<compile_context>
chip_gen: v6e
topology: v6e:2x2x1
jax: 0.10.0
libtpu: 0.0.40
codegen_flags: <defaults>
</compile_context>

<pallas_src>
import math
import numpy as np
import jax
import jax.numpy as jnp
from jax.experimental import pallas as pl
from jax.experimental.pallas import tpu as pltpu

RESOLUTION = 8            # AdaptiveMaxPool1d(output_size=8)
REPR_SIZE = 32            # representation_size
NUM_CLASSES = 10
OUT_PAD = 128             # lane-dense (padded) output width
BACKBONE_OUT_CHANNELS = 64
CONV_CHANNELS = [256, 128, 64]
KSIZE = 7
PAD = KSIZE // 2          # 3
BN_EPS = 1e-5
FLAT_IN = RESOLUTION * BACKBONE_OUT_CHANNELS   # 512
ROW_BLOCK = 256           # max batch rows per grid step


def _round_up(x, m):
    return (x + m - 1) // m * m


# -----------------------------------------------------------------------------
# Pallas kernel: whole predictor for one block of batch rows.
#   x_ref : (BR, 512)  bf16   -- pooled input, flattened l-major / c-minor
#   w*    : (8*Ci, 8*Co) bf16 -- banded (Toeplitz) conv weights
#   s*,t* : (1, 8*Co)  f32    -- folded BN scale / (BN shift + conv bias), tiled
#   fw1   : (512, 32)  bf16, fb1 (1, 32) f32
#   fw2   : (32, 128)  bf16 (zero-padded), fb2 (1, 128) f32 (zero-padded)
#   o_ref : (BR, 128)  f32
# -----------------------------------------------------------------------------
def predictor_kernel(x_ref,
                     w1_ref, s1_ref, t1_ref,
                     w2_ref, s2_ref, t2_ref,
                     w3_ref, s3_ref, t3_ref,
                     fw1_ref, fb1_ref, fw2_ref, fb2_ref,
                     o_ref):
    def mm(a, w_ref):
        return jnp.dot(a, w_ref[...], preferred_element_type=jnp.float32)

    x = x_ref[...]                                                     # bf16
    # conv1 + BN + ReLU  (banded matmul == Conv1d(k=7, pad=3) on length 8)
    y = jnp.maximum(mm(x, w1_ref) * s1_ref[...] + t1_ref[...], 0.0)    # (BR, 2048)
    # conv2 + BN + ReLU
    y = jnp.maximum(mm(y.astype(jnp.bfloat16), w2_ref) * s2_ref[...]
                    + t2_ref[...], 0.0)                                # (BR, 1024)
    # conv3 + BN + ReLU
    y = jnp.maximum(mm(y.astype(jnp.bfloat16), w3_ref) * s3_ref[...]
                    + t3_ref[...], 0.0)                                # (BR, 512)
    # Flatten is implicit (already lane-flattened) -> Linear + ReLU + Linear
    h = jnp.maximum(mm(y.astype(jnp.bfloat16), fw1_ref) + fb1_ref[...], 0.0)
    o_ref[...] = mm(h.astype(jnp.bfloat16), fw2_ref) + fb2_ref[...]    # (BR, 128)


# -----------------------------------------------------------------------------
# Wrapper: pool all items (cheap XLA), flatten+stack rows, ONE pallas_call.
# -----------------------------------------------------------------------------
def predictor_forward_batched(features_ncl, kparams):
    pooled = []
    for x in features_ncl:
        N, C, L = x.shape
        assert C == BACKBONE_OUT_CHANNELS
        # TODO(synk): general AdaptiveMaxPool1d with uneven bins (L % 8 != 0).
        assert L % RESOLUTION == 0
        p = jnp.max(x.reshape(N, C, RESOLUTION, L // RESOLUTION), axis=-1)  # (N,C,8)
        # flatten l-major / c-minor to match the banded weight layout
        pooled.append(jnp.transpose(p, (0, 2, 1)).reshape(N, FLAT_IN))
    I = len(pooled)
    N = pooled[0].shape[0]
    xs = jnp.concatenate(pooled, axis=0).astype(jnp.bfloat16)               # (B, 512)
    B = I * N

    BR = min(ROW_BLOCK, _round_up(B, 8))
    Bp = _round_up(B, BR)
    if Bp != B:
        xs = jnp.pad(xs, ((0, Bp - B), (0, 0)))
    grid = (Bp // BR,)

    def resident(a):  # full-array block, constant index map -> VMEM-resident
        nd = a.ndim
        return pl.BlockSpec(a.shape, lambda i: (0,) * nd)

    in_specs = [pl.BlockSpec((BR, FLAT_IN), lambda i: (i, 0))]
    in_specs += [resident(a) for a in kparams]

    conv_dims = list(zip([BACKBONE_OUT_CHANNELS] + CONV_CHANNELS[:-1], CONV_CHANNELS))
    flops = 2 * Bp * sum((RESOLUTION * ci) * (RESOLUTION * co) for ci, co in conv_dims)
    flops += 2 * Bp * (RESOLUTION * CONV_CHANNELS[-1] * REPR_SIZE + REPR_SIZE * OUT_PAD)
    bytes_accessed = Bp * FLAT_IN * 2 + Bp * OUT_PAD * 4
    bytes_accessed += sum(int(np.prod(a.shape)) * a.dtype.itemsize for a in kparams)

    out = pl.pallas_call(
        predictor_kernel,
        grid=grid,
        out_shape=jax.ShapeDtypeStruct((Bp, OUT_PAD), jnp.float32),
        in_specs=in_specs,
        out_specs=pl.BlockSpec((BR, OUT_PAD), lambda i: (i, 0)),
        compiler_params=pltpu.CompilerParams(
            dimension_semantics=("parallel",),
            vmem_limit_bytes=48 * 1024 * 1024),
        cost_estimate=pl.CostEstimate(flops=int(flops), transcendentals=0,
                                      bytes_accessed=int(bytes_accessed)),
    )(xs, *kparams)

    return [out[i * N:(i + 1) * N, :NUM_CLASSES] for i in range(I)]


# -----------------------------------------------------------------------------
# Deterministic parameter init (mirrors the PyTorch module's __init__).
# -----------------------------------------------------------------------------
def init_params(key):
    convs = []
    prev = BACKBONE_OUT_CHANNELS
    for co in CONV_CHANNELS:
        key, k1 = jax.random.split(key)
        std = math.sqrt(2.0 / (co * KSIZE))   # kaiming_normal_, fan_out, relu
        w = jax.random.normal(k1, (co, prev, KSIZE), jnp.float32) * std
        b = jnp.zeros((co,), jnp.float32)
        gamma = jnp.ones((co,), jnp.float32)
        beta = jnp.zeros((co,), jnp.float32)
        mean = jnp.zeros((co,), jnp.float32)
        var = jnp.ones((co,), jnp.float32)
        convs.append((w, b, gamma, beta, mean, var))
        prev = co
    key, k1, k2, k3, k4 = jax.random.split(key, 5)
    fan1 = prev * RESOLUTION
    bound1 = 1.0 / math.sqrt(fan1)
    fc1_w = jax.random.uniform(k1, (REPR_SIZE, fan1), jnp.float32, -bound1, bound1)
    fc1_b = jax.random.uniform(k2, (REPR_SIZE,), jnp.float32, -bound1, bound1)
    bound2 = 1.0 / math.sqrt(REPR_SIZE)
    fc2_w = jax.random.uniform(k3, (NUM_CLASSES, REPR_SIZE), jnp.float32, -bound2, bound2)
    fc2_b = jax.random.uniform(k4, (NUM_CLASSES,), jnp.float32, -bound2, bound2)
    return convs, (fc1_w, fc1_b, fc2_w, fc2_b)


def _make_banded(w):
    """(Co, Ci, K) conv weight -> (8*Ci, 8*Co) banded matrix implementing
    Conv1d(kernel=7, padding=3) on a length-8 sequence in flattened
    (l-major, c-minor) layout."""
    w = np.asarray(w)
    co, ci, k = w.shape
    wb = np.zeros((RESOLUTION * ci, RESOLUTION * co), np.float32)
    for lo in range(RESOLUTION):
        for kk in range(k):
            li = lo + kk - PAD
            if 0 <= li < RESOLUTION:
                wb[li * ci:(li + 1) * ci, lo * co:(lo + 1) * co] = w[:, :, kk].T
    return wb


def to_kernel_params(convs, fcs):
    """PyTorch-layout params -> kernel layout (banded bf16 weights, folded BN+bias)."""
    kp = []
    for (w, b, gamma, beta, mean, var) in convs:
        scale = gamma / jnp.sqrt(var + BN_EPS)            # eval-mode BN
        shift = beta + (b - mean) * scale                 # conv bias folded in
        kp += [jnp.asarray(_make_banded(w), jnp.bfloat16),
               jnp.tile(scale, RESOLUTION)[None, :],      # (1, 8*Co)
               jnp.tile(shift, RESOLUTION)[None, :]]
    fc1_w, fc1_b, fc2_w, fc2_b = fcs
    # fc1 columns: torch flatten index c*8+l  ->  kernel (l-major) index l*64+c
    c_last = CONV_CHANNELS[-1]
    fw1 = jnp.transpose(fc1_w.reshape(REPR_SIZE, c_last, RESOLUTION),
                        (2, 1, 0)).reshape(c_last * RESOLUTION, REPR_SIZE)
    # fc2 zero-padded to 128 output lanes (wrapper slices back to 10)
    fw2 = jnp.zeros((REPR_SIZE, OUT_PAD), jnp.float32).at[:, :NUM_CLASSES].set(fc2_w.T)
    fb2 = jnp.zeros((OUT_PAD,), jnp.float32).at[:NUM_CLASSES].set(fc2_b)
    kp += [fw1.astype(jnp.bfloat16), fc1_b[None, :],
           fw2.astype(jnp.bfloat16), fb2[None, :]]
    return tuple(kp)


# -----------------------------------------------------------------------------
# Stand-in backbone (glue): multi-scale NCL features, out_channels = 64.
# -----------------------------------------------------------------------------
def backbone_forward(Xs):
    f1 = Xs                                        # (N, 64, 32)
    f2 = 0.5 * (Xs[:, :, ::2] + Xs[:, :, 1::2])    # (N, 64, 16)
    return [f1, f2]


@jax.jit
def backbone_net_forward(Xs, kernel_params):
    return predictor_forward_batched(backbone_forward(Xs), kernel_params)


# -----------------------------------------------------------------------------
# Pure-JAX reference of the PyTorch graph (for a sanity check).
# -----------------------------------------------------------------------------
def predictor_ref(x_ncl, convs, fcs):
    N, C, L = x_ncl.shape
    y = jnp.max(x_ncl.reshape(N, C, RESOLUTION, L // RESOLUTION), axis=-1)
    for (w, b, gamma, beta, mean, var) in convs:
        y = jax.lax.conv_general_dilated(
            y, w, window_strides=(1,), padding=[(PAD, PAD)],
            dimension_numbers=('NCH', 'OIH', 'NCH'))
        y = y + b[None, :, None]
        y = (y - mean[None, :, None]) / jnp.sqrt(var[None, :, None] + BN_EPS)
        y = y * gamma[None, :, None] + beta[None, :, None]
        y = jnp.maximum(y, 0.0)
    fc1_w, fc1_b, fc2_w, fc2_b = fcs
    flat = y.reshape(N, -1)
    h = jnp.maximum(flat @ fc1_w.T + fc1_b, 0.0)
    return h @ fc2_w.T + fc2_b


if __name__ == "__main__":
    key = jax.random.PRNGKey(0)
    key, kx = jax.random.split(key)
    Xs = jax.random.normal(kx, (2, BACKBONE_OUT_CHANNELS, 32), jnp.float32)

    convs, fcs = init_params(key)
    kparams = to_kernel_params(convs, fcs)

    scores = backbone_net_forward(Xs, kparams)
    scores = [jax.block_until_ready(s) for s in scores]

    # sanity check against the pure-JAX f32 reference (eval-mode BatchNorm);
    # tolerance absorbs the bf16 MXU inputs.
    for item, s in zip(backbone_forward(Xs), scores):
        ref = predictor_ref(item, convs, fcs)
        np.testing.assert_allclose(np.asarray(s), np.asarray(ref),
                                   rtol=2e-2, atol=2e-2)

    print("KERNEL_OK")
</pallas_src>

<mosaic_0001>
module attributes {stable_mosaic.version = 11 : i64} {
  func.func @predictor_kernel(%arg0: i32, %arg1: memref<8x512xbf16, #tpu.memory_space<vmem>>, %arg2: memref<512x2048xbf16, #tpu.memory_space<vmem>>, %arg3: memref<1x2048xf32, #tpu.memory_space<vmem>>, %arg4: memref<1x2048xf32, #tpu.memory_space<vmem>>, %arg5: memref<2048x1024xbf16, #tpu.memory_space<vmem>>, %arg6: memref<1x1024xf32, #tpu.memory_space<vmem>>, %arg7: memref<1x1024xf32, #tpu.memory_space<vmem>>, %arg8: memref<1024x512xbf16, #tpu.memory_space<vmem>>, %arg9: memref<1x512xf32, #tpu.memory_space<vmem>>, %arg10: memref<1x512xf32, #tpu.memory_space<vmem>>, %arg11: memref<512x32xbf16, #tpu.memory_space<vmem>>, %arg12: memref<1x32xf32, #tpu.memory_space<vmem>>, %arg13: memref<32x128xbf16, #tpu.memory_space<vmem>>, %arg14: memref<1x128xf32, #tpu.memory_space<vmem>>, %arg15: memref<8x128xf32, #tpu.memory_space<vmem>>) attributes {dimension_semantics = [#tpu.dimension_semantics<parallel>], iteration_bounds = array<i64: 1>, scalar_prefetch = 0 : i64, scratch_operands = 0 : i64, tpu.core_type = #tpu.core_type<tc>, window_params = [{transform_indices = @transform_0, window_bounds = array<i64: 8, 512>}, {pipeline_mode = #tpu.pipeline_mode<synchronous>, transform_indices = @transform_1, window_bounds = array<i64: 512, 2048>}, {pipeline_mode = #tpu.pipeline_mode<synchronous>, transform_indices = @transform_2, window_bounds = array<i64: 1, 2048>}, {pipeline_mode = #tpu.pipeline_mode<synchronous>, transform_indices = @transform_3, window_bounds = array<i64: 1, 2048>}, {pipeline_mode = #tpu.pipeline_mode<synchronous>, transform_indices = @transform_4, window_bounds = array<i64: 2048, 1024>}, {pipeline_mode = #tpu.pipeline_mode<synchronous>, transform_indices = @transform_5, window_bounds = array<i64: 1, 1024>}, {pipeline_mode = #tpu.pipeline_mode<synchronous>, transform_indices = @transform_6, window_bounds = array<i64: 1, 1024>}, {pipeline_mode = #tpu.pipeline_mode<synchronous>, transform_indices = @transform_7, window_bounds = array<i64: 1024, 512>}, {pipeline_mode = #tpu.pipeline_mode<synchronous>, transform_indices = @transform_8, window_bounds = array<i64: 1, 512>}, {pipeline_mode = #tpu.pipeline_mode<synchronous>, transform_indices = @transform_9, window_bounds = array<i64: 1, 512>}, {pipeline_mode = #tpu.pipeline_mode<synchronous>, transform_indices = @transform_10, window_bounds = array<i64: 512, 32>}, {pipeline_mode = #tpu.pipeline_mode<synchronous>, transform_indices = @transform_11, window_bounds = array<i64: 1, 32>}, {pipeline_mode = #tpu.pipeline_mode<synchronous>, transform_indices = @transform_12, window_bounds = array<i64: 32, 128>}, {pipeline_mode = #tpu.pipeline_mode<synchronous>, transform_indices = @transform_13, window_bounds = array<i64: 1, 128>}, {transform_indices = @transform_14, window_bounds = array<i64: 8, 128>}]} {
    %c0 = arith.constant 0 : index
    %c0_0 = arith.constant 0 : index
    %0 = vector.load %arg1[%c0, %c0_0] : memref<8x512xbf16, #tpu.memory_space<vmem>>, vector<8x512xbf16>
    %c0_1 = arith.constant 0 : index
    %c0_2 = arith.constant 0 : index
    %1 = vector.load %arg2[%c0_1, %c0_2] : memref<512x2048xbf16, #tpu.memory_space<vmem>>, vector<512x2048xbf16>
    %cst = arith.constant dense<0.000000e+00> : vector<8x2048xf32>
    %2 = tpu.matmul %0, %1, %cst {dimension_numbers = #tpu.dot_dimension_numbers<[1], [0], [0], [1], [0, 0, 1, 1], [], []>} : vector<8x512xbf16>, vector<512x2048xbf16>, vector<8x2048xf32> -> vector<8x2048xf32>
    %c0_3 = arith.constant 0 : index
    %c0_4 = arith.constant 0 : index
    %3 = vector.load %arg3[%c0_3, %c0_4] : memref<1x2048xf32, #tpu.memory_space<vmem>>, vector<1x2048xf32>
    %4 = vector.broadcast %3 : vector<1x2048xf32> to vector<8x2048xf32>
    %5 = arith.mulf %2, %4 : vector<8x2048xf32>
    %c0_5 = arith.constant 0 : index
    %c0_6 = arith.constant 0 : index
    %6 = vector.load %arg4[%c0_5, %c0_6] : memref<1x2048xf32, #tpu.memory_space<vmem>>, vector<1x2048xf32>
    %7 = vector.broadcast %6 : vector<1x2048xf32> to vector<8x2048xf32>
    %8 = arith.addf %5, %7 : vector<8x2048xf32>
    %cst_7 = arith.constant 0.000000e+00 : f32
    %9 = vector.broadcast %cst_7 : f32 to vector<8x2048xf32>
    %10 = arith.maximumf %8, %9 : vector<8x2048xf32>
    %11 = arith.truncf %10 : vector<8x2048xf32> to vector<8x2048xbf16>
    %c0_8 = arith.constant 0 : index
    %c0_9 = arith.constant 0 : index
    %12 = vector.load %arg5[%c0_8, %c0_9] : memref<2048x1024xbf16, #tpu.memory_space<vmem>>, vector<2048x1024xbf16>
    %cst_10 = arith.constant dense<0.000000e+00> : vector<8x1024xf32>
    %13 = tpu.matmul %11, %12, %cst_10 {dimension_numbers = #tpu.dot_dimension_numbers<[1], [0], [0], [1], [0, 0, 1, 1], [], []>} : vector<8x2048xbf16>, vector<2048x1024xbf16>, vector<8x1024xf32> -> vector<8x1024xf32>
    %c0_11 = arith.constant 0 : index
    %c0_12 = arith.constant 0 : index
    %14 = vector.load %arg6[%c0_11, %c0_12] : memref<1x1024xf32, #tpu.memory_space<vmem>>, vector<1x1024xf32>
    %15 = vector.broadcast %14 : vector<1x1024xf32> to vector<8x1024xf32>
    %16 = arith.mulf %13, %15 : vector<8x1024xf32>
    %c0_13 = arith.constant 0 : index
    %c0_14 = arith.constant 0 : index
    %17 = vector.load %arg7[%c0_13, %c0_14] : memref<1x1024xf32, #tpu.memory_space<vmem>>, vector<1x1024xf32>
    %18 = vector.broadcast %17 : vector<1x1024xf32> to vector<8x1024xf32>
    %19 = arith.addf %16, %18 : vector<8x1024xf32>
    %cst_15 = arith.constant 0.000000e+00 : f32
    %20 = vector.broadcast %cst_15 : f32 to vector<8x1024xf32>
    %21 = arith.maximumf %19, %20 : vector<8x1024xf32>
    %22 = arith.truncf %21 : vector<8x1024xf32> to vector<8x1024xbf16>
    %c0_16 = arith.constant 0 : index
    %c0_17 = arith.constant 0 : index
    %23 = vector.load %arg8[%c0_16, %c0_17] : memref<1024x512xbf16, #tpu.memory_space<vmem>>, vector<1024x512xbf16>
    %cst_18 = arith.constant dense<0.000000e+00> : vector<8x512xf32>
    %24 = tpu.matmul %22, %23, %cst_18 {dimension_numbers = #tpu.dot_dimension_numbers<[1], [0], [0], [1], [0, 0, 1, 1], [], []>} : vector<8x1024xbf16>, vector<1024x512xbf16>, vector<8x512xf32> -> vector<8x512xf32>
    %c0_19 = arith.constant 0 : index
    %c0_20 = arith.constant 0 : index
    %25 = vector.load %arg9[%c0_19, %c0_20] : memref<1x512xf32, #tpu.memory_space<vmem>>, vector<1x512xf32>
    %26 = vector.broadcast %25 : vector<1x512xf32> to vector<8x512xf32>
    %27 = arith.mulf %24, %26 : vector<8x512xf32>
    %c0_21 = arith.constant 0 : index
    %c0_22 = arith.constant 0 : index
    %28 = vector.load %arg10[%c0_21, %c0_22] : memref<1x512xf32, #tpu.memory_space<vmem>>, vector<1x512xf32>
    %29 = vector.broadcast %28 : vector<1x512xf32> to vector<8x512xf32>
    %30 = arith.addf %27, %29 : vector<8x512xf32>
    %cst_23 = arith.constant 0.000000e+00 : f32
    %31 = vector.broadcast %cst_23 : f32 to vector<8x512xf32>
    %32 = arith.maximumf %30, %31 : vector<8x512xf32>
    %33 = arith.truncf %32 : vector<8x512xf32> to vector<8x512xbf16>
    %c0_24 = arith.constant 0 : index
    %c0_25 = arith.constant 0 : index
    %34 = vector.load %arg11[%c0_24, %c0_25] : memref<512x32xbf16, #tpu.memory_space<vmem>>, vector<512x32xbf16>
    %cst_26 = arith.constant dense<0.000000e+00> : vector<8x32xf32>
    %35 = tpu.matmul %33, %34, %cst_26 {dimension_numbers = #tpu.dot_dimension_numbers<[1], [0], [0], [1], [0, 0, 1, 1], [], []>} : vector<8x512xbf16>, vector<512x32xbf16>, vector<8x32xf32> -> vector<8x32xf32>
    %c0_27 = arith.constant 0 : index
    %c0_28 = arith.constant 0 : index
    %36 = vector.load %arg12[%c0_27, %c0_28] : memref<1x32xf32, #tpu.memory_space<vmem>>, vector<1x32xf32>
    %37 = vector.broadcast %36 : vector<1x32xf32> to vector<8x32xf32>
    %38 = arith.addf %35, %37 : vector<8x32xf32>
    %cst_29 = arith.constant 0.000000e+00 : f32
    %39 = vector.broadcast %cst_29 : f32 to vector<8x32xf32>
    %40 = arith.maximumf %38, %39 : vector<8x32xf32>
    %41 = arith.truncf %40 : vector<8x32xf32> to vector<8x32xbf16>
    %c0_30 = arith.constant 0 : index
    %c0_31 = arith.constant 0 : index
    %42 = vector.load %arg13[%c0_30, %c0_31] : memref<32x128xbf16, #tpu.memory_space<vmem>>, vector<32x128xbf16>
    %cst_32 = arith.constant dense<0.000000e+00> : vector<8x128xf32>
    %43 = tpu.matmul %41, %42, %cst_32 {dimension_numbers = #tpu.dot_dimension_numbers<[1], [0], [0], [1], [0, 0, 1, 1], [], []>} : vector<8x32xbf16>, vector<32x128xbf16>, vector<8x128xf32> -> vector<8x128xf32>
    %c0_33 = arith.constant 0 : index
    %c0_34 = arith.constant 0 : index
    %44 = vector.load %arg14[%c0_33, %c0_34] : memref<1x128xf32, #tpu.memory_space<vmem>>, vector<1x128xf32>
    %45 = vector.broadcast %44 : vector<1x128xf32> to vector<8x128xf32>
    %46 = arith.addf %43, %45 : vector<8x128xf32>
    %c0_35 = arith.constant 0 : index
    %c0_36 = arith.constant 0 : index
    %47 = vector.load %arg15[%c0_35, %c0_36] : memref<8x128xf32, #tpu.memory_space<vmem>>, vector<8x128xf32>
    tpu.vector_store %arg15[%c0_35, %c0_36], %46 {strides = array<i32>} : memref<8x128xf32, #tpu.memory_space<vmem>>, vector<8x128xf32>,
    return
  }
  func.func @transform_0(%arg0: i32) -> (i32, i32) {
    %c0_i32 = arith.constant 0 : i32
    %c0_i32_0 = arith.constant 0 : i32
    return %arg0, %c0_i32 : i32, i32
  }
  func.func @transform_1(%arg0: i32) -> (i32, i32) {
    %c0_i32 = arith.constant 0 : i32
    %c0_i32_0 = arith.constant 0 : i32
    %c0_i32_1 = arith.constant 0 : i32
    return %c0_i32, %c0_i32_0 : i32, i32
  }
  func.func @transform_2(%arg0: i32) -> (i32, i32) {
    %c0_i32 = arith.constant 0 : i32
    %c0_i32_0 = arith.constant 0 : i32
    %c0_i32_1 = arith.constant 0 : i32
    return %c0_i32, %c0_i32_0 : i32, i32
  }
  func.func @transform_3(%arg0: i32) -> (i32, i32) {
    %c0_i32 = arith.constant 0 : i32
    %c0_i32_0 = arith.constant 0 : i32
    %c0_i32_1 = arith.constant 0 : i32
    return %c0_i32, %c0_i32_0 : i32, i32
  }
  func.func @transform_4(%arg0: i32) -> (i32, i32) {
    %c0_i32 = arith.constant 0 : i32
    %c0_i32_0 = arith.constant 0 : i32
    %c0_i32_1 = arith.constant 0 : i32
    return %c0_i32, %c0_i32_0 : i32, i32
  }
  func.func @transform_5(%arg0: i32) -> (i32, i32) {
    %c0_i32 = arith.constant 0 : i32
    %c0_i32_0 = arith.constant 0 : i32
    %c0_i32_1 = arith.constant 0 : i32
    return %c0_i32, %c0_i32_0 : i32, i32
  }
  func.func @transform_6(%arg0: i32) -> (i32, i32) {
    %c0_i32 = arith.constant 0 : i32
    %c0_i32_0 = arith.constant 0 : i32
    %c0_i32_1 = arith.constant 0 : i32
    return %c0_i32, %c0_i32_0 : i32, i32
  }
  func.func @transform_7(%arg0: i32) -> (i32, i32) {
    %c0_i32 = arith.constant 0 : i32
    %c0_i32_0 = arith.constant 0 : i32
    %c0_i32_1 = arith.constant 0 : i32
    return %c0_i32, %c0_i32_0 : i32, i32
  }
  func.func @transform_8(%arg0: i32) -> (i32, i32) {
    %c0_i32 = arith.constant 0 : i32
    %c0_i32_0 = arith.constant 0 : i32
    %c0_i32_1 = arith.constant 0 : i32
    return %c0_i32, %c0_i32_0 : i32, i32
  }
  func.func @transform_9(%arg0: i32) -> (i32, i32) {
    %c0_i32 = arith.constant 0 : i32
    %c0_i32_0 = arith.constant 0 : i32
    %c0_i32_1 = arith.constant 0 : i32
    return %c0_i32, %c0_i32_0 : i32, i32
  }
  func.func @transform_10(%arg0: i32) -> (i32, i32) {
    %c0_i32 = arith.constant 0 : i32
    %c0_i32_0 = arith.constant 0 : i32
    %c0_i32_1 = arith.constant 0 : i32
    return %c0_i32, %c0_i32_0 : i32, i32
  }
  func.func @transform_11(%arg0: i32) -> (i32, i32) {
    %c0_i32 = arith.constant 0 : i32
    %c0_i32_0 = arith.constant 0 : i32
    %c0_i32_1 = arith.constant 0 : i32
    return %c0_i32, %c0_i32_0 : i32, i32
  }
  func.func @transform_12(%arg0: i32) -> (i32, i32) {
    %c0_i32 = arith.constant 0 : i32
    %c0_i32_0 = arith.constant 0 : i32
    %c0_i32_1 = arith.constant 0 : i32
    return %c0_i32, %c0_i32_0 : i32, i32
  }
  func.func @transform_13(%arg0: i32) -> (i32, i32) {
    %c0_i32 = arith.constant 0 : i32
    %c0_i32_0 = arith.constant 0 : i32
    %c0_i32_1 = arith.constant 0 : i32
    return %c0_i32, %c0_i32_0 : i32, i32
  }
  func.func @transform_14(%arg0: i32) -> (i32, i32) {
    %c0_i32 = arith.constant 0 : i32
    %c0_i32_0 = arith.constant 0 : i32
    return %arg0, %c0_i32 : i32, i32
  }
}

</mosaic_0001>

<bundles_post_ra>
// kernel: backbone_net_forward.1
= control target key start
LH: loop header
LB: loop body
LE: loop exit
PB: predicated region body
PF: predicated region fallthrough
CT: control target
= control target key end

     0   :  { %19 = vsyncpa [#allocation3], 0  ;;  %s17391_s0 = inlined_call_operand.vmem [shape: bf16[8,512], index: 0, kind: input, shape index: {}]   ;;  %s17392_s1 = inlined_call_operand.hbm [shape: bf16[512,2048], index: 1, kind: input, shape index: {}]   ;;  %s17393_s2 = inlined_call_operand.hbm [shape: f32[1,2048], index: 2, kind: input, shape index: {}]   ;;  %s17394_s3 = inlined_call_operand.hbm [shape: f32[1,2048], index: 3, kind: input, shape index: {}]   ;;  %s17395_s4 = inlined_call_operand.hbm [shape: bf16[2048,1024], index: 4, kind: input, shape index: {}]   ;;  %s17396_s5 = inlined_call_operand.hbm [shape: f32[1,1024], index: 5, kind: input, shape index: {}]   ;;  %s17397_s6 = inlined_call_operand.hbm [shape: f32[1,1024], index: 6, kind: input, shape index: {}]   ;;  %s17398_s7 = inlined_call_operand.hbm [shape: bf16[1024,512], index: 7, kind: input, shape index: {}]   ;;  %s17399_s8 = inlined_call_operand.hbm [shape: f32[1,512], index: 8, kind: input, shape index: {}]   ;;  %s17400_s9 = inlined_call_operand.hbm [shape: f32[1,512], index: 9, kind: input, shape index: {}]   ;;  %s17401_s10 = inlined_call_operand.vmem [shape: bf16[512,32], index: 10, kind: input, shape index: {}]   ;;  %s17402_s11 = inlined_call_operand.hbm [shape: f32[1,32], index: 11, kind: input, shape index: {}]   ;;  %s17403_s12 = inlined_call_operand.hbm [shape: bf16[32,128], index: 12, kind: input, shape index: {}]   ;;  %s17404_s13 = inlined_call_operand.hbm [shape: f32[1,128], index: 13, kind: input, shape index: {}]   ;;  %s17405_s14 = inlined_call_operand.vmem [shape: f32[8,128], index: 14, kind: output, shape index: {}]  }
   0x1   :  { %20 = vsyncpa [#allocation5], 0 }
   0x2   :  { %21 = vsyncpa [#allocation8], 0 }
   0x3   :  { %22 = vsyncpa [#allocation11], 0 }
   0x4   :  { %23 = vsyncpa [#allocation14], 0 }
   0x5   :  { %24 = vsyncpa [#allocation17], 0 }
   0x6   :  { %25 = vsyncpa [#allocation20], 0  ;;  %s16676_s29 = smov [#allocation4]   ;;  %s16677_s15 = smov [#allocation7]  }
   0x7   :  { %s46_s30 = sshll.u32 %s16676_s29, 4  ;;  %s65_s16 = sshll.u32 %s16677_s15, 4  ;;  %s47_s30 = int_to_ptr.vmem [resolvable:$true] %s46_s30  ;;  %s66_s16 = int_to_ptr.vmem [resolvable:$true] %s65_s16 }
   0x8   :  { %s16430_s17 = scalar_lea.vmem %s47_s30, 256  ;;  %p16435_p1 = scmp.lt.s32.totalorder %s47_s30, %s47_s30 }
   0x9   :  { %p16431_p0 = scmp.ne.s32.totalorder %s47_s30, %s16430_s17  ;;  %p16436_p2 = scmp.lt.s32.totalorder %s16430_s17, %s16430_s17 }
   0xb   :  { %p16437_p3 = por %p16436_p2, %p16435_p1 }
   0xd   :  { %p16438_p4 = pnand %p16437_p3, %p16431_p0 }
   0xf   :  { %16441 = shalt.err (!%p16438_p4)
}
  0x10   :  { %49 = dma.hbm_to_vmem [thread:$0]  %s17393_s2, 256, %s47_s30, [#allocation5]  }
  0x11   :  { %s16450_s20 = scalar_lea.vmem %s66_s16, 131072  ;;  %p16455_p6 = scmp.lt.s32.totalorder %s66_s16, %s66_s16 }
  0x12   :  { %p16451_p5 = scmp.ne.s32.totalorder %s66_s16, %s16450_s20  ;;  %p16456_p7 = scmp.lt.s32.totalorder %s16450_s20, %s16450_s20 }
  0x14   :  { %p16457_p8 = por %p16456_p7, %p16455_p6 }
  0x16   :  { %p16458_p9 = pnand %p16457_p8, %p16451_p5 }
  0x18   :  { %16461 = shalt.err (!%p16458_p9)
}
  0x19   :  { %s16678_s21 = smov 512   ;;  %s16679_s22 = smov 32  }
  0x1a   :  { %71 = dma.hbm_to_vmem [thread:$0]  %s17395_s4, 131072, %s66_s16, [#allocation8], %s16678_s21, %s16678_s21, %s16679_s22  }
  0x1b   :  { %s16680_s25 = smov [#allocation10]   ;;  %s16681_s27 = smov [#allocation13]  }
  0x1c   :  { %s88_s26 = sshll.u32 %s16680_s25, 4  ;;  %s110_s28 = sshll.u32 %s16681_s27, 4  ;;  %s89_s26 = int_to_ptr.vmem [resolvable:$true] %s88_s26  ;;  %s111_s28 = int_to_ptr.vmem [resolvable:$true] %s110_s28 }
  0x1d   :  { %s16470_s2 = scalar_lea.vmem %s89_s26, 128  ;;  %p16475_p11 = scmp.lt.s32.totalorder %s89_s26, %s89_s26 }
  0x1e   :  { %p16471_p10 = scmp.ne.s32.totalorder %s89_s26, %s16470_s2  ;;  %p16476_p12 = scmp.lt.s32.totalorder %s16470_s2, %s16470_s2 }
  0x20   :  { %p16477_p13 = por %p16476_p12, %p16475_p11 }
  0x22   :  { %p16478_p0 = pnand %p16477_p13, %p16471_p10 }
  0x24   :  { %16481 = shalt.err (!%p16478_p0)
}
  0x25   :  { %91 = dma.hbm_to_vmem [thread:$0]  %s17397_s6, 128, %s89_s26, [#allocation11]  }
  0x26   :  { %s16490_s15 = scalar_lea.vmem %s111_s28, 64  ;;  %p16495_p2 = scmp.lt.s32.totalorder %s111_s28, %s111_s28 }
  0x27   :  { %p16491_p1 = scmp.ne.s32.totalorder %s111_s28, %s16490_s15  ;;  %p16496_p3 = scmp.lt.s32.totalorder %s16490_s15, %s16490_s15 }
  0x29   :  { %p16497_p4 = por %p16496_p3, %p16495_p2 }
  0x2b   :  { %p16498_p5 = pnand %p16497_p4, %p16491_p1 }
  0x2d   :  { %16501 = shalt.err (!%p16498_p5)
}
  0x2e   :  { %113 = dma.hbm_to_vmem [thread:$0]  %s17399_s8, 64, %s111_s28, [#allocation14]  }
  0x2f   :  { %s16682_s17 = smov [#allocation16]   ;;  %s16683_s19 = smov [#allocation2]  }
  0x30   :  { %s132_s18 = sshll.u32 %s16682_s17, 4  ;;  %s33_s20 = sshll.u32 %s16683_s19, 4  ;;  %s133_s18 = int_to_ptr.vmem [resolvable:$true] %s132_s18  ;;  %s34_s20 = int_to_ptr.vmem [resolvable:$true] %s33_s20 }
  0x31   :  { %s16510_s21 = scalar_lea.vmem %s133_s18, 16  ;;  %s16514_s6 = scalar_lea.vmem %s133_s18, 32 }
  0x32   :  { %p16511_p6 = scmp.ne.s32.totalorder %s133_s18, %s16510_s21  ;;  %p16515_p7 = scmp.lt.s32.totalorder %s133_s18, %s133_s18 }
  0x33   :  { %p16516_p8 = scmp.lt.s32.totalorder %s16514_s6, %s16510_s21 }
  0x35   :  { %p16517_p9 = por %p16516_p8, %p16515_p7 }
  0x37   :  { %p16518_p10 = pnand %p16517_p9, %p16511_p6 }
  0x39   :  { %16521 = shalt.err (!%p16518_p10)
}
  0x3a   :  { %135 = dma.hbm_to_vmem [thread:$0]  %s17402_s11, 16, %s133_s18, [#allocation17]  }
  0x3b   :  { %s16530_s24 = scalar_lea.vmem %s34_s20, 65536  ;;  %p16535_p12 = scmp.lt.s32.totalorder %s34_s20, %s34_s20 }
  0x3c   :  { %p16531_p11 = scmp.ne.s32.totalorder %s34_s20, %s16530_s24  ;;  %p16536_p13 = scmp.lt.s32.totalorder %s16530_s24, %s16530_s24 }
  0x3e   :  { %p16537_p0 = por %p16536_p13, %p16535_p12 }
  0x40   :  { %p16538_p1 = pnand %p16537_p0, %p16531_p11 }
  0x42   :  { %16541 = shalt.err (!%p16538_p1)
}
  0x43   :  { %s16684_s8 = smov 1024   ;;  %s16685_s25 = smov 64  }
  0x44   :  { %39 = dma.hbm_to_vmem [thread:$0]  %s17392_s1, 65536, %s34_s20, [#allocation3], %s16684_s8, %s16684_s8, %s16685_s25  }
  0x45   :  { %s16686_s28 = smov [#allocation6]   ;;  %s16687_s29 = smov [#allocation9]  }
  0x46   :  { %s56_s2 = sshll.u32 %s16686_s28, 4  ;;  %s78_s30 = sshll.u32 %s16687_s29, 4  ;;  %s57_s2 = int_to_ptr.vmem [resolvable:$true] %s56_s2  ;;  %s79_s30 = int_to_ptr.vmem [resolvable:$true] %s78_s30 }
  0x47   :  { %s16550_s11 = scalar_lea.vmem %s57_s2, 256  ;;  %p16555_p3 = scmp.lt.s32.totalorder %s57_s2, %s57_s2 }
  0x48   :  { %p16551_p2 = scmp.ne.s32.totalorder %s57_s2, %s16550_s11  ;;  %p16556_p4 = scmp.lt.s32.totalorder %s16550_s11, %s16550_s11 }
  0x4a   :  { %p16557_p5 = por %p16556_p4, %p16555_p3 }
  0x4c   :  { %p16558_p6 = pnand %p16557_p5, %p16551_p2 }
  0x4e   :  { %16561 = shalt.err (!%p16558_p6)
}
  0x4f   :  { %59 = dma.hbm_to_vmem [thread:$0]  %s17394_s3, 256, %s57_s2, [#allocation5]  }
  0x50   :  { %s16570_s16 = scalar_lea.vmem %s79_s30, 128  ;;  %p16575_p8 = scmp.lt.s32.totalorder %s79_s30, %s79_s30 }
  0x51   :  { %p16571_p7 = scmp.ne.s32.totalorder %s79_s30, %s16570_s16  ;;  %p16576_p9 = scmp.lt.s32.totalorder %s16570_s16, %s16570_s16 }
  0x53   :  { %p16577_p10 = por %p16576_p9, %p16575_p8 }
  0x55   :  { %p16578_p11 = pnand %p16577_p10, %p16571_p7 }
  0x57   :  { %16581 = shalt.err (!%p16578_p11)
}
  0x58   :  { %81 = dma.hbm_to_vmem [thread:$0]  %s17396_s5, 128, %s79_s30, [#allocation8]  }
  0x59   :  { %s16688_s18 = smov [#allocation12]  }
  0x5a   :  { %s97_s19 = sshll.u32 %s16688_s18, 4  ;;  %s98_s19 = int_to_ptr.vmem [resolvable:$true] %s97_s19 }
  0x5b   :  { %s16590_s20 = scalar_lea.vmem %s98_s19, 32768  ;;  %p16595_p13 = scmp.lt.s32.totalorder %s98_s19, %s98_s19 }
  0x5c   :  { %p16591_p12 = scmp.ne.s32.totalorder %s98_s19, %s16590_s20  ;;  %p16596_p0 = scmp.lt.s32.totalorder %s16590_s20, %s16590_s20 }
  0x5e   :  { %p16597_p1 = por %p16596_p0, %p16595_p13 }
  0x60   :  { %p16598_p2 = pnand %p16597_p1, %p16591_p12 }
  0x62   :  { %16601 = shalt.err (!%p16598_p2)
}
  0x63   :  { %s16689_s3 = smov 256   ;;  %s16690_s21 = smov 16  }
  0x64   :  { %103 = dma.hbm_to_vmem [thread:$0]  %s17398_s7, 32768, %s98_s19, [#allocation11], %s16689_s3, %s16689_s3, %s16690_s21  }
  0x65   :  { %s16691_s23 = smov [#allocation15]   ;;  %s16692_s5 = smov [#allocation18]  }
  0x66   :  { %s120_s24 = sshll.u32 %s16691_s23, 4  ;;  %s141_s8 = sshll.u32 %s16692_s5, 4  ;;  %s121_s24 = int_to_ptr.vmem [resolvable:$true] %s120_s24  ;;  %s142_s8 = int_to_ptr.vmem [resolvable:$true] %s141_s8 }
  0x67   :  { %s16610_s26 = scalar_lea.vmem %s121_s24, 64  ;;  %p16615_p4 = scmp.lt.s32.totalorder %s121_s24, %s121_s24 }
  0x68   :  { %p16611_p3 = scmp.ne.s32.totalorder %s121_s24, %s16610_s26  ;;  %p16616_p5 = scmp.lt.s32.totalorder %s16610_s26, %s16610_s26 }
  0x6a   :  { %p16617_p6 = por %p16616_p5, %p16615_p4 }
  0x6c   :  { %p16618_p7 = pnand %p16617_p6, %p16611_p3 }
  0x6e   :  { %16621 = shalt.err (!%p16618_p7)
}
  0x6f   :  { %123 = dma.hbm_to_vmem [thread:$0]  %s17400_s9, 64, %s121_s24, [#allocation14]  }
  0x70   :  { %s16630_s2 = scalar_lea.vmem %s142_s8, 256  ;;  %p16635_p9 = scmp.lt.s32.totalorder %s142_s8, %s142_s8 }
  0x71   :  { %p16631_p8 = scmp.ne.s32.totalorder %s142_s8, %s16630_s2  ;;  %p16636_p10 = scmp.lt.s32.totalorder %s16630_s2, %s16630_s2 }
  0x73   :  { %p16637_p11 = por %p16636_p10, %p16635_p9 }
  0x75   :  { %p16638_p12 = pnand %p16637_p11, %p16631_p8 }
  0x77   :  { %16641 = shalt.err (!%p16638_p12)
}
  0x78   :  { %s16693_s7 = smov 4   ;;  %s16694_s11 = smov [#allocation19]  }
  0x79   :  { %147 = dma.hbm_to_vmem [thread:$0]  %s17403_s12, 256, %s142_s8, [#allocation17], %s16685_s25, %s16685_s25, %s16693_s7  }
  0x7a   :  { %s154_s15 = sshll.u32 %s16694_s11, 4  ;;  %s155_s15 = int_to_ptr.vmem [resolvable:$true] %s154_s15 }
  0x7b   :  { %s16650_s4 = scalar_lea.vmem %s155_s15, 16  ;;  %s16654_s9 = scalar_lea.vmem %s155_s15, 32 }
  0x7c   :  { %p16651_p13 = scmp.ne.s32.totalorder %s155_s15, %s16650_s4  ;;  %p16655_p0 = scmp.lt.s32.totalorder %s155_s15, %s155_s15 }
  0x7d   :  { %p16656_p1 = scmp.lt.s32.totalorder %s16654_s9, %s16650_s4 }
  0x7f   :  { %p16657_p2 = por %p16656_p1, %p16655_p0 }
  0x81   :  { %p16658_p3 = pnand %p16657_p2, %p16651_p13 }
  0x83   :  { %16661 = shalt.err (!%p16658_p3)
}
  0x84   :  { %157 = dma.hbm_to_vmem [thread:$0]  %s17404_s13, 16, %s155_s15, [#allocation20]  }
  0x85   :  { %16662 = dma.done.wait [#allocation3], 65536  }
  0x86   :  { %16663 = vsyncadd [#allocation3], 4294901760 }
  0x87   :  { %16664 = dma.done.wait [#allocation5], 512  }
  0x88   :  { %16665 = vsyncadd [#allocation5], 4294966784 }
  0x89   :  { %16666 = dma.done.wait [#allocation8], 131200  }
  0x8a   :  { %16667 = vsyncadd [#allocation8], 4294836096 }
  0x8b   :  { %16668 = dma.done.wait [#allocation11], 32896  }
  0x8c   :  { %16669 = vsyncadd [#allocation11], 4294934400 }
  0x8d   :  { %16670 = dma.done.wait [#allocation14], 128  }
  0x8e   :  { %16671 = vsyncadd [#allocation14], 4294967168 }
  0x8f   :  { %16672 = dma.done.wait [#allocation17], 272  }
  0x90   :  { %16673 = vsyncadd [#allocation17], 4294967024 }
  0x91   :  { %16674 = dma.done.wait [#allocation20], 16  }
  0x92   :  { %16675 = vsyncadd [#allocation20], 4294967280  ;;  %v309_v0 = vld [vmem:[#allocation2 + $0x380] sm:$0xff]  ;;  %v16819_v54 = vld [vmem:[%s17391_s0 + $0x8] sm:$0xff]  ;;  %vm16696_vm0 = vmmov 0   ;;  %vm14035_vm1 = vcmask 261120  }
  0x93   :  { %v317_v1 = vld [vmem:[#allocation2 + $0x3c0] sm:$0xff]  ;;  %v16827_v59 = vcombine.high %v16819_v54, %v16819_v54 }
  0x94   :  { %v565_v2 = vld [vmem:[#allocation2 + $0xb80] sm:$0xff]  ;;  %v14208_v3 = vcombine.high %v309_v0, %v317_v1  ;;  %v14207_v5 = vcombine.low %v309_v0, %v317_v1 }
  0x95   :  { %v573_v4 = vld [vmem:[#allocation2 + $0xbc0] sm:$0xff]  ;;  %3356 = vmatprep.mubr.bf16.mxu1 %v16827_v59 }
  0x96   :  { %v293_v6 = vld [vmem:[#allocation2 + $0x300] sm:$0xff]  ;;  %v14464_v8 = vcombine.high %v565_v2, %v573_v4  ;;  %v14463_v9 = vcombine.low %v565_v2, %v573_v4  ;;  %3283 = vmatprep.subr.bf16.mxu0 %v14208_v3 }
  0x97   :  { %v301_v7 = vld [vmem:[#allocation2 + $0x340] sm:$0xff]  ;;  %3284 = vmatpush1.bf16.msra.mxu0 %v14207_v5 }
  0x98   :  { %v14192_v10 = vcombine.high %v293_v6, %v301_v7  ;;  %v549_v11 = vld [vmem:[#allocation2 + $0xb00] sm:$0xff]  ;;  %3324 = vmatprep.subr.bf16.mxu1 %v14464_v8  ;;  %v14191_v18 = vcombine.low %v293_v6, %v301_v7 }
  0x99   :  { %v557_v12 = vld [vmem:[#allocation2 + $0xb40] sm:$0xff]  ;;  %3325 = vmatpush1.bf16.msra.mxu1 %v14463_v9 }
  0x9a   :  { %v277_v13 = vld [vmem:[#allocation2 + $0x280] sm:$0xff]  ;;  %v14448_v14 = vcombine.high %v549_v11, %v557_v12  ;;  %3285 = vmatprep.subr.bf16.mxu0 %v14192_v10  ;;  %v14447_v19 = vcombine.low %v549_v11, %v557_v12 }
  0x9b   :  { %v285_v15 = vld [vmem:[#allocation2 + $0x2c0] sm:$0xff]  ;;  %3286 = vmatpush1.bf16.msra.mxu0 %v14191_v18 }
  0x9c   :  { %v533_v16 = vld [vmem:[#allocation2 + $0xa80] sm:$0xff]  ;;  %v14176_v20 = vcombine.high %v277_v13, %v285_v15  ;;  %3326 = vmatprep.subr.bf16.mxu1 %v14448_v14  ;;  %v14175_v26 = vcombine.low %v277_v13, %v285_v15 }
  0x9d   :  { %v541_v17 = vld [vmem:[#allocation2 + $0xac0] sm:$0xff]  ;;  %3327 = vmatpush1.bf16.msra.mxu1 %v14447_v19 }
  0x9e   :  { %v14432_v21 = vcombine.high %v533_v16, %v541_v17  ;;  %v261_v22 = vld [vmem:[#allocation2 + $0x200] sm:$0xff]  ;;  %3287 = vmatprep.subr.bf16.mxu0 %v14176_v20  ;;  %v14431_v27 = vcombine.low %v533_v16, %v541_v17 }
  0x9f   :  { %v269_v23 = vld [vmem:[#allocation2 + $0x240] sm:$0xff]  ;;  %3288 = vmatpush1.bf16.msra.mxu0 %v14175_v26 }
  0xa0   :  { %v517_v24 = vld [vmem:[#allocation2 + $0xa00] sm:$0xff]  ;;  %v14160_v28 = vcombine.high %v261_v22, %v269_v23  ;;  %3328 = vmatprep.subr.bf16.mxu1 %v14432_v21  ;;  %v14159_v34 = vcombine.low %v261_v22, %v269_v23 }
  0xa1   :  { %v525_v25 = vld [vmem:[#allocation2 + $0xa40] sm:$0xff]  ;;  %3329 = vmatpush1.bf16.msra.mxu1 %v14431_v27 }
  0xa2   :  { %v14416_v29 = vcombine.high %v517_v24, %v525_v25  ;;  %v245_v30 = vld [vmem:[#allocation2 + $0x180] sm:$0xff]  ;;  %3289 = vmatprep.subr.bf16.mxu0 %v14160_v28  ;;  %v14415_v35 = vcombine.low %v517_v24, %v525_v25 }
  0xa3   :  { %v253_v31 = vld [vmem:[#allocation2 + $0x1c0] sm:$0xff]  ;;  %3290 = vmatpush1.bf16.msra.mxu0 %v14159_v34 }
  0xa4   :  { %v501_v32 = vld [vmem:[#allocation2 + $0x980] sm:$0xff]  ;;  %v14144_v36 = vcombine.high %v245_v30, %v253_v31  ;;  %3330 = vmatprep.subr.bf16.mxu1 %v14416_v29  ;;  %v14143_v42 = vcombine.low %v245_v30, %v253_v31 }
  0xa5   :  { %v509_v33 = vld [vmem:[#allocation2 + $0x9c0] sm:$0xff]  ;;  %3331 = vmatpush1.bf16.msra.mxu1 %v14415_v35 }
  0xa6   :  { %v14400_v37 = vcombine.high %v501_v32, %v509_v33  ;;  %v229_v38 = vld [vmem:[#allocation2 + $0x100] sm:$0xff]  ;;  %3291 = vmatprep.subr.bf16.mxu0 %v14144_v36  ;;  %v14399_v43 = vcombine.low %v501_v32, %v509_v33 }
  0xa7   :  { %v237_v39 = vld [vmem:[#allocation2 + $0x140] sm:$0xff]  ;;  %3292 = vmatpush1.bf16.msra.mxu0 %v14143_v42 }
  0xa8   :  { %v485_v40 = vld [vmem:[#allocation2 + $0x900] sm:$0xff]  ;;  %v14128_v44 = vcombine.high %v229_v38, %v237_v39  ;;  %3332 = vmatprep.subr.bf16.mxu1 %v14400_v37  ;;  %v14127_v50 = vcombine.low %v229_v38, %v237_v39 }
  0xa9   :  { %v493_v41 = vld [vmem:[#allocation2 + $0x940] sm:$0xff]  ;;  %3333 = vmatpush1.bf16.msra.mxu1 %v14399_v43 }
  0xaa   :  { %v14384_v45 = vcombine.high %v485_v40, %v493_v41  ;;  %v213_v46 = vld [vmem:[#allocation2 + $0x80] sm:$0xff]  ;;  %3293 = vmatprep.subr.bf16.mxu0 %v14128_v44  ;;  %v14383_v51 = vcombine.low %v485_v40, %v493_v41 }
  0xab   :  { %v221_v47 = vld [vmem:[#allocation2 + $0xc0] sm:$0xff]  ;;  %3294 = vmatpush1.bf16.msra.mxu0 %v14127_v50 }
  0xac   :  { %v469_v48 = vld [vmem:[#allocation2 + $0x880] sm:$0xff]  ;;  %v14112_v52 = vcombine.high %v213_v46, %v221_v47  ;;  %3334 = vmatprep.subr.bf16.mxu1 %v14384_v45  ;;  %v14111_v62 = vcombine.low %v213_v46, %v221_v47 }
  0xad   :  { %v477_v49 = vld [vmem:[#allocation2 + $0x8c0] sm:$0xff]  ;;  %3335 = vmatpush1.bf16.msra.mxu1 %v14383_v51 }
  0xae   :  { %v16814_v53 = vld [vmem:[%s17391_s0] sm:$0xff]  ;;  %v14368_v55 = vcombine.high %v469_v48, %v477_v49  ;;  %3295 = vmatprep.subr.bf16.mxu0 %v14112_v52  ;;  %v14367_v63 = vcombine.low %v469_v48, %v477_v49 }
  0xaf   :  { %v197_v56 = vld [vmem:[#allocation2] sm:$0xff]  ;;  %v16823_v58 = vcombine.high %v16814_v53, %v16814_v53  ;;  %3296 = vmatpush1.bf16.msra.mxu0 %v14111_v62 }
  0xb0   :  { %v205_v57 = vld [vmem:[#allocation2 + $0x40] sm:$0xff]  ;;  %3336 = vmatprep.subr.bf16.mxu1 %v14368_v55 }
  0xb1   :  { %v453_v60 = vld [vmem:[#allocation2 + $0x800] sm:$0xff]  ;;  %3315 = vmatprep.mubr.bf16.mxu0 %v16823_v58  ;;  %v14096_v0 = vcombine.high %v197_v56, %v205_v57  ;;  %v14095_v6 = vcombine.low %v197_v56, %v205_v57  ;;  %3337 = vmatpush1.bf16.msra.mxu1 %v14367_v63 }
  0xb2   :  { %v461_v61 = vld [vmem:[#allocation2 + $0x840] sm:$0xff] }
  0xb3   :  { %v14352_v1 = vcombine.high %v453_v60, %v461_v61  ;;  %v437_v2 = vld [vmem:[#allocation2 + $0x780] sm:$0xff]  ;;  %3297 = vmatprep.subr.bf16.mxu0 %v14096_v0  ;;  %v14351_v7 = vcombine.low %v453_v60, %v461_v61 }
  0xb4   :  { %v445_v3 = vld [vmem:[#allocation2 + $0x7c0] sm:$0xff]  ;;  %3298 = vmatpush1.bf16.msra.mxu0 %v14095_v6  ;;  %v310_v6 = vld [vmem:[#allocation2 + $0x388] sm:$0xff] }
  0xb5   :  { %v693_v4 = vld [vmem:[#allocation2 + $0xf80] sm:$0xff]  ;;  %v14336_v8 = vcombine.high %v437_v2, %v445_v3  ;;  %3338 = vmatprep.subr.bf16.mxu1 %v14352_v1  ;;  %v14335_v14 = vcombine.low %v437_v2, %v445_v3 }
  0xb6   :  { %v701_v5 = vld [vmem:[#allocation2 + $0xfc0] sm:$0xff]  ;;  %3339 = vmatpush1.bf16.msra.mxu1 %v14351_v7  ;;  %v318_v7 = vld [vmem:[#allocation2 + $0x3c8] sm:$0xff] }
  0xb7   :  { %v14592_v9 = vcombine.high %v693_v4, %v701_v5  ;;  %v421_v10 = vld [vmem:[#allocation2 + $0x700] sm:$0xff]  ;;  %3299 = vmatprep.subr.bf16.mxu0 %v14336_v8  ;;  %v14591_v15 = vcombine.low %v693_v4, %v701_v5  ;;  %v566_v8 = vld [vmem:[#allocation2 + $0xb88] sm:$0xff] }
  0xb8   :  { %v429_v11 = vld [vmem:[#allocation2 + $0x740] sm:$0xff]  ;;  %3300 = vmatpush2.bf16.msra.mxu0 %v14335_v14  ;;  %v294_v14 = vld [vmem:[#allocation2 + $0x308] sm:$0xff] }
  0xb9   :  { %v677_v12 = vld [vmem:[#allocation2 + $0xf00] sm:$0xff]  ;;  %v14320_v16 = vcombine.high %v421_v10, %v429_v11  ;;  %3340 = vmatprep.subr.bf16.mxu1 %v14592_v9  ;;  %v14319_v22 = vcombine.low %v421_v10, %v429_v11  ;;  %v574_v9 = vld [vmem:[#allocation2 + $0xbc8] sm:$0xff] }
  0xba   :  { %v685_v13 = vld [vmem:[#allocation2 + $0xf40] sm:$0xff]  ;;  %3341 = vmatpush2.bf16.msra.mxu1 %v14591_v15  ;;  %v302_v15 = vld [vmem:[#allocation2 + $0x348] sm:$0xff] }
  0xbb   :  { %v14576_v17 = vcombine.high %v677_v12, %v685_v13  ;;  %v405_v18 = vld [vmem:[#allocation2 + $0x680] sm:$0xff]  ;;  %3301 = vmatprep.subr.bf16.mxu0 %v14320_v16  ;;  %v14575_v23 = vcombine.low %v677_v12, %v685_v13  ;;  %v14210_v12 = vcombine.high %v310_v6, %v318_v7  ;;  %v14466_v13 = vcombine.high %v566_v8, %v574_v9 }
  0xbc   :  { %v413_v19 = vld [vmem:[#allocation2 + $0x6c0] sm:$0xff]  ;;  %3302 = vmatpush2.bf16.msra.mxu0 %v14319_v22  ;;  %v16833_v16 = vcombine.low %v16814_v53, %v16814_v53  ;;  %v14194_v22 = vcombine.high %v294_v14, %v302_v15  ;;  %v14193_v53 = vcombine.low %v294_v14, %v302_v15 }
  0xbd   :  { %v661_v20 = vld [vmem:[#allocation2 + $0xe80] sm:$0xff]  ;;  %v14304_v24 = vcombine.high %v405_v18, %v413_v19  ;;  %3342 = vmatprep.subr.bf16.mxu1 %v14576_v17  ;;  %v14303_v30 = vcombine.low %v405_v18, %v413_v19  ;;  %v550_v17 = vld [vmem:[#allocation2 + $0xb08] sm:$0xff]  ;;  %v16837_v19 = vcombine.low %v16819_v54, %v16819_v54 }
  0xbe   :  { %v669_v21 = vld [vmem:[#allocation2 + $0xec0] sm:$0xff]  ;;  %3343 = vmatpush2.bf16.msra.mxu1 %v14575_v23  ;;  %v558_v18 = vld [vmem:[#allocation2 + $0xb48] sm:$0xff] }
  0xbf   :  { %v14560_v25 = vcombine.high %v661_v20, %v669_v21  ;;  %v389_v26 = vld [vmem:[#allocation2 + $0x600] sm:$0xff]  ;;  %3303 = vmatprep.subr.bf16.mxu0 %v14304_v24  ;;  %v14559_v31 = vcombine.low %v661_v20, %v669_v21  ;;  %v14209_v20 = vcombine.low %v310_v6, %v318_v7  ;;  %v14465_v21 = vcombine.low %v566_v8, %v574_v9  ;;  %v278_v23 = vld [vmem:[#allocation2 + $0x288] sm:$0xff] }
  0xc0   :  { %v397_v27 = vld [vmem:[#allocation2 + $0x640] sm:$0xff]  ;;  %3304 = vmatpush2.bf16.msra.mxu0 %v14303_v30  ;;  %v286_v24 = vld [vmem:[#allocation2 + $0x2c8] sm:$0xff]  ;;  %v14449_v54 = vcombine.low %v550_v17, %v558_v18 }
  0xc1   :  { %v645_v28 = vld [vmem:[#allocation2 + $0xe00] sm:$0xff]  ;;  %v14288_v32 = vcombine.high %v389_v26, %v397_v27  ;;  %3344 = vmatprep.subr.bf16.mxu1 %v14560_v25  ;;  %v14287_v38 = vcombine.low %v389_v26, %v397_v27  ;;  %v534_v25 = vld [vmem:[#allocation2 + $0xa88] sm:$0xff]  ;;  %v14450_v26 = vcombine.high %v550_v17, %v558_v18 }
  0xc2   :  { %v653_v29 = vld [vmem:[#allocation2 + $0xe40] sm:$0xff]  ;;  %3345 = vmatpush2.bf16.msra.mxu1 %v14559_v31  ;;  %v542_v27 = vld [vmem:[#allocation2 + $0xac8] sm:$0xff] }
  0xc3   :  { %v14544_v33 = vcombine.high %v645_v28, %v653_v29  ;;  %v373_v34 = vld [vmem:[#allocation2 + $0x580] sm:$0xff]  ;;  %3305 = vmatprep.subr.bf16.mxu0 %v14288_v32  ;;  %v14543_v39 = vcombine.low %v645_v28, %v653_v29  ;;  %v14178_v28 = vcombine.high %v278_v23, %v286_v24  ;;  %v262_v29 = vld [vmem:[#allocation2 + $0x208] sm:$0xff]  ;;  %v14434_v32 = vcombine.high %v534_v25, %v542_v27 }
  0xc4   :  { %v381_v35 = vld [vmem:[#allocation2 + $0x5c0] sm:$0xff]  ;;  %3306 = vmatpush2.bf16.msra.mxu0 %v14287_v38  ;;  %v270_v30 = vld [vmem:[#allocation2 + $0x248] sm:$0xff] }
  0xc5   :  { %v629_v36 = vld [vmem:[#allocation2 + $0xd80] sm:$0xff]  ;;  %v14272_v40 = vcombine.high %v373_v34, %v381_v35  ;;  %3346 = vmatprep.subr.bf16.mxu1 %v14544_v33  ;;  %v14271_v46 = vcombine.low %v373_v34, %v381_v35  ;;  %v518_v31 = vld [vmem:[#allocation2 + $0xa08] sm:$0xff]  ;;  %v14177_v34 = vcombine.low %v278_v23, %v286_v24  ;;  %v14433_v35 = vcombine.low %v534_v25, %v542_v27 }
  0xc6   :  { %v637_v37 = vld [vmem:[#allocation2 + $0xdc0] sm:$0xff]  ;;  %3347 = vmatpush2.bf16.msra.mxu1 %v14543_v39  ;;  %v526_v33 = vld [vmem:[#allocation2 + $0xa48] sm:$0xff] }
  0xc7   :  { %v14528_v41 = vcombine.high %v629_v36, %v637_v37  ;;  %v357_v42 = vld [vmem:[#allocation2 + $0x500] sm:$0xff]  ;;  %3307 = vmatprep.subr.bf16.mxu0 %v14272_v40  ;;  %v14527_v47 = vcombine.low %v629_v36, %v637_v37  ;;  %v14162_v36 = vcombine.high %v262_v29, %v270_v30  ;;  %v246_v37 = vld [vmem:[#allocation2 + $0x188] sm:$0xff]  ;;  %v14418_v40 = vcombine.high %v518_v31, %v526_v33 }
  0xc8   :  { %v365_v43 = vld [vmem:[#allocation2 + $0x540] sm:$0xff]  ;;  %3308 = vmatpush2.bf16.msra.mxu0 %v14271_v46  ;;  %v254_v38 = vld [vmem:[#allocation2 + $0x1c8] sm:$0xff] }
  0xc9   :  { %v613_v44 = vld [vmem:[#allocation2 + $0xd00] sm:$0xff]  ;;  %v14256_v48 = vcombine.high %v357_v42, %v365_v43  ;;  %3348 = vmatprep.subr.bf16.mxu1 %v14528_v41  ;;  %v14255_v56 = vcombine.low %v357_v42, %v365_v43  ;;  %v502_v39 = vld [vmem:[#allocation2 + $0x988] sm:$0xff]  ;;  %v14161_v42 = vcombine.low %v262_v29, %v270_v30  ;;  %v14417_v43 = vcombine.low %v518_v31, %v526_v33 }
  0xca   :  { %v621_v45 = vld [vmem:[#allocation2 + $0xd40] sm:$0xff]  ;;  %3349 = vmatpush2.bf16.msra.mxu1 %v14527_v47  ;;  %v510_v41 = vld [vmem:[#allocation2 + $0x9c8] sm:$0xff] }
  0xcb   :  { %v14512_v49 = vcombine.high %v613_v44, %v621_v45  ;;  %v341_v50 = vld [vmem:[#allocation2 + $0x480] sm:$0xff]  ;;  %3309 = vmatprep.subr.bf16.mxu0 %v14256_v48  ;;  %v14511_v57 = vcombine.low %v613_v44, %v621_v45  ;;  %v14146_v44 = vcombine.high %v246_v37, %v254_v38  ;;  %v230_v45 = vld [vmem:[#allocation2 + $0x108] sm:$0xff]  ;;  %v14402_v48 = vcombine.high %v502_v39, %v510_v41 }
  0xcc   :  { %v349_v51 = vld [vmem:[#allocation2 + $0x4c0] sm:$0xff]  ;;  %3310 = vmatpush2.bf16.msra.mxu0 %v14255_v56  ;;  %v238_v46 = vld [vmem:[#allocation2 + $0x148] sm:$0xff] }
  0xcd   :  { %v597_v52 = vld [vmem:[#allocation2 + $0xc80] sm:$0xff]  ;;  %v14240_v60 = vcombine.high %v341_v50, %v349_v51  ;;  %3350 = vmatprep.subr.bf16.mxu1 %v14512_v49  ;;  %v14239_v2 = vcombine.low %v341_v50, %v349_v51  ;;  %v486_v47 = vld [vmem:[#allocation2 + $0x908] sm:$0xff]  ;;  %v14145_v50 = vcombine.low %v246_v37, %v254_v38  ;;  %v14401_v51 = vcombine.low %v502_v39, %v510_v41 }
  0xce   :  { %v605_v55 = vld [vmem:[#allocation2 + $0xcc0] sm:$0xff]  ;;  %3351 = vmatpush2.bf16.msra.mxu1 %v14511_v57  ;;  %v494_v49 = vld [vmem:[#allocation2 + $0x948] sm:$0xff] }
  0xcf   :  { %v14496_v61 = vcombine.high %v597_v52, %v605_v55  ;;  %v325_v62 = vld [vmem:[#allocation2 + $0x400] sm:$0xff]  ;;  %3311 = vmatprep.subr.bf16.mxu0 %v14240_v60  ;;  %v14495_v3 = vcombine.low %v597_v52, %v605_v55  ;;  %v14130_v52 = vcombine.high %v230_v45, %v238_v46  ;;  %v214_v55 = vld [vmem:[#allocation2 + $0x88] sm:$0xff]  ;;  %v14386_v60 = vcombine.high %v486_v47, %v494_v49 }
  0xd0   :  { %v333_v63 = vld [vmem:[#allocation2 + $0x440] sm:$0xff]  ;;  %3312 = vmatpush2.bf16.msra.mxu0 %v14239_v2  ;;  %v222_v56 = vld [vmem:[#allocation2 + $0xc8] sm:$0xff] }
  0xd1   :  { %v581_v0 = vld [vmem:[#allocation2 + $0xc00] sm:$0xff]  ;;  %v14224_v4 = vcombine.high %v325_v62, %v333_v63  ;;  %3352 = vmatprep.subr.bf16.mxu1 %v14496_v61  ;;  %v14223_v10 = vcombine.low %v325_v62, %v333_v63  ;;  %v470_v57 = vld [vmem:[#allocation2 + $0x888] sm:$0xff]  ;;  %v14129_v62 = vcombine.low %v230_v45, %v238_v46  ;;  %v14385_v63 = vcombine.low %v486_v47, %v494_v49 }
  0xd2   :  { %v589_v1 = vld [vmem:[#allocation2 + $0xc40] sm:$0xff]  ;;  %3353 = vmatpush2.bf16.msra.mxu1 %v14495_v3  ;;  %v478_v61 = vld [vmem:[#allocation2 + $0x8c8] sm:$0xff]  ;;  %v14113_v6 = vcombine.low %v214_v55, %v222_v56 }
  0xd3   :  { %v14480_v5 = vcombine.high %v581_v0, %v589_v1  ;;  %3313 = vmatprep.subr.bf16.mxu0 %v14224_v4  ;;  %v14479_v11 = vcombine.low %v581_v0, %v589_v1  ;;  %v14114_v0 = vcombine.high %v214_v55, %v222_v56  ;;  %v198_v1 = vld [vmem:[#allocation2 + $0x8] sm:$0xff]  ;;  %v14370_v4 = vcombine.high %v470_v57, %v478_v61 }
  0xd4   :  { %3314 = vmatpush2.bf16.msra.mxu0 %v14223_v10  ;;  %v206_v2 = vld [vmem:[#allocation2 + $0x48] sm:$0xff]  ;;  %v14369_v7 = vcombine.low %v470_v57, %v478_v61 }
  0xd5   :  { %3354 = vmatprep.subr.bf16.mxu1 %v14480_v5  ;;  %3365 = vmatprep.subr.bf16.mxu0 %v14210_v12  ;;  %v454_v3 = vld [vmem:[#allocation2 + $0x808] sm:$0xff]  ;;  %v14098_v8 = vcombine.high %v198_v1, %v206_v2  ;;  %v14097_v14 = vcombine.low %v198_v1, %v206_v2 }
  0xd6   :  { %3355 = vmatpush2.bf16.msra.mxu1 %v14479_v11  ;;  %v462_v5 = vld [vmem:[#allocation2 + $0x848] sm:$0xff] }
  0xd7   :  { %3406 = vmatprep.subr.bf16.mxu1 %v14466_v13  ;;  %3316 = vmatmul.mubr.bf16.vlgmr.msra.gmra.mxu0 %v16833_v16  ;;  %v438_v9 = vld [vmem:[#allocation2 + $0x788] sm:$0xff]  ;;  %v14354_v12 = vcombine.high %v454_v3, %v462_v5  ;;  %v14353_v15 = vcombine.low %v454_v3, %v462_v5 }
  0xd8   :  { %3366 = vmatpush1.bf16.msra.mxu0 %v14209_v20  ;;  %3397 = vmatprep.mubr.bf16.mxu0 %v16823_v58  ;;  %v446_v10 = vld [vmem:[#allocation2 + $0x7c8] sm:$0xff] }
  0xd9   :  { %3357 = vmatmul.mubr.bf16.vlgmr.msra.gmra.mxu1 %v16837_v19  ;;  %3367 = vmatprep.subr.bf16.mxu0 %v14194_v22  ;;  %v694_v11 = vld [vmem:[#allocation2 + $0xf88] sm:$0xff]  ;;  %v14338_v17 = vcombine.high %v438_v9, %v446_v10  ;;  %v14337_v24 = vcombine.low %v438_v9, %v446_v10 }
  0xda   :  { %3407 = vmatpush1.bf16.msra.mxu1 %v14465_v21  ;;  %3438 = vmatprep.mubr.bf16.mxu1 %v16827_v59  ;;  %v702_v13 = vld [vmem:[#allocation2 + $0xfc8] sm:$0xff] }
  0xdb   :  { %3408 = vmatprep.subr.bf16.mxu1 %v14450_v26  ;;  %v422_v18 = vld [vmem:[#allocation2 + $0x708] sm:$0xff]  ;;  %v14594_v22 = vcombine.high %v694_v11, %v702_v13  ;;  %v14593_v25 = vcombine.low %v694_v11, %v702_v13  ;;  %v311_v13 = vld [vmem:[#allocation2 + $0x390] sm:$0xff] }
  0xdc   :  { %3368 = vmatpush1.bf16.msra.mxu0 %v14193_v53  ;;  %v430_v20 = vld [vmem:[#allocation2 + $0x748] sm:$0xff] }
  0xdd   :  { %3369 = vmatprep.subr.bf16.mxu0 %v14178_v28  ;;  %v678_v21 = vld [vmem:[#allocation2 + $0xf08] sm:$0xff]  ;;  %v14322_v26 = vcombine.high %v422_v18, %v430_v20  ;;  %v14321_v30 = vcombine.low %v422_v18, %v430_v20  ;;  %v575_v18 = vld [vmem:[#allocation2 + $0xbd0] sm:$0xff] }
  0xde   :  { %3409 = vmatpush1.bf16.msra.mxu1 %v14449_v54  ;;  %v686_v23 = vld [vmem:[#allocation2 + $0xf48] sm:$0xff] }
  0xdf   :  { %3410 = vmatprep.subr.bf16.mxu1 %v14434_v32  ;;  %v406_v27 = vld [vmem:[#allocation2 + $0x688] sm:$0xff]  ;;  %v14578_v28 = vcombine.high %v678_v21, %v686_v23  ;;  %v14577_v31 = vcombine.low %v678_v21, %v686_v23  ;;  %v295_v23 = vld [vmem:[#allocation2 + $0x310] sm:$0xff] }
  0xe0   :  { %3370 = vmatpush1.bf16.msra.mxu0 %v14177_v34  ;;  %v414_v53 = vld [vmem:[#allocation2 + $0x6c8] sm:$0xff] }
  0xe1   :  { %3371 = vmatprep.subr.bf16.mxu0 %v14162_v36  ;;  %v662_v54 = vld [vmem:[#allocation2 + $0xe88] sm:$0xff]  ;;  %v14306_v32 = vcombine.high %v406_v27, %v414_v53  ;;  %v14305_v38 = vcombine.low %v406_v27, %v414_v53  ;;  %v559_v27 = vld [vmem:[#allocation2 + $0xb50] sm:$0xff] }
  0xe2   :  { %3411 = vmatpush1.bf16.msra.mxu1 %v14433_v35  ;;  %v670_v29 = vld [vmem:[#allocation2 + $0xec8] sm:$0xff] }
  0xe3   :  { %3412 = vmatprep.subr.bf16.mxu1 %v14418_v40  ;;  %v390_v33 = vld [vmem:[#allocation2 + $0x608] sm:$0xff]  ;;  %v14562_v36 = vcombine.high %v662_v54, %v670_v29  ;;  %v14561_v39 = vcombine.low %v662_v54, %v670_v29  ;;  %v279_v29 = vld [vmem:[#allocation2 + $0x290] sm:$0xff] }
  0xe4   :  { %3372 = vmatpush1.bf16.msra.mxu0 %v14161_v42  ;;  %v398_v34 = vld [vmem:[#allocation2 + $0x648] sm:$0xff] }
  0xe5   :  { %3373 = vmatprep.subr.bf16.mxu0 %v14146_v44  ;;  %v646_v35 = vld [vmem:[#allocation2 + $0xe08] sm:$0xff]  ;;  %v14290_v40 = vcombine.high %v390_v33, %v398_v34  ;;  %v14289_v46 = vcombine.low %v390_v33, %v398_v34  ;;  %v543_v33 = vld [vmem:[#allocation2 + $0xad0] sm:$0xff] }
  0xe6   :  { %3413 = vmatpush1.bf16.msra.mxu1 %v14417_v43  ;;  %v654_v37 = vld [vmem:[#allocation2 + $0xe48] sm:$0xff] }
  0xe7   :  { %3414 = vmatprep.subr.bf16.mxu1 %v14402_v48  ;;  %v374_v41 = vld [vmem:[#allocation2 + $0x588] sm:$0xff]  ;;  %v14546_v44 = vcombine.high %v646_v35, %v654_v37  ;;  %v14545_v47 = vcombine.low %v646_v35, %v654_v37  ;;  %v263_v37 = vld [vmem:[#allocation2 + $0x210] sm:$0xff] }
  0xe8   :  { %3374 = vmatpush1.bf16.msra.mxu0 %v14145_v50  ;;  %v382_v42 = vld [vmem:[#allocation2 + $0x5c8] sm:$0xff] }
  0xe9   :  { %3375 = vmatprep.subr.bf16.mxu0 %v14130_v52  ;;  %v630_v43 = vld [vmem:[#allocation2 + $0xd88] sm:$0xff]  ;;  %v14274_v48 = vcombine.high %v374_v41, %v382_v42  ;;  %v14273_v56 = vcombine.low %v374_v41, %v382_v42  ;;  %v527_v41 = vld [vmem:[#allocation2 + $0xa50] sm:$0xff] }
  0xea   :  { %3415 = vmatpush1.bf16.msra.mxu1 %v14401_v51  ;;  %v638_v45 = vld [vmem:[#allocation2 + $0xdc8] sm:$0xff] }
  0xeb   :  { %3416 = vmatprep.subr.bf16.mxu1 %v14386_v60  ;;  %v358_v49 = vld [vmem:[#allocation2 + $0x508] sm:$0xff]  ;;  %v14530_v52 = vcombine.high %v630_v43, %v638_v45  ;;  %v14529_v57 = vcombine.low %v630_v43, %v638_v45  ;;  %v247_v45 = vld [vmem:[#allocation2 + $0x190] sm:$0xff] }
  0xec   :  { %3376 = vmatpush1.bf16.msra.mxu0 %v14129_v62  ;;  %v366_v50 = vld [vmem:[#allocation2 + $0x548] sm:$0xff] }
  0xed   :  { %3377 = vmatprep.subr.bf16.mxu0 %v14114_v0  ;;  %v614_v51 = vld [vmem:[#allocation2 + $0xd08] sm:$0xff]  ;;  %v14258_v60 = vcombine.high %v358_v49, %v366_v50  ;;  %v14257_v2 = vcombine.low %v358_v49, %v366_v50  ;;  %v511_v49 = vld [vmem:[#allocation2 + $0x9d0] sm:$0xff] }
  0xee   :  { %3417 = vmatpush1.bf16.msra.mxu1 %v14385_v63  ;;  %v622_v55 = vld [vmem:[#allocation2 + $0xd48] sm:$0xff] }
  0xef   :  { %3418 = vmatprep.subr.bf16.mxu1 %v14370_v4  ;;  %v342_v61 = vld [vmem:[#allocation2 + $0x488] sm:$0xff]  ;;  %v14514_v0 = vcombine.high %v614_v51, %v622_v55  ;;  %v14513_v3 = vcombine.low %v614_v51, %v622_v55  ;;  %v231_v55 = vld [vmem:[#allocation2 + $0x110] sm:$0xff] }
  0xf0   :  { %3378 = vmatpush1.bf16.msra.mxu0 %v14113_v6  ;;  %v350_v62 = vld [vmem:[#allocation2 + $0x4c8] sm:$0xff] }
  0xf1   :  { %3379 = vmatprep.subr.bf16.mxu0 %v14098_v8  ;;  %v598_v63 = vld [vmem:[#allocation2 + $0xc88] sm:$0xff]  ;;  %v14242_v4 = vcombine.high %v342_v61, %v350_v62  ;;  %v14241_v10 = vcombine.low %v342_v61, %v350_v62  ;;  %v495_v61 = vld [vmem:[#allocation2 + $0x950] sm:$0xff] }
  0xf2   :  { %3419 = vmatpush1.bf16.msra.mxu1 %v14369_v7  ;;  %v606_v1 = vld [vmem:[#allocation2 + $0xcc8] sm:$0xff] }
  0xf3   :  { %3420 = vmatprep.subr.bf16.mxu1 %v14354_v12  ;;  %v326_v5 = vld [vmem:[#allocation2 + $0x408] sm:$0xff]  ;;  %v14498_v8 = vcombine.high %v598_v63, %v606_v1  ;;  %v14497_v11 = vcombine.low %v598_v63, %v606_v1  ;;  %v215_v1 = vld [vmem:[#allocation2 + $0x90] sm:$0xff] }
  0xf4   :  { %3380 = vmatpush1.bf16.msra.mxu0 %v14097_v14  ;;  %v334_v6 = vld [vmem:[#allocation2 + $0x448] sm:$0xff]  ;;  %v319_v14 = vld [vmem:[#allocation2 + $0x3d0] sm:$0xff] }
  0xf5   :  { %3381 = vmatprep.subr.bf16.mxu0 %v14338_v17  ;;  %v582_v7 = vld [vmem:[#allocation2 + $0xc08] sm:$0xff]  ;;  %v14226_v12 = vcombine.high %v326_v5, %v334_v6  ;;  %v14225_v20 = vcombine.low %v326_v5, %v334_v6  ;;  %v14211_v53 = vcombine.low %v311_v13, %v319_v14  ;;  %v479_v5 = vld [vmem:[#allocation2 + $0x8d0] sm:$0xff] }
  0xf6   :  { %3421 = vmatpush1.bf16.msra.mxu1 %v14353_v15  ;;  %v590_v9 = vld [vmem:[#allocation2 + $0xc48] sm:$0xff]  ;;  %v567_v15 = vld [vmem:[#allocation2 + $0xb90] sm:$0xff] }
  0xf7   :  { %3422 = vmatprep.subr.bf16.mxu1 %v14594_v22  ;;  %v14482_v17 = vcombine.high %v582_v7, %v590_v9  ;;  %v14481_v21 = vcombine.low %v582_v7, %v590_v9  ;;  %v14212_v22 = vcombine.high %v311_v13, %v319_v14  ;;  %v14467_v54 = vcombine.low %v567_v15, %v575_v18  ;;  %v199_v9 = vld [vmem:[#allocation2 + $0x10] sm:$0xff] }
  0xf8   :  { %3382 = vmatpush2.bf16.msra.mxu0 %v14337_v24  ;;  %v303_v24 = vld [vmem:[#allocation2 + $0x350] sm:$0xff] }
  0xf9   :  { %3383 = vmatprep.subr.bf16.mxu0 %v14322_v26  ;;  %v14468_v26 = vcombine.high %v567_v15, %v575_v18  ;;  %v14195_v34 = vcombine.low %v295_v23, %v303_v24  ;;  %v463_v13 = vld [vmem:[#allocation2 + $0x850] sm:$0xff] }
  0xfa   :  { %3423 = vmatpush2.bf16.msra.mxu1 %v14593_v25  ;;  %v551_v25 = vld [vmem:[#allocation2 + $0xb10] sm:$0xff] }
  0xfb   :  { %3424 = vmatprep.subr.bf16.mxu1 %v14578_v28  ;;  %v14196_v28 = vcombine.high %v295_v23, %v303_v24  ;;  %v14451_v35 = vcombine.low %v551_v25, %v559_v27  ;;  %v439_v18 = vld [vmem:[#allocation2 + $0x790] sm:$0xff] }
  0xfc   :  { %3384 = vmatpush2.bf16.msra.mxu0 %v14321_v30  ;;  %v287_v30 = vld [vmem:[#allocation2 + $0x2d0] sm:$0xff] }
  0xfd   :  { %3385 = vmatprep.subr.bf16.mxu0 %v14306_v32  ;;  %v14452_v32 = vcombine.high %v551_v25, %v559_v27  ;;  %v14179_v42 = vcombine.low %v279_v29, %v287_v30  ;;  %v703_v23 = vld [vmem:[#allocation2 + $0xfd0] sm:$0xff] }
  0xfe   :  { %3425 = vmatpush2.bf16.msra.mxu1 %v14577_v31  ;;  %v535_v31 = vld [vmem:[#allocation2 + $0xa90] sm:$0xff] }
  0xff   :  { %3426 = vmatprep.subr.bf16.mxu1 %v14562_v36  ;;  %v14180_v36 = vcombine.high %v279_v29, %v287_v30  ;;  %v14435_v43 = vcombine.low %v535_v31, %v543_v33  ;;  %v423_v27 = vld [vmem:[#allocation2 + $0x710] sm:$0xff] }
 0x100   :  { %3386 = vmatpush2.bf16.msra.mxu0 %v14305_v38  ;;  %v14436_v38 = vcombine.high %v535_v31, %v543_v33  ;;  %v687_v29 = vld [vmem:[#allocation2 + $0xf50] sm:$0xff] }
 0x101   :  { %3387 = vmatprep.subr.bf16.mxu0 %v14290_v40  ;;  %v519_v40 = vld [vmem:[#allocation2 + $0xa10] sm:$0xff] }
 0x102   :  { %3427 = vmatpush2.bf16.msra.mxu1 %v14561_v39  ;;  %v271_v39 = vld [vmem:[#allocation2 + $0x250] sm:$0xff]  ;;  %v14419_v51 = vcombine.low %v519_v40, %v527_v41 }
 0x103   :  { %3428 = vmatprep.subr.bf16.mxu1 %v14546_v44  ;;  %v14164_v44 = vcombine.high %v263_v37, %v271_v39  ;;  %v14163_v50 = vcombine.low %v263_v37, %v271_v39  ;;  %v407_v33 = vld [vmem:[#allocation2 + $0x690] sm:$0xff] }
 0x104   :  { %3388 = vmatpush2.bf16.msra.mxu0 %v14289_v46  ;;  %v255_v46 = vld [vmem:[#allocation2 + $0x1d0] sm:$0xff] }
 0x105   :  { %3389 = vmatprep.subr.bf16.mxu0 %v14274_v48  ;;  %v14420_v48 = vcombine.high %v519_v40, %v527_v41  ;;  %v14147_v62 = vcombine.low %v247_v45, %v255_v46  ;;  %v671_v37 = vld [vmem:[#allocation2 + $0xed0] sm:$0xff] }
 0x106   :  { %3429 = vmatpush2.bf16.msra.mxu1 %v14545_v47  ;;  %v503_v47 = vld [vmem:[#allocation2 + $0x990] sm:$0xff] }
 0x107   :  { %3430 = vmatprep.subr.bf16.mxu1 %v14530_v52  ;;  %v14148_v52 = vcombine.high %v247_v45, %v255_v46  ;;  %v14403_v63 = vcombine.low %v503_v47, %v511_v49  ;;  %v391_v41 = vld [vmem:[#allocation2 + $0x610] sm:$0xff] }
 0x108   :  { %3390 = vmatpush2.bf16.msra.mxu0 %v14273_v56  ;;  %v239_v56 = vld [vmem:[#allocation2 + $0x150] sm:$0xff] }
 0x109   :  { %3391 = vmatprep.subr.bf16.mxu0 %v14258_v60  ;;  %v14404_v60 = vcombine.high %v503_v47, %v511_v49  ;;  %v14131_v6 = vcombine.low %v231_v55, %v239_v56  ;;  %v655_v45 = vld [vmem:[#allocation2 + $0xe50] sm:$0xff] }
 0x10a   :  { %3431 = vmatpush2.bf16.msra.mxu1 %v14529_v57  ;;  %v487_v57 = vld [vmem:[#allocation2 + $0x910] sm:$0xff] }
 0x10b   :  { %3432 = vmatprep.subr.bf16.mxu1 %v14514_v0  ;;  %v14132_v0 = vcombine.high %v231_v55, %v239_v56  ;;  %v14387_v7 = vcombine.low %v487_v57, %v495_v61  ;;  %v375_v49 = vld [vmem:[#allocation2 + $0x590] sm:$0xff] }
 0x10c   :  { %3392 = vmatpush2.bf16.msra.mxu0 %v14257_v2  ;;  %v223_v2 = vld [vmem:[#allocation2 + $0xd0] sm:$0xff] }
 0x10d   :  { %3393 = vmatprep.subr.bf16.mxu0 %v14242_v4  ;;  %v14388_v4 = vcombine.high %v487_v57, %v495_v61  ;;  %v14115_v14 = vcombine.low %v215_v1, %v223_v2  ;;  %v639_v55 = vld [vmem:[#allocation2 + $0xdd0] sm:$0xff] }
 0x10e   :  { %3433 = vmatpush2.bf16.msra.mxu1 %v14513_v3  ;;  %v471_v3 = vld [vmem:[#allocation2 + $0x890] sm:$0xff] }
 0x10f   :  { %3434 = vmatprep.subr.bf16.mxu1 %v14498_v8  ;;  %v14116_v8 = vcombine.high %v215_v1, %v223_v2  ;;  %v14371_v15 = vcombine.low %v471_v3, %v479_v5  ;;  %v359_v61 = vld [vmem:[#allocation2 + $0x510] sm:$0xff] }
 0x110   :  { %3394 = vmatpush2.bf16.msra.mxu0 %v14241_v10  ;;  %v207_v10 = vld [vmem:[#allocation2 + $0x50] sm:$0xff] }
 0x111   :  { %3395 = vmatprep.subr.bf16.mxu0 %v14226_v12  ;;  %v14372_v12 = vcombine.high %v471_v3, %v479_v5  ;;  %v14099_v24 = vcombine.low %v199_v9, %v207_v10  ;;  %v623_v1 = vld [vmem:[#allocation2 + $0xd50] sm:$0xff] }
 0x112   :  { %3435 = vmatpush2.bf16.msra.mxu1 %v14497_v11  ;;  %v455_v11 = vld [vmem:[#allocation2 + $0x810] sm:$0xff] }
 0x113   :  { %3436 = vmatprep.subr.bf16.mxu1 %v14482_v17  ;;  %v14100_v17 = vcombine.high %v199_v9, %v207_v10  ;;  %v14355_v25 = vcombine.low %v455_v11, %v463_v13  ;;  %v343_v5 = vld [vmem:[#allocation2 + $0x490] sm:$0xff] }
 0x114   :  { %3396 = vmatpush2.bf16.msra.mxu0 %v14225_v20  ;;  %v447_v20 = vld [vmem:[#allocation2 + $0x7d0] sm:$0xff] }
 0x115   :  { %3447 = vmatprep.subr.bf16.mxu0 %v14212_v22  ;;  %v14356_v22 = vcombine.high %v455_v11, %v463_v13  ;;  %v14339_v30 = vcombine.low %v439_v18, %v447_v20  ;;  %v607_v9 = vld [vmem:[#allocation2 + $0xcd0] sm:$0xff] }
 0x116   :  { %3437 = vmatpush2.bf16.msra.mxu1 %v14481_v21  ;;  %v695_v21 = vld [vmem:[#allocation2 + $0xf90] sm:$0xff] }
 0x117   :  { %3488 = vmatprep.subr.bf16.mxu1 %v14468_v26  ;;  %3398 = vmatmul.mubr.bf16.vlgmr.msra.gmra.mxu0 %v16833_v16  ;;  %v14340_v26 = vcombine.high %v439_v18, %v447_v20  ;;  %v14595_v31 = vcombine.low %v695_v21, %v703_v23  ;;  %v327_v13 = vld [vmem:[#allocation2 + $0x410] sm:$0xff] }
 0x118   :  { %3448 = vmatpush1.bf16.msra.mxu0 %v14211_v53  ;;  %3479 = vmatprep.mubr.bf16.mxu0 %v16823_v58  ;;  %v431_v53 = vld [vmem:[#allocation2 + $0x750] sm:$0xff] }
 0x119   :  { %3439 = vmatmul.mubr.bf16.vlgmr.msra.gmra.mxu1 %v16837_v19  ;;  %3449 = vmatprep.subr.bf16.mxu0 %v14196_v28  ;;  %v14596_v28 = vcombine.high %v695_v21, %v703_v23  ;;  %v591_v18 = vld [vmem:[#allocation2 + $0xc50] sm:$0xff]  ;;  %v312_v23 = vld [vmem:[#allocation2 + $0x398] sm:$0xff] }
 0x11a   :  { %3489 = vmatpush1.bf16.msra.mxu1 %v14467_v54  ;;  %3520 = vmatprep.mubr.bf16.mxu1 %v16827_v59  ;;  %v679_v54 = vld [vmem:[#allocation2 + $0xf10] sm:$0xff] }
 0x11b   :  { %3490 = vmatprep.subr.bf16.mxu1 %v14452_v32  ;;  %v14324_v32 = vcombine.high %v423_v27, %v431_v53  ;;  %v14579_v39 = vcombine.low %v679_v54, %v687_v29 }
 0x11c   :  { %3450 = vmatpush1.bf16.msra.mxu0 %v14195_v34  ;;  %v415_v34 = vld [vmem:[#allocation2 + $0x6d0] sm:$0xff] }
 0x11d   :  { %3451 = vmatprep.subr.bf16.mxu0 %v14180_v36  ;;  %v14580_v36 = vcombine.high %v679_v54, %v687_v29  ;;  %v14308_v40 = vcombine.high %v407_v33, %v415_v34  ;;  %v14307_v46 = vcombine.low %v407_v33, %v415_v34  ;;  %v296_v29 = vld [vmem:[#allocation2 + $0x318] sm:$0xff] }
 0x11e   :  { %3491 = vmatpush1.bf16.msra.mxu1 %v14451_v35  ;;  %v663_v35 = vld [vmem:[#allocation2 + $0xe90] sm:$0xff]  ;;  %v560_v33 = vld [vmem:[#allocation2 + $0xb58] sm:$0xff] }
 0x11f   :  { %3492 = vmatprep.subr.bf16.mxu1 %v14436_v38  ;;  %v14323_v38 = vcombine.low %v423_v27, %v431_v53  ;;  %v14563_v47 = vcombine.low %v663_v35, %v671_v37  ;;  %v576_v27 = vld [vmem:[#allocation2 + $0xbd8] sm:$0xff] }
 0x120   :  { %3452 = vmatpush1.bf16.msra.mxu0 %v14179_v42  ;;  %v399_v42 = vld [vmem:[#allocation2 + $0x650] sm:$0xff] }
 0x121   :  { %3453 = vmatprep.subr.bf16.mxu0 %v14164_v44  ;;  %v14564_v44 = vcombine.high %v663_v35, %v671_v37  ;;  %v14291_v56 = vcombine.low %v391_v41, %v399_v42  ;;  %v280_v37 = vld [vmem:[#allocation2 + $0x298] sm:$0xff] }
 0x122   :  { %3493 = vmatpush1.bf16.msra.mxu1 %v14435_v43  ;;  %v647_v43 = vld [vmem:[#allocation2 + $0xe10] sm:$0xff] }
 0x123   :  { %3494 = vmatprep.subr.bf16.mxu1 %v14420_v48  ;;  %v14292_v48 = vcombine.high %v391_v41, %v399_v42  ;;  %v14547_v57 = vcombine.low %v647_v43, %v655_v45  ;;  %v544_v41 = vld [vmem:[#allocation2 + $0xad8] sm:$0xff] }
 0x124   :  { %3454 = vmatpush1.bf16.msra.mxu0 %v14163_v50  ;;  %v383_v50 = vld [vmem:[#allocation2 + $0x5d0] sm:$0xff] }
 0x125   :  { %3455 = vmatprep.subr.bf16.mxu0 %v14148_v52  ;;  %v14548_v52 = vcombine.high %v647_v43, %v655_v45  ;;  %v14275_v2 = vcombine.low %v375_v49, %v383_v50  ;;  %v264_v45 = vld [vmem:[#allocation2 + $0x218] sm:$0xff] }
 0x126   :  { %3495 = vmatpush1.bf16.msra.mxu1 %v14419_v51  ;;  %v631_v51 = vld [vmem:[#allocation2 + $0xd90] sm:$0xff] }
 0x127   :  { %3496 = vmatprep.subr.bf16.mxu1 %v14404_v60  ;;  %v14276_v60 = vcombine.high %v375_v49, %v383_v50  ;;  %v14531_v3 = vcombine.low %v631_v51, %v639_v55  ;;  %v528_v49 = vld [vmem:[#allocation2 + $0xa58] sm:$0xff] }
 0x128   :  { %3456 = vmatpush1.bf16.msra.mxu0 %v14147_v62  ;;  %v367_v62 = vld [vmem:[#allocation2 + $0x550] sm:$0xff] }
 0x129   :  { %3457 = vmatprep.subr.bf16.mxu0 %v14132_v0  ;;  %v14532_v0 = vcombine.high %v631_v51, %v639_v55  ;;  %v14259_v10 = vcombine.low %v359_v61, %v367_v62  ;;  %v248_v55 = vld [vmem:[#allocation2 + $0x198] sm:$0xff] }
 0x12a   :  { %3497 = vmatpush1.bf16.msra.mxu1 %v14403_v63  ;;  %v615_v63 = vld [vmem:[#allocation2 + $0xd10] sm:$0xff] }
 0x12b   :  { %3498 = vmatprep.subr.bf16.mxu1 %v14388_v4  ;;  %v14260_v4 = vcombine.high %v359_v61, %v367_v62  ;;  %v14515_v11 = vcombine.low %v615_v63, %v623_v1  ;;  %v512_v61 = vld [vmem:[#allocation2 + $0x9d8] sm:$0xff] }
 0x12c   :  { %3458 = vmatpush1.bf16.msra.mxu0 %v14131_v6  ;;  %v351_v6 = vld [vmem:[#allocation2 + $0x4d0] sm:$0xff] }
 0x12d   :  { %3459 = vmatprep.subr.bf16.mxu0 %v14116_v8  ;;  %v14516_v8 = vcombine.high %v615_v63, %v623_v1  ;;  %v14243_v20 = vcombine.low %v343_v5, %v351_v6  ;;  %v232_v1 = vld [vmem:[#allocation2 + $0x118] sm:$0xff] }
 0x12e   :  { %3499 = vmatpush1.bf16.msra.mxu1 %v14387_v7  ;;  %v599_v7 = vld [vmem:[#allocation2 + $0xc90] sm:$0xff] }
 0x12f   :  { %3500 = vmatprep.subr.bf16.mxu1 %v14372_v12  ;;  %v14244_v12 = vcombine.high %v343_v5, %v351_v6  ;;  %v14499_v21 = vcombine.low %v599_v7, %v607_v9  ;;  %v496_v5 = vld [vmem:[#allocation2 + $0x958] sm:$0xff] }
 0x130   :  { %3460 = vmatpush1.bf16.msra.mxu0 %v14115_v14  ;;  %v335_v14 = vld [vmem:[#allocation2 + $0x450] sm:$0xff] }
 0x131   :  { %3461 = vmatprep.subr.bf16.mxu0 %v14100_v17  ;;  %v14500_v17 = vcombine.high %v599_v7, %v607_v9  ;;  %v14227_v53 = vcombine.low %v327_v13, %v335_v14  ;;  %v216_v9 = vld [vmem:[#allocation2 + $0x98] sm:$0xff] }
 0x132   :  { %3501 = vmatpush1.bf16.msra.mxu1 %v14371_v15  ;;  %v583_v15 = vld [vmem:[#allocation2 + $0xc10] sm:$0xff] }
 0x133   :  { %3502 = vmatprep.subr.bf16.mxu1 %v14356_v22  ;;  %v14228_v22 = vcombine.high %v327_v13, %v335_v14  ;;  %v14483_v54 = vcombine.low %v583_v15, %v591_v18  ;;  %v480_v13 = vld [vmem:[#allocation2 + $0x8d8] sm:$0xff] }
 0x134   :  { %3462 = vmatpush1.bf16.msra.mxu0 %v14099_v24  ;;  %v320_v24 = vld [vmem:[#allocation2 + $0x3d8] sm:$0xff] }
 0x135   :  { %3463 = vmatprep.subr.bf16.mxu0 %v14340_v26  ;;  %v14484_v26 = vcombine.high %v583_v15, %v591_v18  ;;  %v14213_v34 = vcombine.low %v312_v23, %v320_v24  ;;  %v200_v18 = vld [vmem:[#allocation2 + $0x18] sm:$0xff] }
 0x136   :  { %3503 = vmatpush1.bf16.msra.mxu1 %v14355_v25  ;;  %v568_v25 = vld [vmem:[#allocation2 + $0xb98] sm:$0xff] }
 0x137   :  { %3504 = vmatprep.subr.bf16.mxu1 %v14596_v28  ;;  %v14214_v28 = vcombine.high %v312_v23, %v320_v24  ;;  %v14469_v35 = vcombine.low %v568_v25, %v576_v27  ;;  %v464_v23 = vld [vmem:[#allocation2 + $0x858] sm:$0xff] }
 0x138   :  { %3464 = vmatpush2.bf16.msra.mxu0 %v14339_v30  ;;  %v304_v30 = vld [vmem:[#allocation2 + $0x358] sm:$0xff] }
 0x139   :  { %3465 = vmatprep.subr.bf16.mxu0 %v14324_v32  ;;  %v14470_v32 = vcombine.high %v568_v25, %v576_v27  ;;  %v14197_v42 = vcombine.low %v296_v29, %v304_v30  ;;  %v440_v27 = vld [vmem:[#allocation2 + $0x798] sm:$0xff] }
 0x13a   :  { %3505 = vmatpush2.bf16.msra.mxu1 %v14595_v31  ;;  %v552_v31 = vld [vmem:[#allocation2 + $0xb18] sm:$0xff] }
 0x13b   :  { %3506 = vmatprep.subr.bf16.mxu1 %v14580_v36  ;;  %v14198_v36 = vcombine.high %v296_v29, %v304_v30  ;;  %v14453_v43 = vcombine.low %v552_v31, %v560_v33  ;;  %v704_v29 = vld [vmem:[#allocation2 + $0xfd8] sm:$0xff] }
 0x13c   :  { %3466 = vmatpush2.bf16.msra.mxu0 %v14323_v38  ;;  %v288_v38 = vld [vmem:[#allocation2 + $0x2d8] sm:$0xff] }
 0x13d   :  { %3467 = vmatprep.subr.bf16.mxu0 %v14308_v40  ;;  %v14454_v40 = vcombine.high %v552_v31, %v560_v33  ;;  %v14181_v50 = vcombine.low %v280_v37, %v288_v38  ;;  %v424_v33 = vld [vmem:[#allocation2 + $0x718] sm:$0xff] }
 0x13e   :  { %3507 = vmatpush2.bf16.msra.mxu1 %v14579_v39  ;;  %v536_v39 = vld [vmem:[#allocation2 + $0xa98] sm:$0xff] }
 0x13f   :  { %3508 = vmatprep.subr.bf16.mxu1 %v14564_v44  ;;  %v14182_v44 = vcombine.high %v280_v37, %v288_v38  ;;  %v14437_v51 = vcombine.low %v536_v39, %v544_v41  ;;  %v688_v37 = vld [vmem:[#allocation2 + $0xf58] sm:$0xff] }
 0x140   :  { %3468 = vmatpush2.bf16.msra.mxu0 %v14307_v46  ;;  %v272_v46 = vld [vmem:[#allocation2 + $0x258] sm:$0xff] }
 0x141   :  { %3469 = vmatprep.subr.bf16.mxu0 %v14292_v48  ;;  %v14438_v48 = vcombine.high %v536_v39, %v544_v41  ;;  %v14165_v62 = vcombine.low %v264_v45, %v272_v46  ;;  %v408_v41 = vld [vmem:[#allocation2 + $0x698] sm:$0xff] }
 0x142   :  { %3509 = vmatpush2.bf16.msra.mxu1 %v14563_v47  ;;  %v520_v47 = vld [vmem:[#allocation2 + $0xa18] sm:$0xff] }
 0x143   :  { %3510 = vmatprep.subr.bf16.mxu1 %v14548_v52  ;;  %v14166_v52 = vcombine.high %v264_v45, %v272_v46  ;;  %v14421_v63 = vcombine.low %v520_v47, %v528_v49  ;;  %v672_v45 = vld [vmem:[#allocation2 + $0xed8] sm:$0xff] }
 0x144   :  { %3470 = vmatpush2.bf16.msra.mxu0 %v14291_v56  ;;  %v256_v56 = vld [vmem:[#allocation2 + $0x1d8] sm:$0xff] }
 0x145   :  { %3471 = vmatprep.subr.bf16.mxu0 %v14276_v60  ;;  %v14422_v60 = vcombine.high %v520_v47, %v528_v49  ;;  %v14149_v6 = vcombine.low %v248_v55, %v256_v56 }
 0x146   :  { %3511 = vmatpush2.bf16.msra.mxu1 %v14547_v57  ;;  %v504_v57 = vld [vmem:[#allocation2 + $0x998] sm:$0xff] }
 0x147   :  { %3512 = vmatprep.subr.bf16.mxu1 %v14532_v0  ;;  %v14150_v0 = vcombine.high %v248_v55, %v256_v56  ;;  %v14405_v7 = vcombine.low %v504_v57, %v512_v61  ;;  %v656_v55 = vld [vmem:[#allocation2 + $0xe58] sm:$0xff] }
 0x148   :  { %3472 = vmatpush2.bf16.msra.mxu0 %v14275_v2  ;;  %v240_v2 = vld [vmem:[#allocation2 + $0x158] sm:$0xff] }
 0x149   :  { %3473 = vmatprep.subr.bf16.mxu0 %v14260_v4  ;;  %v14406_v4 = vcombine.high %v504_v57, %v512_v61  ;;  %v14133_v14 = vcombine.low %v232_v1, %v240_v2 }
 0x14a   :  { %3513 = vmatpush2.bf16.msra.mxu1 %v14531_v3  ;;  %v488_v3 = vld [vmem:[#allocation2 + $0x918] sm:$0xff] }
 0x14b   :  { %3514 = vmatprep.subr.bf16.mxu1 %v14516_v8  ;;  %v14134_v8 = vcombine.high %v232_v1, %v240_v2  ;;  %v14389_v15 = vcombine.low %v488_v3, %v496_v5  ;;  %v640_v1 = vld [vmem:[#allocation2 + $0xdd8] sm:$0xff] }
 0x14c   :  { %3474 = vmatpush2.bf16.msra.mxu0 %v14259_v10  ;;  %v224_v10 = vld [vmem:[#allocation2 + $0xd8] sm:$0xff] }
 0x14d   :  { %3475 = vmatprep.subr.bf16.mxu0 %v14244_v12  ;;  %v14390_v12 = vcombine.high %v488_v3, %v496_v5  ;;  %v14117_v24 = vcombine.low %v216_v9, %v224_v10 }
 0x14e   :  { %3515 = vmatpush2.bf16.msra.mxu1 %v14515_v11  ;;  %v472_v11 = vld [vmem:[#allocation2 + $0x898] sm:$0xff] }
 0x14f   :  { %3516 = vmatprep.subr.bf16.mxu1 %v14500_v17  ;;  %v14118_v17 = vcombine.high %v216_v9, %v224_v10  ;;  %v14373_v25 = vcombine.low %v472_v11, %v480_v13  ;;  %v624_v9 = vld [vmem:[#allocation2 + $0xd58] sm:$0xff] }
 0x150   :  { %3476 = vmatpush2.bf16.msra.mxu0 %v14243_v20  ;;  %v208_v20 = vld [vmem:[#allocation2 + $0x58] sm:$0xff] }
 0x151   :  { %3477 = vmatprep.subr.bf16.mxu0 %v14228_v22  ;;  %v14374_v22 = vcombine.high %v472_v11, %v480_v13  ;;  %v14101_v30 = vcombine.low %v200_v18, %v208_v20 }
 0x152   :  { %3517 = vmatpush2.bf16.msra.mxu1 %v14499_v21  ;;  %v456_v21 = vld [vmem:[#allocation2 + $0x818] sm:$0xff] }
 0x153   :  { %3518 = vmatprep.subr.bf16.mxu1 %v14484_v26  ;;  %v14102_v26 = vcombine.high %v200_v18, %v208_v20  ;;  %v14357_v31 = vcombine.low %v456_v21, %v464_v23  ;;  %v608_v18 = vld [vmem:[#allocation2 + $0xcd8] sm:$0xff] }
 0x154   :  { %3478 = vmatpush2.bf16.msra.mxu0 %v14227_v53  ;;  %v448_v53 = vld [vmem:[#allocation2 + $0x7d8] sm:$0xff] }
 0x155   :  { %3529 = vmatprep.subr.bf16.mxu0 %v14214_v28  ;;  %v14358_v28 = vcombine.high %v456_v21, %v464_v23  ;;  %v14341_v38 = vcombine.low %v440_v27, %v448_v53 }
 0x156   :  { %3519 = vmatpush2.bf16.msra.mxu1 %v14483_v54  ;;  %v696_v54 = vld [vmem:[#allocation2 + $0xf98] sm:$0xff] }
 0x157   :  { %3570 = vmatprep.subr.bf16.mxu1 %v14470_v32  ;;  %3480 = vmatmul.mubr.bf16.vlgmr.msra.gmra.mxu0 %v16833_v16  ;;  %v14342_v32 = vcombine.high %v440_v27, %v448_v53  ;;  %v14597_v39 = vcombine.low %v696_v54, %v704_v29  ;;  %v592_v27 = vld [vmem:[#allocation2 + $0xc58] sm:$0xff] }
 0x158   :  { %3530 = vmatpush1.bf16.msra.mxu0 %v14213_v34  ;;  %3561 = vmatprep.mubr.bf16.mxu0 %v16823_v58  ;;  %v432_v34 = vld [vmem:[#allocation2 + $0x758] sm:$0xff] }
 0x159   :  { %3521 = vmatmul.mubr.bf16.vlgmr.msra.gmra.mxu1 %v16837_v19  ;;  %3531 = vmatprep.subr.bf16.mxu0 %v14198_v36  ;;  %v14598_v36 = vcombine.high %v696_v54, %v704_v29  ;;  %v14325_v46 = vcombine.low %v424_v33, %v432_v34 }
 0x15a   :  { %3571 = vmatpush1.bf16.msra.mxu1 %v14469_v35  ;;  %3602 = vmatprep.mubr.bf16.mxu1 %v16827_v59  ;;  %v680_v35 = vld [vmem:[#allocation2 + $0xf18] sm:$0xff] }
 0x15b   :  { %3572 = vmatprep.subr.bf16.mxu1 %v14454_v40  ;;  %v14326_v40 = vcombine.high %v424_v33, %v432_v34  ;;  %v14581_v47 = vcombine.low %v680_v35, %v688_v37  ;;  %v577_v33 = vld [vmem:[#allocation2 + $0xbe0] sm:$0xff] }
 0x15c   :  { %3532 = vmatpush1.bf16.msra.mxu0 %v14197_v42  ;;  %v416_v42 = vld [vmem:[#allocation2 + $0x6d8] sm:$0xff] }
 0x15d   :  { %3533 = vmatprep.subr.bf16.mxu0 %v14182_v44  ;;  %v14582_v44 = vcombine.high %v680_v35, %v688_v37  ;;  %v14309_v56 = vcombine.low %v408_v41, %v416_v42 }
 0x15e   :  { %3573 = vmatpush1.bf16.msra.mxu1 %v14453_v43  ;;  %v664_v43 = vld [vmem:[#allocation2 + $0xe98] sm:$0xff] }
 0x15f   :  { %3574 = vmatprep.subr.bf16.mxu1 %v14438_v48  ;;  %v14310_v48 = vcombine.high %v408_v41, %v416_v42  ;;  %v14566_v49 = vcombine.high %v664_v43, %v672_v45  ;;  %v14565_v57 = vcombine.low %v664_v43, %v672_v45  ;;  %v561_v41 = vld [vmem:[#allocation2 + $0xb60] sm:$0xff] }
 0x160   :  { %3534 = vmatpush1.bf16.msra.mxu0 %v14181_v50  ;;  %v392_v50 = vld [vmem:[#allocation2 + $0x618] sm:$0xff] }
 0x161   :  { %3535 = vmatprep.subr.bf16.mxu0 %v14166_v52  ;;  %v648_v52 = vld [vmem:[#allocation2 + $0xe18] sm:$0xff] }
 0x162   :  { %3575 = vmatpush1.bf16.msra.mxu1 %v14437_v51  ;;  %v400_v51 = vld [vmem:[#allocation2 + $0x658] sm:$0xff]  ;;  %v14550_v61 = vcombine.high %v648_v52, %v656_v55  ;;  %v14549_v3 = vcombine.low %v648_v52, %v656_v55 }
 0x163   :  { %3576 = vmatprep.subr.bf16.mxu1 %v14422_v60  ;;  %v14294_v60 = vcombine.high %v392_v50, %v400_v51  ;;  %v14293_v2 = vcombine.low %v392_v50, %v400_v51  ;;  %v545_v50 = vld [vmem:[#allocation2 + $0xae0] sm:$0xff] }
 0x164   :  { %3536 = vmatpush1.bf16.msra.mxu0 %v14165_v62  ;;  %v376_v62 = vld [vmem:[#allocation2 + $0x598] sm:$0xff] }
 0x165   :  { %3537 = vmatprep.subr.bf16.mxu0 %v14150_v0  ;;  %v632_v0 = vld [vmem:[#allocation2 + $0xd98] sm:$0xff] }
 0x166   :  { %3577 = vmatpush1.bf16.msra.mxu1 %v14421_v63  ;;  %v384_v63 = vld [vmem:[#allocation2 + $0x5d8] sm:$0xff]  ;;  %v14534_v5 = vcombine.high %v632_v0, %v640_v1  ;;  %v14533_v11 = vcombine.low %v632_v0, %v640_v1  ;;  %v273_v0 = vld [vmem:[#allocation2 + $0x260] sm:$0xff] }
 0x167   :  { %3578 = vmatprep.subr.bf16.mxu1 %v14406_v4  ;;  %v14278_v4 = vcombine.high %v376_v62, %v384_v63  ;;  %v14277_v10 = vcombine.low %v376_v62, %v384_v63  ;;  %v265_v63 = vld [vmem:[#allocation2 + $0x220] sm:$0xff] }
 0x168   :  { %3538 = vmatpush1.bf16.msra.mxu0 %v14149_v6  ;;  %v360_v6 = vld [vmem:[#allocation2 + $0x518] sm:$0xff] }
 0x169   :  { %3539 = vmatprep.subr.bf16.mxu0 %v14134_v8  ;;  %v616_v8 = vld [vmem:[#allocation2 + $0xd18] sm:$0xff] }
 0x16a   :  { %3579 = vmatpush1.bf16.msra.mxu1 %v14405_v7  ;;  %v368_v7 = vld [vmem:[#allocation2 + $0x558] sm:$0xff]  ;;  %v14518_v13 = vcombine.high %v616_v8, %v624_v9  ;;  %v14517_v21 = vcombine.low %v616_v8, %v624_v9  ;;  %v14168_v9 = vcombine.high %v265_v63, %v273_v0 }
 0x16b   :  { %3580 = vmatprep.subr.bf16.mxu1 %v14390_v12  ;;  %v14262_v12 = vcombine.high %v360_v6, %v368_v7  ;;  %v14261_v20 = vcombine.low %v360_v6, %v368_v7 }
 0x16c   :  { %3540 = vmatpush1.bf16.msra.mxu0 %v14133_v14  ;;  %v344_v14 = vld [vmem:[#allocation2 + $0x498] sm:$0xff] }
 0x16d   :  { %3541 = vmatprep.subr.bf16.mxu0 %v14118_v17  ;;  %v600_v17 = vld [vmem:[#allocation2 + $0xc98] sm:$0xff] }
 0x16e   :  { %3581 = vmatpush1.bf16.msra.mxu1 %v14389_v15  ;;  %v352_v15 = vld [vmem:[#allocation2 + $0x4d8] sm:$0xff]  ;;  %v14502_v23 = vcombine.high %v600_v17, %v608_v18  ;;  %v14501_v54 = vcombine.low %v600_v17, %v608_v18  ;;  %v14167_v17 = vcombine.low %v265_v63, %v273_v0 }
 0x16f   :  { %3582 = vmatprep.subr.bf16.mxu1 %v14374_v22  ;;  %v14246_v22 = vcombine.high %v344_v14, %v352_v15  ;;  %v14245_v53 = vcombine.low %v344_v14, %v352_v15  ;;  %v505_v14 = vld [vmem:[#allocation2 + $0x9a0] sm:$0xff] }
 0x170   :  { %3542 = vmatpush1.bf16.msra.mxu0 %v14117_v24  ;;  %v328_v24 = vld [vmem:[#allocation2 + $0x418] sm:$0xff]  ;;  %v513_v15 = vld [vmem:[#allocation2 + $0x9e0] sm:$0xff] }
 0x171   :  { %3543 = vmatprep.subr.bf16.mxu0 %v14102_v26  ;;  %v584_v26 = vld [vmem:[#allocation2 + $0xc18] sm:$0xff] }
 0x172   :  { %3583 = vmatpush1.bf16.msra.mxu1 %v14373_v25  ;;  %v336_v25 = vld [vmem:[#allocation2 + $0x458] sm:$0xff]  ;;  %v14486_v29 = vcombine.high %v584_v26, %v592_v27  ;;  %v14485_v35 = vcombine.low %v584_v26, %v592_v27  ;;  %v14407_v27 = vcombine.low %v505_v14, %v513_v15 }
 0x173   :  { %3584 = vmatprep.subr.bf16.mxu1 %v14358_v28  ;;  %v14230_v28 = vcombine.high %v328_v24, %v336_v25  ;;  %v14229_v34 = vcombine.low %v328_v24, %v336_v25  ;;  %v489_v24 = vld [vmem:[#allocation2 + $0x920] sm:$0xff] }
 0x174   :  { %3544 = vmatpush1.bf16.msra.mxu0 %v14101_v30  ;;  %v313_v30 = vld [vmem:[#allocation2 + $0x3a0] sm:$0xff] }
 0x175   :  { %3545 = vmatprep.subr.bf16.mxu0 %v14342_v32  ;;  %v569_v32 = vld [vmem:[#allocation2 + $0xba0] sm:$0xff] }
 0x176   :  { %3585 = vmatpush1.bf16.msra.mxu1 %v14357_v31  ;;  %v321_v31 = vld [vmem:[#allocation2 + $0x3e0] sm:$0xff]  ;;  %v14472_v37 = vcombine.high %v569_v32, %v577_v33  ;;  %v14471_v43 = vcombine.low %v569_v32, %v577_v33 }
 0x177   :  { %3586 = vmatprep.subr.bf16.mxu1 %v14598_v36  ;;  %v14216_v36 = vcombine.high %v313_v30, %v321_v31  ;;  %v14215_v42 = vcombine.low %v313_v30, %v321_v31  ;;  %v497_v25 = vld [vmem:[#allocation2 + $0x960] sm:$0xff] }
 0x178   :  { %3546 = vmatpush2.bf16.msra.mxu0 %v14341_v38  ;;  %v297_v38 = vld [vmem:[#allocation2 + $0x320] sm:$0xff]  ;;  %v14391_v33 = vcombine.low %v489_v24, %v497_v25 }
 0x179   :  { %3547 = vmatprep.subr.bf16.mxu0 %v14326_v40  ;;  %v553_v40 = vld [vmem:[#allocation2 + $0xb20] sm:$0xff] }
 0x17a   :  { %3587 = vmatpush2.bf16.msra.mxu1 %v14597_v39  ;;  %v305_v39 = vld [vmem:[#allocation2 + $0x360] sm:$0xff]  ;;  %v14456_v45 = vcombine.high %v553_v40, %v561_v41 }
 0x17b   :  { %3588 = vmatprep.subr.bf16.mxu1 %v14582_v44  ;;  %v14200_v44 = vcombine.high %v297_v38, %v305_v39  ;;  %v14199_v52 = vcombine.low %v297_v38, %v305_v39  ;;  %v473_v30 = vld [vmem:[#allocation2 + $0x8a0] sm:$0xff] }
 0x17c   :  { %3548 = vmatpush2.bf16.msra.mxu0 %v14325_v46  ;;  %v281_v46 = vld [vmem:[#allocation2 + $0x2a0] sm:$0xff] }
 0x17d   :  { %3549 = vmatprep.subr.bf16.mxu0 %v14310_v48  ;;  %v481_v31 = vld [vmem:[#allocation2 + $0x8e0] sm:$0xff] }
 0x17e   :  { %3589 = vmatpush2.bf16.msra.mxu1 %v14581_v47  ;;  %v289_v47 = vld [vmem:[#allocation2 + $0x2e0] sm:$0xff] }
 0x17f   :  { %3590 = vmatprep.subr.bf16.mxu1 %v14566_v49  ;;  %v537_v49 = vld [vmem:[#allocation2 + $0xaa0] sm:$0xff]  ;;  %v14183_v6 = vcombine.low %v281_v46, %v289_v47 }
 0x180   :  { %3550 = vmatpush2.bf16.msra.mxu0 %v14309_v56  ;;  %v14440_v62 = vcombine.high %v537_v49, %v545_v50  ;;  %v14439_v8 = vcombine.low %v537_v49, %v545_v50  ;;  %v457_v38 = vld [vmem:[#allocation2 + $0x820] sm:$0xff] }
 0x181   :  { %3551 = vmatprep.subr.bf16.mxu0 %v14294_v60  ;;  %v14184_v60 = vcombine.high %v281_v46, %v289_v47  ;;  %v465_v39 = vld [vmem:[#allocation2 + $0x860] sm:$0xff] }
 0x182   :  { %3591 = vmatpush2.bf16.msra.mxu1 %v14565_v57  ;;  %v14455_v57 = vcombine.low %v553_v40, %v561_v41  ;;  %v14375_v41 = vcombine.low %v473_v30, %v481_v31  ;;  %v697_v46 = vld [vmem:[#allocation2 + $0xfa0] sm:$0xff]  ;;  %v14359_v49 = vcombine.low %v457_v38, %v465_v39 }
 0x183   :  { %3592 = vmatprep.subr.bf16.mxu1 %v14550_v61  ;;  %v705_v47 = vld [vmem:[#allocation2 + $0xfe0] sm:$0xff] }
 0x184   :  { %3552 = vmatpush2.bf16.msra.mxu0 %v14293_v2 }
 0x185   :  { %3553 = vmatprep.subr.bf16.mxu0 %v14278_v4  ;;  %v529_v4 = vld [vmem:[#allocation2 + $0xa60] sm:$0xff] }
 0x186   :  { %3593 = vmatpush2.bf16.msra.mxu1 %v14549_v3  ;;  %v521_v3 = vld [vmem:[#allocation2 + $0xa20] sm:$0xff] }
 0x187   :  { %3594 = vmatprep.subr.bf16.mxu1 %v14534_v5  ;;  %v14423_v18 = vcombine.low %v521_v3, %v529_v4 }
 0x188   :  { %3554 = vmatpush2.bf16.msra.mxu0 %v14277_v10 }
 0x189   :  { %3555 = vmatprep.subr.bf16.mxu0 %v14262_v12  ;;  %v249_v12 = vld [vmem:[#allocation2 + $0x1a0] sm:$0xff] }
 0x18a   :  { %3595 = vmatpush2.bf16.msra.mxu1 %v14533_v11  ;;  %v14424_v11 = vcombine.high %v521_v3, %v529_v4  ;;  %v417_v3 = vld [vmem:[#allocation2 + $0x6e0] sm:$0xff] }
 0x18b   :  { %3596 = vmatprep.subr.bf16.mxu1 %v14518_v13  ;;  %v257_v13 = vld [vmem:[#allocation2 + $0x1e0] sm:$0xff] }
 0x18c   :  { %3556 = vmatpush2.bf16.msra.mxu0 %v14261_v20  ;;  %v14152_v20 = vcombine.high %v249_v12, %v257_v13  ;;  %v14151_v26 = vcombine.low %v249_v12, %v257_v13  ;;  %v665_v4 = vld [vmem:[#allocation2 + $0xea0] sm:$0xff] }
 0x18d   :  { %3557 = vmatprep.subr.bf16.mxu0 %v14246_v22  ;;  %v233_v22 = vld [vmem:[#allocation2 + $0x120] sm:$0xff] }
 0x18e   :  { %3597 = vmatpush2.bf16.msra.mxu1 %v14517_v21  ;;  %v14408_v21 = vcombine.high %v505_v14, %v513_v15  ;;  %v649_v12 = vld [vmem:[#allocation2 + $0xe20] sm:$0xff] }
 0x18f   :  { %3598 = vmatprep.subr.bf16.mxu1 %v14502_v23  ;;  %v241_v23 = vld [vmem:[#allocation2 + $0x160] sm:$0xff] }
 0x190   :  { %3558 = vmatpush2.bf16.msra.mxu0 %v14245_v53  ;;  %v14136_v53 = vcombine.high %v233_v22, %v241_v23  ;;  %v14135_v32 = vcombine.low %v233_v22, %v241_v23  ;;  %v657_v13 = vld [vmem:[#allocation2 + $0xe60] sm:$0xff] }
 0x191   :  { %3559 = vmatprep.subr.bf16.mxu0 %v14230_v28  ;;  %v217_v28 = vld [vmem:[#allocation2 + $0xa0] sm:$0xff] }
 0x192   :  { %3599 = vmatpush2.bf16.msra.mxu1 %v14501_v54  ;;  %v14392_v54 = vcombine.high %v489_v24, %v497_v25  ;;  %v633_v22 = vld [vmem:[#allocation2 + $0xda0] sm:$0xff]  ;;  %v14551_v25 = vcombine.low %v649_v12, %v657_v13 }
 0x193   :  { %3600 = vmatprep.subr.bf16.mxu1 %v14486_v29  ;;  %v225_v29 = vld [vmem:[#allocation2 + $0xe0] sm:$0xff] }
 0x194   :  { %3560 = vmatpush2.bf16.msra.mxu0 %v14229_v34  ;;  %v14120_v34 = vcombine.high %v217_v28, %v225_v29  ;;  %v14119_v40 = vcombine.low %v217_v28, %v225_v29  ;;  %v641_v23 = vld [vmem:[#allocation2 + $0xde0] sm:$0xff] }
 0x195   :  { %3611 = vmatprep.subr.bf16.mxu0 %v14216_v36  ;;  %v201_v36 = vld [vmem:[#allocation2 + $0x20] sm:$0xff] }
 0x196   :  { %3601 = vmatpush2.bf16.msra.mxu1 %v14485_v35  ;;  %v14376_v35 = vcombine.high %v473_v30, %v481_v31  ;;  %v617_v28 = vld [vmem:[#allocation2 + $0xd20] sm:$0xff]  ;;  %v14535_v31 = vcombine.low %v633_v22, %v641_v23 }
 0x197   :  { %3652 = vmatprep.subr.bf16.mxu1 %v14472_v37  ;;  %v3317_v48 = vpop.f32.mrf.mxu0  ;;  %3562 = vmatmul.mubr.bf16.vlgmr.msra.gmra.mxu0 %v16833_v16  ;;  %v209_v37 = vld [vmem:[#allocation2 + $0x60] sm:$0xff] }
 0x198   :  { %3612 = vmatpush1.bf16.msra.mxu0 %v14215_v42  ;;  %3643 = vmatprep.mubr.bf16.mxu0 %v16823_v58  ;;  %v14104_v42 = vcombine.high %v201_v36, %v209_v37  ;;  %v625_v29 = vld [vmem:[#allocation2 + $0xd60] sm:$0xff] }
 0x199   :  { %v3358_v51 = vpop.f32.mrf.mxu1  ;;  %3603 = vmatmul.mubr.bf16.vlgmr.msra.gmra.mxu1 %v16837_v19  ;;  %v3319_v56 = vpop.f32.mrf.mxu0  ;;  %3613 = vmatprep.subr.bf16.mxu0 %v14200_v44  ;;  %v441_v44 = vld [vmem:[#allocation2 + $0x7a0] sm:$0xff] }
 0x19a   :  { %v16853_v55 = vadd.f32 %v3358_v51, %v3317_v48  ;;  %3653 = vmatpush1.bf16.msra.mxu1 %v14471_v43  ;;  %3684 = vmatprep.mubr.bf16.mxu1 %v16827_v59  ;;  %v14360_v43 = vcombine.high %v457_v38, %v465_v39  ;;  %v14103_v48 = vcombine.low %v201_v36, %v209_v37  ;;  %v601_v36 = vld [vmem:[#allocation2 + $0xca0] sm:$0xff] }
 0x19b   :  { %v3360_v61 = vpop.f32.mrf.mxu1  ;;  %3654 = vmatprep.subr.bf16.mxu1 %v14456_v45  ;;  %v3321_v2 = vpop.f32.mrf.mxu0  ;;  %v449_v45 = vld [vmem:[#allocation2 + $0x7e0] sm:$0xff]  ;;  %v14600_v51 = vcombine.high %v697_v46, %v705_v47  ;;  %v14519_v39 = vcombine.low %v617_v28, %v625_v29 }
 0x19c   :  { %v16856_v1 = vadd.f32 %v3360_v61, %v3319_v56  ;;  %3614 = vmatpush1.bf16.msra.mxu0 %v14199_v52  ;;  %v14344_v50 = vcombine.high %v441_v44, %v449_v45  ;;  %v425_v52 = vld [vmem:[#allocation2 + $0x720] sm:$0xff]  ;;  %v14343_v61 = vcombine.low %v441_v44, %v449_v45 }
 0x19d   :  { %v3362_v5 = vpop.f32.mrf.mxu1  ;;  %v3322_v7 = vpop.f32.mrf.mxu0  ;;  %3615 = vmatprep.subr.bf16.mxu0 %v14184_v60  ;;  %v433_v56 = vld [vmem:[#allocation2 + $0x760] sm:$0xff] }
 0x19e   :  { %3655 = vmatpush1.bf16.msra.mxu1 %v14455_v57  ;;  %v681_v57 = vld [vmem:[#allocation2 + $0xf20] sm:$0xff]  ;;  %v14328_v63 = vcombine.high %v425_v52, %v433_v56 }
 0x19f   :  { %v3363_v10 = vpop.f32.mrf.mxu1  ;;  %3656 = vmatprep.subr.bf16.mxu1 %v14440_v62  ;;  %v689_v60 = vld [vmem:[#allocation2 + $0xf60] sm:$0xff]  ;;  %v14599_v62 = vcombine.low %v697_v46, %v705_v47 }
 0x1a0   :  { %3616 = vmatpush1.bf16.msra.mxu0 %v14183_v6  ;;  %v14584_v0 = vcombine.high %v681_v57, %v689_v60  ;;  %v409_v2 = vld [vmem:[#allocation2 + $0x6a0] sm:$0xff]  ;;  %v14327_v6 = vcombine.low %v425_v52, %v433_v56  ;;  %v14583_v7 = vcombine.low %v681_v57, %v689_v60  ;;  %v570_v52 = vld [vmem:[#allocation2 + $0xba8] sm:$0xff] }
 0x1a1   :  { %3617 = vmatprep.subr.bf16.mxu0 %v14168_v9  ;;  %v673_v5 = vld [vmem:[#allocation2 + $0xee0] sm:$0xff]  ;;  %v14311_v14 = vcombine.low %v409_v2, %v417_v3  ;;  %v578_v56 = vld [vmem:[#allocation2 + $0xbe8] sm:$0xff] }
 0x1a2   :  { %3657 = vmatpush1.bf16.msra.mxu1 %v14439_v8  ;;  %v14312_v8 = vcombine.high %v409_v2, %v417_v3  ;;  %v14568_v9 = vcombine.high %v665_v4, %v673_v5  ;;  %v393_v10 = vld [vmem:[#allocation2 + $0x620] sm:$0xff]  ;;  %v14567_v15 = vcombine.low %v665_v4, %v673_v5  ;;  %v554_v2 = vld [vmem:[#allocation2 + $0xb28] sm:$0xff]  ;;  %v14473_v5 = vcombine.low %v570_v52, %v578_v56 }
 0x1a3   :  { %3658 = vmatprep.subr.bf16.mxu1 %v14424_v11  ;;  %v401_v11 = vld [vmem:[#allocation2 + $0x660] sm:$0xff]  ;;  %v562_v3 = vld [vmem:[#allocation2 + $0xb68] sm:$0xff] }
 0x1a4   :  { %3618 = vmatpush1.bf16.msra.mxu0 %v14167_v17  ;;  %v14296_v17 = vcombine.high %v393_v10, %v401_v11  ;;  %v14295_v24 = vcombine.low %v393_v10, %v401_v11  ;;  %v609_v37 = vld [vmem:[#allocation2 + $0xce0] sm:$0xff]  ;;  %v538_v11 = vld [vmem:[#allocation2 + $0xaa8] sm:$0xff] }
 0x1a5   :  { %3619 = vmatprep.subr.bf16.mxu0 %v14152_v20  ;;  %v377_v20 = vld [vmem:[#allocation2 + $0x5a0] sm:$0xff]  ;;  %v14503_v47 = vcombine.low %v601_v36, %v609_v37 }
 0x1a6   :  { %3659 = vmatpush1.bf16.msra.mxu1 %v14423_v18  ;;  %v14552_v18 = vcombine.high %v649_v12, %v657_v13  ;;  %v585_v44 = vld [vmem:[#allocation2 + $0xc20] sm:$0xff]  ;;  %v546_v12 = vld [vmem:[#allocation2 + $0xae8] sm:$0xff] }
 0x1a7   :  { %3660 = vmatprep.subr.bf16.mxu1 %v14408_v21  ;;  %v385_v21 = vld [vmem:[#allocation2 + $0x5e0] sm:$0xff] }
 0x1a8   :  { %3620 = vmatpush1.bf16.msra.mxu0 %v14151_v26  ;;  %v14280_v26 = vcombine.high %v377_v20, %v385_v21  ;;  %v14279_v30 = vcombine.low %v377_v20, %v385_v21  ;;  %v593_v45 = vld [vmem:[#allocation2 + $0xc60] sm:$0xff] }
 0x1a9   :  { %3621 = vmatprep.subr.bf16.mxu0 %v14136_v53  ;;  %v361_v53 = vld [vmem:[#allocation2 + $0x520] sm:$0xff]  ;;  %v14487_v60 = vcombine.low %v585_v44, %v593_v45 }
 0x1aa   :  { %3661 = vmatpush1.bf16.msra.mxu1 %v14407_v27  ;;  %v14536_v27 = vcombine.high %v633_v22, %v641_v23  ;;  %v14442_v22 = vcombine.high %v538_v11, %v546_v12  ;;  %v266_v23 = vld [vmem:[#allocation2 + $0x228] sm:$0xff] }
 0x1ab   :  { %3662 = vmatprep.subr.bf16.mxu1 %v14392_v54  ;;  %v369_v54 = vld [vmem:[#allocation2 + $0x560] sm:$0xff] }
 0x1ac   :  { %3622 = vmatpush1.bf16.msra.mxu0 %v14135_v32  ;;  %v14264_v32 = vcombine.high %v361_v53, %v369_v54  ;;  %v14263_v38 = vcombine.low %v361_v53, %v369_v54  ;;  %v530_v53 = vld [vmem:[#allocation2 + $0xa68] sm:$0xff] }
 0x1ad   :  { %3623 = vmatprep.subr.bf16.mxu0 %v14120_v34  ;;  %v345_v34 = vld [vmem:[#allocation2 + $0x4a0] sm:$0xff] }
 0x1ae   :  { %3663 = vmatpush1.bf16.msra.mxu1 %v14391_v33  ;;  %v14520_v33 = vcombine.high %v617_v28, %v625_v29 }
 0x1af   :  { %3664 = vmatprep.subr.bf16.mxu1 %v14376_v35  ;;  %v353_v35 = vld [vmem:[#allocation2 + $0x4e0] sm:$0xff] }
 0x1b0   :  { %3624 = vmatpush1.bf16.msra.mxu0 %v14119_v40  ;;  %v14248_v40 = vcombine.high %v345_v34, %v353_v35  ;;  %v14247_v46 = vcombine.low %v345_v34, %v353_v35  ;;  %v250_v34 = vld [vmem:[#allocation2 + $0x1a8] sm:$0xff] }
 0x1b1   :  { %3625 = vmatprep.subr.bf16.mxu0 %v14104_v42  ;;  %v329_v42 = vld [vmem:[#allocation2 + $0x420] sm:$0xff]  ;;  %v258_v35 = vld [vmem:[#allocation2 + $0x1e8] sm:$0xff] }
 0x1b2   :  { %3665 = vmatpush1.bf16.msra.mxu1 %v14375_v41  ;;  %v14504_v41 = vcombine.high %v601_v36, %v609_v37  ;;  %v506_v36 = vld [vmem:[#allocation2 + $0x9a8] sm:$0xff] }
 0x1b3   :  { %3666 = vmatprep.subr.bf16.mxu1 %v14360_v43  ;;  %v337_v43 = vld [vmem:[#allocation2 + $0x460] sm:$0xff]  ;;  %v514_v37 = vld [vmem:[#allocation2 + $0x9e8] sm:$0xff] }
 0x1b4   :  { %3626 = vmatpush1.bf16.msra.mxu0 %v14103_v48  ;;  %v14232_v48 = vcombine.high %v329_v42, %v337_v43  ;;  %v14231_v57 = vcombine.low %v329_v42, %v337_v43  ;;  %v234_v42 = vld [vmem:[#allocation2 + $0x128] sm:$0xff] }
 0x1b5   :  { %3627 = vmatprep.subr.bf16.mxu0 %v14344_v50  ;;  %v314_v50 = vld [vmem:[#allocation2 + $0x3a8] sm:$0xff] }
 0x1b6   :  { %3667 = vmatpush1.bf16.msra.mxu1 %v14359_v49  ;;  %v14488_v49 = vcombine.high %v585_v44, %v593_v45  ;;  %v242_v43 = vld [vmem:[#allocation2 + $0x168] sm:$0xff] }
 0x1b7   :  { %3668 = vmatprep.subr.bf16.mxu1 %v14600_v51  ;;  %v322_v51 = vld [vmem:[#allocation2 + $0x3e8] sm:$0xff] }
 0x1b8   :  { %3628 = vmatpush2.bf16.msra.mxu0 %v14343_v61  ;;  %v14218_v61 = vcombine.high %v314_v50, %v322_v51  ;;  %v14217_v4 = vcombine.low %v314_v50, %v322_v51  ;;  %v490_v44 = vld [vmem:[#allocation2 + $0x928] sm:$0xff] }
 0x1b9   :  { %3629 = vmatprep.subr.bf16.mxu0 %v14328_v63  ;;  %v298_v63 = vld [vmem:[#allocation2 + $0x328] sm:$0xff] }
 0x1ba   :  { %3669 = vmatpush2.bf16.msra.mxu1 %v14599_v62  ;;  %v14474_v62 = vcombine.high %v570_v52, %v578_v56  ;;  %v498_v45 = vld [vmem:[#allocation2 + $0x968] sm:$0xff] }
 0x1bb   :  { %3670 = vmatprep.subr.bf16.mxu1 %v14584_v0  ;;  %v306_v0 = vld [vmem:[#allocation2 + $0x368] sm:$0xff] }
 0x1bc   :  { %3630 = vmatpush2.bf16.msra.mxu0 %v14327_v6  ;;  %v14202_v6 = vcombine.high %v298_v63, %v306_v0  ;;  %v218_v50 = vld [vmem:[#allocation2 + $0xa8] sm:$0xff] }
 0x1bd   :  { %3631 = vmatprep.subr.bf16.mxu0 %v14312_v8  ;;  %v282_v8 = vld [vmem:[#allocation2 + $0x2a8] sm:$0xff] }
 0x1be   :  { %3671 = vmatpush2.bf16.msra.mxu1 %v14583_v7  ;;  %v14458_v7 = vcombine.high %v554_v2, %v562_v3  ;;  %v226_v51 = vld [vmem:[#allocation2 + $0xe8] sm:$0xff] }
 0x1bf   :  { %3672 = vmatprep.subr.bf16.mxu1 %v14568_v9  ;;  %v290_v9 = vld [vmem:[#allocation2 + $0x2e8] sm:$0xff] }
 0x1c0   :  { %3632 = vmatpush2.bf16.msra.mxu0 %v14311_v14  ;;  %v14201_v14 = vcombine.low %v298_v63, %v306_v0  ;;  %v14186_v20 = vcombine.high %v282_v8, %v290_v9  ;;  %v14185_v28 = vcombine.low %v282_v8, %v290_v9  ;;  %v474_v52 = vld [vmem:[#allocation2 + $0x8a8] sm:$0xff] }
 0x1c1   :  { %3633 = vmatprep.subr.bf16.mxu0 %v14296_v17  ;;  %v482_v56 = vld [vmem:[#allocation2 + $0x8e8] sm:$0xff] }
 0x1c2   :  { %3673 = vmatpush2.bf16.msra.mxu1 %v14567_v15  ;;  %v202_v63 = vld [vmem:[#allocation2 + $0x28] sm:$0xff] }
 0x1c3   :  { %3674 = vmatprep.subr.bf16.mxu1 %v14552_v18  ;;  %v14457_v18 = vcombine.low %v554_v2, %v562_v3  ;;  %v210_v0 = vld [vmem:[#allocation2 + $0x68] sm:$0xff] }
 0x1c4   :  { %3634 = vmatpush2.bf16.msra.mxu0 %v14295_v24  ;;  %v274_v24 = vld [vmem:[#allocation2 + $0x268] sm:$0xff] }
 0x1c5   :  { %3635 = vmatprep.subr.bf16.mxu0 %v14280_v26  ;;  %v458_v2 = vld [vmem:[#allocation2 + $0x828] sm:$0xff] }
 0x1c6   :  { %3675 = vmatpush2.bf16.msra.mxu1 %v14551_v25  ;;  %v466_v3 = vld [vmem:[#allocation2 + $0x868] sm:$0xff] }
 0x1c7   :  { %3676 = vmatprep.subr.bf16.mxu1 %v14536_v27  ;;  %v522_v27 = vld [vmem:[#allocation2 + $0xa28] sm:$0xff] }
 0x1c8   :  { %3636 = vmatpush2.bf16.msra.mxu0 %v14279_v30  ;;  %v14441_v30 = vcombine.low %v538_v11, %v546_v12  ;;  %v442_v8 = vld [vmem:[#allocation2 + $0x7a8] sm:$0xff]  ;;  %v14105_v12 = vcombine.low %v202_v63, %v210_v0 }
 0x1c9   :  { %3637 = vmatprep.subr.bf16.mxu0 %v14264_v32  ;;  %v450_v9 = vld [vmem:[#allocation2 + $0x7e8] sm:$0xff] }
 0x1ca   :  { %3677 = vmatpush2.bf16.msra.mxu1 %v14535_v31  ;;  %v14170_v31 = vcombine.high %v266_v23, %v274_v24  ;;  %v706_v11 = vld [vmem:[#allocation2 + $0xfe8] sm:$0xff] }
 0x1cb   :  { %3678 = vmatprep.subr.bf16.mxu1 %v14520_v33  ;;  %v14426_v33 = vcombine.high %v522_v27, %v530_v53 }
 0x1cc   :  { %3638 = vmatpush2.bf16.msra.mxu0 %v14263_v38  ;;  %v14169_v38 = vcombine.low %v266_v23, %v274_v24  ;;  %v14345_v23 = vcombine.low %v442_v8, %v450_v9 }
 0x1cd   :  { %3639 = vmatprep.subr.bf16.mxu0 %v14248_v40  ;;  %v14154_v40 = vcombine.high %v250_v34, %v258_v35 }
 0x1ce   :  { %3679 = vmatpush2.bf16.msra.mxu1 %v14519_v39  ;;  %v14425_v39 = vcombine.low %v522_v27, %v530_v53  ;;  %v410_v53 = vld [vmem:[#allocation2 + $0x6a8] sm:$0xff] }
 0x1cf   :  { %3680 = vmatprep.subr.bf16.mxu1 %v14504_v41  ;;  %v14410_v41 = vcombine.high %v506_v36, %v514_v37 }
 0x1d0   :  { %3640 = vmatpush2.bf16.msra.mxu0 %v14247_v46  ;;  %v14153_v46 = vcombine.low %v250_v34, %v258_v35  ;;  %v394_v34 = vld [vmem:[#allocation2 + $0x628] sm:$0xff] }
 0x1d1   :  { %3641 = vmatprep.subr.bf16.mxu0 %v14232_v48  ;;  %v14138_v48 = vcombine.high %v234_v42, %v242_v43  ;;  %v402_v35 = vld [vmem:[#allocation2 + $0x668] sm:$0xff] }
 0x1d2   :  { %3681 = vmatpush2.bf16.msra.mxu1 %v14503_v47  ;;  %v14409_v47 = vcombine.low %v506_v36, %v514_v37  ;;  %v650_v36 = vld [vmem:[#allocation2 + $0xe28] sm:$0xff] }
 0x1d3   :  { %3682 = vmatprep.subr.bf16.mxu1 %v14488_v49  ;;  %v14394_v49 = vcombine.high %v490_v44, %v498_v45  ;;  %v658_v37 = vld [vmem:[#allocation2 + $0xe68] sm:$0xff] }
 0x1d4   :  { %3642 = vmatpush2.bf16.msra.mxu0 %v14231_v57  ;;  %v14137_v57 = vcombine.low %v234_v42, %v242_v43  ;;  %v378_v42 = vld [vmem:[#allocation2 + $0x5a8] sm:$0xff] }
 0x1d5   :  { %3693 = vmatprep.subr.bf16.mxu0 %v14218_v61  ;;  %v14122_v61 = vcombine.high %v218_v50, %v226_v51  ;;  %v386_v43 = vld [vmem:[#allocation2 + $0x5e8] sm:$0xff] }
 0x1d6   :  { %3683 = vmatpush2.bf16.msra.mxu1 %v14487_v60  ;;  %v14393_v60 = vcombine.low %v490_v44, %v498_v45  ;;  %v634_v44 = vld [vmem:[#allocation2 + $0xda8] sm:$0xff] }
 0x1d7   :  { %3734 = vmatprep.subr.bf16.mxu1 %v14474_v62  ;;  %v3399_v10 = vpop.f32.mrf.mxu0  ;;  %3644 = vmatmul.mubr.bf16.vlgmr.msra.gmra.mxu0 %v16833_v16  ;;  %v14378_v62 = vcombine.high %v474_v52, %v482_v56  ;;  %v642_v45 = vld [vmem:[#allocation2 + $0xde8] sm:$0xff] }
 0x1d8   :  { %3694 = vmatpush1.bf16.msra.mxu0 %v14217_v4  ;;  %3725 = vmatprep.mubr.bf16.mxu0 %v16823_v58  ;;  %v14121_v4 = vcombine.low %v218_v50, %v226_v51  ;;  %v362_v50 = vld [vmem:[#allocation2 + $0x528] sm:$0xff] }
 0x1d9   :  { %v3440_v13 = vpop.f32.mrf.mxu1  ;;  %3685 = vmatmul.mubr.bf16.vlgmr.msra.gmra.mxu1 %v16837_v19  ;;  %v3401_v17 = vpop.f32.mrf.mxu0  ;;  %3695 = vmatprep.subr.bf16.mxu0 %v14202_v6  ;;  %v14106_v6 = vcombine.high %v202_v63, %v210_v0  ;;  %v370_v51 = vld [vmem:[#allocation2 + $0x568] sm:$0xff] }
 0x1da   :  { %v16861_v15 = vadd.f32 %v3440_v13, %v3399_v10  ;;  %3735 = vmatpush1.bf16.msra.mxu1 %v14473_v5  ;;  %3766 = vmatprep.mubr.bf16.mxu1 %v16827_v59  ;;  %v14377_v5 = vcombine.low %v474_v52, %v482_v56  ;;  %v698_v10 = vld [vmem:[#allocation2 + $0xfa8] sm:$0xff]  ;;  %v14361_v13 = vcombine.low %v458_v2, %v466_v3 }
 0x1db   :  { %v3442_v21 = vpop.f32.mrf.mxu1  ;;  %3736 = vmatprep.subr.bf16.mxu1 %v14458_v7  ;;  %v3403_v26 = vpop.f32.mrf.mxu0  ;;  %v14362_v7 = vcombine.high %v458_v2, %v466_v3  ;;  %v14601_v24 = vcombine.low %v698_v10, %v706_v11  ;;  %v618_v52 = vld [vmem:[#allocation2 + $0xd28] sm:$0xff] }
 0x1dc   :  { %v16864_v25 = vadd.f32 %v3442_v21, %v3401_v17  ;;  %3696 = vmatpush1.bf16.msra.mxu0 %v14201_v14  ;;  %v14346_v14 = vcombine.high %v442_v8, %v450_v9  ;;  %v14602_v17 = vcombine.high %v698_v10, %v706_v11  ;;  %v682_v21 = vld [vmem:[#allocation2 + $0xf28] sm:$0xff] }
 0x1dd   :  { %v3444_v54 = vpop.f32.mrf.mxu1  ;;  %v3404_v29 = vpop.f32.mrf.mxu0  ;;  %3697 = vmatprep.subr.bf16.mxu0 %v14186_v20  ;;  %v434_v20 = vld [vmem:[#allocation2 + $0x768] sm:$0xff] }
 0x1de   :  { %3737 = vmatpush1.bf16.msra.mxu1 %v14457_v18  ;;  %v426_v18 = vld [vmem:[#allocation2 + $0x728] sm:$0xff] }
 0x1df   :  { %v3445_v32 = vpop.f32.mrf.mxu1  ;;  %3738 = vmatprep.subr.bf16.mxu1 %v14442_v22  ;;  %v690_v22 = vld [vmem:[#allocation2 + $0xf68] sm:$0xff]  ;;  %v14330_v26 = vcombine.high %v426_v18, %v434_v20 }
 0x1e0   :  { %3698 = vmatpush1.bf16.msra.mxu0 %v14185_v28  ;;  %v14586_v27 = vcombine.high %v682_v21, %v690_v22  ;;  %v418_v54 = vld [vmem:[#allocation2 + $0x6e8] sm:$0xff] }
 0x1e1   :  { %3699 = vmatprep.subr.bf16.mxu0 %v14170_v31  ;;  %v666_v28 = vld [vmem:[#allocation2 + $0xea8] sm:$0xff]  ;;  %v14585_v31 = vcombine.low %v682_v21, %v690_v22  ;;  %v14314_v32 = vcombine.high %v410_v53, %v418_v54  ;;  %v571_v21 = vld [vmem:[#allocation2 + $0xbb0] sm:$0xff] }
 0x1e2   :  { %3739 = vmatpush1.bf16.msra.mxu1 %v14441_v30  ;;  %v674_v29 = vld [vmem:[#allocation2 + $0xee8] sm:$0xff]  ;;  %v14329_v30 = vcombine.low %v426_v18, %v434_v20  ;;  %v315_v18 = vld [vmem:[#allocation2 + $0x3b0] sm:$0xff] }
 0x1e3   :  { %3740 = vmatprep.subr.bf16.mxu1 %v14426_v33  ;;  %v14570_v33 = vcombine.high %v666_v28, %v674_v29  ;;  %v626_v56 = vld [vmem:[#allocation2 + $0xd68] sm:$0xff]  ;;  %v323_v20 = vld [vmem:[#allocation2 + $0x3f0] sm:$0xff] }
 0x1e4   :  { %3700 = vmatpush1.bf16.msra.mxu0 %v14169_v38  ;;  %v14313_v38 = vcombine.low %v410_v53, %v418_v54  ;;  %v346_v63 = vld [vmem:[#allocation2 + $0x4a8] sm:$0xff]  ;;  %v579_v22 = vld [vmem:[#allocation2 + $0xbf0] sm:$0xff] }
 0x1e5   :  { %3701 = vmatprep.subr.bf16.mxu0 %v14154_v40  ;;  %v14298_v40 = vcombine.high %v394_v34, %v402_v35  ;;  %v354_v0 = vld [vmem:[#allocation2 + $0x4e8] sm:$0xff]  ;;  %v299_v53 = vld [vmem:[#allocation2 + $0x330] sm:$0xff] }
 0x1e6   :  { %3741 = vmatpush1.bf16.msra.mxu1 %v14425_v39  ;;  %v14569_v39 = vcombine.low %v666_v28, %v674_v29  ;;  %v602_v2 = vld [vmem:[#allocation2 + $0xca8] sm:$0xff]  ;;  %v307_v54 = vld [vmem:[#allocation2 + $0x370] sm:$0xff] }
 0x1e7   :  { %3742 = vmatprep.subr.bf16.mxu1 %v14410_v41  ;;  %v14554_v41 = vcombine.high %v650_v36, %v658_v37  ;;  %v610_v3 = vld [vmem:[#allocation2 + $0xce8] sm:$0xff]  ;;  %v555_v28 = vld [vmem:[#allocation2 + $0xb30] sm:$0xff] }
 0x1e8   :  { %3702 = vmatpush1.bf16.msra.mxu0 %v14153_v46  ;;  %v14297_v46 = vcombine.low %v394_v34, %v402_v35  ;;  %v330_v8 = vld [vmem:[#allocation2 + $0x428] sm:$0xff]  ;;  %v563_v29 = vld [vmem:[#allocation2 + $0xb70] sm:$0xff] }
 0x1e9   :  { %3703 = vmatprep.subr.bf16.mxu0 %v14138_v48  ;;  %v14282_v48 = vcombine.high %v378_v42, %v386_v43  ;;  %v338_v9 = vld [vmem:[#allocation2 + $0x468] sm:$0xff]  ;;  %v283_v34 = vld [vmem:[#allocation2 + $0x2b0] sm:$0xff] }
 0x1ea   :  { %3743 = vmatpush1.bf16.msra.mxu1 %v14409_v47  ;;  %v14553_v47 = vcombine.low %v650_v36, %v658_v37  ;;  %v586_v10 = vld [vmem:[#allocation2 + $0xc28] sm:$0xff]  ;;  %v291_v35 = vld [vmem:[#allocation2 + $0x2f0] sm:$0xff] }
 0x1eb   :  { %3744 = vmatprep.subr.bf16.mxu1 %v14394_v49  ;;  %v14538_v49 = vcombine.high %v634_v44, %v642_v45  ;;  %v594_v11 = vld [vmem:[#allocation2 + $0xc68] sm:$0xff]  ;;  %v539_v37 = vld [vmem:[#allocation2 + $0xab0] sm:$0xff] }
 0x1ec   :  { %3704 = vmatpush1.bf16.msra.mxu0 %v14137_v57  ;;  %v14281_v57 = vcombine.low %v378_v42, %v386_v43  ;;  %v14459_v43 = vcombine.low %v555_v28, %v563_v29 }
 0x1ed   :  { %3705 = vmatprep.subr.bf16.mxu0 %v14122_v61  ;;  %v14266_v61 = vcombine.high %v362_v50, %v370_v51 }
 0x1ee   :  { %3745 = vmatpush1.bf16.msra.mxu1 %v14393_v60  ;;  %v14537_v60 = vcombine.low %v634_v44, %v642_v45  ;;  %v14188_v44 = vcombine.high %v283_v34, %v291_v35 }
 0x1ef   :  { %3746 = vmatprep.subr.bf16.mxu1 %v14378_v62  ;;  %v14522_v62 = vcombine.high %v618_v52, %v626_v56 }
 0x1f0   :  { %3706 = vmatpush1.bf16.msra.mxu0 %v14121_v4  ;;  %v14265_v4 = vcombine.low %v362_v50, %v370_v51  ;;  %v523_v51 = vld [vmem:[#allocation2 + $0xa30] sm:$0xff] }
 0x1f1   :  { %3707 = vmatprep.subr.bf16.mxu0 %v14106_v6  ;;  %v14250_v6 = vcombine.high %v346_v63, %v354_v0 }
 0x1f2   :  { %3747 = vmatpush1.bf16.msra.mxu1 %v14377_v5  ;;  %v14521_v5 = vcombine.low %v618_v52, %v626_v56  ;;  %v531_v52 = vld [vmem:[#allocation2 + $0xa70] sm:$0xff] }
 0x1f3   :  { %3748 = vmatprep.subr.bf16.mxu1 %v14362_v7  ;;  %v14506_v7 = vcombine.high %v602_v2, %v610_v3 }
 0x1f4   :  { %3708 = vmatpush1.bf16.msra.mxu0 %v14105_v12  ;;  %v14249_v12 = vcombine.low %v346_v63, %v354_v0  ;;  %v14428_v0 = vcombine.high %v523_v51, %v531_v52 }
 0x1f5   :  { %3709 = vmatprep.subr.bf16.mxu0 %v14346_v14  ;;  %v14234_v14 = vcombine.high %v330_v8, %v338_v9 }
 0x1f6   :  { %3749 = vmatpush1.bf16.msra.mxu1 %v14361_v13  ;;  %v14505_v13 = vcombine.low %v602_v2, %v610_v3  ;;  %v251_v2 = vld [vmem:[#allocation2 + $0x1b0] sm:$0xff] }
 0x1f7   :  { %3750 = vmatprep.subr.bf16.mxu1 %v14602_v17  ;;  %v14490_v17 = vcombine.high %v586_v10, %v594_v11  ;;  %v259_v3 = vld [vmem:[#allocation2 + $0x1f0] sm:$0xff] }
 0x1f8   :  { %3710 = vmatpush2.bf16.msra.mxu0 %v14345_v23  ;;  %v14233_v23 = vcombine.low %v330_v8, %v338_v9  ;;  %v14156_v8 = vcombine.high %v251_v2, %v259_v3 }
 0x1f9   :  { %3711 = vmatprep.subr.bf16.mxu0 %v14330_v26  ;;  %v14220_v26 = vcombine.high %v315_v18, %v323_v20 }
 0x1fa   :  { %3751 = vmatpush2.bf16.msra.mxu1 %v14601_v24  ;;  %v14489_v24 = vcombine.low %v586_v10, %v594_v11  ;;  %v235_v10 = vld [vmem:[#allocation2 + $0x130] sm:$0xff] }
 0x1fb   :  { %3752 = vmatprep.subr.bf16.mxu1 %v14586_v27  ;;  %v14476_v27 = vcombine.high %v571_v21, %v579_v22  ;;  %v243_v11 = vld [vmem:[#allocation2 + $0x170] sm:$0xff] }
 0x1fc   :  { %3712 = vmatpush2.bf16.msra.mxu0 %v14329_v30  ;;  %v14219_v30 = vcombine.low %v315_v18, %v323_v20  ;;  %v14140_v18 = vcombine.high %v235_v10, %v243_v11 }
 0x1fd   :  { %3713 = vmatprep.subr.bf16.mxu0 %v14314_v32  ;;  %v14204_v32 = vcombine.high %v299_v53, %v307_v54 }
 0x1fe   :  { %3753 = vmatpush2.bf16.msra.mxu1 %v14585_v31  ;;  %v14475_v31 = vcombine.low %v571_v21, %v579_v22  ;;  %v219_v21 = vld [vmem:[#allocation2 + $0xb0] sm:$0xff] }
 0x1ff   :  { %3754 = vmatprep.subr.bf16.mxu1 %v14570_v33  ;;  %v14460_v33 = vcombine.high %v555_v28, %v563_v29  ;;  %v227_v22 = vld [vmem:[#allocation2 + $0xf0] sm:$0xff] }
 0x200   :  { %3714 = vmatpush2.bf16.msra.mxu0 %v14313_v38  ;;  %v547_v38 = vld [vmem:[#allocation2 + $0xaf0] sm:$0xff] }
 0x201   :  { %3715 = vmatprep.subr.bf16.mxu0 %v14298_v40  ;;  %v14203_v40 = vcombine.low %v299_v53, %v307_v54  ;;  %v14124_v53 = vcombine.high %v219_v21, %v227_v22  ;;  %v203_v28 = vld [vmem:[#allocation2 + $0x30] sm:$0xff] }
 0x202   :  { %3755 = vmatpush2.bf16.msra.mxu1 %v14569_v39  ;;  %v211_v29 = vld [vmem:[#allocation2 + $0x70] sm:$0xff] }
 0x203   :  { %3756 = vmatprep.subr.bf16.mxu1 %v14554_v41 }
 0x204   :  { %3716 = vmatpush2.bf16.msra.mxu0 %v14297_v46  ;;  %v14444_v46 = vcombine.high %v539_v37, %v547_v38 }
 0x205   :  { %3717 = vmatprep.subr.bf16.mxu0 %v14282_v48  ;;  %v275_v48 = vld [vmem:[#allocation2 + $0x270] sm:$0xff] }
 0x206   :  { %3757 = vmatpush2.bf16.msra.mxu1 %v14553_v47  ;;  %v267_v47 = vld [vmem:[#allocation2 + $0x230] sm:$0xff] }
 0x207   :  { %3758 = vmatprep.subr.bf16.mxu1 %v14538_v49 }
 0x208   :  { %3718 = vmatpush2.bf16.msra.mxu0 %v14281_v57  ;;  %v14187_v57 = vcombine.low %v283_v34, %v291_v35  ;;  %v14108_v34 = vcombine.high %v203_v28, %v211_v29 }
 0x209   :  { %3719 = vmatprep.subr.bf16.mxu0 %v14266_v61  ;;  %v14443_v61 = vcombine.low %v539_v37, %v547_v38  ;;  %v451_v37 = vld [vmem:[#allocation2 + $0x7f0] sm:$0xff] }
 0x20a   :  { %3759 = vmatpush2.bf16.msra.mxu1 %v14537_v60  ;;  %v699_v38 = vld [vmem:[#allocation2 + $0xfb0] sm:$0xff] }
 0x20b   :  { %3760 = vmatprep.subr.bf16.mxu1 %v14522_v62  ;;  %v14172_v62 = vcombine.high %v267_v47, %v275_v48 }
 0x20c   :  { %3720 = vmatpush2.bf16.msra.mxu0 %v14265_v4  ;;  %v507_v4 = vld [vmem:[#allocation2 + $0x9b0] sm:$0xff] }
 0x20d   :  { %3721 = vmatprep.subr.bf16.mxu0 %v14250_v6  ;;  %v14171_v6 = vcombine.low %v267_v47, %v275_v48  ;;  %v683_v47 = vld [vmem:[#allocation2 + $0xf30] sm:$0xff] }
 0x20e   :  { %3761 = vmatpush2.bf16.msra.mxu1 %v14521_v5  ;;  %v515_v5 = vld [vmem:[#allocation2 + $0x9f0] sm:$0xff] }
 0x20f   :  { %3762 = vmatprep.subr.bf16.mxu1 %v14506_v7  ;;  %v14427_v7 = vcombine.low %v523_v51, %v531_v52  ;;  %v14412_v9 = vcombine.high %v507_v4, %v515_v5  ;;  %v691_v48 = vld [vmem:[#allocation2 + $0xf70] sm:$0xff] }
 0x210   :  { %3722 = vmatpush2.bf16.msra.mxu0 %v14249_v12  ;;  %v491_v12 = vld [vmem:[#allocation2 + $0x930] sm:$0xff] }
 0x211   :  { %3723 = vmatprep.subr.bf16.mxu0 %v14234_v14  ;;  %v14155_v14 = vcombine.low %v251_v2, %v259_v3 }
 0x212   :  { %3763 = vmatpush2.bf16.msra.mxu1 %v14505_v13  ;;  %v499_v13 = vld [vmem:[#allocation2 + $0x970] sm:$0xff] }
 0x213   :  { %3764 = vmatprep.subr.bf16.mxu1 %v14490_v17  ;;  %v14411_v17 = vcombine.low %v507_v4, %v515_v5  ;;  %v14396_v20 = vcombine.high %v491_v12, %v499_v13  ;;  %v395_v4 = vld [vmem:[#allocation2 + $0x630] sm:$0xff] }
 0x214   :  { %3724 = vmatpush2.bf16.msra.mxu0 %v14233_v23  ;;  %v475_v23 = vld [vmem:[#allocation2 + $0x8b0] sm:$0xff] }
 0x215   :  { %3775 = vmatprep.subr.bf16.mxu0 %v14220_v26  ;;  %v14139_v26 = vcombine.low %v235_v10, %v243_v11  ;;  %v403_v5 = vld [vmem:[#allocation2 + $0x670] sm:$0xff] }
 0x216   :  { %3765 = vmatpush2.bf16.msra.mxu1 %v14489_v24  ;;  %v483_v24 = vld [vmem:[#allocation2 + $0x8f0] sm:$0xff]  ;;  %v14300_v10 = vcombine.high %v395_v4, %v403_v5 }
 0x217   :  { %3816 = vmatprep.subr.bf16.mxu1 %v14476_v27  ;;  %v3481_v36 = vpop.f32.mrf.mxu0  ;;  %3726 = vmatmul.mubr.bf16.vlgmr.msra.gmra.mxu0 %v16833_v16  ;;  %v14395_v27 = vcombine.low %v491_v12, %v499_v13  ;;  %v14380_v54 = vcombine.high %v475_v23, %v483_v24  ;;  %v379_v12 = vld [vmem:[#allocation2 + $0x5b0] sm:$0xff] }
 0x218   :  { %3776 = vmatpush1.bf16.msra.mxu0 %v14219_v30  ;;  %3807 = vmatprep.mubr.bf16.mxu0 %v16823_v58  ;;  %v459_v30 = vld [vmem:[#allocation2 + $0x830] sm:$0xff] }
 0x219   :  { %v3522_v39 = vpop.f32.mrf.mxu1  ;;  %3767 = vmatmul.mubr.bf16.vlgmr.msra.gmra.mxu1 %v16837_v19  ;;  %v3483_v42 = vpop.f32.mrf.mxu0  ;;  %3777 = vmatprep.subr.bf16.mxu0 %v14204_v32  ;;  %v14123_v32 = vcombine.low %v219_v21, %v227_v22  ;;  %v387_v13 = vld [vmem:[#allocation2 + $0x5f0] sm:$0xff] }
 0x21a   :  { %v16869_v41 = vadd.f32 %v3522_v39, %v3481_v36  ;;  %3817 = vmatpush1.bf16.msra.mxu1 %v14475_v31  ;;  %3848 = vmatprep.mubr.bf16.mxu1 %v16827_v59  ;;  %v467_v31 = vld [vmem:[#allocation2 + $0x870] sm:$0xff]  ;;  %v14284_v21 = vcombine.high %v379_v12, %v387_v13 }
 0x21b   :  { %v3524_v45 = vpop.f32.mrf.mxu1  ;;  %3818 = vmatprep.subr.bf16.mxu1 %v14460_v33  ;;  %v3485_v50 = vpop.f32.mrf.mxu0  ;;  %v14379_v33 = vcombine.low %v475_v23, %v483_v24  ;;  %v14364_v35 = vcombine.high %v459_v30, %v467_v31  ;;  %v443_v36 = vld [vmem:[#allocation2 + $0x7b0] sm:$0xff] }
 0x21c   :  { %v16872_v49 = vadd.f32 %v3524_v45, %v3483_v42  ;;  %3778 = vmatpush1.bf16.msra.mxu0 %v14203_v40  ;;  %v707_v39 = vld [vmem:[#allocation2 + $0xff0] sm:$0xff]  ;;  %v14107_v40 = vcombine.low %v203_v28, %v211_v29  ;;  %v14363_v42 = vcombine.low %v459_v30, %v467_v31  ;;  %v14347_v50 = vcombine.low %v443_v36, %v451_v37 }
 0x21d   :  { %v3526_v56 = vpop.f32.mrf.mxu1  ;;  %v3486_v60 = vpop.f32.mrf.mxu0  ;;  %3779 = vmatprep.subr.bf16.mxu0 %v14188_v44  ;;  %v14604_v44 = vcombine.high %v699_v38, %v707_v39  ;;  %v427_v45 = vld [vmem:[#allocation2 + $0x730] sm:$0xff]  ;;  %v14603_v51 = vcombine.low %v699_v38, %v707_v39 }
 0x21e   :  { %3819 = vmatpush1.bf16.msra.mxu1 %v14459_v43  ;;  %v14348_v43 = vcombine.high %v443_v36, %v451_v37  ;;  %v14588_v56 = vcombine.high %v683_v47, %v691_v48  ;;  %v419_v60 = vld [vmem:[#allocation2 + $0x6f0] sm:$0xff] }
 0x21f   :  { %v3527_v63 = vpop.f32.mrf.mxu1  ;;  %3820 = vmatprep.subr.bf16.mxu1 %v14444_v46  ;;  %v435_v46 = vld [vmem:[#allocation2 + $0x770] sm:$0xff] }
 0x220   :  { %3780 = vmatpush1.bf16.msra.mxu0 %v14187_v57  ;;  %v14332_v52 = vcombine.high %v427_v45, %v435_v46  ;;  %v411_v57 = vld [vmem:[#allocation2 + $0x6b0] sm:$0xff]  ;;  %v14331_v63 = vcombine.low %v427_v45, %v435_v46 }
 0x221   :  { %3781 = vmatprep.subr.bf16.mxu0 %v14172_v62  ;;  %v675_v62 = vld [vmem:[#allocation2 + $0xef0] sm:$0xff]  ;;  %v14316_v2 = vcombine.high %v411_v57, %v419_v60 }
 0x222   :  { %3821 = vmatpush1.bf16.msra.mxu1 %v14443_v61  ;;  %v667_v61 = vld [vmem:[#allocation2 + $0xeb0] sm:$0xff] }
 0x223   :  { %3822 = vmatprep.subr.bf16.mxu1 %v14428_v0  ;;  %v14587_v0 = vcombine.low %v683_v47, %v691_v48  ;;  %v14572_v3 = vcombine.high %v667_v61, %v675_v62  ;;  %v363_v23 = vld [vmem:[#allocation2 + $0x530] sm:$0xff]  ;;  %v316_v47 = vld [vmem:[#allocation2 + $0x3b8] sm:$0xff] }
 0x224   :  { %3782 = vmatpush1.bf16.msra.mxu0 %v14171_v6  ;;  %v651_v6 = vld [vmem:[#allocation2 + $0xe30] sm:$0xff]  ;;  %v324_v48 = vld [vmem:[#allocation2 + $0x3f8] sm:$0xff] }
 0x225   :  { %3783 = vmatprep.subr.bf16.mxu0 %v14156_v8  ;;  %v14315_v8 = vcombine.low %v411_v57, %v419_v60  ;;  %v371_v24 = vld [vmem:[#allocation2 + $0x570] sm:$0xff]  ;;  %v14222_v57 = vcombine.high %v316_v47, %v324_v48 }
 0x226   :  { %3823 = vmatpush1.bf16.msra.mxu1 %v14427_v7  ;;  %v659_v7 = vld [vmem:[#allocation2 + $0xe70] sm:$0xff]  ;;  %v14268_v28 = vcombine.high %v363_v23, %v371_v24 }
 0x227   :  { %3824 = vmatprep.subr.bf16.mxu1 %v14412_v9  ;;  %v14571_v9 = vcombine.low %v667_v61, %v675_v62  ;;  %v14556_v11 = vcombine.high %v651_v6, %v659_v7  ;;  %v347_v30 = vld [vmem:[#allocation2 + $0x4b0] sm:$0xff]  ;;  %v300_v61 = vld [vmem:[#allocation2 + $0x338] sm:$0xff] }
 0x228   :  { %3784 = vmatpush1.bf16.msra.mxu0 %v14155_v14  ;;  %v635_v14 = vld [vmem:[#allocation2 + $0xdb0] sm:$0xff]  ;;  %v308_v62 = vld [vmem:[#allocation2 + $0x378] sm:$0xff] }
 0x229   :  { %3785 = vmatprep.subr.bf16.mxu0 %v14140_v18  ;;  %v14299_v18 = vcombine.low %v395_v4, %v403_v5  ;;  %v355_v31 = vld [vmem:[#allocation2 + $0x4f0] sm:$0xff]  ;;  %v14206_v4 = vcombine.high %v300_v61, %v308_v62 }
 0x22a   :  { %3825 = vmatpush1.bf16.msra.mxu1 %v14411_v17  ;;  %v643_v17 = vld [vmem:[#allocation2 + $0xdf0] sm:$0xff]  ;;  %v14252_v36 = vcombine.high %v347_v30, %v355_v31 }
 0x22b   :  { %3826 = vmatprep.subr.bf16.mxu1 %v14396_v20  ;;  %v14555_v20 = vcombine.low %v651_v6, %v659_v7  ;;  %v14540_v22 = vcombine.high %v635_v14, %v643_v17  ;;  %v331_v38 = vld [vmem:[#allocation2 + $0x430] sm:$0xff]  ;;  %v284_v6 = vld [vmem:[#allocation2 + $0x2b8] sm:$0xff] }
 0x22c   :  { %3786 = vmatpush1.bf16.msra.mxu0 %v14139_v26  ;;  %v619_v26 = vld [vmem:[#allocation2 + $0xd30] sm:$0xff]  ;;  %v292_v7 = vld [vmem:[#allocation2 + $0x2f8] sm:$0xff] }
 0x22d   :  { %3787 = vmatprep.subr.bf16.mxu0 %v14124_v53  ;;  %v14283_v53 = vcombine.low %v379_v12, %v387_v13  ;;  %v339_v39 = vld [vmem:[#allocation2 + $0x470] sm:$0xff]  ;;  %v14205_v12 = vcombine.low %v300_v61, %v308_v62 }
 0x22e   :  { %3827 = vmatpush1.bf16.msra.mxu1 %v14395_v27  ;;  %v627_v27 = vld [vmem:[#allocation2 + $0xd70] sm:$0xff]  ;;  %v14236_v45 = vcombine.high %v331_v38, %v339_v39 }
 0x22f   :  { %3828 = vmatprep.subr.bf16.mxu1 %v14380_v54  ;;  %v14539_v54 = vcombine.low %v635_v14, %v643_v17  ;;  %v14524_v29 = vcombine.high %v619_v26, %v627_v27 }
 0x230   :  { %3788 = vmatpush1.bf16.msra.mxu0 %v14123_v32  ;;  %v603_v32 = vld [vmem:[#allocation2 + $0xcb0] sm:$0xff] }
 0x231   :  { %3789 = vmatprep.subr.bf16.mxu0 %v14108_v34  ;;  %v14267_v34 = vcombine.low %v363_v23, %v371_v24  ;;  %v276_v23 = vld [vmem:[#allocation2 + $0x278] sm:$0xff] }
 0x232   :  { %3829 = vmatpush1.bf16.msra.mxu1 %v14379_v33  ;;  %v611_v33 = vld [vmem:[#allocation2 + $0xcf0] sm:$0xff] }
 0x233   :  { %3830 = vmatprep.subr.bf16.mxu1 %v14364_v35  ;;  %v14523_v35 = vcombine.low %v619_v26, %v627_v27  ;;  %v14508_v37 = vcombine.high %v603_v32, %v611_v33  ;;  %v524_v27 = vld [vmem:[#allocation2 + $0xa38] sm:$0xff] }
 0x234   :  { %3790 = vmatpush1.bf16.msra.mxu0 %v14107_v40  ;;  %v587_v40 = vld [vmem:[#allocation2 + $0xc30] sm:$0xff] }
 0x235   :  { %3791 = vmatprep.subr.bf16.mxu0 %v14348_v43  ;;  %v14251_v43 = vcombine.low %v347_v30, %v355_v31 }
 0x236   :  { %3831 = vmatpush1.bf16.msra.mxu1 %v14363_v42  ;;  %v595_v42 = vld [vmem:[#allocation2 + $0xc70] sm:$0xff] }
 0x237   :  { %3832 = vmatprep.subr.bf16.mxu1 %v14604_v44  ;;  %v14507_v44 = vcombine.low %v603_v32, %v611_v33  ;;  %v14492_v46 = vcombine.high %v587_v40, %v595_v42 }
 0x238   :  { %3792 = vmatpush2.bf16.msra.mxu0 %v14347_v50  ;;  %v572_v50 = vld [vmem:[#allocation2 + $0xbb8] sm:$0xff] }
 0x239   :  { %3793 = vmatprep.subr.bf16.mxu0 %v14332_v52  ;;  %v14235_v52 = vcombine.low %v331_v38, %v339_v39 }
 0x23a   :  { %3833 = vmatpush2.bf16.msra.mxu1 %v14603_v51  ;;  %v580_v51 = vld [vmem:[#allocation2 + $0xbf8] sm:$0xff] }
 0x23b   :  { %3834 = vmatprep.subr.bf16.mxu1 %v14588_v56  ;;  %v14491_v56 = vcombine.low %v587_v40, %v595_v42  ;;  %v14478_v60 = vcombine.high %v572_v50, %v580_v51  ;;  %v236_v40 = vld [vmem:[#allocation2 + $0x138] sm:$0xff] }
 0x23c   :  { %3794 = vmatpush2.bf16.msra.mxu0 %v14331_v63  ;;  %v556_v63 = vld [vmem:[#allocation2 + $0xb38] sm:$0xff] }
 0x23d   :  { %3795 = vmatprep.subr.bf16.mxu0 %v14316_v2  ;;  %v14221_v2 = vcombine.low %v316_v47, %v324_v48  ;;  %v244_v42 = vld [vmem:[#allocation2 + $0x178] sm:$0xff] }
 0x23e   :  { %3835 = vmatpush2.bf16.msra.mxu1 %v14587_v0  ;;  %v564_v0 = vld [vmem:[#allocation2 + $0xb78] sm:$0xff]  ;;  %v14142_v47 = vcombine.high %v236_v40, %v244_v42 }
 0x23f   :  { %3836 = vmatprep.subr.bf16.mxu1 %v14572_v3  ;;  %v14477_v3 = vcombine.low %v572_v50, %v580_v51  ;;  %v14462_v5 = vcombine.high %v556_v63, %v564_v0  ;;  %v14461_v17 = vcombine.low %v556_v63, %v564_v0  ;;  %v220_v50 = vld [vmem:[#allocation2 + $0xb8] sm:$0xff] }
 0x240   :  { %3796 = vmatpush2.bf16.msra.mxu0 %v14315_v8  ;;  %v228_v51 = vld [vmem:[#allocation2 + $0xf8] sm:$0xff] }
 0x241   :  { %3797 = vmatprep.subr.bf16.mxu0 %v14300_v10  ;;  %v548_v10 = vld [vmem:[#allocation2 + $0xaf8] sm:$0xff]  ;;  %v14126_v61 = vcombine.high %v220_v50, %v228_v51 }
 0x242   :  { %3837 = vmatpush2.bf16.msra.mxu1 %v14571_v9  ;;  %v540_v9 = vld [vmem:[#allocation2 + $0xab8] sm:$0xff] }
 0x243   :  { %3838 = vmatprep.subr.bf16.mxu1 %v14556_v11  ;;  %v14445_v30 = vcombine.low %v540_v9, %v548_v10  ;;  %v204_v63 = vld [vmem:[#allocation2 + $0x38] sm:$0xff] }
 0x244   :  { %3798 = vmatpush2.bf16.msra.mxu0 %v14299_v18  ;;  %v14190_v18 = vcombine.high %v284_v6, %v292_v7  ;;  %v212_v0 = vld [vmem:[#allocation2 + $0x78] sm:$0xff] }
 0x245   :  { %3799 = vmatprep.subr.bf16.mxu0 %v14284_v21  ;;  %v14446_v21 = vcombine.high %v540_v9, %v548_v10  ;;  %v452_v9 = vld [vmem:[#allocation2 + $0x7f8] sm:$0xff] }
 0x246   :  { %3839 = vmatpush2.bf16.msra.mxu1 %v14555_v20  ;;  %v700_v10 = vld [vmem:[#allocation2 + $0xfb8] sm:$0xff] }
 0x247   :  { %3840 = vmatprep.subr.bf16.mxu1 %v14540_v22  ;;  %v268_v22 = vld [vmem:[#allocation2 + $0x238] sm:$0xff] }
 0x248   :  { %3800 = vmatpush2.bf16.msra.mxu0 %v14283_v53  ;;  %v532_v53 = vld [vmem:[#allocation2 + $0xa78] sm:$0xff]  ;;  %v14174_v31 = vcombine.high %v268_v22, %v276_v23 }
 0x249   :  { %3801 = vmatprep.subr.bf16.mxu0 %v14268_v28  ;;  %v14189_v28 = vcombine.low %v284_v6, %v292_v7  ;;  %v14430_v33 = vcombine.high %v524_v27, %v532_v53  ;;  %v14110_v6 = vcombine.high %v204_v63, %v212_v0 }
 0x24a   :  { %3841 = vmatpush2.bf16.msra.mxu1 %v14539_v54 }
 0x24b   :  { %3842 = vmatprep.subr.bf16.mxu1 %v14524_v29 }
 0x24c   :  { %3802 = vmatpush2.bf16.msra.mxu0 %v14267_v34  ;;  %v252_v34 = vld [vmem:[#allocation2 + $0x1b8] sm:$0xff] }
 0x24d   :  { %3803 = vmatprep.subr.bf16.mxu0 %v14252_v36  ;;  %v516_v36 = vld [vmem:[#allocation2 + $0x9f8] sm:$0xff] }
 0x24e   :  { %3843 = vmatpush2.bf16.msra.mxu1 %v14523_v35  ;;  %v508_v35 = vld [vmem:[#allocation2 + $0x9b8] sm:$0xff] }
 0x24f   :  { %3844 = vmatprep.subr.bf16.mxu1 %v14508_v37  ;;  %v14173_v37 = vcombine.low %v268_v22, %v276_v23  ;;  %v14414_v39 = vcombine.high %v508_v35, %v516_v36  ;;  %v684_v22 = vld [vmem:[#allocation2 + $0xf38] sm:$0xff] }
 0x250   :  { %3804 = vmatpush2.bf16.msra.mxu0 %v14251_v43  ;;  %v492_v43 = vld [vmem:[#allocation2 + $0x938] sm:$0xff] }
 0x251   :  { %3805 = vmatprep.subr.bf16.mxu0 %v14236_v45  ;;  %v692_v23 = vld [vmem:[#allocation2 + $0xf78] sm:$0xff] }
 0x252   :  { %3845 = vmatpush2.bf16.msra.mxu1 %v14507_v44  ;;  %v500_v44 = vld [vmem:[#allocation2 + $0x978] sm:$0xff] }
 0x253   :  { %3846 = vmatprep.subr.bf16.mxu1 %v14492_v46  ;;  %v14413_v46 = vcombine.low %v508_v35, %v516_v36  ;;  %v14398_v48 = vcombine.high %v492_v43, %v500_v44  ;;  %v396_v35 = vld [vmem:[#allocation2 + $0x638] sm:$0xff] }
 0x254   :  { %3806 = vmatpush2.bf16.msra.mxu0 %v14235_v52  ;;  %v476_v52 = vld [vmem:[#allocation2 + $0x8b8] sm:$0xff] }
 0x255   :  { %3857 = vmatprep.subr.bf16.mxu0 %v14222_v57  ;;  %v14141_v57 = vcombine.low %v236_v40, %v244_v42  ;;  %v404_v36 = vld [vmem:[#allocation2 + $0x678] sm:$0xff] }
 0x256   :  { %3847 = vmatpush2.bf16.msra.mxu1 %v14491_v56  ;;  %v484_v56 = vld [vmem:[#allocation2 + $0x8f8] sm:$0xff]  ;;  %v14302_v42 = vcombine.high %v396_v35, %v404_v36 }
 0x257   :  { %3898 = vmatprep.subr.bf16.mxu1 %v14478_v60  ;;  %v3563_v8 = vpop.f32.mrf.mxu0  ;;  %3808 = vmatmul.mubr.bf16.vlgmr.msra.gmra.mxu0 %v16833_v16  ;;  %v14397_v60 = vcombine.low %v492_v43, %v500_v44  ;;  %v14382_v62 = vcombine.high %v476_v52, %v484_v56  ;;  %v380_v44 = vld [vmem:[#allocation2 + $0x5b8] sm:$0xff] }
 0x258   :  { %3858 = vmatpush1.bf16.msra.mxu0 %v14221_v2  ;;  %3889 = vmatprep.mubr.bf16.mxu0 %v16823_v58  ;;  %v260_v58 = vld [vmem:[#allocation2 + $0x1f8] sm:$0xff] }
 0x259   :  { %v3604_v11 = vpop.f32.mrf.mxu1  ;;  %3849 = vmatmul.mubr.bf16.vlgmr.msra.gmra.mxu1 %v16837_v19  ;;  %v3565_v14 = vpop.f32.mrf.mxu0  ;;  %3859 = vmatprep.subr.bf16.mxu0 %v14206_v4  ;;  %v14158_v38 = vcombine.high %v252_v34, %v260_v58  ;;  %v14157_v45 = vcombine.low %v252_v34, %v260_v58  ;;  %v460_v2 = vld [vmem:[#allocation2 + $0x838] sm:$0xff]  ;;  %v14125_v4 = vcombine.low %v220_v50, %v228_v51 }
 0x25a   :  { %v16877_v13 = vadd.f32 %v3604_v11, %v3563_v8  ;;  %3899 = vmatpush1.bf16.msra.mxu1 %v14477_v3  ;;  %3930 = vmatprep.mubr.bf16.mxu1 %v16827_v59  ;;  %v14429_v59 = vcombine.low %v524_v27, %v532_v53  ;;  %v468_v3 = vld [vmem:[#allocation2 + $0x878] sm:$0xff]  ;;  %v14301_v50 = vcombine.low %v396_v35, %v404_v36  ;;  %v4355_v35 = vld [vmem:[#allocation7 + $0x5c0] sm:$0xff] }
 0x25b   :  { %v3606_v20 = vpop.f32.mrf.mxu1  ;;  %3900 = vmatprep.subr.bf16.mxu1 %v14462_v5  ;;  %v3567_v26 = vpop.f32.mrf.mxu0  ;;  %v14381_v5 = vcombine.low %v476_v52, %v484_v56  ;;  %v14366_v7 = vcombine.high %v460_v2, %v468_v3  ;;  %v444_v8 = vld [vmem:[#allocation2 + $0x7b8] sm:$0xff]  ;;  %v4359_v36 = vld [vmem:[#allocation7 + $0x5e0] sm:$0xff] }
 0x25c   :  { %v16880_v24 = vadd.f32 %v3606_v20, %v3565_v14  ;;  %3860 = vmatpush1.bf16.msra.mxu0 %v14205_v12  ;;  %v708_v11 = vld [vmem:[#allocation2 + $0xff8] sm:$0xff]  ;;  %v14109_v12 = vcombine.low %v204_v63, %v212_v0  ;;  %v14365_v14 = vcombine.low %v460_v2, %v468_v3  ;;  %v14349_v26 = vcombine.low %v444_v8, %v452_v9  ;;  %v16888_v0 = vld [vmem:[#allocation4] sm:$0xff] }
 0x25d   :  { %v3608_v54 = vpop.f32.mrf.mxu1  ;;  %v3568_v29 = vpop.f32.mrf.mxu0  ;;  %3861 = vmatprep.subr.bf16.mxu0 %v14190_v18  ;;  %v14606_v18 = vcombine.high %v700_v10, %v708_v11  ;;  %v428_v20 = vld [vmem:[#allocation2 + $0x738] sm:$0xff]  ;;  %v14605_v27 = vcombine.low %v700_v10, %v708_v11 }
 0x25e   :  { %3901 = vmatpush1.bf16.msra.mxu1 %v14461_v17  ;;  %v14350_v17 = vcombine.high %v444_v8, %v452_v9  ;;  %v14590_v54 = vcombine.high %v684_v22, %v692_v23  ;;  %v420_v29 = vld [vmem:[#allocation2 + $0x6f8] sm:$0xff] }
 0x25f   :  { %v3609_v32 = vpop.f32.mrf.mxu1  ;;  %3902 = vmatprep.subr.bf16.mxu1 %v14446_v21  ;;  %v436_v21 = vld [vmem:[#allocation2 + $0x778] sm:$0xff] }
 0x260   :  { %3862 = vmatpush1.bf16.msra.mxu0 %v14189_v28  ;;  %v14334_v53 = vcombine.high %v428_v20, %v436_v21  ;;  %v412_v28 = vld [vmem:[#allocation2 + $0x6b8] sm:$0xff]  ;;  %v14333_v32 = vcombine.low %v428_v20, %v436_v21 }
 0x261   :  { %3863 = vmatprep.subr.bf16.mxu0 %v14174_v31  ;;  %v676_v31 = vld [vmem:[#allocation2 + $0xef8] sm:$0xff]  ;;  %v14318_v34 = vcombine.high %v412_v28, %v420_v29 }
 0x262   :  { %3903 = vmatpush1.bf16.msra.mxu1 %v14445_v30  ;;  %v668_v30 = vld [vmem:[#allocation2 + $0xeb8] sm:$0xff] }
 0x263   :  { %3904 = vmatprep.subr.bf16.mxu1 %v14430_v33  ;;  %v14589_v33 = vcombine.low %v684_v22, %v692_v23  ;;  %v14574_v58 = vcombine.high %v668_v30, %v676_v31  ;;  %v14573_v40 = vcombine.low %v668_v30, %v676_v31  ;;  %v628_v63 = vld [vmem:[#allocation2 + $0xd78] sm:$0xff] }
 0x264   :  { %3864 = vmatpush1.bf16.msra.mxu0 %v14173_v37  ;;  %v3943_v37 = vlaneseq  ;;  %v356_v8 = vld [vmem:[#allocation2 + $0x4f8] sm:$0xff] }
 0x265   :  { %3865 = vmatprep.subr.bf16.mxu0 %v14158_v38  ;;  %v660_v38 = vld [vmem:[#allocation2 + $0xe78] sm:$0xff] }
 0x266   :  { %3905 = vmatpush1.bf16.msra.mxu1 %v14429_v59  ;;  %v652_v59 = vld [vmem:[#allocation2 + $0xe38] sm:$0xff] }
 0x267   :  { %3906 = vmatprep.subr.bf16.mxu1 %v14414_v39  ;;  %v14317_v39 = vcombine.low %v412_v28, %v420_v29  ;;  %v14558_v43 = vcombine.high %v652_v59, %v660_v38  ;;  %v14557_v51 = vcombine.low %v652_v59, %v660_v38  ;;  %v604_v10 = vld [vmem:[#allocation2 + $0xcb8] sm:$0xff] }
 0x268   :  { %3866 = vmatpush1.bf16.msra.mxu0 %v14157_v45  ;;  %v388_v45 = vld [vmem:[#allocation2 + $0x5f8] sm:$0xff] }
 0x269   :  { %3867 = vmatprep.subr.bf16.mxu0 %v14142_v47  ;;  %v636_v47 = vld [vmem:[#allocation2 + $0xdb8] sm:$0xff]  ;;  %v14286_v52 = vcombine.high %v380_v44, %v388_v45  ;;  %v14285_v3 = vcombine.low %v380_v44, %v388_v45 }
 0x26a   :  { %3907 = vmatpush1.bf16.msra.mxu1 %v14413_v46  ;;  %v16883_v46 = vshrl.u32 %v3943_v37, 7  ;;  %v612_v11 = vld [vmem:[#allocation2 + $0xcf8] sm:$0xff] }
 0x26b   :  { %3908 = vmatprep.subr.bf16.mxu1 %v14398_v48  ;;  %v644_v48 = vld [vmem:[#allocation2 + $0xdf8] sm:$0xff]  ;;  %v14510_v21 = vcombine.high %v604_v10, %v612_v11  ;;  %v14509_v31 = vcombine.low %v604_v10, %v612_v11 }
 0x26c   :  { %3868 = vmatpush1.bf16.msra.mxu0 %v14141_v57  ;;  %v14542_v56 = vcombine.high %v636_v47, %v644_v48  ;;  %v364_v57 = vld [vmem:[#allocation2 + $0x538] sm:$0xff]  ;;  %v16891_v2 = vsub.s32 3, %v16883_v46 }
 0x26d   :  { %3869 = vmatprep.subr.bf16.mxu0 %v14126_v61  ;;  %v16886_v61 = vsub.s32 1, %v16883_v46  ;;  %v332_v22 = vld [vmem:[#allocation2 + $0x438] sm:$0xff] }
 0x26e   :  { %3909 = vmatpush1.bf16.msra.mxu1 %v14397_v60  ;;  %v372_v60 = vld [vmem:[#allocation2 + $0x578] sm:$0xff] }
 0x26f   :  { %3910 = vmatprep.subr.bf16.mxu1 %v14382_v62  ;;  %v620_v62 = vld [vmem:[#allocation2 + $0xd38] sm:$0xff]  ;;  %v3950_v9 = vrot.slane %v16888_v0, %v16886_v61 }
 0x270   :  { %3870 = vmatpush1.bf16.msra.mxu0 %v14125_v4  ;;  %v14541_v4 = vcombine.low %v636_v47, %v644_v48  ;;  %v340_v23 = vld [vmem:[#allocation2 + $0x478] sm:$0xff]  ;;  %v4347_v47 = vld [vmem:[#allocation7 + $0x580] sm:$0xff] }
 0x271   :  { %3871 = vmatprep.subr.bf16.mxu0 %v14110_v6  ;;  %v14526_v6 = vcombine.high %v620_v62, %v628_v63  ;;  %v14237_v59 = vcombine.low %v332_v22, %v340_v23  ;;  %v4351_v48 = vld [vmem:[#allocation7 + $0x5a0] sm:$0xff] }
 0x272   :  { %3911 = vmatpush1.bf16.msra.mxu1 %v14381_v5  ;;  %v14270_v5 = vcombine.high %v364_v57, %v372_v60 }
 0x273   :  { %3912 = vmatprep.subr.bf16.mxu1 %v14366_v7  ;;  %v348_v7 = vld [vmem:[#allocation2 + $0x4b8] sm:$0xff] }
 0x274   :  { %3872 = vmatpush1.bf16.msra.mxu0 %v14109_v12  ;;  %v16895_v12 = vld [vmem:[#allocation6] sm:$0xff]  ;;  %v14254_v20 = vcombine.high %v348_v7, %v356_v8  ;;  %v14253_v30 = vcombine.low %v348_v7, %v356_v8 }
 0x275   :  { %3873 = vmatprep.subr.bf16.mxu0 %v14350_v17  ;;  %v14269_v17 = vcombine.low %v364_v57, %v372_v60  ;;  %v4058_v29 = vrot.slane %v16895_v12, %v16891_v2 }
 0x276   :  { %3913 = vmatpush1.bf16.msra.mxu1 %v14365_v14  ;;  %v3958_v14 = vrot.slane %v16888_v0, %v16891_v2 }
 0x277   :  { %3914 = vmatprep.subr.bf16.mxu1 %v14606_v18  ;;  %v14525_v18 = vcombine.low %v620_v62, %v628_v63  ;;  %v14784_v62 = vcombine.high %v4347_v47, %v4351_v48  ;;  %v4339_v63 = vld [vmem:[#allocation7 + $0x540] sm:$0xff] }
 0x278   :  { %3874 = vmatpush2.bf16.msra.mxu0 %v14349_v26  ;;  %v4024_v26 = vmul.f32 %v3950_v9, %v16856_v1  ;;  %v4026_v28 = vmul.f32 %v3958_v14, %v16864_v25  ;;  %v4231_v1 = vld [vmem:[#allocation7 + $0x1e0] sm:$0xff]  ;;  %v14783_v9 = vcombine.low %v4347_v47, %v4351_v48 }
 0x279   :  { %3875 = vmatprep.subr.bf16.mxu0 %v14334_v53  ;;  %v588_v53 = vld [vmem:[#allocation2 + $0xc38] sm:$0xff]  ;;  %v4203_v14 = vld [vmem:[#allocation7 + $0x100] sm:$0xff] }
 0x27a   :  { %3915 = vmatpush2.bf16.msra.mxu1 %v14605_v27  ;;  %v4050_v27 = vrot.slane %v16895_v12, %v16886_v61  ;;  %v4126_v37 = vadd.f32 %v4058_v29, %v4026_v28  ;;  %v4195_v29 = vld [vmem:[#allocation7 + $0xc0] sm:$0xff] }
 0x27b   :  { %3916 = vmatprep.subr.bf16.mxu1 %v14590_v54  ;;  %v596_v54 = vld [vmem:[#allocation2 + $0xc78] sm:$0xff] }
 0x27c   :  { %3876 = vmatpush2.bf16.msra.mxu0 %v14333_v32  ;;  %v14238_v32 = vcombine.high %v332_v22, %v340_v23  ;;  %v14493_v25 = vcombine.low %v588_v53, %v596_v54  ;;  %v4142_v44 = vmax.f32 %v4126_v37, 0.0  ;;  %v4315_v37 = vld [vmem:[#allocation7 + $0x480] sm:$0xff] }
 0x27d   :  { %3877 = vmatprep.subr.bf16.mxu0 %v14318_v34  ;;  %v4227_v34 = vld [vmem:[#allocation7 + $0x1c0] sm:$0xff] }
 0x27e   :  { %3917 = vmatpush2.bf16.msra.mxu1 %v14589_v33  ;;  %v14494_v33 = vcombine.high %v588_v53, %v596_v54  ;;  %v14664_v38 = vcombine.high %v4227_v34, %v4231_v1  ;;  %v14663_v45 = vcombine.low %v4227_v34, %v4231_v1 }
 0x27f   :  { %3918 = vmatprep.subr.bf16.mxu1 %v14574_v58  ;;  %v4124_v58 = vadd.f32 %v4050_v27, %v4024_v26 }
 0x280   :  { %3878 = vmatpush2.bf16.msra.mxu0 %v14317_v39  ;;  %v14792_v39 = vcombine.high %v4355_v35, %v4359_v36 }
 0x281   :  { %3879 = vmatprep.subr.bf16.mxu0 %v14302_v42  ;;  %v4219_v42 = vld [vmem:[#allocation7 + $0x180] sm:$0xff] }
 0x282   :  { %3919 = vmatpush2.bf16.msra.mxu1 %v14573_v40  ;;  %v4140_v40 = vmax.f32 %v4124_v58, 0.0 }
 0x283   :  { %3920 = vmatprep.subr.bf16.mxu1 %v14558_v43  ;;  %v4223_v43 = vld [vmem:[#allocation7 + $0x1a0] sm:$0xff] }
 0x284   :  { %3880 = vmatpush2.bf16.msra.mxu0 %v14301_v50  ;;  %v14791_v50 = vcombine.low %v4355_v35, %v4359_v36  ;;  %v16905_v57 = vpack.c.bf16 %v4140_v40, %v4140_v40  ;;  %v4187_v35 = vld [vmem:[#allocation7 + $0x80] sm:$0xff] }
 0x285   :  { %3881 = vmatprep.subr.bf16.mxu0 %v14286_v52  ;;  %v4211_v52 = vld [vmem:[#allocation7 + $0x140] sm:$0xff] }
 0x286   :  { %3921 = vmatpush2.bf16.msra.mxu1 %v14557_v51  ;;  %v14656_v51 = vcombine.high %v4219_v42, %v4223_v43  ;;  %v4191_v36 = vld [vmem:[#allocation7 + $0xa0] sm:$0xff] }
 0x287   :  { %3922 = vmatprep.subr.bf16.mxu1 %v14542_v56  ;;  %v4215_v56 = vld [vmem:[#allocation7 + $0x160] sm:$0xff]  ;;  %v14623_v47 = vcombine.low %v4187_v35, %v4191_v36 }
 0x288   :  { %3882 = vmatpush2.bf16.msra.mxu0 %v14285_v3  ;;  %v4343_v3 = vld [vmem:[#allocation7 + $0x560] sm:$0xff]  ;;  %v14648_v10 = vcombine.high %v4211_v52, %v4215_v56  ;;  %v14647_v23 = vcombine.low %v4211_v52, %v4215_v56 }
 0x289   :  { %3883 = vmatprep.subr.bf16.mxu0 %v14270_v5  ;;  %v14776_v11 = vcombine.high %v4339_v63, %v4343_v3  ;;  %v14775_v27 = vcombine.low %v4339_v63, %v4343_v3  ;;  %v4171_v52 = vld [vmem:[#allocation7] sm:$0xff] }
 0x28a   :  { %3923 = vmatpush2.bf16.msra.mxu1 %v14541_v4  ;;  %v16908_v4 = vpack.c.bf16 %v4142_v44, %v4142_v44  ;;  %v4307_v44 = vld [vmem:[#allocation7 + $0x440] sm:$0xff] }
 0x28b   :  { %3924 = vmatprep.subr.bf16.mxu1 %v14526_v6  ;;  %v14655_v6 = vcombine.low %v4219_v42, %v4223_v43  ;;  %v4179_v42 = vld [vmem:[#allocation7 + $0x40] sm:$0xff] }
 0x28c   :  { %3884 = vmatpush2.bf16.msra.mxu0 %v14269_v17  ;;  %v4207_v17 = vld [vmem:[#allocation7 + $0x120] sm:$0xff] }
 0x28d   :  { %3885 = vmatprep.subr.bf16.mxu0 %v14254_v20  ;;  %v4331_v20 = vld [vmem:[#allocation7 + $0x500] sm:$0xff]  ;;  %v14640_v53 = vcombine.high %v4203_v14, %v4207_v17 }
 0x28e   :  { %3925 = vmatpush2.bf16.msra.mxu1 %v14525_v18  ;;  %v4183_v43 = vld [vmem:[#allocation7 + $0x60] sm:$0xff] }
 0x28f   :  { %3926 = vmatprep.subr.bf16.mxu1 %v14510_v21  ;;  %v4335_v21 = vld [vmem:[#allocation7 + $0x520] sm:$0xff]  ;;  %v14615_v63 = vcombine.low %v4179_v42, %v4183_v43 }
 0x290   :  { %3886 = vmatpush2.bf16.msra.mxu0 %v14253_v30  ;;  %v14768_v28 = vcombine.high %v4331_v20, %v4335_v21  ;;  %v4199_v30 = vld [vmem:[#allocation7 + $0xe0] sm:$0xff]  ;;  %v14767_v34 = vcombine.low %v4331_v20, %v4335_v21 }
 0x291   :  { %3887 = vmatprep.subr.bf16.mxu0 %v14238_v32  ;;  %v4327_v32 = vld [vmem:[#allocation7 + $0x4e0] sm:$0xff]  ;;  %v14632_v1 = vcombine.high %v4195_v29, %v4199_v30 }
 0x292   :  { %3927 = vmatpush2.bf16.msra.mxu1 %v14509_v31  ;;  %v4323_v31 = vld [vmem:[#allocation7 + $0x4c0] sm:$0xff] }
 0x293   :  { %3928 = vmatprep.subr.bf16.mxu1 %v14494_v33  ;;  %v14639_v33 = vcombine.low %v4203_v14, %v4207_v17  ;;  %v14760_v58 = vcombine.high %v4323_v31, %v4327_v32  ;;  %v4175_v56 = vld [vmem:[#allocation7 + $0x20] sm:$0xff] }
 0x294   :  { %3888 = vmatpush2.bf16.msra.mxu0 %v14237_v59  ;;  %v4319_v59 = vld [vmem:[#allocation7 + $0x4a0] sm:$0xff] }
 0x295   :  { %10315 = vmatprep.subr.bf16.mxu0 %v14664_v38  ;;  %v14759_v38 = vcombine.low %v4323_v31, %v4327_v32  ;;  %v14752_v40 = vcombine.high %v4315_v37, %v4319_v59  ;;  %v14751_v48 = vcombine.low %v4315_v37, %v4319_v59  ;;  %v4283_v20 = vld [vmem:[#allocation7 + $0x380] sm:$0xff] }
 0x296   :  { %3929 = vmatpush2.bf16.msra.mxu1 %v14493_v25  ;;  %v14631_v25 = vcombine.low %v4195_v29, %v4199_v30  ;;  %v4287_v21 = vld [vmem:[#allocation7 + $0x3a0] sm:$0xff] }
 0x297   :  { %10356 = vmatprep.subr.bf16.mxu1 %v14792_v39  ;;  %v3645_v60 = vpop.f32.mrf.mxu0  ;;  %3890 = vmatmul.mubr.bf16.vlgmr.msra.gmra.mxu0 %v16833_v16  ;;  %v14624_v39 = vcombine.high %v4187_v35, %v4191_v36  ;;  %v4279_v29 = vld [vmem:[#allocation7 + $0x360] sm:$0xff]  ;;  %v14719_v32 = vcombine.low %v4283_v20, %v4287_v21 }
 0x298   :  { %10316 = vmatpush1.bf16.msra.mxu0 %v14663_v45  ;;  %10347 = vmatprep.mubr.bf16.mxu0 %v16905_v57  ;;  %v4311_v45 = vld [vmem:[#allocation7 + $0x460] sm:$0xff] }
 0x299   :  { %v3686_v5 = vpop.f32.mrf.mxu1  ;;  %3931 = vmatmul.mubr.bf16.vlgmr.msra.gmra.mxu1 %v16837_v19  ;;  %v3647_v8 = vpop.f32.mrf.mxu0  ;;  %10317 = vmatprep.subr.bf16.mxu0 %v14656_v51  ;;  %v14744_v51 = vcombine.high %v4307_v44, %v4311_v45  ;;  %v14743_v3 = vcombine.low %v4307_v44, %v4311_v45  ;;  %v4403_v30 = vld [vmem:[#allocation7 + $0x740] sm:$0xff] }
 0x29a   :  { %v16911_v7 = vadd.f32 %v3686_v5, %v3645_v60  ;;  %10357 = vmatpush1.bf16.msra.mxu1 %v14791_v50  ;;  %10388 = vmatprep.mubr.bf16.mxu1 %v16908_v4  ;;  %v14616_v50 = vcombine.high %v4179_v42, %v4183_v43  ;;  %v4299_v60 = vld [vmem:[#allocation7 + $0x400] sm:$0xff]  ;;  %v14608_v5 = vcombine.high %v4171_v52, %v4175_v56 }
 0x29b   :  { %v3688_v16 = vpop.f32.mrf.mxu1  ;;  %v3649_v19 = vpop.f32.mrf.mxu0  ;;  %10358 = vmatprep.subr.bf16.mxu1 %v14784_v62  ;;  %v4303_v62 = vld [vmem:[#allocation7 + $0x420] sm:$0xff] }
 0x29c   :  { %v16915_v18 = vadd.f32 %v3688_v16, %v3647_v8  ;;  %10318 = vmatpush1.bf16.msra.mxu0 %v14655_v6  ;;  %v14736_v6 = vcombine.high %v4299_v60, %v4303_v62  ;;  %v4291_v8 = vld [vmem:[#allocation7 + $0x3c0] sm:$0xff]  ;;  %v14735_v14 = vcombine.low %v4299_v60, %v4303_v62  ;;  %v16924_v62 = vsub.s32 5, %v16883_v46 }
 0x29d   :  { %v3690_v22 = vpop.f32.mrf.mxu1  ;;  %v3650_v26 = vpop.f32.mrf.mxu0  ;;  %10319 = vmatprep.subr.bf16.mxu0 %v14648_v10  ;;  %v4419_v10 = vld [vmem:[#allocation7 + $0x7c0] sm:$0xff] }
 0x29e   :  { %10359 = vmatpush1.bf16.msra.mxu1 %v14783_v9  ;;  %v4295_v9 = vld [vmem:[#allocation7 + $0x3e0] sm:$0xff] }
 0x29f   :  { %v3691_v54 = vpop.f32.mrf.mxu1  ;;  %10360 = vmatprep.subr.bf16.mxu1 %v14776_v11  ;;  %v4423_v16 = vld [vmem:[#allocation7 + $0x7e0] sm:$0xff]  ;;  %v14607_v11 = vcombine.low %v4171_v52, %v4175_v56  ;;  %v14728_v17 = vcombine.high %v4291_v8, %v4295_v9  ;;  %v14727_v26 = vcombine.low %v4291_v8, %v4295_v9 }
 0x2a0   :  { %10320 = vmatpush1.bf16.msra.mxu0 %v14647_v23  ;;  %v14856_v19 = vcombine.high %v4419_v10, %v4423_v16  ;;  %v4411_v22 = vld [vmem:[#allocation7 + $0x780] sm:$0xff] }
 0x2a1   :  { %10321 = vmatprep.subr.bf16.mxu0 %v14640_v53  ;;  %v4415_v23 = vld [vmem:[#allocation7 + $0x7a0] sm:$0xff]  ;;  %v14720_v53 = vcombine.high %v4283_v20, %v4287_v21 }
 0x2a2   :  { %10361 = vmatpush1.bf16.msra.mxu1 %v14775_v27  ;;  %v14855_v27 = vcombine.low %v4419_v10, %v4423_v16  ;;  %v14848_v54 = vcombine.high %v4411_v22, %v4415_v23  ;;  %v4407_v31 = vld [vmem:[#allocation7 + $0x760] sm:$0xff] }
 0x2a3   :  { %10362 = vmatprep.subr.bf16.mxu1 %v14768_v28  ;;  %v4275_v28 = vld [vmem:[#allocation7 + $0x340] sm:$0xff] }
 0x2a4   :  { %10322 = vmatpush1.bf16.msra.mxu0 %v14639_v33  ;;  %v14847_v33 = vcombine.low %v4411_v22, %v4415_v23  ;;  %v4271_v35 = vld [vmem:[#allocation7 + $0x320] sm:$0xff]  ;;  %v14711_v59 = vcombine.low %v4275_v28, %v4279_v29 }
 0x2a5   :  { %10323 = vmatprep.subr.bf16.mxu0 %v14632_v1  ;;  %v14840_v1 = vcombine.high %v4403_v30, %v4407_v31  ;;  %v4395_v36 = vld [vmem:[#allocation7 + $0x700] sm:$0xff] }
 0x2a6   :  { %10363 = vmatpush1.bf16.msra.mxu1 %v14767_v34  ;;  %v14712_v34 = vcombine.high %v4275_v28, %v4279_v29  ;;  %v4399_v37 = vld [vmem:[#allocation7 + $0x720] sm:$0xff] }
 0x2a7   :  { %10364 = vmatprep.subr.bf16.mxu1 %v14760_v58  ;;  %v4267_v58 = vld [vmem:[#allocation7 + $0x300] sm:$0xff] }
 0x2a8   :  { %10324 = vmatpush1.bf16.msra.mxu0 %v14631_v25  ;;  %v14839_v25 = vcombine.low %v4403_v30, %v4407_v31  ;;  %v4263_v42 = vld [vmem:[#allocation7 + $0x2e0] sm:$0xff]  ;;  %v14703_v45 = vcombine.low %v4267_v58, %v4271_v35 }
 0x2a9   :  { %10325 = vmatprep.subr.bf16.mxu0 %v14624_v39  ;;  %v14832_v39 = vcombine.high %v4395_v36, %v4399_v37  ;;  %v4387_v43 = vld [vmem:[#allocation7 + $0x6c0] sm:$0xff] }
 0x2aa   :  { %10365 = vmatpush1.bf16.msra.mxu1 %v14759_v38  ;;  %v14704_v38 = vcombine.high %v4267_v58, %v4271_v35  ;;  %v4391_v44 = vld [vmem:[#allocation7 + $0x6e0] sm:$0xff] }
 0x2ab   :  { %10366 = vmatprep.subr.bf16.mxu1 %v14752_v40  ;;  %v4259_v40 = vld [vmem:[#allocation7 + $0x2c0] sm:$0xff]  ;;  %v14824_v52 = vcombine.high %v4387_v43, %v4391_v44  ;;  %v14823_v9 = vcombine.low %v4387_v43, %v4391_v44 }
 0x2ac   :  { %10326 = vmatpush1.bf16.msra.mxu0 %v14623_v47  ;;  %v16918_v47 = vsub.s32 0, %v16883_v46  ;;  %v4251_v56 = vld [vmem:[#allocation7 + $0x280] sm:$0xff] }
 0x2ad   :  { %10327 = vmatprep.subr.bf16.mxu0 %v14616_v50  ;;  %v14696_v50 = vcombine.high %v4259_v40, %v4263_v42  ;;  %v4255_v60 = vld [vmem:[#allocation7 + $0x2a0] sm:$0xff] }
 0x2ae   :  { %10367 = vmatpush1.bf16.msra.mxu1 %v14751_v48  ;;  %v14831_v48 = vcombine.low %v4395_v36, %v4399_v37  ;;  %v3946_v8 = vrot.slane %v16888_v0, %v16918_v47  ;;  %v14688_v10 = vcombine.high %v4251_v56, %v4255_v60  ;;  %v4371_v20 = vld [vmem:[#allocation7 + $0x640] sm:$0xff]  ;;  %v4046_v22 = vrot.slane %v16895_v12, %v16918_v47 }
 0x2af   :  { %10368 = vmatprep.subr.bf16.mxu1 %v14744_v51  ;;  %v16921_v51 = vsub.s32 2, %v16883_v46  ;;  %v4375_v21 = vld [vmem:[#allocation7 + $0x660] sm:$0xff] }
 0x2b0   :  { %10328 = vmatpush1.bf16.msra.mxu0 %v14615_v63  ;;  %v4379_v63 = vld [vmem:[#allocation7 + $0x680] sm:$0xff]  ;;  %v14808_v30 = vcombine.high %v4371_v20, %v4375_v21  ;;  %v14807_v37 = vcombine.low %v4371_v20, %v4375_v21 }
 0x2b1   :  { %10329 = vmatprep.subr.bf16.mxu0 %v14608_v5  ;;  %v16927_v5 = vsub.s32 7, %v16883_v46  ;;  %v3954_v16 = vrot.slane %v16888_v0, %v16921_v51  ;;  %v4054_v29 = vrot.slane %v16895_v12, %v16921_v51  ;;  %v4235_v31 = vld [vmem:[#allocation7 + $0x200] sm:$0xff] }
 0x2b2   :  { %10369 = vmatpush1.bf16.msra.mxu1 %v14743_v3  ;;  %v4383_v3 = vld [vmem:[#allocation7 + $0x6a0] sm:$0xff] }
 0x2b3   :  { %10370 = vmatprep.subr.bf16.mxu1 %v14736_v6  ;;  %v14695_v6 = vcombine.low %v4259_v40, %v4263_v42  ;;  %v3974_v23 = vrot.slane %v16888_v0, %v16927_v5  ;;  %v4025_v28 = vmul.f32 %v3954_v16, %v16861_v15  ;;  %v4074_v35 = vrot.slane %v16895_v12, %v16927_v5  ;;  %v4611_v42 = vld [vmem:[#allocation7 + $0xdc0] sm:$0xff] }
 0x2b4   :  { %10330 = vmatpush1.bf16.msra.mxu0 %v14607_v11  ;;  %v14816_v11 = vcombine.high %v4379_v63, %v4383_v3  ;;  %v4615_v43 = vld [vmem:[#allocation7 + $0xde0] sm:$0xff] }
 0x2b5   :  { %10331 = vmatprep.subr.bf16.mxu0 %v14728_v17  ;;  %v4247_v17 = vld [vmem:[#allocation7 + $0x260] sm:$0xff]  ;;  %v4030_v58 = vmul.f32 %v3974_v23, %v16880_v24 }
 0x2b6   :  { %10371 = vmatpush1.bf16.msra.mxu1 %v14735_v14  ;;  %v4243_v14 = vld [vmem:[#allocation7 + $0x240] sm:$0xff] }
 0x2b7   :  { %10372 = vmatprep.subr.bf16.mxu1 %v14856_v19  ;;  %v3966_v19 = vrot.slane %v16888_v0, %v16924_v62  ;;  %v14679_v15 = vcombine.low %v4243_v14, %v4247_v17  ;;  %v4130_v44 = vadd.f32 %v4074_v35, %v4030_v58  ;;  %v4471_v20 = vld [vmem:[#allocation7 + $0x960] sm:$0xff] }
 0x2b8   :  { %10332 = vmatpush2.bf16.msra.mxu0 %v14727_v26  ;;  %v14687_v26 = vcombine.low %v4251_v56, %v4255_v60  ;;  %v15048_v56 = vcombine.high %v4611_v42, %v4615_v43  ;;  %v4587_v35 = vld [vmem:[#allocation7 + $0xd00] sm:$0xff] }
 0x2b9   :  { %10333 = vmatprep.subr.bf16.mxu0 %v14720_v53  ;;  %v14815_v53 = vcombine.low %v4379_v63, %v4383_v3  ;;  %v4475_v63 = vld [vmem:[#allocation7 + $0x980] sm:$0xff] }
 0x2ba   :  { %10373 = vmatpush2.bf16.msra.mxu1 %v14855_v27  ;;  %v4023_v27 = vmul.f32 %v3946_v8, %v16853_v55  ;;  %v4367_v55 = vld [vmem:[#allocation7 + $0x620] sm:$0xff] }
 0x2bb   :  { %10374 = vmatprep.subr.bf16.mxu1 %v14848_v54  ;;  %v14680_v54 = vcombine.high %v4243_v14, %v4247_v17  ;;  %v4479_v3 = vld [vmem:[#allocation7 + $0x9a0] sm:$0xff] }
 0x2bc   :  { %10334 = vmatpush2.bf16.msra.mxu0 %v14719_v32  ;;  %v4239_v32 = vld [vmem:[#allocation7 + $0x220] sm:$0xff]  ;;  %v4123_v36 = vadd.f32 %v4046_v22, %v4023_v27  ;;  %v14912_v17 = vcombine.high %v4475_v63, %v4479_v3 }
 0x2bd   :  { %10335 = vmatprep.subr.bf16.mxu0 %v14712_v34  ;;  %v4066_v34 = vrot.slane %v16895_v12, %v16924_v62  ;;  %v14671_v24 = vcombine.low %v4235_v31, %v4239_v32  ;;  %v4599_v27 = vld [vmem:[#allocation7 + $0xd60] sm:$0xff] }
 0x2be   :  { %10375 = vmatpush2.bf16.msra.mxu1 %v14847_v33  ;;  %v4028_v33 = vmul.f32 %v3966_v19, %v16872_v49  ;;  %v4467_v19 = vld [vmem:[#allocation7 + $0x940] sm:$0xff] }
 0x2bf   :  { %10376 = vmatprep.subr.bf16.mxu1 %v14840_v1  ;;  %v4363_v1 = vld [vmem:[#allocation7 + $0x600] sm:$0xff] }
 0x2c0   :  { %10336 = vmatpush2.bf16.msra.mxu0 %v14711_v59  ;;  %v14672_v59 = vcombine.high %v4235_v31, %v4239_v32  ;;  %v14800_v49 = vcombine.high %v4363_v1, %v4367_v55  ;;  %v4128_v40 = vadd.f32 %v4066_v34, %v4028_v33  ;;  %v14904_v32 = vcombine.high %v4467_v19, %v4471_v20 }
 0x2c1   :  { %10337 = vmatprep.subr.bf16.mxu0 %v14704_v38  ;;  %v4483_v38 = vld [vmem:[#allocation7 + $0x9c0] sm:$0xff] }
 0x2c2   :  { %10377 = vmatpush2.bf16.msra.mxu1 %v14839_v25  ;;  %v4125_v25 = vadd.f32 %v4054_v29, %v4025_v28  ;;  %v4144_v60 = vmax.f32 %v4128_v40, 0.0  ;;  %v14911_v28 = vcombine.low %v4475_v63, %v4479_v3  ;;  %v4451_v40 = vld [vmem:[#allocation7 + $0x8c0] sm:$0xff] }
 0x2c3   :  { %10378 = vmatprep.subr.bf16.mxu1 %v14832_v39  ;;  %v4487_v39 = vld [vmem:[#allocation7 + $0x9e0] sm:$0xff] }
 0x2c4   :  { %10338 = vmatpush2.bf16.msra.mxu0 %v14703_v45  ;;  %v4139_v45 = vmax.f32 %v4123_v36, 0.0  ;;  %v14919_v8 = vcombine.low %v4483_v38, %v4487_v39  ;;  %v16953_v21 = vpack.c.bf16 %v4144_v60, %v4144_v60  ;;  %v4571_v60 = vld [vmem:[#allocation7 + $0xc80] sm:$0xff] }
 0x2c5   :  { %10339 = vmatprep.subr.bf16.mxu0 %v14696_v50  ;;  %v14920_v50 = vcombine.high %v4483_v38, %v4487_v39  ;;  %v4575_v63 = vld [vmem:[#allocation7 + $0xca0] sm:$0xff] }
 0x2c6   :  { %10379 = vmatpush2.bf16.msra.mxu1 %v14831_v48  ;;  %v14799_v48 = vcombine.low %v4363_v1, %v4367_v55  ;;  %v16949_v16 = vpack.c.bf16 %v4139_v45, %v4139_v45  ;;  %v4459_v1 = vld [vmem:[#allocation7 + $0x900] sm:$0xff] }
 0x2c7   :  { %10380 = vmatprep.subr.bf16.mxu1 %v14824_v52  ;;  %v4141_v52 = vmax.f32 %v4125_v25, 0.0  ;;  %v4463_v55 = vld [vmem:[#allocation7 + $0x920] sm:$0xff] }
 0x2c8   :  { %10340 = vmatpush2.bf16.msra.mxu0 %v14695_v6  ;;  %v4146_v6 = vmax.f32 %v4130_v44, 0.0  ;;  %v4583_v44 = vld [vmem:[#allocation7 + $0xce0] sm:$0xff] }
 0x2c9   :  { %10341 = vmatprep.subr.bf16.mxu0 %v14688_v10  ;;  %v4607_v10 = vld [vmem:[#allocation7 + $0xda0] sm:$0xff]  ;;  %v16951_v14 = vpack.c.bf16 %v4141_v52, %v4141_v52 }
 0x2ca   :  { %10381 = vmatpush2.bf16.msra.mxu1 %v14823_v9  ;;  %v4603_v9 = vld [vmem:[#allocation7 + $0xd80] sm:$0xff] }
 0x2cb   :  { %10382 = vmatprep.subr.bf16.mxu1 %v14816_v11  ;;  %v15047_v11 = vcombine.low %v4611_v42, %v4615_v43  ;;  %v15040_v23 = vcombine.high %v4603_v9, %v4607_v10  ;;  %v15039_v31 = vcombine.low %v4603_v9, %v4607_v10  ;;  %v4455_v42 = vld [vmem:[#allocation7 + $0x8e0] sm:$0xff]  ;;  %v15008_v9 = vcombine.high %v4571_v60, %v4575_v63 }
 0x2cc   :  { %10342 = vmatpush2.bf16.msra.mxu0 %v14687_v26  ;;  %v4595_v26 = vld [vmem:[#allocation7 + $0xd40] sm:$0xff]  ;;  %v14887_v3 = vcombine.low %v4451_v40, %v4455_v42 }
 0x2cd   :  { %10343 = vmatprep.subr.bf16.mxu0 %v14680_v54  ;;  %v15032_v34 = vcombine.high %v4595_v26, %v4599_v27  ;;  %v15031_v25 = vcombine.low %v4595_v26, %v4599_v27  ;;  %v4579_v43 = vld [vmem:[#allocation7 + $0xcc0] sm:$0xff] }
 0x2ce   :  { %10383 = vmatpush2.bf16.msra.mxu1 %v14815_v53  ;;  %v16956_v53 = vpack.c.bf16 %v4146_v6, %v4146_v6  ;;  %v4443_v52 = vld [vmem:[#allocation7 + $0x880] sm:$0xff]  ;;  %v15015_v6 = vcombine.low %v4579_v43, %v4583_v44 }
 0x2cf   :  { %10384 = vmatprep.subr.bf16.mxu1 %v14808_v30  ;;  %v4435_v10 = vld [vmem:[#allocation7 + $0x840] sm:$0xff] }
 0x2d0   :  { %10344 = vmatpush2.bf16.msra.mxu0 %v14679_v15  ;;  %v4591_v15 = vld [vmem:[#allocation7 + $0xd20] sm:$0xff] }
 0x2d1   :  { %10345 = vmatprep.subr.bf16.mxu0 %v14672_v59  ;;  %v15024_v39 = vcombine.high %v4587_v35, %v4591_v15  ;;  %v15023_v45 = vcombine.low %v4587_v35, %v4591_v15  ;;  %v4427_v27 = vld [vmem:[#allocation7 + $0x800] sm:$0xff] }
 0x2d2   :  { %10385 = vmatpush2.bf16.msra.mxu1 %v14807_v37  ;;  %v14903_v37 = vcombine.low %v4467_v19, %v4471_v20  ;;  %v4567_v19 = vld [vmem:[#allocation7 + $0xc60] sm:$0xff] }
 0x2d3   :  { %10386 = vmatprep.subr.bf16.mxu1 %v14800_v49  ;;  %v14896_v49 = vcombine.high %v4459_v1, %v4463_v55  ;;  %v4551_v35 = vld [vmem:[#allocation7 + $0xbe0] sm:$0xff] }
 0x2d4   :  { %10346 = vmatpush2.bf16.msra.mxu0 %v14671_v24  ;;  %v14895_v24 = vcombine.low %v4459_v1, %v4463_v55  ;;  %v4675_v15 = vld [vmem:[#allocation7 + $0xfc0] sm:$0xff] }
 0x2d5   :  { %10397 = vmatprep.subr.bf16.mxu0 %v14920_v50  ;;  %v15016_v50 = vcombine.high %v4579_v43, %v4583_v44 }
 0x2d6   :  { %10387 = vmatpush2.bf16.msra.mxu1 %v14799_v48  ;;  %v14888_v48 = vcombine.high %v4451_v40, %v4455_v42  ;;  %v4667_v40 = vld [vmem:[#allocation7 + $0xf80] sm:$0xff] }
 0x2d7   :  { %10438 = vmatprep.subr.bf16.mxu1 %v15048_v56  ;;  %v3727_v22 = vpop.f32.mrf.mxu0  ;;  %10348 = vmatmul.mubr.bf16.vlgmr.msra.gmra.mxu0 %v16949_v16  ;;  %v4447_v56 = vld [vmem:[#allocation7 + $0x8a0] sm:$0xff] }
 0x2d8   :  { %10398 = vmatpush1.bf16.msra.mxu0 %v14919_v8  ;;  %10429 = vmatprep.mubr.bf16.mxu0 %v16953_v21  ;;  %v14880_v8 = vcombine.high %v4443_v52, %v4447_v56  ;;  %v14879_v20 = vcombine.low %v4443_v52, %v4447_v56  ;;  %v4671_v42 = vld [vmem:[#allocation7 + $0xfa0] sm:$0xff] }
 0x2d9   :  { %v3768_v54 = vpop.f32.mrf.mxu1  ;;  %10389 = vmatmul.mubr.bf16.vlgmr.msra.gmra.mxu1 %v16951_v14  ;;  %v16962_v30 = vpop.f32.mrf.mxu0  ;;  %10399 = vmatprep.subr.bf16.mxu0 %v14912_v17  ;;  %v4563_v17 = vld [vmem:[#allocation7 + $0xc40] sm:$0xff] }
 0x2da   :  { %v16959_v29 = vadd.f32 %v3768_v54, %v3727_v22  ;;  %10439 = vmatpush1.bf16.msra.mxu1 %v15047_v11  ;;  %10470 = vmatprep.mubr.bf16.mxu1 %v16956_v53  ;;  %v4439_v11 = vld [vmem:[#allocation7 + $0x860] sm:$0xff]  ;;  %v15007_v22 = vcombine.low %v4571_v60, %v4575_v63  ;;  %v15000_v26 = vcombine.high %v4563_v17, %v4567_v19 }
 0x2db   :  { %v16965_v33 = vpop.f32.mrf.mxu1  ;;  %v3731_v58 = vpop.f32.mrf.mxu0  ;;  %10440 = vmatprep.subr.bf16.mxu1 %v15040_v23  ;;  %v14872_v23 = vcombine.high %v4435_v10, %v4439_v11  ;;  %v4431_v54 = vld [vmem:[#allocation7 + $0x820] sm:$0xff]  ;;  %v15103_v63 = vcombine.low %v4667_v40, %v4671_v42 }
 0x2dc   :  { %10400 = vmatpush1.bf16.msra.mxu0 %v14911_v28  ;;  %v4555_v28 = vld [vmem:[#allocation7 + $0xc00] sm:$0xff]  ;;  %v14864_v1 = vcombine.high %v4427_v27, %v4431_v54 }
 0x2dd   :  { %v3772_v36 = vpop.f32.mrf.mxu1  ;;  %v3732_v59 = vpop.f32.mrf.mxu0  ;;  %10401 = vmatprep.subr.bf16.mxu0 %v14904_v32  ;;  %v14871_v32 = vcombine.low %v4435_v10, %v4439_v11  ;;  %v4547_v58 = vld [vmem:[#allocation7 + $0xbc0] sm:$0xff] }
 0x2de   :  { %10441 = vmatpush1.bf16.msra.mxu1 %v15039_v31  ;;  %v4559_v31 = vld [vmem:[#allocation7 + $0xc20] sm:$0xff]  ;;  %v14983_v43 = vcombine.low %v4547_v58, %v4551_v35 }
 0x2df   :  { %v3773_v38 = vpop.f32.mrf.mxu1  ;;  %10442 = vmatprep.subr.bf16.mxu1 %v15032_v34  ;;  %v14999_v34 = vcombine.low %v4563_v17, %v4567_v19  ;;  %v14992_v55 = vcombine.high %v4555_v28, %v4559_v31  ;;  %v4679_v36 = vld [vmem:[#allocation7 + $0xfe0] sm:$0xff]  ;;  %v14991_v59 = vcombine.low %v4555_v28, %v4559_v31  ;;  %v16968_v31 = vsub.s32 4, %v16883_v46 }
 0x2e0   :  { %10402 = vmatpush1.bf16.msra.mxu0 %v14903_v37  ;;  %v14863_v37 = vcombine.low %v4427_v27, %v4431_v54  ;;  %v4539_v38 = vld [vmem:[#allocation7 + $0xb80] sm:$0xff]  ;;  %v15111_v44 = vcombine.low %v4675_v15, %v4679_v36 }
 0x2e1   :  { %10403 = vmatprep.subr.bf16.mxu0 %v14896_v49  ;;  %v15112_v49 = vcombine.high %v4675_v15, %v4679_v36  ;;  %v4659_v52 = vld [vmem:[#allocation7 + $0xf40] sm:$0xff] }
 0x2e2   :  { %10443 = vmatpush1.bf16.msra.mxu1 %v15031_v25  ;;  %v14984_v25 = vcombine.high %v4547_v58, %v4551_v35  ;;  %v4663_v56 = vld [vmem:[#allocation7 + $0xf60] sm:$0xff] }
 0x2e3   :  { %10444 = vmatprep.subr.bf16.mxu1 %v15024_v39  ;;  %v4543_v39 = vld [vmem:[#allocation7 + $0xba0] sm:$0xff]  ;;  %v15095_v19 = vcombine.low %v4659_v52, %v4663_v56 }
 0x2e4   :  { %10404 = vmatpush1.bf16.msra.mxu0 %v14895_v24  ;;  %v14976_v24 = vcombine.high %v4539_v38, %v4543_v39  ;;  %v14975_v60 = vcombine.low %v4539_v38, %v4543_v39  ;;  %v4651_v10 = vld [vmem:[#allocation7 + $0xf00] sm:$0xff] }
 0x2e5   :  { %10405 = vmatprep.subr.bf16.mxu0 %v14888_v48  ;;  %v4531_v48 = vld [vmem:[#allocation7 + $0xb40] sm:$0xff] }
 0x2e6   :  { %10445 = vmatpush1.bf16.msra.mxu1 %v15023_v45  ;;  %v15104_v45 = vcombine.high %v4667_v40, %v4671_v42  ;;  %v4655_v11 = vld [vmem:[#allocation7 + $0xf20] sm:$0xff] }
 0x2e7   :  { %10446 = vmatprep.subr.bf16.mxu1 %v15016_v50  ;;  %v4535_v50 = vld [vmem:[#allocation7 + $0xb60] sm:$0xff] }
 0x2e8   :  { %10406 = vmatpush1.bf16.msra.mxu0 %v14887_v3  ;;  %v14968_v3 = vcombine.high %v4531_v48, %v4535_v50  ;;  %v14967_v17 = vcombine.low %v4531_v48, %v4535_v50  ;;  %v4643_v27 = vld [vmem:[#allocation7 + $0xec0] sm:$0xff]  ;;  %v16983_v48 = vld [vmem:[#allocation6 + $0x8] sm:$0xff]  ;;  %v3771_v50 = vadd.f32 %v16965_v33, %v16962_v30 }
 0x2e9   :  { %10407 = vmatprep.subr.bf16.mxu0 %v14880_v8  ;;  %v4523_v8 = vld [vmem:[#allocation7 + $0xb00] sm:$0xff] }
 0x2ea   :  { %10447 = vmatpush1.bf16.msra.mxu1 %v15015_v6  ;;  %v15096_v6 = vcombine.high %v4659_v52, %v4663_v56  ;;  %v4647_v54 = vld [vmem:[#allocation7 + $0xee0] sm:$0xff] }
 0x2eb   :  { %10448 = vmatprep.subr.bf16.mxu1 %v15008_v9  ;;  %v4527_v9 = vld [vmem:[#allocation7 + $0xb20] sm:$0xff] }
 0x2ec   :  { %10408 = vmatpush1.bf16.msra.mxu0 %v14879_v20  ;;  %v14960_v20 = vcombine.high %v4523_v8, %v4527_v9  ;;  %v14959_v28 = vcombine.low %v4523_v8, %v4527_v9  ;;  %v4507_v58 = vld [vmem:[#allocation7 + $0xa80] sm:$0xff] }
 0x2ed   :  { %10409 = vmatprep.subr.bf16.mxu0 %v14872_v23  ;;  %v4515_v23 = vld [vmem:[#allocation7 + $0xac0] sm:$0xff] }
 0x2ee   :  { %10449 = vmatpush1.bf16.msra.mxu1 %v15007_v22  ;;  %v15088_v22 = vcombine.high %v4651_v10, %v4655_v11  ;;  %v4511_v35 = vld [vmem:[#allocation7 + $0xaa0] sm:$0xff] }
 0x2ef   :  { %10450 = vmatprep.subr.bf16.mxu1 %v15000_v26  ;;  %v4519_v26 = vld [vmem:[#allocation7 + $0xae0] sm:$0xff]  ;;  %v14944_v38 = vcombine.high %v4507_v58, %v4511_v35  ;;  %v14943_v52 = vcombine.low %v4507_v58, %v4511_v35 }
 0x2f0   :  { %10410 = vmatpush1.bf16.msra.mxu0 %v14871_v32  ;;  %v15087_v32 = vcombine.low %v4651_v10, %v4655_v11  ;;  %v4635_v15 = vld [vmem:[#allocation7 + $0xe80] sm:$0xff]  ;;  %v4082_v10 = vrot.slane %v16983_v48, %v16886_v61 }
 0x2f1   :  { %10411 = vmatprep.subr.bf16.mxu0 %v14864_v1  ;;  %v16971_v1 = vsub.s32 6, %v16883_v46  ;;  %v4639_v36 = vld [vmem:[#allocation7 + $0xea0] sm:$0xff] }
 0x2f2   :  { %10451 = vmatpush1.bf16.msra.mxu1 %v14999_v34  ;;  %v14952_v34 = vcombine.high %v4515_v23, %v4519_v26  ;;  %v15072_v39 = vcombine.high %v4635_v15, %v4639_v36  ;;  %v4499_v40 = vld [vmem:[#allocation7 + $0xa40] sm:$0xff] }
 0x2f3   :  { %10452 = vmatprep.subr.bf16.mxu1 %v14992_v55  ;;  %v15080_v55 = vcombine.high %v4643_v27, %v4647_v54  ;;  %v3970_v46 = vrot.slane %v16888_v0, %v16971_v1  ;;  %v4503_v42 = vld [vmem:[#allocation7 + $0xa60] sm:$0xff] }
 0x2f4   :  { %10412 = vmatpush1.bf16.msra.mxu0 %v14863_v37  ;;  %v16973_v37 = vld [vmem:[#allocation4 + $0x8] sm:$0xff]  ;;  %v4491_v9 = vld [vmem:[#allocation7 + $0xa00] sm:$0xff] }
 0x2f5   :  { %10413 = vmatprep.subr.bf16.mxu0 %v14984_v25  ;;  %v3962_v25 = vrot.slane %v16888_v0, %v16968_v31  ;;  %v3990_v0 = vrot.slane %v16973_v37, %v16891_v2  ;;  %v4495_v30 = vld [vmem:[#allocation7 + $0xa20] sm:$0xff] }
 0x2f6   :  { %10453 = vmatpush1.bf16.msra.mxu1 %v14991_v59  ;;  %v14951_v59 = vcombine.low %v4515_v23, %v4519_v26  ;;  %v4619_v11 = vld [vmem:[#allocation7 + $0xe00] sm:$0xff] }
 0x2f7   :  { %10454 = vmatprep.subr.bf16.mxu1 %v15112_v49  ;;  %v15079_v49 = vcombine.low %v4643_v27, %v4647_v54  ;;  %v4027_v56 = vmul.f32 %v3962_v25, %v16869_v41  ;;  %v4623_v41 = vld [vmem:[#allocation7 + $0xe20] sm:$0xff] }
 0x2f8   :  { %10414 = vmatpush2.bf16.msra.mxu0 %v14983_v43  ;;  %v3982_v43 = vrot.slane %v16973_v37, %v16886_v61  ;;  %v15056_v26 = vcombine.high %v4619_v11, %v4623_v41  ;;  %v4743_v27 = vld [vmem:[#allocation7 + $0x11e0] sm:$0xff]  ;;  %v15055_v35 = vcombine.low %v4619_v11, %v4623_v41 }
 0x2f9   :  { %10415 = vmatprep.subr.bf16.mxu0 %v14976_v24  ;;  %v4631_v24 = vld [vmem:[#allocation7 + $0xe60] sm:$0xff] }
 0x2fa   :  { %10455 = vmatpush2.bf16.msra.mxu1 %v15111_v44  ;;  %v4627_v44 = vld [vmem:[#allocation7 + $0xe40] sm:$0xff]  ;;  %v4032_v33 = vmul.f32 %v3982_v43, %v16915_v18 }
 0x2fb   :  { %10456 = vmatprep.subr.bf16.mxu1 %v15104_v45  ;;  %v4062_v45 = vrot.slane %v16895_v12, %v16968_v31  ;;  %v15064_v8 = vcombine.high %v4627_v44, %v4631_v24  ;;  %v4739_v18 = vld [vmem:[#allocation7 + $0x11c0] sm:$0xff] }
 0x2fc   :  { %10416 = vmatpush2.bf16.msra.mxu0 %v14975_v60  ;;  %v15071_v60 = vcombine.low %v4635_v15, %v4639_v36  ;;  %v4132_v54 = vadd.f32 %v4082_v10, %v4032_v33  ;;  %v15176_v15 = vcombine.high %v4739_v18, %v4743_v27 }
 0x2fd   :  { %10417 = vmatprep.subr.bf16.mxu0 %v14968_v3  ;;  %v4029_v3 = vmul.f32 %v3970_v46, %v16877_v13  ;;  %v14935_v13 = vcombine.low %v4499_v40, %v4503_v42 }
 0x2fe   :  { %10457 = vmatpush2.bf16.msra.mxu1 %v15103_v63  ;;  %v14936_v63 = vcombine.high %v4499_v40, %v4503_v42  ;;  %v4148_v25 = vmax.f32 %v4132_v54, 0.0  ;;  %v4859_v40 = vld [vmem:[#allocation7 + $0x1580] sm:$0xff] }
 0x2ff   :  { %10458 = vmatprep.subr.bf16.mxu1 %v15096_v6  ;;  %v4070_v6 = vrot.slane %v16895_v12, %v16971_v1  ;;  %v15063_v12 = vcombine.low %v4627_v44, %v4631_v24  ;;  %v4863_v42 = vld [vmem:[#allocation7 + $0x15a0] sm:$0xff] }
 0x300   :  { %10418 = vmatpush2.bf16.msra.mxu0 %v14967_v17  ;;  %v4034_v17 = vmul.f32 %v3990_v0, %v3771_v50  ;;  %v4723_v50 = vld [vmem:[#allocation7 + $0x1140] sm:$0xff]  ;;  %v15295_v10 = vcombine.low %v4859_v40, %v4863_v42 }
 0x301   :  { %10419 = vmatprep.subr.bf16.mxu0 %v14960_v20  ;;  %v4127_v20 = vadd.f32 %v4062_v45, %v4027_v56  ;;  %v4129_v23 = vadd.f32 %v4070_v6, %v4029_v3  ;;  %v4727_v0 = vld [vmem:[#allocation7 + $0x1160] sm:$0xff] }
 0x302   :  { %10459 = vmatpush2.bf16.msra.mxu1 %v15095_v19  ;;  %v4090_v19 = vrot.slane %v16983_v48, %v16891_v2  ;;  %v4855_v3 = vld [vmem:[#allocation7 + $0x1560] sm:$0xff]  ;;  %v15160_v11 = vcombine.high %v4723_v50, %v4727_v0 }
 0x303   :  { %10460 = vmatprep.subr.bf16.mxu1 %v15088_v22  ;;  %v14928_v22 = vcombine.high %v4491_v9, %v4495_v30  ;;  %v4143_v58 = vmax.f32 %v4127_v20, 0.0  ;;  %v4145_v36 = vmax.f32 %v4129_v23, 0.0 }
 0x304   :  { %10420 = vmatpush2.bf16.msra.mxu0 %v14959_v28  ;;  %v4867_v28 = vld [vmem:[#allocation7 + $0x15c0] sm:$0xff] }
 0x305   :  { %10421 = vmatprep.subr.bf16.mxu0 %v14952_v34  ;;  %v4134_v34 = vadd.f32 %v4090_v19, %v4034_v17  ;;  %v16998_v43 = vpack.c.bf16 %v4143_v58, %v4143_v58  ;;  %v17000_v24 = vpack.c.bf16 %v4145_v36, %v4145_v36  ;;  %v4715_v19 = vld [vmem:[#allocation7 + $0x1100] sm:$0xff] }
 0x306   :  { %10461 = vmatpush2.bf16.msra.mxu1 %v15087_v32  ;;  %v4871_v32 = vld [vmem:[#allocation7 + $0x15e0] sm:$0xff] }
 0x307   :  { %10462 = vmatprep.subr.bf16.mxu1 %v15080_v55  ;;  %v14927_v55 = vcombine.low %v4491_v9, %v4495_v30  ;;  %v4150_v46 = vmax.f32 %v4134_v34, 0.0  ;;  %v15303_v44 = vcombine.low %v4867_v28, %v4871_v32  ;;  %v4707_v34 = vld [vmem:[#allocation7 + $0x10c0] sm:$0xff] }
 0x308   :  { %10422 = vmatpush2.bf16.msra.mxu0 %v14951_v59  ;;  %v15304_v59 = vcombine.high %v4867_v28, %v4871_v32  ;;  %v4835_v58 = vld [vmem:[#allocation7 + $0x14c0] sm:$0xff] }
 0x309   :  { %10423 = vmatprep.subr.bf16.mxu0 %v14944_v38  ;;  %v4735_v38 = vld [vmem:[#allocation7 + $0x11a0] sm:$0xff]  ;;  %v17005_v6 = vpack.c.bf16 %v4150_v46, %v4150_v46 }
 0x30a   :  { %10463 = vmatpush2.bf16.msra.mxu1 %v15079_v49  ;;  %v4731_v49 = vld [vmem:[#allocation7 + $0x1180] sm:$0xff] }
 0x30b   :  { %10464 = vmatprep.subr.bf16.mxu1 %v15072_v39  ;;  %v15175_v39 = vcombine.low %v4739_v18, %v4743_v27  ;;  %v15168_v45 = vcombine.high %v4731_v49, %v4735_v38  ;;  %v15167_v9 = vcombine.low %v4731_v49, %v4735_v38  ;;  %v4699_v49 = vld [vmem:[#allocation7 + $0x1080] sm:$0xff] }
 0x30c   :  { %10424 = vmatpush2.bf16.msra.mxu0 %v14943_v52  ;;  %v17002_v52 = vpack.c.bf16 %v4148_v25, %v4148_v25  ;;  %v4703_v38 = vld [vmem:[#allocation7 + $0x10a0] sm:$0xff] }
 0x30d   :  { %10425 = vmatprep.subr.bf16.mxu0 %v14936_v63  ;;  %v4851_v63 = vld [vmem:[#allocation7 + $0x1540] sm:$0xff] }
 0x30e   :  { %10465 = vmatpush2.bf16.msra.mxu1 %v15071_v60  ;;  %v15296_v60 = vcombine.high %v4859_v40, %v4863_v42  ;;  %v15288_v17 = vcombine.high %v4851_v63, %v4855_v3  ;;  %v15287_v27 = vcombine.low %v4851_v63, %v4855_v3  ;;  %v4827_v46 = vld [vmem:[#allocation7 + $0x1480] sm:$0xff]  ;;  %v15135_v63 = vcombine.low %v4699_v49, %v4703_v38 }
 0x30f   :  { %10466 = vmatprep.subr.bf16.mxu1 %v15064_v8 }
 0x310   :  { %10426 = vmatpush2.bf16.msra.mxu0 %v14935_v13  ;;  %v4719_v13 = vld [vmem:[#allocation7 + $0x1120] sm:$0xff] }
 0x311   :  { %10427 = vmatprep.subr.bf16.mxu0 %v14928_v22  ;;  %v4847_v22 = vld [vmem:[#allocation7 + $0x1520] sm:$0xff]  ;;  %v15152_v54 = vcombine.high %v4715_v19, %v4719_v13 }
 0x312   :  { %10467 = vmatpush2.bf16.msra.mxu1 %v15063_v12  ;;  %v4843_v12 = vld [vmem:[#allocation7 + $0x1500] sm:$0xff] }
 0x313   :  { %10468 = vmatprep.subr.bf16.mxu1 %v15056_v26  ;;  %v15159_v26 = vcombine.low %v4723_v50, %v4727_v0  ;;  %v15280_v32 = vcombine.high %v4843_v12, %v4847_v22  ;;  %v15279_v36 = vcombine.low %v4843_v12, %v4847_v22  ;;  %v4691_v50 = vld [vmem:[#allocation7 + $0x1040] sm:$0xff] }
 0x314   :  { %10428 = vmatpush2.bf16.msra.mxu0 %v14927_v55  ;;  %v4711_v55 = vld [vmem:[#allocation7 + $0x10e0] sm:$0xff] }
 0x315   :  { %10479 = vmatprep.subr.bf16.mxu0 %v15176_v15  ;;  %v15151_v15 = vcombine.low %v4715_v19, %v4719_v13  ;;  %v15143_v40 = vcombine.low %v4707_v34, %v4711_v55  ;;  %v4695_v0 = vld [vmem:[#allocation7 + $0x1060] sm:$0xff] }
 0x316   :  { %10469 = vmatpush2.bf16.msra.mxu1 %v15055_v35  ;;  %v4839_v35 = vld [vmem:[#allocation7 + $0x14e0] sm:$0xff]  ;;  %v15127_v13 = vcombine.low %v4691_v50, %v4695_v0 }
 0x317   :  { %10520 = vmatprep.subr.bf16.mxu1 %v15304_v59  ;;  %v3809_v56 = vpop.f32.mrf.mxu0  ;;  %10430 = vmatmul.mubr.bf16.vlgmr.msra.gmra.mxu0 %v16998_v43  ;;  %v15144_v59 = vcombine.high %v4707_v34, %v4711_v55  ;;  %v15272_v25 = vcombine.high %v4835_v58, %v4839_v35  ;;  %v15271_v42 = vcombine.low %v4835_v58, %v4839_v35  ;;  %v4815_v19 = vld [vmem:[#allocation7 + $0x1420] sm:$0xff] }
 0x318   :  { %10480 = vmatpush1.bf16.msra.mxu0 %v15175_v39  ;;  %10511 = vmatprep.mubr.bf16.mxu0 %v17002_v52  ;;  %v4831_v39 = vld [vmem:[#allocation7 + $0x14a0] sm:$0xff] }
 0x319   :  { %v3850_v8 = vpop.f32.mrf.mxu1  ;;  %10471 = vmatmul.mubr.bf16.vlgmr.msra.gmra.mxu1 %v17000_v24  ;;  %v17011_v33 = vpop.f32.mrf.mxu0  ;;  %10481 = vmatprep.subr.bf16.mxu0 %v15168_v45  ;;  %v15264_v45 = vcombine.high %v4827_v46, %v4831_v39  ;;  %v15263_v3 = vcombine.low %v4827_v46, %v4831_v39  ;;  %v4795_v55 = vld [vmem:[#allocation7 + $0x1380] sm:$0xff] }
 0x31a   :  { %v17008_v30 = vadd.f32 %v3850_v8, %v3809_v56  ;;  %10521 = vmatpush1.bf16.msra.mxu1 %v15303_v44  ;;  %10552 = vmatprep.mubr.bf16.mxu1 %v17005_v6  ;;  %v15136_v44 = vcombine.high %v4699_v49, %v4703_v38  ;;  %v4819_v56 = vld [vmem:[#allocation7 + $0x1440] sm:$0xff]  ;;  %v15128_v8 = vcombine.high %v4691_v50, %v4695_v0 }
 0x31b   :  { %v17014_v41 = vpop.f32.mrf.mxu1  ;;  %v3813_v20 = vpop.f32.mrf.mxu0  ;;  %10522 = vmatprep.subr.bf16.mxu1 %v15296_v60  ;;  %v4823_v60 = vld [vmem:[#allocation7 + $0x1460] sm:$0xff] }
 0x31c   :  { %10482 = vmatpush1.bf16.msra.mxu0 %v15167_v9  ;;  %v15256_v9 = vcombine.high %v4819_v56, %v4823_v60  ;;  %v15255_v20 = vcombine.low %v4819_v56, %v4823_v60  ;;  %v4799_v58 = vld [vmem:[#allocation7 + $0x13a0] sm:$0xff] }
 0x31d   :  { %v3854_v23 = vpop.f32.mrf.mxu1  ;;  %v3814_v18 = vpop.f32.mrf.mxu0  ;;  %10483 = vmatprep.subr.bf16.mxu0 %v15160_v11  ;;  %v4687_v11 = vld [vmem:[#allocation7 + $0x1020] sm:$0xff] }
 0x31e   :  { %10523 = vmatpush1.bf16.msra.mxu1 %v15295_v10  ;;  %v4683_v10 = vld [vmem:[#allocation7 + $0x1000] sm:$0xff] }
 0x31f   :  { %v3855_v28 = vpop.f32.mrf.mxu1  ;;  %10524 = vmatprep.subr.bf16.mxu1 %v15288_v17  ;;  %v4811_v17 = vld [vmem:[#allocation7 + $0x1400] sm:$0xff]  ;;  %v15120_v12 = vcombine.high %v4683_v10, %v4687_v11 }
 0x320   :  { %10484 = vmatpush1.bf16.msra.mxu0 %v15159_v26  ;;  %v15248_v22 = vcombine.high %v4811_v17, %v4815_v19  ;;  %v4803_v23 = vld [vmem:[#allocation7 + $0x13c0] sm:$0xff]  ;;  %v15247_v28 = vcombine.low %v4811_v17, %v4815_v19 }
 0x321   :  { %10485 = vmatprep.subr.bf16.mxu0 %v15152_v54  ;;  %v4807_v26 = vld [vmem:[#allocation7 + $0x13e0] sm:$0xff]  ;;  %v15119_v54 = vcombine.low %v4683_v10, %v4687_v11 }
 0x322   :  { %10525 = vmatpush1.bf16.msra.mxu1 %v15287_v27  ;;  %v4931_v18 = vld [vmem:[#allocation7 + $0x17c0] sm:$0xff] }
 0x323   :  { %10526 = vmatprep.subr.bf16.mxu1 %v15280_v32  ;;  %v4935_v27 = vld [vmem:[#allocation7 + $0x17e0] sm:$0xff]  ;;  %v15240_v32 = vcombine.high %v4803_v23, %v4807_v26 }
 0x324   :  { %10486 = vmatpush1.bf16.msra.mxu0 %v15151_v15  ;;  %v15368_v34 = vcombine.high %v4931_v18, %v4935_v27  ;;  %v4923_v35 = vld [vmem:[#allocation7 + $0x1780] sm:$0xff] }
 0x325   :  { %10487 = vmatprep.subr.bf16.mxu0 %v15144_v59  ;;  %v4927_v15 = vld [vmem:[#allocation7 + $0x17a0] sm:$0xff]  ;;  %v15367_v59 = vcombine.low %v4931_v18, %v4935_v27 }
 0x326   :  { %10527 = vmatpush1.bf16.msra.mxu1 %v15279_v36  ;;  %v15239_v36 = vcombine.low %v4803_v23, %v4807_v26  ;;  %v15360_v49 = vcombine.high %v4923_v35, %v4927_v15  ;;  %v4787_v38 = vld [vmem:[#allocation7 + $0x1340] sm:$0xff] }
 0x327   :  { %10528 = vmatprep.subr.bf16.mxu1 %v15272_v25  ;;  %v15232_v25 = vcombine.high %v4795_v55, %v4799_v58  ;;  %v4791_v46 = vld [vmem:[#allocation7 + $0x1360] sm:$0xff] }
 0x328   :  { %10488 = vmatpush1.bf16.msra.mxu0 %v15143_v40  ;;  %v4915_v39 = vld [vmem:[#allocation7 + $0x1740] sm:$0xff] }
 0x329   :  { %10489 = vmatprep.subr.bf16.mxu0 %v15136_v44  ;;  %v4919_v40 = vld [vmem:[#allocation7 + $0x1760] sm:$0xff]  ;;  %v15359_v44 = vcombine.low %v4923_v35, %v4927_v15 }
 0x32a   :  { %10529 = vmatpush1.bf16.msra.mxu1 %v15271_v42  ;;  %v15231_v42 = vcombine.low %v4795_v55, %v4799_v58  ;;  %v15352_v50 = vcombine.high %v4915_v39, %v4919_v40  ;;  %v4779_v0 = vld [vmem:[#allocation7 + $0x1300] sm:$0xff]  ;;  %v3986_v58 = vrot.slane %v16973_v37, %v16921_v51 }
 0x32b   :  { %10530 = vmatprep.subr.bf16.mxu1 %v15264_v45  ;;  %v15224_v45 = vcombine.high %v4787_v38, %v4791_v46  ;;  %v4783_v56 = vld [vmem:[#allocation7 + $0x1320] sm:$0xff] }
 0x32c   :  { %10490 = vmatpush1.bf16.msra.mxu0 %v15135_v63  ;;  %v4907_v60 = vld [vmem:[#allocation7 + $0x1700] sm:$0xff] }
 0x32d   :  { %10491 = vmatprep.subr.bf16.mxu0 %v15128_v8  ;;  %v4911_v63 = vld [vmem:[#allocation7 + $0x1720] sm:$0xff]  ;;  %v15351_v8 = vcombine.low %v4915_v39, %v4919_v40 }
 0x32e   :  { %10531 = vmatpush1.bf16.msra.mxu1 %v15263_v3  ;;  %v15223_v3 = vcombine.low %v4787_v38, %v4791_v46  ;;  %v15344_v10 = vcombine.high %v4907_v60, %v4911_v63  ;;  %v4771_v11 = vld [vmem:[#allocation7 + $0x12c0] sm:$0xff]  ;;  %v4078_v46 = vrot.slane %v16983_v48, %v16918_v47 }
 0x32f   :  { %10532 = vmatprep.subr.bf16.mxu1 %v15256_v9  ;;  %v15216_v9 = vcombine.high %v4779_v0, %v4783_v56  ;;  %v4775_v17 = vld [vmem:[#allocation7 + $0x12e0] sm:$0xff] }
 0x330   :  { %10492 = vmatpush1.bf16.msra.mxu0 %v15127_v13  ;;  %v4899_v19 = vld [vmem:[#allocation7 + $0x16c0] sm:$0xff] }
 0x331   :  { %10493 = vmatprep.subr.bf16.mxu0 %v15120_v12  ;;  %v4903_v13 = vld [vmem:[#allocation7 + $0x16e0] sm:$0xff]  ;;  %v15343_v12 = vcombine.low %v4907_v60, %v4911_v63  ;;  %v4098_v60 = vrot.slane %v16983_v48, %v16924_v62 }
 0x332   :  { %10533 = vmatpush1.bf16.msra.mxu1 %v15255_v20  ;;  %v15215_v20 = vcombine.low %v4779_v0, %v4783_v56  ;;  %v15336_v23 = vcombine.high %v4899_v19, %v4903_v13  ;;  %v4763_v26 = vld [vmem:[#allocation7 + $0x1280] sm:$0xff] }
 0x333   :  { %10534 = vmatprep.subr.bf16.mxu1 %v15248_v22  ;;  %v15208_v22 = vcombine.high %v4771_v11, %v4775_v17  ;;  %v4767_v18 = vld [vmem:[#allocation7 + $0x12a0] sm:$0xff] }
 0x334   :  { %10494 = vmatpush1.bf16.msra.mxu0 %v15119_v54  ;;  %v4891_v27 = vld [vmem:[#allocation7 + $0x1680] sm:$0xff]  ;;  %v15200_v55 = vcombine.high %v4763_v26, %v4767_v18  ;;  %v15199_v39 = vcombine.low %v4763_v26, %v4767_v18 }
 0x335   :  { %10495 = vmatprep.subr.bf16.mxu0 %v15240_v32  ;;  %v4895_v54 = vld [vmem:[#allocation7 + $0x16a0] sm:$0xff]  ;;  %v3978_v32 = vrot.slane %v16973_v37, %v16918_v47 }
 0x336   :  { %10535 = vmatpush1.bf16.msra.mxu1 %v15247_v28  ;;  %v15207_v28 = vcombine.low %v4771_v11, %v4775_v17  ;;  %v15328_v35 = vcombine.high %v4891_v27, %v4895_v54  ;;  %v4755_v15 = vld [vmem:[#allocation7 + $0x1240] sm:$0xff] }
 0x337   :  { %10536 = vmatprep.subr.bf16.mxu1 %v15368_v34  ;;  %v15335_v34 = vcombine.low %v4899_v19, %v4903_v13  ;;  %v4887_v38 = vld [vmem:[#allocation7 + $0x1660] sm:$0xff]  ;;  %v4031_v40 = vmul.f32 %v3978_v32, %v16911_v7 }
 0x338   :  { %10496 = vmatpush2.bf16.msra.mxu0 %v15239_v36  ;;  %v4759_v36 = vld [vmem:[#allocation7 + $0x1260] sm:$0xff] }
 0x339   :  { %10497 = vmatprep.subr.bf16.mxu0 %v15232_v25  ;;  %v3998_v25 = vrot.slane %v16973_v37, %v16924_v62  ;;  %v4751_v0 = vld [vmem:[#allocation7 + $0x1220] sm:$0xff]  ;;  %v15191_v7 = vcombine.low %v4755_v15, %v4759_v36 }
 0x33a   :  { %10537 = vmatpush2.bf16.msra.mxu1 %v15367_v59  ;;  %v3853_v59 = vadd.f32 %v17014_v41, %v17011_v33  ;;  %v4086_v33 = vrot.slane %v16983_v48, %v16921_v51  ;;  %v4875_v63 = vld [vmem:[#allocation7 + $0x1600] sm:$0xff] }
 0x33b   :  { %10538 = vmatprep.subr.bf16.mxu1 %v15360_v49  ;;  %v4883_v49 = vld [vmem:[#allocation7 + $0x1640] sm:$0xff] }
 0x33c   :  { %10498 = vmatpush2.bf16.msra.mxu0 %v15231_v42  ;;  %v15327_v42 = vcombine.low %v4891_v27, %v4895_v54  ;;  %v15320_v41 = vcombine.high %v4883_v49, %v4887_v38  ;;  %v4036_v56 = vmul.f32 %v3998_v25, %v3853_v59  ;;  %v4995_v17 = vld [vmem:[#allocation7 + $0x19c0] sm:$0xff] }
 0x33d   :  { %10499 = vmatprep.subr.bf16.mxu0 %v15224_v45  ;;  %v4033_v45 = vmul.f32 %v3986_v58, %v16959_v29  ;;  %v4999_v19 = vld [vmem:[#allocation7 + $0x19e0] sm:$0xff] }
 0x33e   :  { %10539 = vmatpush2.bf16.msra.mxu1 %v15359_v44  ;;  %v15192_v44 = vcombine.high %v4755_v15, %v4759_v36  ;;  %v4136_v13 = vadd.f32 %v4098_v60, %v4036_v56  ;;  %v15432_v18 = vcombine.high %v4995_v17, %v4999_v19  ;;  %v5119_v58 = vld [vmem:[#allocation7 + $0x1da0] sm:$0xff] }
 0x33f   :  { %10540 = vmatprep.subr.bf16.mxu1 %v15352_v50  ;;  %v4747_v50 = vld [vmem:[#allocation7 + $0x1200] sm:$0xff] }
 0x340   :  { %10500 = vmatpush2.bf16.msra.mxu0 %v15223_v3  ;;  %v4879_v3 = vld [vmem:[#allocation7 + $0x1620] sm:$0xff]  ;;  %v15184_v29 = vcombine.high %v4747_v50, %v4751_v0  ;;  %v4152_v32 = vmax.f32 %v4136_v13, 0.0 }
 0x341   :  { %10501 = vmatprep.subr.bf16.mxu0 %v15216_v9  ;;  %v15319_v9 = vcombine.low %v4883_v49, %v4887_v38  ;;  %v15312_v11 = vcombine.high %v4875_v63, %v4879_v3  ;;  %v15311_v26 = vcombine.low %v4875_v63, %v4879_v3  ;;  %v4979_v38 = vld [vmem:[#allocation7 + $0x1940] sm:$0xff] }
 0x342   :  { %10541 = vmatpush2.bf16.msra.mxu1 %v15351_v8  ;;  %v4131_v8 = vadd.f32 %v4078_v46, %v4031_v40  ;;  %v4983_v46 = vld [vmem:[#allocation7 + $0x1960] sm:$0xff] }
 0x343   :  { %10542 = vmatprep.subr.bf16.mxu1 %v15344_v10  ;;  %v4133_v10 = vadd.f32 %v4086_v33, %v4033_v45  ;;  %v15416_v56 = vcombine.high %v4979_v38, %v4983_v46  ;;  %v4971_v3 = vld [vmem:[#allocation7 + $0x1900] sm:$0xff] }
 0x344   :  { %10502 = vmatpush2.bf16.msra.mxu0 %v15215_v20  ;;  %v5123_v20 = vld [vmem:[#allocation7 + $0x1dc0] sm:$0xff] }
 0x345   :  { %10503 = vmatprep.subr.bf16.mxu0 %v15208_v22  ;;  %v15183_v22 = vcombine.low %v4747_v50, %v4751_v0  ;;  %v4149_v27 = vmax.f32 %v4133_v10, 0.0  ;;  %v4006_v50 = vrot.slane %v16973_v37, %v16927_v5  ;;  %v5099_v10 = vld [vmem:[#allocation7 + $0x1d00] sm:$0xff] }
 0x346   :  { %10543 = vmatpush2.bf16.msra.mxu1 %v15343_v12  ;;  %v5127_v12 = vld [vmem:[#allocation7 + $0x1de0] sm:$0xff] }
 0x347   :  { %10544 = vmatprep.subr.bf16.mxu1 %v15336_v23  ;;  %v4147_v23 = vmax.f32 %v4131_v8, 0.0  ;;  %v15560_v54 = vcombine.high %v5123_v20, %v5127_v12  ;;  %v15559_v36 = vcombine.low %v5123_v20, %v5127_v12  ;;  %v17034_v59 = vpack.c.bf16 %v4149_v27, %v4149_v27 }
 0x348   :  { %10504 = vmatpush2.bf16.msra.mxu0 %v15207_v28  ;;  %v4987_v28 = vld [vmem:[#allocation7 + $0x1980] sm:$0xff] }
 0x349   :  { %10505 = vmatprep.subr.bf16.mxu0 %v15200_v55  ;;  %v5115_v55 = vld [vmem:[#allocation7 + $0x1d80] sm:$0xff]  ;;  %v17032_v15 = vpack.c.bf16 %v4147_v23, %v4147_v23 }
 0x34a   :  { %10545 = vmatpush2.bf16.msra.mxu1 %v15335_v34  ;;  %v4991_v34 = vld [vmem:[#allocation7 + $0x19a0] sm:$0xff]  ;;  %v15552_v49 = vcombine.high %v5115_v55, %v5119_v58  ;;  %v15551_v0 = vcombine.low %v5115_v55, %v5119_v58 }
 0x34b   :  { %10546 = vmatprep.subr.bf16.mxu1 %v15328_v35  ;;  %v15431_v35 = vcombine.low %v4995_v17, %v4999_v19  ;;  %v15424_v25 = vcombine.high %v4987_v28, %v4991_v34  ;;  %v15423_v33 = vcombine.low %v4987_v28, %v4991_v34  ;;  %v15415_v19 = vcombine.low %v4979_v38, %v4983_v46  ;;  %v5091_v28 = vld [vmem:[#allocation7 + $0x1cc0] sm:$0xff] }
 0x34c   :  { %10506 = vmatpush2.bf16.msra.mxu0 %v15199_v39  ;;  %v17036_v39 = vpack.c.bf16 %v4152_v32, %v4152_v32  ;;  %v5095_v32 = vld [vmem:[#allocation7 + $0x1ce0] sm:$0xff] }
 0x34d   :  { %10507 = vmatprep.subr.bf16.mxu0 %v15192_v44  ;;  %v5111_v44 = vld [vmem:[#allocation7 + $0x1d60] sm:$0xff] }
 0x34e   :  { %10547 = vmatpush2.bf16.msra.mxu1 %v15327_v42  ;;  %v5107_v42 = vld [vmem:[#allocation7 + $0x1d40] sm:$0xff] }
 0x34f   :  { %10548 = vmatprep.subr.bf16.mxu1 %v15320_v41  ;;  %v15544_v63 = vcombine.high %v5107_v42, %v5111_v44  ;;  %v15543_v12 = vcombine.low %v5107_v42, %v5111_v44  ;;  %v5083_v46 = vld [vmem:[#allocation7 + $0x1c80] sm:$0xff] }
 0x350   :  { %10508 = vmatpush2.bf16.msra.mxu0 %v15191_v7  ;;  %v4975_v7 = vld [vmem:[#allocation7 + $0x1920] sm:$0xff] }
 0x351   :  { %10509 = vmatprep.subr.bf16.mxu0 %v15184_v29  ;;  %v15407_v34 = vcombine.low %v4971_v3, %v4975_v7  ;;  %v5087_v42 = vld [vmem:[#allocation7 + $0x1ca0] sm:$0xff] }
 0x352   :  { %10549 = vmatpush2.bf16.msra.mxu1 %v15319_v9  ;;  %v4106_v9 = vrot.slane %v16983_v48, %v16927_v5 }
 0x353   :  { %10550 = vmatprep.subr.bf16.mxu1 %v15312_v11  ;;  %v5103_v11 = vld [vmem:[#allocation7 + $0x1d20] sm:$0xff] }
 0x354   :  { %10510 = vmatpush2.bf16.msra.mxu0 %v15183_v22  ;;  %v15408_v22 = vcombine.high %v4971_v3, %v4975_v7  ;;  %v15535_v58 = vcombine.low %v5099_v10, %v5103_v11  ;;  %v15519_v7 = vcombine.low %v5083_v46, %v5087_v42 }
 0x355   :  { %10561 = vmatprep.subr.bf16.mxu0 %v15432_v18  ;;  %v4963_v18 = vld [vmem:[#allocation7 + $0x18c0] sm:$0xff] }
 0x356   :  { %10551 = vmatpush2.bf16.msra.mxu1 %v15311_v26  ;;  %v15536_v26 = vcombine.high %v5099_v10, %v5103_v11  ;;  %v4943_v10 = vld [vmem:[#allocation7 + $0x1820] sm:$0xff] }
 0x357   :  { %10602 = vmatprep.subr.bf16.mxu1 %v15560_v54  ;;  %v17038_v40 = vpop.f32.mrf.mxu0  ;;  %10512 = vmatmul.mubr.bf16.vlgmr.msra.gmra.mxu0 %v17032_v15  ;;  %v4967_v54 = vld [vmem:[#allocation7 + $0x18e0] sm:$0xff] }
 0x358   :  { %10562 = vmatpush1.bf16.msra.mxu0 %v15431_v35  ;;  %10593 = vmatprep.mubr.bf16.mxu0 %v17036_v39  ;;  %v15400_v35 = vcombine.high %v4963_v18, %v4967_v54  ;;  %v15399_v44 = vcombine.low %v4963_v18, %v4967_v54  ;;  %v5067_v11 = vld [vmem:[#allocation7 + $0x1c00] sm:$0xff] }
 0x359   :  { %v17041_v45 = vpop.f32.mrf.mxu1  ;;  %10553 = vmatmul.mubr.bf16.vlgmr.msra.gmra.mxu1 %v17034_v59  ;;  %v3893_v41 = vpop.f32.mrf.mxu0  ;;  %10563 = vmatprep.subr.bf16.mxu0 %v15424_v25  ;;  %v4955_v25 = vld [vmem:[#allocation7 + $0x1880] sm:$0xff] }
 0x35a   :  { %10603 = vmatpush1.bf16.msra.mxu1 %v15559_v36  ;;  %v15528_v36 = vcombine.high %v5091_v28, %v5095_v32  ;;  %v5191_v18 = vld [vmem:[#allocation7 + $0x1fe0] sm:$0xff] }
 0x35b   :  { %v3934_v60 = vpop.f32.mrf.mxu1  ;;  %10604 = vmatprep.subr.bf16.mxu1 %v15552_v49  ;;  %v3895_v29 = vpop.f32.mrf.mxu0  ;;  %v4959_v49 = vld [vmem:[#allocation7 + $0x18a0] sm:$0xff] }
 0x35c   :  { %v3935_v8 = vadd.f32 %v3934_v60, %v3893_v41  ;;  %10564 = vmatpush1.bf16.msra.mxu0 %v15423_v33  ;;  %v15527_v33 = vcombine.low %v5091_v28, %v5095_v32  ;;  %v15392_v41 = vcombine.high %v4955_v25, %v4959_v49  ;;  %v5075_v60 = vld [vmem:[#allocation7 + $0x1c40] sm:$0xff]  ;;  %v15391_v3 = vcombine.low %v4955_v25, %v4959_v49 }
 0x35d   :  { %v3936_v17 = vpop.f32.mrf.mxu1  ;;  %v3896_v20 = vpop.f32.mrf.mxu0  ;;  %10565 = vmatprep.subr.bf16.mxu0 %v15416_v56  ;;  %v4951_v56 = vld [vmem:[#allocation7 + $0x1860] sm:$0xff] }
 0x35e   :  { %v4038_v13 = vmul.f32 %v4006_v50, %v3935_v8  ;;  %10605 = vmatpush1.bf16.msra.mxu1 %v15551_v0  ;;  %v15520_v50 = vcombine.high %v5083_v46, %v5087_v42  ;;  %v4947_v0 = vld [vmem:[#allocation7 + $0x1840] sm:$0xff] }
 0x35f   :  { %v3937_v23 = vpop.f32.mrf.mxu1  ;;  %10606 = vmatprep.subr.bf16.mxu1 %v15544_v63  ;;  %v5079_v63 = vld [vmem:[#allocation7 + $0x1c60] sm:$0xff]  ;;  %v15384_v8 = vcombine.high %v4947_v0, %v4951_v56 }
 0x360   :  { %v4138_v27 = vadd.f32 %v4106_v9, %v4038_v13  ;;  %10566 = vmatpush1.bf16.msra.mxu0 %v15415_v19  ;;  %v15512_v9 = vcombine.high %v5075_v60, %v5079_v63  ;;  %v4939_v29 = vld [vmem:[#allocation7 + $0x1800] sm:$0xff]  ;;  %v15383_v19 = vcombine.low %v4947_v0, %v4951_v56  ;;  %v15511_v13 = vcombine.low %v5075_v60, %v5079_v63 }
 0x361   :  { %10567 = vmatprep.subr.bf16.mxu0 %v15408_v22  ;;  %v5071_v17 = vld [vmem:[#allocation7 + $0x1c20] sm:$0xff]  ;;  %v15376_v20 = vcombine.high %v4939_v29, %v4943_v10 }
 0x362   :  { %v4154_v55 = vmax.f32 %v4138_v27, 0.0  ;;  %10607 = vmatpush1.bf16.msra.mxu1 %v15543_v12  ;;  %v15504_v12 = vcombine.high %v5067_v11, %v5071_v17  ;;  %v5059_v22 = vld [vmem:[#allocation7 + $0x1bc0] sm:$0xff]  ;;  %v15375_v27 = vcombine.low %v4939_v29, %v4943_v10  ;;  %v15503_v54 = vcombine.low %v5067_v11, %v5071_v17 }
 0x363   :  { %10608 = vmatprep.subr.bf16.mxu1 %v15536_v26  ;;  %v5063_v23 = vld [vmem:[#allocation7 + $0x1be0] sm:$0xff] }
 0x364   :  { %v17049_v38 = vpack.c.bf16 %v4154_v55, %v4154_v55  ;;  %10568 = vmatpush1.bf16.msra.mxu0 %v15407_v34  ;;  %v5187_v26 = vld [vmem:[#allocation7 + $0x1fc0] sm:$0xff]  ;;  %v15496_v28 = vcombine.high %v5059_v22, %v5063_v23 }
 0x365   :  { %10569 = vmatprep.subr.bf16.mxu0 %v15400_v35  ;;  %v15624_v32 = vcombine.high %v5187_v26, %v5191_v18  ;;  %v5051_v34 = vld [vmem:[#allocation7 + $0x1b80] sm:$0xff]  ;;  %v15623_v25 = vcombine.low %v5187_v26, %v5191_v18 }
 0x366   :  { %10609 = vmatpush1.bf16.msra.mxu1 %v15535_v58  ;;  %10634 = vmatprep.mubr.bf16.mxu1 %v17049_v38  ;;  %v5055_v55 = vld [vmem:[#allocation7 + $0x1ba0] sm:$0xff] }
 0x367   :  { %10610 = vmatprep.subr.bf16.mxu1 %v15528_v36  ;;  %v5179_v58 = vld [vmem:[#allocation7 + $0x1f80] sm:$0xff]  ;;  %v15495_v36 = vcombine.low %v5059_v22, %v5063_v23  ;;  %v15488_v49 = vcombine.high %v5051_v34, %v5055_v55 }
 0x368   :  { %10570 = vmatpush1.bf16.msra.mxu0 %v15399_v44  ;;  %v5183_v35 = vld [vmem:[#allocation7 + $0x1fa0] sm:$0xff] }
 0x369   :  { %10571 = vmatprep.subr.bf16.mxu0 %v15392_v41  ;;  %v15616_v46 = vcombine.high %v5179_v58, %v5183_v35  ;;  %v5043_v42 = vld [vmem:[#allocation7 + $0x1b40] sm:$0xff]  ;;  %v15615_v0 = vcombine.low %v5179_v58, %v5183_v35  ;;  %v3933_v35 = vadd.f32 %v17041_v45, %v17038_v40 }
 0x36a   :  { %10611 = vmatpush1.bf16.msra.mxu1 %v15527_v33  ;;  %v5047_v44 = vld [vmem:[#allocation7 + $0x1b60] sm:$0xff] }
 0x36b   :  { %10612 = vmatprep.subr.bf16.mxu1 %v15520_v50  ;;  %v5171_v33 = vld [vmem:[#allocation7 + $0x1f40] sm:$0xff]  ;;  %v15487_v50 = vcombine.low %v5051_v34, %v5055_v55  ;;  %v15480_v56 = vcombine.high %v5043_v42, %v5047_v44  ;;  %v3994_v34 = vrot.slane %v16973_v37, %v16968_v31 }
 0x36c   :  { %10572 = vmatpush1.bf16.msra.mxu0 %v15391_v3  ;;  %v5175_v41 = vld [vmem:[#allocation7 + $0x1f60] sm:$0xff] }
 0x36d   :  { %10573 = vmatprep.subr.bf16.mxu0 %v15384_v8  ;;  %v15608_v60 = vcombine.high %v5171_v33, %v5175_v41  ;;  %v5035_v63 = vld [vmem:[#allocation7 + $0x1b00] sm:$0xff]  ;;  %v15607_v29 = vcombine.low %v5171_v33, %v5175_v41  ;;  %v4094_v33 = vrot.slane %v16983_v48, %v16968_v31 }
 0x36e   :  { %10613 = vmatpush1.bf16.msra.mxu1 %v15519_v7  ;;  %v5039_v3 = vld [vmem:[#allocation7 + $0x1b20] sm:$0xff] }
 0x36f   :  { %10614 = vmatprep.subr.bf16.mxu1 %v15512_v9  ;;  %v5163_v7 = vld [vmem:[#allocation7 + $0x1f00] sm:$0xff]  ;;  %v15479_v9 = vcombine.low %v5043_v42, %v5047_v44  ;;  %v15472_v10 = vcombine.high %v5035_v63, %v5039_v3 }
 0x370   :  { %10574 = vmatpush1.bf16.msra.mxu0 %v15383_v19  ;;  %v5167_v8 = vld [vmem:[#allocation7 + $0x1f20] sm:$0xff] }
 0x371   :  { %10575 = vmatprep.subr.bf16.mxu0 %v15376_v20  ;;  %v15600_v11 = vcombine.high %v5163_v7, %v5167_v8  ;;  %v5027_v17 = vld [vmem:[#allocation7 + $0x1ac0] sm:$0xff]  ;;  %v15599_v22 = vcombine.low %v5163_v7, %v5167_v8 }
 0x372   :  { %10615 = vmatpush1.bf16.msra.mxu1 %v15511_v13  ;;  %v5031_v19 = vld [vmem:[#allocation7 + $0x1ae0] sm:$0xff] }
 0x373   :  { %10616 = vmatprep.subr.bf16.mxu1 %v15504_v12  ;;  %v5155_v13 = vld [vmem:[#allocation7 + $0x1ec0] sm:$0xff]  ;;  %v15471_v12 = vcombine.low %v5035_v63, %v5039_v3  ;;  %v15464_v23 = vcombine.high %v5027_v17, %v5031_v19 }
 0x374   :  { %10576 = vmatpush1.bf16.msra.mxu0 %v15375_v27  ;;  %v5159_v20 = vld [vmem:[#allocation7 + $0x1ee0] sm:$0xff] }
 0x375   :  { %10577 = vmatprep.subr.bf16.mxu0 %v15496_v28  ;;  %v15592_v26 = vcombine.high %v5155_v13, %v5159_v20  ;;  %v5019_v18 = vld [vmem:[#allocation7 + $0x1a80] sm:$0xff]  ;;  %v15591_v55 = vcombine.low %v5155_v13, %v5159_v20  ;;  %v4356_v13 = vld [vmem:[#allocation7 + $0x5c8] sm:$0xff] }
 0x376   :  { %10617 = vmatpush1.bf16.msra.mxu1 %v15503_v54  ;;  %v5023_v27 = vld [vmem:[#allocation7 + $0x1aa0] sm:$0xff] }
 0x377   :  { %10618 = vmatprep.subr.bf16.mxu1 %v15624_v32  ;;  %v5147_v54 = vld [vmem:[#allocation7 + $0x1e80] sm:$0xff]  ;;  %v15463_v32 = vcombine.low %v5027_v17, %v5031_v19  ;;  %v15456_v58 = vcombine.high %v5019_v18, %v5023_v27  ;;  %v15455_v41 = vcombine.low %v5019_v18, %v5023_v27  ;;  %v4228_v17 = vld [vmem:[#allocation7 + $0x1c8] sm:$0xff] }
 0x378   :  { %10578 = vmatpush2.bf16.msra.mxu0 %v15495_v36  ;;  %v5151_v28 = vld [vmem:[#allocation7 + $0x1ea0] sm:$0xff]  ;;  %v4002_v36 = vrot.slane %v16973_v37, %v16971_v1  ;;  %v4102_v37 = vrot.slane %v16983_v48, %v16971_v1  ;;  %v4232_v19 = vld [vmem:[#allocation7 + $0x1e8] sm:$0xff] }
 0x379   :  { %10579 = vmatprep.subr.bf16.mxu0 %v15488_v49  ;;  %v5011_v49 = vld [vmem:[#allocation7 + $0x1a40] sm:$0xff]  ;;  %v4360_v48 = vld [vmem:[#allocation7 + $0x5e8] sm:$0xff] }
 0x37a   :  { %10619 = vmatpush2.bf16.msra.mxu1 %v15623_v25  ;;  %v15584_v25 = vcombine.high %v5147_v54, %v5151_v28  ;;  %v5139_v42 = vld [vmem:[#allocation7 + $0x1e40] sm:$0xff]  ;;  %v4037_v45 = vmul.f32 %v4002_v36, %v3933_v35  ;;  %v14794_v18 = vcombine.high %v4356_v13, %v4360_v48  ;;  %v4220_v27 = vld [vmem:[#allocation7 + $0x188] sm:$0xff] }
 0x37b   :  { %10620 = vmatprep.subr.bf16.mxu1 %v15616_v46  ;;  %v5015_v46 = vld [vmem:[#allocation7 + $0x1a60] sm:$0xff] }
 0x37c   :  { %10580 = vmatpush2.bf16.msra.mxu0 %v15487_v50  ;;  %v5143_v44 = vld [vmem:[#allocation7 + $0x1e60] sm:$0xff]  ;;  %v4035_v50 = vmul.f32 %v3994_v34, %v17008_v30  ;;  %v15448_v40 = vcombine.high %v5011_v49, %v5015_v46  ;;  %v15447_v8 = vcombine.low %v5011_v49, %v5015_v46  ;;  %v4352_v34 = vld [vmem:[#allocation7 + $0x5a8] sm:$0xff] }
 0x37d   :  { %10581 = vmatprep.subr.bf16.mxu0 %v15480_v56  ;;  %v15576_v56 = vcombine.high %v5139_v42, %v5143_v44  ;;  %v5007_v63 = vld [vmem:[#allocation7 + $0x1a20] sm:$0xff]  ;;  %v15575_v30 = vcombine.low %v5139_v42, %v5143_v44  ;;  %v4216_v49 = vld [vmem:[#allocation7 + $0x168] sm:$0xff] }
 0x37e   :  { %10621 = vmatpush2.bf16.msra.mxu1 %v15615_v0  ;;  %v15583_v0 = vcombine.low %v5147_v54, %v5151_v28  ;;  %v5131_v3 = vld [vmem:[#allocation7 + $0x1e00] sm:$0xff]  ;;  %v4224_v54 = vld [vmem:[#allocation7 + $0x1a8] sm:$0xff]  ;;  %v14665_v28 = vcombine.low %v4228_v17, %v4232_v19 }
 0x37f   :  { %10622 = vmatprep.subr.bf16.mxu1 %v15608_v60  ;;  %v5003_v60 = vld [vmem:[#allocation7 + $0x1a00] sm:$0xff]  ;;  %v14658_v36 = vcombine.high %v4220_v27, %v4224_v54  ;;  %v4340_v44 = vld [vmem:[#allocation7 + $0x548] sm:$0xff] }
 0x380   :  { %10582 = vmatpush2.bf16.msra.mxu0 %v15479_v9  ;;  %v5135_v7 = vld [vmem:[#allocation7 + $0x1e20] sm:$0xff]  ;;  %v4135_v9 = vadd.f32 %v4094_v33, %v4035_v50  ;;  %v15439_v20 = vcombine.low %v5003_v60, %v5007_v63  ;;  %v4344_v33 = vld [vmem:[#allocation7 + $0x568] sm:$0xff]  ;;  %v14657_v50 = vcombine.low %v4220_v27, %v4224_v54 }
 0x381   :  { %10583 = vmatprep.subr.bf16.mxu0 %v15472_v10  ;;  %v4137_v10 = vadd.f32 %v4102_v37, %v4037_v45 }
 0x382   :  { %10623 = vmatpush2.bf16.msra.mxu1 %v15607_v29  ;;  %v15440_v29 = vcombine.high %v5003_v60, %v5007_v63  ;;  %v14778_v60 = vcombine.high %v4340_v44, %v4344_v33  ;;  %v4204_v63 = vld [vmem:[#allocation7 + $0x108] sm:$0xff] }
 0x383   :  { %10624 = vmatprep.subr.bf16.mxu1 %v15600_v11  ;;  %v15568_v11 = vcombine.high %v5131_v3, %v5135_v7 }
 0x384   :  { %10584 = vmatpush2.bf16.msra.mxu0 %v15471_v12  ;;  %v4151_v12 = vmax.f32 %v4135_v9, 0.0  ;;  %v4332_v9 = vld [vmem:[#allocation7 + $0x508] sm:$0xff] }
 0x385   :  { %10585 = vmatprep.subr.bf16.mxu0 %v15464_v23  ;;  %v14666_v23 = vcombine.high %v4228_v17, %v4232_v19  ;;  %v14777_v17 = vcombine.low %v4340_v44, %v4344_v33  ;;  %v4184_v44 = vld [vmem:[#allocation7 + $0x68] sm:$0xff] }
 0x386   :  { %10625 = vmatpush2.bf16.msra.mxu1 %v15599_v22  ;;  %v15567_v22 = vcombine.low %v5131_v3, %v5135_v7  ;;  %v4208_v3 = vld [vmem:[#allocation7 + $0x128] sm:$0xff] }
 0x387   :  { %10626 = vmatprep.subr.bf16.mxu1 %v15592_v26  ;;  %v4153_v26 = vmax.f32 %v4137_v10, 0.0  ;;  %v14642_v19 = vcombine.high %v4204_v63, %v4208_v3  ;;  %v4308_v33 = vld [vmem:[#allocation7 + $0x448] sm:$0xff] }
 0x388   :  { %10586 = vmatpush2.bf16.msra.mxu0 %v15463_v32  ;;  %v4348_v32 = vld [vmem:[#allocation7 + $0x588] sm:$0xff] }
 0x389   :  { %10587 = vmatprep.subr.bf16.mxu0 %v15456_v58  ;;  %v14793_v58 = vcombine.low %v4356_v13, %v4360_v48  ;;  %v17065_v35 = vpack.c.bf16 %v4153_v26, %v4153_v26  ;;  %v14786_v42 = vcombine.high %v4348_v32, %v4352_v34  ;;  %v14785_v45 = vcombine.low %v4348_v32, %v4352_v34  ;;  %v4192_v32 = vld [vmem:[#allocation7 + $0xa8] sm:$0xff] }
 0x38a   :  { %10627 = vmatpush2.bf16.msra.mxu1 %v15591_v55  ;;  %v17063_v55 = vpack.c.bf16 %v4151_v12, %v4151_v12  ;;  %v4200_v12 = vld [vmem:[#allocation7 + $0xe8] sm:$0xff]  ;;  %v14641_v26 = vcombine.low %v4204_v63, %v4208_v3 }
 0x38b   :  { %10628 = vmatprep.subr.bf16.mxu1 %v15584_v25  ;;  %v4212_v25 = vld [vmem:[#allocation7 + $0x148] sm:$0xff] }
 0x38c   :  { %10588 = vmatpush2.bf16.msra.mxu0 %v15455_v41  ;;  %v14650_v37 = vcombine.high %v4212_v25, %v4216_v49  ;;  %v14649_v10 = vcombine.low %v4212_v25, %v4216_v49  ;;  %v4316_v34 = vld [vmem:[#allocation7 + $0x488] sm:$0xff] }
 0x38d   :  { %10589 = vmatprep.subr.bf16.mxu0 %v15448_v40  ;;  %v4300_v63 = vld [vmem:[#allocation7 + $0x408] sm:$0xff] }
 0x38e   :  { %10629 = vmatpush2.bf16.msra.mxu1 %v15583_v0  ;;  %v4304_v3 = vld [vmem:[#allocation7 + $0x428] sm:$0xff] }
 0x38f   :  { %10630 = vmatprep.subr.bf16.mxu1 %v15576_v56 }
 0x390   :  { %10590 = vmatpush2.bf16.msra.mxu0 %v15447_v8 }
 0x391   :  { %10591 = vmatprep.subr.bf16.mxu0 %v15440_v29 }
 0x392   :  { %10631 = vmatpush2.bf16.msra.mxu1 %v15575_v30  ;;  %v4336_v30 = vld [vmem:[#allocation7 + $0x528] sm:$0xff] }
 0x393   :  { %10632 = vmatprep.subr.bf16.mxu1 %v15568_v11  ;;  %v14770_v48 = vcombine.high %v4332_v9, %v4336_v30 }
 0x394   :  { %10592 = vmatpush2.bf16.msra.mxu0 %v15439_v20  ;;  %v4196_v20 = vld [vmem:[#allocation7 + $0xc8] sm:$0xff] }
 0x395   :  { %10643 = vmatprep.subr.bf16.mxu0 %v14666_v23  ;;  %v4328_v23 = vld [vmem:[#allocation7 + $0x4e8] sm:$0xff]  ;;  %v14634_v27 = vcombine.high %v4196_v20, %v4200_v12 }
 0x396   :  { %10633 = vmatpush2.bf16.msra.mxu1 %v15567_v22  ;;  %v4324_v22 = vld [vmem:[#allocation7 + $0x4c8] sm:$0xff] }
 0x397   :  { %10684 = vmatprep.subr.bf16.mxu1 %v14794_v18  ;;  %v10349_v46 = vpop.f32.mrf.mxu0  ;;  %10594 = vmatmul.mubr.bf16.vlgmr.msra.gmra.mxu0 %v17063_v55  ;;  %v14769_v18 = vcombine.low %v4332_v9, %v4336_v30  ;;  %v14762_v54 = vcombine.high %v4324_v22, %v4328_v23  ;;  %v14761_v25 = vcombine.low %v4324_v22, %v4328_v23  ;;  %v4284_v22 = vld [vmem:[#allocation7 + $0x388] sm:$0xff] }
 0x398   :  { %10644 = vmatpush1.bf16.msra.mxu0 %v14665_v28  ;;  %10675 = vmatprep.mubr.bf16.mxu0 %v16905_v57  ;;  %v4188_v28 = vld [vmem:[#allocation7 + $0x88] sm:$0xff] }
 0x399   :  { %v10390_v41 = vpop.f32.mrf.mxu1  ;;  %10635 = vmatmul.mubr.bf16.vlgmr.msra.gmra.mxu1 %v17065_v35  ;;  %v10351_v40 = vpop.f32.mrf.mxu0  ;;  %10645 = vmatprep.subr.bf16.mxu0 %v14658_v36  ;;  %v14633_v36 = vcombine.low %v4196_v20, %v4200_v12  ;;  %v14626_v49 = vcombine.high %v4188_v28, %v4192_v32  ;;  %v4288_v23 = vld [vmem:[#allocation7 + $0x3a8] sm:$0xff] }
 0x39a   :  { %v17069_v0 = vadd.f32 %v10390_v41, %v10349_v46  ;;  %10685 = vmatpush1.bf16.msra.mxu1 %v14793_v58  ;;  %10716 = vmatprep.mubr.bf16.mxu1 %v16908_v4  ;;  %v4320_v58 = vld [vmem:[#allocation7 + $0x4a8] sm:$0xff] }
 0x39b   :  { %v10392_v56 = vpop.f32.mrf.mxu1  ;;  %v10353_v8 = vpop.f32.mrf.mxu0  ;;  %10686 = vmatprep.subr.bf16.mxu1 %v14786_v42  ;;  %v14754_v46 = vcombine.high %v4316_v34, %v4320_v58  ;;  %v4180_v42 = vld [vmem:[#allocation7 + $0x48] sm:$0xff] }
 0x39c   :  { %v17073_v7 = vadd.f32 %v10392_v56, %v10351_v40  ;;  %10646 = vmatpush1.bf16.msra.mxu0 %v14657_v50  ;;  %v4312_v41 = vld [vmem:[#allocation7 + $0x468] sm:$0xff]  ;;  %v14625_v50 = vcombine.low %v4188_v28, %v4192_v32  ;;  %v14753_v40 = vcombine.low %v4316_v34, %v4320_v58  ;;  %v14617_v8 = vcombine.low %v4180_v42, %v4184_v44 }
 0x39d   :  { %v10394_v29 = vpop.f32.mrf.mxu1  ;;  %v10354_v11 = vpop.f32.mrf.mxu0  ;;  %10647 = vmatprep.subr.bf16.mxu0 %v14650_v37  ;;  %v14746_v37 = vcombine.high %v4308_v33, %v4312_v41  ;;  %v4172_v56 = vld [vmem:[#allocation7 + $0x8] sm:$0xff]  ;;  %v14745_v9 = vcombine.low %v4308_v33, %v4312_v41  ;;  %v14722_v28 = vcombine.high %v4284_v22, %v4288_v23 }
 0x39e   :  { %10687 = vmatpush1.bf16.msra.mxu1 %v14785_v45  ;;  %v14618_v45 = vcombine.high %v4180_v42, %v4184_v44  ;;  %v14738_v29 = vcombine.high %v4300_v63, %v4304_v3  ;;  %v4296_v11 = vld [vmem:[#allocation7 + $0x3e8] sm:$0xff] }
 0x39f   :  { %v10395_v13 = vpop.f32.mrf.mxu1  ;;  %10688 = vmatprep.subr.bf16.mxu1 %v14778_v60  ;;  %v4176_v60 = vld [vmem:[#allocation7 + $0x28] sm:$0xff] }
 0x3a0   :  { %10648 = vmatpush1.bf16.msra.mxu0 %v14649_v10  ;;  %v14610_v30 = vcombine.high %v4172_v56, %v4176_v60  ;;  %v4292_v10 = vld [vmem:[#allocation7 + $0x3c8] sm:$0xff]  ;;  %v14609_v13 = vcombine.low %v4172_v56, %v4176_v60 }
 0x3a1   :  { %10649 = vmatprep.subr.bf16.mxu0 %v14642_v19  ;;  %v4424_v19 = vld [vmem:[#allocation7 + $0x7e8] sm:$0xff]  ;;  %v14730_v20 = vcombine.high %v4292_v10, %v4296_v11 }
 0x3a2   :  { %10689 = vmatpush1.bf16.msra.mxu1 %v14777_v17  ;;  %v4420_v17 = vld [vmem:[#allocation7 + $0x7c8] sm:$0xff] }
 0x3a3   :  { %10690 = vmatprep.subr.bf16.mxu1 %v14770_v48  ;;  %v14737_v48 = vcombine.low %v4300_v63, %v4304_v3  ;;  %v14858_v12 = vcombine.high %v4420_v17, %v4424_v19  ;;  %v4276_v34 = vld [vmem:[#allocation7 + $0x348] sm:$0xff] }
 0x3a4   :  { %10650 = vmatpush1.bf16.msra.mxu0 %v14641_v26  ;;  %v4412_v26 = vld [vmem:[#allocation7 + $0x788] sm:$0xff] }
 0x3a5   :  { %10651 = vmatprep.subr.bf16.mxu0 %v14634_v27  ;;  %v14729_v27 = vcombine.low %v4292_v10, %v4296_v11  ;;  %v4280_v58 = vld [vmem:[#allocation7 + $0x368] sm:$0xff] }
 0x3a6   :  { %10691 = vmatpush1.bf16.msra.mxu1 %v14769_v18  ;;  %v4416_v18 = vld [vmem:[#allocation7 + $0x7a8] sm:$0xff]  ;;  %v14714_v42 = vcombine.high %v4276_v34, %v4280_v58 }
 0x3a7   :  { %10692 = vmatprep.subr.bf16.mxu1 %v14762_v54  ;;  %v14857_v54 = vcombine.low %v4420_v17, %v4424_v19  ;;  %v14850_v32 = vcombine.high %v4412_v26, %v4416_v18  ;;  %v4268_v33 = vld [vmem:[#allocation7 + $0x308] sm:$0xff] }
 0x3a8   :  { %10652 = vmatpush1.bf16.msra.mxu0 %v14633_v36  ;;  %v4404_v36 = vld [vmem:[#allocation7 + $0x748] sm:$0xff] }
 0x3a9   :  { %10653 = vmatprep.subr.bf16.mxu0 %v14626_v49  ;;  %v14721_v49 = vcombine.low %v4284_v22, %v4288_v23  ;;  %v4272_v41 = vld [vmem:[#allocation7 + $0x328] sm:$0xff] }
 0x3aa   :  { %10693 = vmatpush1.bf16.msra.mxu1 %v14761_v25  ;;  %v4408_v25 = vld [vmem:[#allocation7 + $0x768] sm:$0xff]  ;;  %v14706_v56 = vcombine.high %v4268_v33, %v4272_v41 }
 0x3ab   :  { %10694 = vmatprep.subr.bf16.mxu1 %v14754_v46  ;;  %v14849_v46 = vcombine.low %v4412_v26, %v4416_v18  ;;  %v14842_v44 = vcombine.high %v4404_v36, %v4408_v25  ;;  %v4260_v63 = vld [vmem:[#allocation7 + $0x2c8] sm:$0xff] }
 0x3ac   :  { %10654 = vmatpush1.bf16.msra.mxu0 %v14625_v50  ;;  %v4396_v50 = vld [vmem:[#allocation7 + $0x708] sm:$0xff] }
 0x3ad   :  { %10655 = vmatprep.subr.bf16.mxu0 %v14618_v45  ;;  %v14713_v45 = vcombine.low %v4276_v34, %v4280_v58  ;;  %v4264_v3 = vld [vmem:[#allocation7 + $0x2e8] sm:$0xff] }
 0x3ae   :  { %10695 = vmatpush1.bf16.msra.mxu1 %v14753_v40  ;;  %v4400_v40 = vld [vmem:[#allocation7 + $0x728] sm:$0xff]  ;;  %v14698_v10 = vcombine.high %v4260_v63, %v4264_v3 }
 0x3af   :  { %10696 = vmatprep.subr.bf16.mxu1 %v14746_v37  ;;  %v14841_v37 = vcombine.low %v4404_v36, %v4408_v25  ;;  %v14834_v60 = vcombine.high %v4396_v50, %v4400_v40  ;;  %v4252_v17 = vld [vmem:[#allocation7 + $0x288] sm:$0xff] }
 0x3b0   :  { %10656 = vmatpush1.bf16.msra.mxu0 %v14617_v8  ;;  %v4388_v8 = vld [vmem:[#allocation7 + $0x6c8] sm:$0xff] }
 0x3b1   :  { %10657 = vmatprep.subr.bf16.mxu0 %v14610_v30  ;;  %v14705_v30 = vcombine.low %v4268_v33, %v4272_v41  ;;  %v4256_v19 = vld [vmem:[#allocation7 + $0x2a8] sm:$0xff] }
 0x3b2   :  { %10697 = vmatpush1.bf16.msra.mxu1 %v14745_v9  ;;  %v4392_v9 = vld [vmem:[#allocation7 + $0x6e8] sm:$0xff]  ;;  %v14690_v22 = vcombine.high %v4252_v17, %v4256_v19 }
 0x3b3   :  { %10698 = vmatprep.subr.bf16.mxu1 %v14738_v29  ;;  %v14833_v29 = vcombine.low %v4396_v50, %v4400_v40  ;;  %v14826_v11 = vcombine.high %v4388_v8, %v4392_v9  ;;  %v4244_v26 = vld [vmem:[#allocation7 + $0x248] sm:$0xff] }
 0x3b4   :  { %10658 = vmatpush1.bf16.msra.mxu0 %v14609_v13  ;;  %v4380_v13 = vld [vmem:[#allocation7 + $0x688] sm:$0xff] }
 0x3b5   :  { %10659 = vmatprep.subr.bf16.mxu0 %v14730_v20  ;;  %v14697_v20 = vcombine.low %v4260_v63, %v4264_v3  ;;  %v4248_v18 = vld [vmem:[#allocation7 + $0x268] sm:$0xff] }
 0x3b6   :  { %10699 = vmatpush1.bf16.msra.mxu1 %v14737_v48  ;;  %v4384_v48 = vld [vmem:[#allocation7 + $0x6a8] sm:$0xff]  ;;  %v14682_v34 = vcombine.high %v4244_v26, %v4248_v18 }
 0x3b7   :  { %10700 = vmatprep.subr.bf16.mxu1 %v14858_v12  ;;  %v14825_v12 = vcombine.low %v4388_v8, %v4392_v9  ;;  %v14818_v23 = vcombine.high %v4380_v13, %v4384_v48  ;;  %v4236_v36 = vld [vmem:[#allocation7 + $0x208] sm:$0xff] }
 0x3b8   :  { %10660 = vmatpush2.bf16.msra.mxu0 %v14729_v27  ;;  %v4372_v27 = vld [vmem:[#allocation7 + $0x648] sm:$0xff] }
 0x3b9   :  { %10661 = vmatprep.subr.bf16.mxu0 %v14722_v28  ;;  %v14689_v28 = vcombine.low %v4252_v17, %v4256_v19  ;;  %v4240_v25 = vld [vmem:[#allocation7 + $0x228] sm:$0xff] }
 0x3ba   :  { %10701 = vmatpush2.bf16.msra.mxu1 %v14857_v54  ;;  %v4376_v54 = vld [vmem:[#allocation7 + $0x668] sm:$0xff]  ;;  %v14674_v33 = vcombine.high %v4236_v36, %v4240_v25 }
 0x3bb   :  { %10702 = vmatprep.subr.bf16.mxu1 %v14850_v32  ;;  %v14817_v32 = vcombine.low %v4380_v13, %v4384_v48  ;;  %v14810_v58 = vcombine.high %v4372_v27, %v4376_v54  ;;  %v4484_v50 = vld [vmem:[#allocation7 + $0x9c8] sm:$0xff] }
 0x3bc   :  { %10662 = vmatpush2.bf16.msra.mxu0 %v14721_v49  ;;  %v4364_v49 = vld [vmem:[#allocation7 + $0x608] sm:$0xff] }
 0x3bd   :  { %10663 = vmatprep.subr.bf16.mxu0 %v14714_v42  ;;  %v14681_v42 = vcombine.low %v4244_v26, %v4248_v18  ;;  %v4488_v40 = vld [vmem:[#allocation7 + $0x9e8] sm:$0xff] }
 0x3be   :  { %10703 = vmatpush2.bf16.msra.mxu1 %v14849_v46  ;;  %v4368_v46 = vld [vmem:[#allocation7 + $0x628] sm:$0xff]  ;;  %v14922_v63 = vcombine.high %v4484_v50, %v4488_v40 }
 0x3bf   :  { %10704 = vmatprep.subr.bf16.mxu1 %v14842_v44  ;;  %v14809_v44 = vcombine.low %v4372_v27, %v4376_v54  ;;  %v14802_v41 = vcombine.high %v4364_v49, %v4368_v46  ;;  %v4476_v8 = vld [vmem:[#allocation7 + $0x988] sm:$0xff] }
 0x3c0   :  { %10664 = vmatpush2.bf16.msra.mxu0 %v14713_v45  ;;  %v4612_v45 = vld [vmem:[#allocation7 + $0xdc8] sm:$0xff] }
 0x3c1   :  { %10665 = vmatprep.subr.bf16.mxu0 %v14706_v56  ;;  %v14673_v56 = vcombine.low %v4236_v36, %v4240_v25  ;;  %v4480_v9 = vld [vmem:[#allocation7 + $0x9a8] sm:$0xff] }
 0x3c2   :  { %10705 = vmatpush2.bf16.msra.mxu1 %v14841_v37  ;;  %v4616_v37 = vld [vmem:[#allocation7 + $0xde8] sm:$0xff]  ;;  %v14914_v17 = vcombine.high %v4476_v8, %v4480_v9  ;;  %v14913_v18 = vcombine.low %v4476_v8, %v4480_v9 }
 0x3c3   :  { %10706 = vmatprep.subr.bf16.mxu1 %v14834_v60  ;;  %v14801_v60 = vcombine.low %v4364_v49, %v4368_v46  ;;  %v15050_v3 = vcombine.high %v4612_v45, %v4616_v37  ;;  %v4468_v19 = vld [vmem:[#allocation7 + $0x948] sm:$0xff] }
 0x3c4   :  { %10666 = vmatpush2.bf16.msra.mxu0 %v14705_v30  ;;  %v14921_v30 = vcombine.low %v4484_v50, %v4488_v40  ;;  %v4472_v13 = vld [vmem:[#allocation7 + $0x968] sm:$0xff] }
 0x3c5   :  { %10667 = vmatprep.subr.bf16.mxu0 %v14698_v10  ;;  %v4608_v10 = vld [vmem:[#allocation7 + $0xda8] sm:$0xff] }
 0x3c6   :  { %10707 = vmatpush2.bf16.msra.mxu1 %v14833_v29  ;;  %v4604_v29 = vld [vmem:[#allocation7 + $0xd88] sm:$0xff] }
 0x3c7   :  { %10708 = vmatprep.subr.bf16.mxu1 %v14826_v11  ;;  %v15049_v11 = vcombine.low %v4612_v45, %v4616_v37  ;;  %v15041_v54 = vcombine.low %v4604_v29, %v4608_v10  ;;  %v4460_v36 = vld [vmem:[#allocation7 + $0x908] sm:$0xff] }
 0x3c8   :  { %10668 = vmatpush2.bf16.msra.mxu0 %v14697_v20  ;;  %v15042_v20 = vcombine.high %v4604_v29, %v4608_v10  ;;  %v4464_v25 = vld [vmem:[#allocation7 + $0x928] sm:$0xff] }
 0x3c9   :  { %10669 = vmatprep.subr.bf16.mxu0 %v14690_v22  ;;  %v4600_v22 = vld [vmem:[#allocation7 + $0xd68] sm:$0xff]  ;;  %v14898_v45 = vcombine.high %v4460_v36, %v4464_v25  ;;  %v14897_v8 = vcombine.low %v4460_v36, %v4464_v25 }
 0x3ca   :  { %10709 = vmatpush2.bf16.msra.mxu1 %v14825_v12  ;;  %v4596_v12 = vld [vmem:[#allocation7 + $0xd48] sm:$0xff] }
 0x3cb   :  { %10710 = vmatprep.subr.bf16.mxu1 %v14818_v23  ;;  %v4588_v46 = vld [vmem:[#allocation7 + $0xd08] sm:$0xff]  ;;  %v15033_v40 = vcombine.low %v4596_v12, %v4600_v22 }
 0x3cc   :  { %10670 = vmatpush2.bf16.msra.mxu0 %v14689_v28  ;;  %v14906_v28 = vcombine.high %v4468_v19, %v4472_v13  ;;  %v4444_v10 = vld [vmem:[#allocation7 + $0x888] sm:$0xff] }
 0x3cd   :  { %10671 = vmatprep.subr.bf16.mxu0 %v14682_v34  ;;  %v4556_v36 = vld [vmem:[#allocation7 + $0xc08] sm:$0xff] }
 0x3ce   :  { %10711 = vmatpush2.bf16.msra.mxu1 %v14817_v32  ;;  %v4560_v25 = vld [vmem:[#allocation7 + $0xc28] sm:$0xff] }
 0x3cf   :  { %10712 = vmatprep.subr.bf16.mxu1 %v14810_v58 }
 0x3d0   :  { %10672 = vmatpush2.bf16.msra.mxu0 %v14681_v42  ;;  %v4592_v42 = vld [vmem:[#allocation7 + $0xd28] sm:$0xff] }
 0x3d1   :  { %10673 = vmatprep.subr.bf16.mxu0 %v14674_v33  ;;  %v15026_v37 = vcombine.high %v4588_v46, %v4592_v42  ;;  %v15025_v9 = vcombine.low %v4588_v46, %v4592_v42 }
 0x3d2   :  { %10713 = vmatpush2.bf16.msra.mxu1 %v14809_v44 }
 0x3d3   :  { %10714 = vmatprep.subr.bf16.mxu1 %v14802_v41  ;;  %v14905_v41 = vcombine.low %v4468_v19, %v4472_v13  ;;  %v4576_v19 = vld [vmem:[#allocation7 + $0xca8] sm:$0xff] }
 0x3d4   :  { %10674 = vmatpush2.bf16.msra.mxu0 %v14673_v56  ;;  %v4452_v56 = vld [vmem:[#allocation7 + $0x8c8] sm:$0xff] }
 0x3d5   :  { %10725 = vmatprep.subr.bf16.mxu0 %v14922_v63  ;;  %v4580_v63 = vld [vmem:[#allocation7 + $0xcc8] sm:$0xff] }
 0x3d6   :  { %10715 = vmatpush2.bf16.msra.mxu1 %v14801_v60  ;;  %v4456_v60 = vld [vmem:[#allocation7 + $0x8e8] sm:$0xff] }
 0x3d7   :  { %10766 = vmatprep.subr.bf16.mxu1 %v15050_v3  ;;  %v10431_v48 = vpop.f32.mrf.mxu0  ;;  %10676 = vmatmul.mubr.bf16.vlgmr.msra.gmra.mxu0 %v16949_v16  ;;  %v4584_v3 = vld [vmem:[#allocation7 + $0xce8] sm:$0xff]  ;;  %v14889_v13 = vcombine.low %v4452_v56, %v4456_v60 }
 0x3d8   :  { %v10432_v23 = vadd.f32 %v10431_v48, %v17069_v0  ;;  %10726 = vmatpush1.bf16.msra.mxu0 %v14921_v30  ;;  %10757 = vmatprep.mubr.bf16.mxu0 %v16953_v21  ;;  %v15034_v0 = vcombine.high %v4596_v12, %v4600_v22  ;;  %v14890_v30 = vcombine.high %v4452_v56, %v4456_v60  ;;  %v4436_v22 = vld [vmem:[#allocation7 + $0x848] sm:$0xff] }
 0x3d9   :  { %v10472_v26 = vpop.f32.mrf.mxu1  ;;  %10717 = vmatmul.mubr.bf16.vlgmr.msra.gmra.mxu1 %v16951_v14  ;;  %v10433_v27 = vpop.f32.mrf.mxu0  ;;  %10727 = vmatprep.subr.bf16.mxu0 %v14914_v17  ;;  %v15018_v29 = vcombine.high %v4580_v63, %v4584_v3  ;;  %v4572_v17 = vld [vmem:[#allocation7 + $0xc88] sm:$0xff]  ;;  %v15017_v48 = vcombine.low %v4580_v63, %v4584_v3 }
 0x3da   :  { %10767 = vmatpush1.bf16.msra.mxu1 %v15049_v11  ;;  %v17079_v32 = vadd.f32 %v10472_v26, %v10432_v23  ;;  %10798 = vmatprep.mubr.bf16.mxu1 %v16956_v53  ;;  %v10434_v34 = vadd.f32 %v10433_v27, %v17073_v7  ;;  %v4448_v11 = vld [vmem:[#allocation7 + $0x8a8] sm:$0xff]  ;;  %v15010_v12 = vcombine.high %v4572_v17, %v4576_v19 }
 0x3db   :  { %v10474_v58 = vpop.f32.mrf.mxu1  ;;  %v10435_v49 = vpop.f32.mrf.mxu0  ;;  %10768 = vmatprep.subr.bf16.mxu1 %v15042_v20  ;;  %v14882_v20 = vcombine.high %v4444_v10, %v4448_v11  ;;  %v4440_v23 = vld [vmem:[#allocation7 + $0x868] sm:$0xff]  ;;  %v14881_v27 = vcombine.low %v4444_v10, %v4448_v11 }
 0x3dc   :  { %v17083_v44 = vadd.f32 %v10474_v58, %v10434_v34  ;;  %10728 = vmatpush1.bf16.msra.mxu0 %v14913_v18  ;;  %v4564_v26 = vld [vmem:[#allocation7 + $0xc48] sm:$0xff]  ;;  %v14873_v49 = vcombine.low %v4436_v22, %v4440_v23 }
 0x3dd   :  { %v10476_v33 = vpop.f32.mrf.mxu1  ;;  %v10436_v50 = vpop.f32.mrf.mxu0  ;;  %10729 = vmatprep.subr.bf16.mxu0 %v14906_v28  ;;  %v4568_v18 = vld [vmem:[#allocation7 + $0xc68] sm:$0xff]  ;;  %v14874_v28 = vcombine.high %v4436_v22, %v4440_v23 }
 0x3de   :  { %10769 = vmatpush1.bf16.msra.mxu1 %v15041_v54  ;;  %v15009_v54 = vcombine.low %v4572_v17, %v4576_v19  ;;  %v15002_v34 = vcombine.high %v4564_v26, %v4568_v18  ;;  %v4428_v58 = vld [vmem:[#allocation7 + $0x808] sm:$0xff]  ;;  %v15001_v46 = vcombine.low %v4564_v26, %v4568_v18  ;;  %v14994_v33 = vcombine.high %v4556_v36, %v4560_v25 }
 0x3df   :  { %v10477_v7 = vpop.f32.mrf.mxu1  ;;  %10770 = vmatprep.subr.bf16.mxu1 %v15034_v0  ;;  %v4432_v0 = vld [vmem:[#allocation7 + $0x828] sm:$0xff] }
 0x3e0   :  { %10730 = vmatpush1.bf16.msra.mxu0 %v14905_v41  ;;  %v14866_v42 = vcombine.high %v4428_v58, %v4432_v0  ;;  %v4548_v41 = vld [vmem:[#allocation7 + $0xbc8] sm:$0xff]  ;;  %v14865_v7 = vcombine.low %v4428_v58, %v4432_v0 }
 0x3e1   :  { %10731 = vmatprep.subr.bf16.mxu0 %v14898_v45  ;;  %v4552_v50 = vld [vmem:[#allocation7 + $0xbe8] sm:$0xff] }
 0x3e2   :  { %10771 = vmatpush1.bf16.msra.mxu1 %v15033_v40  ;;  %v4676_v40 = vld [vmem:[#allocation7 + $0xfc8] sm:$0xff]  ;;  %v14986_v56 = vcombine.high %v4548_v41, %v4552_v50 }
 0x3e3   :  { %10772 = vmatprep.subr.bf16.mxu1 %v15026_v37  ;;  %v4680_v45 = vld [vmem:[#allocation7 + $0xfe8] sm:$0xff]  ;;  %v14993_v37 = vcombine.low %v4556_v36, %v4560_v25 }
 0x3e4   :  { %10732 = vmatpush1.bf16.msra.mxu0 %v14897_v8  ;;  %v15114_v60 = vcombine.high %v4676_v40, %v4680_v45  ;;  %v4540_v63 = vld [vmem:[#allocation7 + $0xb88] sm:$0xff] }
 0x3e5   :  { %10733 = vmatprep.subr.bf16.mxu0 %v14890_v30  ;;  %v4544_v3 = vld [vmem:[#allocation7 + $0xba8] sm:$0xff]  ;;  %v14985_v30 = vcombine.low %v4548_v41, %v4552_v50 }
 0x3e6   :  { %10773 = vmatpush1.bf16.msra.mxu1 %v15025_v9  ;;  %v4668_v8 = vld [vmem:[#allocation7 + $0xf88] sm:$0xff]  ;;  %v14978_v10 = vcombine.high %v4540_v63, %v4544_v3 }
 0x3e7   :  { %10774 = vmatprep.subr.bf16.mxu1 %v15018_v29  ;;  %v4672_v9 = vld [vmem:[#allocation7 + $0xfa8] sm:$0xff]  ;;  %v15113_v29 = vcombine.low %v4676_v40, %v4680_v45 }
 0x3e8   :  { %10734 = vmatpush1.bf16.msra.mxu0 %v14889_v13  ;;  %v15106_v11 = vcombine.high %v4668_v8, %v4672_v9  ;;  %v4532_v17 = vld [vmem:[#allocation7 + $0xb48] sm:$0xff] }
 0x3e9   :  { %10735 = vmatprep.subr.bf16.mxu0 %v14882_v20  ;;  %v4536_v19 = vld [vmem:[#allocation7 + $0xb68] sm:$0xff]  ;;  %v14977_v20 = vcombine.low %v4540_v63, %v4544_v3 }
 0x3ea   :  { %10775 = vmatpush1.bf16.msra.mxu1 %v15017_v48  ;;  %v4660_v13 = vld [vmem:[#allocation7 + $0xf48] sm:$0xff]  ;;  %v14970_v22 = vcombine.high %v4532_v17, %v4536_v19 }
 0x3eb   :  { %10776 = vmatprep.subr.bf16.mxu1 %v15010_v12  ;;  %v4664_v48 = vld [vmem:[#allocation7 + $0xf68] sm:$0xff]  ;;  %v15105_v12 = vcombine.low %v4668_v8, %v4672_v9 }
 0x3ec   :  { %10736 = vmatpush1.bf16.msra.mxu0 %v14881_v27  ;;  %v15098_v23 = vcombine.high %v4660_v13, %v4664_v48  ;;  %v4524_v26 = vld [vmem:[#allocation7 + $0xb08] sm:$0xff] }
 0x3ed   :  { %10737 = vmatprep.subr.bf16.mxu0 %v14874_v28  ;;  %v4528_v18 = vld [vmem:[#allocation7 + $0xb28] sm:$0xff]  ;;  %v14969_v28 = vcombine.low %v4532_v17, %v4536_v19 }
 0x3ee   :  { %10777 = vmatpush1.bf16.msra.mxu1 %v15009_v54  ;;  %v4652_v27 = vld [vmem:[#allocation7 + $0xf08] sm:$0xff]  ;;  %v14962_v58 = vcombine.high %v4524_v26, %v4528_v18 }
 0x3ef   :  { %10778 = vmatprep.subr.bf16.mxu1 %v15002_v34  ;;  %v4656_v54 = vld [vmem:[#allocation7 + $0xf28] sm:$0xff]  ;;  %v15097_v34 = vcombine.low %v4660_v13, %v4664_v48 }
 0x3f0   :  { %10738 = vmatpush1.bf16.msra.mxu0 %v14873_v49  ;;  %v15090_v0 = vcombine.high %v4652_v27, %v4656_v54  ;;  %v4516_v36 = vld [vmem:[#allocation7 + $0xac8] sm:$0xff] }
 0x3f1   :  { %10739 = vmatprep.subr.bf16.mxu0 %v14866_v42  ;;  %v4520_v25 = vld [vmem:[#allocation7 + $0xae8] sm:$0xff]  ;;  %v14961_v42 = vcombine.low %v4524_v26, %v4528_v18 }
 0x3f2   :  { %10779 = vmatpush1.bf16.msra.mxu1 %v15001_v46  ;;  %v4644_v49 = vld [vmem:[#allocation7 + $0xec8] sm:$0xff]  ;;  %v14954_v41 = vcombine.high %v4516_v36, %v4520_v25 }
 0x3f3   :  { %10780 = vmatprep.subr.bf16.mxu1 %v14994_v33  ;;  %v4648_v46 = vld [vmem:[#allocation7 + $0xee8] sm:$0xff]  ;;  %v15089_v33 = vcombine.low %v4652_v27, %v4656_v54 }
 0x3f4   :  { %10740 = vmatpush1.bf16.msra.mxu0 %v14865_v7  ;;  %v15082_v50 = vcombine.high %v4644_v49, %v4648_v46  ;;  %v4508_v40 = vld [vmem:[#allocation7 + $0xa88] sm:$0xff] }
 0x3f5   :  { %10741 = vmatprep.subr.bf16.mxu0 %v14986_v56  ;;  %v4512_v45 = vld [vmem:[#allocation7 + $0xaa8] sm:$0xff]  ;;  %v14953_v56 = vcombine.low %v4516_v36, %v4520_v25 }
 0x3f6   :  { %10781 = vmatpush1.bf16.msra.mxu1 %v14993_v37  ;;  %v4636_v7 = vld [vmem:[#allocation7 + $0xe88] sm:$0xff]  ;;  %v14946_v63 = vcombine.high %v4508_v40, %v4512_v45 }
 0x3f7   :  { %10782 = vmatprep.subr.bf16.mxu1 %v15114_v60  ;;  %v4640_v37 = vld [vmem:[#allocation7 + $0xea8] sm:$0xff]  ;;  %v15081_v60 = vcombine.low %v4644_v49, %v4648_v46 }
 0x3f8   :  { %10742 = vmatpush2.bf16.msra.mxu0 %v14985_v30  ;;  %v15074_v3 = vcombine.high %v4636_v7, %v4640_v37  ;;  %v4500_v8 = vld [vmem:[#allocation7 + $0xa48] sm:$0xff] }
 0x3f9   :  { %10743 = vmatprep.subr.bf16.mxu0 %v14978_v10  ;;  %v4504_v9 = vld [vmem:[#allocation7 + $0xa68] sm:$0xff]  ;;  %v14945_v10 = vcombine.low %v4508_v40, %v4512_v45 }
 0x3fa   :  { %10783 = vmatpush2.bf16.msra.mxu1 %v15113_v29  ;;  %v4628_v30 = vld [vmem:[#allocation7 + $0xe48] sm:$0xff]  ;;  %v14938_v17 = vcombine.high %v4500_v8, %v4504_v9 }
 0x3fb   :  { %10784 = vmatprep.subr.bf16.mxu1 %v15106_v11  ;;  %v4632_v29 = vld [vmem:[#allocation7 + $0xe68] sm:$0xff]  ;;  %v15073_v11 = vcombine.low %v4636_v7, %v4640_v37 }
 0x3fc   :  { %10744 = vmatpush2.bf16.msra.mxu0 %v14977_v20  ;;  %v15066_v19 = vcombine.high %v4628_v30, %v4632_v29  ;;  %v4492_v13 = vld [vmem:[#allocation7 + $0xa08] sm:$0xff] }
 0x3fd   :  { %10745 = vmatprep.subr.bf16.mxu0 %v14970_v22  ;;  %v4496_v48 = vld [vmem:[#allocation7 + $0xa28] sm:$0xff]  ;;  %v14937_v22 = vcombine.low %v4500_v8, %v4504_v9 }
 0x3fe   :  { %10785 = vmatpush2.bf16.msra.mxu1 %v15105_v12  ;;  %v4620_v20 = vld [vmem:[#allocation7 + $0xe08] sm:$0xff]  ;;  %v14930_v26 = vcombine.high %v4492_v13, %v4496_v48 }
 0x3ff   :  { %10786 = vmatprep.subr.bf16.mxu1 %v15098_v23  ;;  %v4624_v12 = vld [vmem:[#allocation7 + $0xe28] sm:$0xff]  ;;  %v15065_v23 = vcombine.low %v4628_v30, %v4632_v29 }
 0x400   :  { %10746 = vmatpush2.bf16.msra.mxu0 %v14969_v28  ;;  %v15058_v18 = vcombine.high %v4620_v20, %v4624_v12  ;;  %v4740_v27 = vld [vmem:[#allocation7 + $0x11c8] sm:$0xff] }
 0x401   :  { %10747 = vmatprep.subr.bf16.mxu0 %v14962_v58  ;;  %v4744_v54 = vld [vmem:[#allocation7 + $0x11e8] sm:$0xff]  ;;  %v14929_v58 = vcombine.low %v4492_v13, %v4496_v48 }
 0x402   :  { %10787 = vmatpush2.bf16.msra.mxu1 %v15097_v34  ;;  %v4868_v28 = vld [vmem:[#allocation7 + $0x15c8] sm:$0xff]  ;;  %v15178_v36 = vcombine.high %v4740_v27, %v4744_v54 }
 0x403   :  { %10788 = vmatprep.subr.bf16.mxu1 %v15090_v0  ;;  %v4872_v34 = vld [vmem:[#allocation7 + $0x15e8] sm:$0xff]  ;;  %v15057_v0 = vcombine.low %v4620_v20, %v4624_v12 }
 0x404   :  { %10748 = vmatpush2.bf16.msra.mxu0 %v14961_v42  ;;  %v15306_v25 = vcombine.high %v4868_v28, %v4872_v34  ;;  %v4732_v49 = vld [vmem:[#allocation7 + $0x1188] sm:$0xff]  ;;  %v15177_v42 = vcombine.low %v4740_v27, %v4744_v54 }
 0x405   :  { %10749 = vmatprep.subr.bf16.mxu0 %v14954_v41  ;;  %v4736_v46 = vld [vmem:[#allocation7 + $0x11a8] sm:$0xff] }
 0x406   :  { %10789 = vmatpush2.bf16.msra.mxu1 %v15089_v33  ;;  %v4860_v33 = vld [vmem:[#allocation7 + $0x1588] sm:$0xff]  ;;  %v15170_v40 = vcombine.high %v4732_v49, %v4736_v46  ;;  %v15169_v9 = vcombine.low %v4732_v49, %v4736_v46 }
 0x407   :  { %10790 = vmatprep.subr.bf16.mxu1 %v15082_v50  ;;  %v4864_v41 = vld [vmem:[#allocation7 + $0x15a8] sm:$0xff]  ;;  %v15305_v50 = vcombine.low %v4868_v28, %v4872_v34 }
 0x408   :  { %10750 = vmatpush2.bf16.msra.mxu0 %v14953_v56  ;;  %v4724_v45 = vld [vmem:[#allocation7 + $0x1148] sm:$0xff]  ;;  %v15298_v56 = vcombine.high %v4860_v33, %v4864_v41  ;;  %v15297_v29 = vcombine.low %v4860_v33, %v4864_v41 }
 0x409   :  { %10751 = vmatprep.subr.bf16.mxu0 %v14946_v63  ;;  %v4728_v7 = vld [vmem:[#allocation7 + $0x1168] sm:$0xff] }
 0x40a   :  { %10791 = vmatpush2.bf16.msra.mxu1 %v15081_v60  ;;  %v4852_v60 = vld [vmem:[#allocation7 + $0x1548] sm:$0xff] }
 0x40b   :  { %10792 = vmatprep.subr.bf16.mxu1 %v15074_v3  ;;  %v4856_v63 = vld [vmem:[#allocation7 + $0x1568] sm:$0xff] }
 0x40c   :  { %10752 = vmatpush2.bf16.msra.mxu0 %v14945_v10  ;;  %v15162_v10 = vcombine.high %v4724_v45, %v4728_v7  ;;  %v4716_v13 = vld [vmem:[#allocation7 + $0x1108] sm:$0xff]  ;;  %v15289_v54 = vcombine.low %v4852_v60, %v4856_v63 }
 0x40d   :  { %10753 = vmatprep.subr.bf16.mxu0 %v14938_v17  ;;  %v4720_v48 = vld [vmem:[#allocation7 + $0x1128] sm:$0xff] }
 0x40e   :  { %10793 = vmatpush2.bf16.msra.mxu1 %v15073_v11  ;;  %v4844_v12 = vld [vmem:[#allocation7 + $0x1508] sm:$0xff]  ;;  %v15154_v28 = vcombine.high %v4716_v13, %v4720_v48  ;;  %v15153_v49 = vcombine.low %v4716_v13, %v4720_v48 }
 0x40f   :  { %10794 = vmatprep.subr.bf16.mxu1 %v15066_v19  ;;  %v4700_v41 = vld [vmem:[#allocation7 + $0x1088] sm:$0xff] }
 0x410   :  { %10754 = vmatpush2.bf16.msra.mxu0 %v14937_v22  ;;  %v4848_v22 = vld [vmem:[#allocation7 + $0x1528] sm:$0xff] }
 0x411   :  { %10755 = vmatprep.subr.bf16.mxu0 %v14930_v26  ;;  %v15282_v34 = vcombine.high %v4844_v12, %v4848_v22  ;;  %v15281_v46 = vcombine.low %v4844_v12, %v4848_v22  ;;  %v4812_v13 = vld [vmem:[#allocation7 + $0x1408] sm:$0xff] }
 0x412   :  { %10795 = vmatpush2.bf16.msra.mxu1 %v15065_v23  ;;  %v4816_v48 = vld [vmem:[#allocation7 + $0x1428] sm:$0xff] }
 0x413   :  { %10796 = vmatprep.subr.bf16.mxu1 %v15058_v18  ;;  %v15161_v18 = vcombine.low %v4724_v45, %v4728_v7  ;;  %v4832_v45 = vld [vmem:[#allocation7 + $0x14a8] sm:$0xff] }
 0x414   :  { %10756 = vmatpush2.bf16.msra.mxu0 %v14929_v58  ;;  %v4708_v58 = vld [vmem:[#allocation7 + $0x10c8] sm:$0xff] }
 0x415   :  { %10807 = vmatprep.subr.bf16.mxu0 %v15178_v36  ;;  %v4836_v36 = vld [vmem:[#allocation7 + $0x14c8] sm:$0xff] }
 0x416   :  { %10797 = vmatpush2.bf16.msra.mxu1 %v15057_v0  ;;  %v4712_v0 = vld [vmem:[#allocation7 + $0x10e8] sm:$0xff] }
 0x417   :  { %10848 = vmatprep.subr.bf16.mxu1 %v15306_v25  ;;  %v10513_v37 = vpop.f32.mrf.mxu0  ;;  %10758 = vmatmul.mubr.bf16.vlgmr.msra.gmra.mxu0 %v16998_v43  ;;  %v4840_v25 = vld [vmem:[#allocation7 + $0x14e8] sm:$0xff]  ;;  %v15145_v7 = vcombine.low %v4708_v58, %v4712_v0 }
 0x418   :  { %v10514_v3 = vadd.f32 %v10513_v37, %v17079_v32  ;;  %10808 = vmatpush1.bf16.msra.mxu0 %v15177_v42  ;;  %10839 = vmatprep.mubr.bf16.mxu0 %v17002_v52  ;;  %v15290_v32 = vcombine.high %v4852_v60, %v4856_v63  ;;  %v15146_v42 = vcombine.high %v4708_v58, %v4712_v0  ;;  %v4692_v63 = vld [vmem:[#allocation7 + $0x1048] sm:$0xff] }
 0x419   :  { %v10554_v8 = vpop.f32.mrf.mxu1  ;;  %10799 = vmatmul.mubr.bf16.vlgmr.msra.gmra.mxu1 %v17000_v24  ;;  %v10515_v30 = vpop.f32.mrf.mxu0  ;;  %10809 = vmatprep.subr.bf16.mxu0 %v15170_v40  ;;  %v15274_v33 = vcombine.high %v4836_v36, %v4840_v25  ;;  %v4828_v40 = vld [vmem:[#allocation7 + $0x1488] sm:$0xff]  ;;  %v15273_v37 = vcombine.low %v4836_v36, %v4840_v25 }
 0x41a   :  { %10849 = vmatpush1.bf16.msra.mxu1 %v15305_v50  ;;  %v17089_v11 = vadd.f32 %v10554_v8, %v10514_v3  ;;  %10880 = vmatprep.mubr.bf16.mxu1 %v17005_v6  ;;  %v10516_v17 = vadd.f32 %v10515_v30, %v17083_v44  ;;  %v4704_v50 = vld [vmem:[#allocation7 + $0x10a8] sm:$0xff]  ;;  %v15266_v60 = vcombine.high %v4828_v40, %v4832_v45 }
 0x41b   :  { %v10556_v19 = vpop.f32.mrf.mxu1  ;;  %v10517_v20 = vpop.f32.mrf.mxu0  ;;  %10850 = vmatprep.subr.bf16.mxu1 %v15298_v56  ;;  %v15138_v56 = vcombine.high %v4700_v41, %v4704_v50  ;;  %v4696_v3 = vld [vmem:[#allocation7 + $0x1068] sm:$0xff]  ;;  %v15137_v30 = vcombine.low %v4700_v41, %v4704_v50 }
 0x41c   :  { %v17093_v23 = vadd.f32 %v10556_v19, %v10516_v17  ;;  %10810 = vmatpush1.bf16.msra.mxu0 %v15169_v9  ;;  %v4820_v8 = vld [vmem:[#allocation7 + $0x1448] sm:$0xff]  ;;  %v15129_v20 = vcombine.low %v4692_v63, %v4696_v3 }
 0x41d   :  { %v10558_v26 = vpop.f32.mrf.mxu1  ;;  %v10518_v27 = vpop.f32.mrf.mxu0  ;;  %10811 = vmatprep.subr.bf16.mxu0 %v15162_v10  ;;  %v4824_v9 = vld [vmem:[#allocation7 + $0x1468] sm:$0xff]  ;;  %v15130_v10 = vcombine.high %v4692_v63, %v4696_v3 }
 0x41e   :  { %10851 = vmatpush1.bf16.msra.mxu1 %v15297_v29  ;;  %v15265_v29 = vcombine.low %v4828_v40, %v4832_v45  ;;  %v15258_v17 = vcombine.high %v4820_v8, %v4824_v9  ;;  %v4684_v19 = vld [vmem:[#allocation7 + $0x1008] sm:$0xff]  ;;  %v15257_v12 = vcombine.low %v4820_v8, %v4824_v9  ;;  %v15250_v26 = vcombine.high %v4812_v13, %v4816_v48 }
 0x41f   :  { %v10559_v44 = vpop.f32.mrf.mxu1  ;;  %10852 = vmatprep.subr.bf16.mxu1 %v15290_v32  ;;  %v4688_v32 = vld [vmem:[#allocation7 + $0x1028] sm:$0xff] }
 0x420   :  { %10812 = vmatpush1.bf16.msra.mxu0 %v15161_v18  ;;  %v15122_v22 = vcombine.high %v4684_v19, %v4688_v32  ;;  %v4804_v18 = vld [vmem:[#allocation7 + $0x13c8] sm:$0xff]  ;;  %v15121_v44 = vcombine.low %v4684_v19, %v4688_v32 }
 0x421   :  { %10813 = vmatprep.subr.bf16.mxu0 %v15154_v28  ;;  %v4808_v27 = vld [vmem:[#allocation7 + $0x13e8] sm:$0xff] }
 0x422   :  { %10853 = vmatpush1.bf16.msra.mxu1 %v15289_v54  ;;  %v4932_v54 = vld [vmem:[#allocation7 + $0x17c8] sm:$0xff]  ;;  %v15242_v58 = vcombine.high %v4804_v18, %v4808_v27 }
 0x423   :  { %10854 = vmatprep.subr.bf16.mxu1 %v15282_v34  ;;  %v4936_v28 = vld [vmem:[#allocation7 + $0x17e8] sm:$0xff]  ;;  %v15249_v34 = vcombine.low %v4812_v13, %v4816_v48 }
 0x424   :  { %10814 = vmatpush1.bf16.msra.mxu0 %v15153_v49  ;;  %v15370_v0 = vcombine.high %v4932_v54, %v4936_v28  ;;  %v4796_v36 = vld [vmem:[#allocation7 + $0x1388] sm:$0xff] }
 0x425   :  { %10815 = vmatprep.subr.bf16.mxu0 %v15146_v42  ;;  %v4800_v25 = vld [vmem:[#allocation7 + $0x13a8] sm:$0xff]  ;;  %v15241_v42 = vcombine.low %v4804_v18, %v4808_v27 }
 0x426   :  { %10855 = vmatpush1.bf16.msra.mxu1 %v15281_v46  ;;  %v4924_v49 = vld [vmem:[#allocation7 + $0x1788] sm:$0xff]  ;;  %v15234_v41 = vcombine.high %v4796_v36, %v4800_v25 }
 0x427   :  { %10856 = vmatprep.subr.bf16.mxu1 %v15274_v33  ;;  %v4928_v46 = vld [vmem:[#allocation7 + $0x17a8] sm:$0xff]  ;;  %v15369_v33 = vcombine.low %v4932_v54, %v4936_v28 }
 0x428   :  { %10816 = vmatpush1.bf16.msra.mxu0 %v15145_v7  ;;  %v15362_v50 = vcombine.high %v4924_v49, %v4928_v46  ;;  %v4788_v40 = vld [vmem:[#allocation7 + $0x1348] sm:$0xff] }
 0x429   :  { %10817 = vmatprep.subr.bf16.mxu0 %v15138_v56  ;;  %v4792_v45 = vld [vmem:[#allocation7 + $0x1368] sm:$0xff]  ;;  %v15233_v56 = vcombine.low %v4796_v36, %v4800_v25 }
 0x42a   :  { %10857 = vmatpush1.bf16.msra.mxu1 %v15273_v37  ;;  %v4916_v7 = vld [vmem:[#allocation7 + $0x1748] sm:$0xff]  ;;  %v15226_v63 = vcombine.high %v4788_v40, %v4792_v45 }
 0x42b   :  { %10858 = vmatprep.subr.bf16.mxu1 %v15266_v60  ;;  %v4920_v37 = vld [vmem:[#allocation7 + $0x1768] sm:$0xff]  ;;  %v15361_v60 = vcombine.low %v4924_v49, %v4928_v46 }
 0x42c   :  { %10818 = vmatpush1.bf16.msra.mxu0 %v15137_v30  ;;  %v15354_v3 = vcombine.high %v4916_v7, %v4920_v37  ;;  %v4780_v8 = vld [vmem:[#allocation7 + $0x1308] sm:$0xff] }
 0x42d   :  { %10819 = vmatprep.subr.bf16.mxu0 %v15130_v10  ;;  %v4784_v9 = vld [vmem:[#allocation7 + $0x1328] sm:$0xff]  ;;  %v15225_v10 = vcombine.low %v4788_v40, %v4792_v45 }
 0x42e   :  { %10859 = vmatpush1.bf16.msra.mxu1 %v15265_v29  ;;  %v4908_v30 = vld [vmem:[#allocation7 + $0x1708] sm:$0xff]  ;;  %v15218_v19 = vcombine.high %v4780_v8, %v4784_v9 }
 0x42f   :  { %10860 = vmatprep.subr.bf16.mxu1 %v15258_v17  ;;  %v4912_v29 = vld [vmem:[#allocation7 + $0x1728] sm:$0xff]  ;;  %v15353_v17 = vcombine.low %v4916_v7, %v4920_v37 }
 0x430   :  { %10820 = vmatpush1.bf16.msra.mxu0 %v15129_v20  ;;  %v15346_v32 = vcombine.high %v4908_v30, %v4912_v29  ;;  %v4772_v13 = vld [vmem:[#allocation7 + $0x12c8] sm:$0xff] }
 0x431   :  { %10821 = vmatprep.subr.bf16.mxu0 %v15122_v22  ;;  %v4776_v48 = vld [vmem:[#allocation7 + $0x12e8] sm:$0xff]  ;;  %v15217_v22 = vcombine.low %v4780_v8, %v4784_v9 }
 0x432   :  { %10861 = vmatpush1.bf16.msra.mxu1 %v15257_v12  ;;  %v4900_v20 = vld [vmem:[#allocation7 + $0x16c8] sm:$0xff]  ;;  %v15210_v18 = vcombine.high %v4772_v13, %v4776_v48 }
 0x433   :  { %10862 = vmatprep.subr.bf16.mxu1 %v15250_v26  ;;  %v4904_v12 = vld [vmem:[#allocation7 + $0x16e8] sm:$0xff]  ;;  %v15345_v26 = vcombine.low %v4908_v30, %v4912_v29 }
 0x434   :  { %10822 = vmatpush1.bf16.msra.mxu0 %v15121_v44  ;;  %v15338_v27 = vcombine.high %v4900_v20, %v4904_v12  ;;  %v4764_v54 = vld [vmem:[#allocation7 + $0x1288] sm:$0xff] }
 0x435   :  { %10823 = vmatprep.subr.bf16.mxu0 %v15242_v58  ;;  %v4768_v28 = vld [vmem:[#allocation7 + $0x12a8] sm:$0xff]  ;;  %v15209_v58 = vcombine.low %v4772_v13, %v4776_v48 }
 0x436   :  { %10863 = vmatpush1.bf16.msra.mxu1 %v15249_v34  ;;  %v4892_v44 = vld [vmem:[#allocation7 + $0x1688] sm:$0xff]  ;;  %v15202_v36 = vcombine.high %v4764_v54, %v4768_v28 }
 0x437   :  { %10864 = vmatprep.subr.bf16.mxu1 %v15370_v0  ;;  %v4896_v34 = vld [vmem:[#allocation7 + $0x16a8] sm:$0xff]  ;;  %v15337_v0 = vcombine.low %v4900_v20, %v4904_v12 }
 0x438   :  { %10824 = vmatpush2.bf16.msra.mxu0 %v15241_v42  ;;  %v15330_v25 = vcombine.high %v4892_v44, %v4896_v34  ;;  %v4756_v49 = vld [vmem:[#allocation7 + $0x1248] sm:$0xff] }
 0x439   :  { %10825 = vmatprep.subr.bf16.mxu0 %v15234_v41  ;;  %v4760_v46 = vld [vmem:[#allocation7 + $0x1268] sm:$0xff]  ;;  %v15201_v41 = vcombine.low %v4764_v54, %v4768_v28 }
 0x43a   :  { %10865 = vmatpush2.bf16.msra.mxu1 %v15369_v33  ;;  %v4884_v42 = vld [vmem:[#allocation7 + $0x1648] sm:$0xff]  ;;  %v15194_v40 = vcombine.high %v4756_v49, %v4760_v46 }
 0x43b   :  { %10866 = vmatprep.subr.bf16.mxu1 %v15362_v50  ;;  %v4888_v33 = vld [vmem:[#allocation7 + $0x1668] sm:$0xff]  ;;  %v15329_v50 = vcombine.low %v4892_v44, %v4896_v34 }
 0x43c   :  { %10826 = vmatpush2.bf16.msra.mxu0 %v15233_v56  ;;  %v15322_v45 = vcombine.high %v4884_v42, %v4888_v33  ;;  %v4748_v7 = vld [vmem:[#allocation7 + $0x1208] sm:$0xff] }
 0x43d   :  { %10827 = vmatprep.subr.bf16.mxu0 %v15226_v63  ;;  %v4752_v37 = vld [vmem:[#allocation7 + $0x1228] sm:$0xff]  ;;  %v15193_v63 = vcombine.low %v4756_v49, %v4760_v46 }
 0x43e   :  { %10867 = vmatpush2.bf16.msra.mxu1 %v15361_v60  ;;  %v4876_v56 = vld [vmem:[#allocation7 + $0x1608] sm:$0xff]  ;;  %v15186_v8 = vcombine.high %v4748_v7, %v4752_v37 }
 0x43f   :  { %10868 = vmatprep.subr.bf16.mxu1 %v15354_v3  ;;  %v4880_v60 = vld [vmem:[#allocation7 + $0x1628] sm:$0xff]  ;;  %v15321_v3 = vcombine.low %v4884_v42, %v4888_v33 }
 0x440   :  { %10828 = vmatpush2.bf16.msra.mxu0 %v15225_v10  ;;  %v15314_v9 = vcombine.high %v4876_v56, %v4880_v60  ;;  %v4996_v30 = vld [vmem:[#allocation7 + $0x19c8] sm:$0xff] }
 0x441   :  { %10829 = vmatprep.subr.bf16.mxu0 %v15218_v19  ;;  %v5000_v29 = vld [vmem:[#allocation7 + $0x19e8] sm:$0xff]  ;;  %v15185_v19 = vcombine.low %v4748_v7, %v4752_v37 }
 0x442   :  { %10869 = vmatpush2.bf16.msra.mxu1 %v15353_v17  ;;  %v5124_v10 = vld [vmem:[#allocation7 + $0x1dc8] sm:$0xff]  ;;  %v15434_v13 = vcombine.high %v4996_v30, %v5000_v29 }
 0x443   :  { %10870 = vmatprep.subr.bf16.mxu1 %v15346_v32  ;;  %v5128_v17 = vld [vmem:[#allocation7 + $0x1de8] sm:$0xff]  ;;  %v15313_v32 = vcombine.low %v4876_v56, %v4880_v60 }
 0x444   :  { %10830 = vmatpush2.bf16.msra.mxu0 %v15217_v22  ;;  %v15562_v48 = vcombine.high %v5124_v10, %v5128_v17  ;;  %v4988_v20 = vld [vmem:[#allocation7 + $0x1988] sm:$0xff]  ;;  %v15433_v22 = vcombine.low %v4996_v30, %v5000_v29 }
 0x445   :  { %10831 = vmatprep.subr.bf16.mxu0 %v15210_v18  ;;  %v4992_v12 = vld [vmem:[#allocation7 + $0x19a8] sm:$0xff] }
 0x446   :  { %10871 = vmatpush2.bf16.msra.mxu1 %v15345_v26  ;;  %v5116_v26 = vld [vmem:[#allocation7 + $0x1d88] sm:$0xff]  ;;  %v15426_v54 = vcombine.high %v4988_v20, %v4992_v12  ;;  %v15425_v46 = vcombine.low %v4988_v20, %v4992_v12 }
 0x447   :  { %10872 = vmatprep.subr.bf16.mxu1 %v15338_v27  ;;  %v5120_v18 = vld [vmem:[#allocation7 + $0x1da8] sm:$0xff]  ;;  %v15561_v27 = vcombine.low %v5124_v10, %v5128_v17 }
 0x448   :  { %10832 = vmatpush2.bf16.msra.mxu0 %v15209_v58  ;;  %v4980_v28 = vld [vmem:[#allocation7 + $0x1948] sm:$0xff]  ;;  %v15554_v58 = vcombine.high %v5116_v26, %v5120_v18  ;;  %v15553_v33 = vcombine.low %v5116_v26, %v5120_v18 }
 0x449   :  { %10833 = vmatprep.subr.bf16.mxu0 %v15202_v36  ;;  %v4984_v44 = vld [vmem:[#allocation7 + $0x1968] sm:$0xff] }
 0x44a   :  { %10873 = vmatpush2.bf16.msra.mxu1 %v15337_v0  ;;  %v5108_v0 = vld [vmem:[#allocation7 + $0x1d48] sm:$0xff] }
 0x44b   :  { %10874 = vmatprep.subr.bf16.mxu1 %v15330_v25  ;;  %v5112_v36 = vld [vmem:[#allocation7 + $0x1d68] sm:$0xff] }
 0x44c   :  { %10834 = vmatpush2.bf16.msra.mxu0 %v15201_v41  ;;  %v15418_v41 = vcombine.high %v4980_v28, %v4984_v44  ;;  %v4972_v7 = vld [vmem:[#allocation7 + $0x1908] sm:$0xff]  ;;  %v15545_v29 = vcombine.low %v5108_v0, %v5112_v36 }
 0x44d   :  { %10835 = vmatprep.subr.bf16.mxu0 %v15194_v40  ;;  %v4976_v37 = vld [vmem:[#allocation7 + $0x1928] sm:$0xff] }
 0x44e   :  { %10875 = vmatpush2.bf16.msra.mxu1 %v15329_v50  ;;  %v5100_v60 = vld [vmem:[#allocation7 + $0x1d08] sm:$0xff]  ;;  %v15410_v10 = vcombine.high %v4972_v7, %v4976_v37  ;;  %v15409_v20 = vcombine.low %v4972_v7, %v4976_v37 }
 0x44f   :  { %10876 = vmatprep.subr.bf16.mxu1 %v15322_v45  ;;  %v4956_v18 = vld [vmem:[#allocation7 + $0x1888] sm:$0xff] }
 0x450   :  { %10836 = vmatpush2.bf16.msra.mxu0 %v15193_v63  ;;  %v5104_v63 = vld [vmem:[#allocation7 + $0x1d28] sm:$0xff] }
 0x451   :  { %10837 = vmatprep.subr.bf16.mxu0 %v15186_v8  ;;  %v15538_v17 = vcombine.high %v5100_v60, %v5104_v63  ;;  %v15537_v12 = vcombine.low %v5100_v60, %v5104_v63  ;;  %v5068_v7 = vld [vmem:[#allocation7 + $0x1c08] sm:$0xff] }
 0x452   :  { %10877 = vmatpush2.bf16.msra.mxu1 %v15321_v3  ;;  %v5072_v37 = vld [vmem:[#allocation7 + $0x1c28] sm:$0xff] }
 0x453   :  { %10878 = vmatprep.subr.bf16.mxu1 %v15314_v9  ;;  %v15417_v9 = vcombine.low %v4980_v28, %v4984_v44  ;;  %v5088_v28 = vld [vmem:[#allocation7 + $0x1ca8] sm:$0xff] }
 0x454   :  { %10838 = vmatpush2.bf16.msra.mxu0 %v15185_v19  ;;  %v4964_v19 = vld [vmem:[#allocation7 + $0x18c8] sm:$0xff] }
 0x455   :  { %10889 = vmatprep.subr.bf16.mxu0 %v15434_v13  ;;  %v5092_v13 = vld [vmem:[#allocation7 + $0x1cc8] sm:$0xff] }
 0x456   :  { %10879 = vmatpush2.bf16.msra.mxu1 %v15313_v32  ;;  %v4968_v32 = vld [vmem:[#allocation7 + $0x18e8] sm:$0xff] }
 0x457   :  { %10930 = vmatprep.subr.bf16.mxu1 %v15562_v48  ;;  %v10595_v34 = vpop.f32.mrf.mxu0  ;;  %10840 = vmatmul.mubr.bf16.vlgmr.msra.gmra.mxu0 %v17032_v15  ;;  %v5096_v48 = vld [vmem:[#allocation7 + $0x1ce8] sm:$0xff]  ;;  %v15401_v44 = vcombine.low %v4964_v19, %v4968_v32 }
 0x458   :  { %v10596_v25 = vadd.f32 %v10595_v34, %v17089_v11  ;;  %10890 = vmatpush1.bf16.msra.mxu0 %v15433_v22  ;;  %10921 = vmatprep.mubr.bf16.mxu0 %v17036_v39  ;;  %v15546_v11 = vcombine.high %v5108_v0, %v5112_v36  ;;  %v15402_v22 = vcombine.high %v4964_v19, %v4968_v32  ;;  %v4948_v36 = vld [vmem:[#allocation7 + $0x1848] sm:$0xff] }
 0x459   :  { %v10636_v49 = vpop.f32.mrf.mxu1  ;;  %10881 = vmatmul.mubr.bf16.vlgmr.msra.gmra.mxu1 %v17034_v59  ;;  %v10597_v42 = vpop.f32.mrf.mxu0  ;;  %10891 = vmatprep.subr.bf16.mxu0 %v15426_v54  ;;  %v15530_v26 = vcombine.high %v5092_v13, %v5096_v48  ;;  %v5084_v54 = vld [vmem:[#allocation7 + $0x1c88] sm:$0xff]  ;;  %v15529_v34 = vcombine.low %v5092_v13, %v5096_v48 }
 0x45a   :  { %10931 = vmatpush1.bf16.msra.mxu1 %v15561_v27  ;;  %v17099_v50 = vadd.f32 %v10636_v49, %v10596_v25  ;;  %10962 = vmatprep.mubr.bf16.mxu1 %v17049_v38  ;;  %v10598_v40 = vadd.f32 %v10597_v42, %v17093_v23  ;;  %v4960_v27 = vld [vmem:[#allocation7 + $0x18a8] sm:$0xff]  ;;  %v15522_v0 = vcombine.high %v5084_v54, %v5088_v28 }
 0x45b   :  { %v10638_v45 = vpop.f32.mrf.mxu1  ;;  %v10599_v56 = vpop.f32.mrf.mxu0  ;;  %10932 = vmatprep.subr.bf16.mxu1 %v15554_v58  ;;  %v15394_v58 = vcombine.high %v4956_v18, %v4960_v27  ;;  %v4952_v25 = vld [vmem:[#allocation7 + $0x1868] sm:$0xff]  ;;  %v15393_v42 = vcombine.low %v4956_v18, %v4960_v27 }
 0x45c   :  { %v17103_v3 = vadd.f32 %v10638_v45, %v10598_v40  ;;  %10892 = vmatpush1.bf16.msra.mxu0 %v15425_v46  ;;  %v5076_v49 = vld [vmem:[#allocation7 + $0x1c48] sm:$0xff]  ;;  %v15385_v56 = vcombine.low %v4948_v36, %v4952_v25 }
 0x45d   :  { %v10640_v8 = vpop.f32.mrf.mxu1  ;;  %v10600_v30 = vpop.f32.mrf.mxu0  ;;  %10893 = vmatprep.subr.bf16.mxu0 %v15418_v41  ;;  %v5080_v46 = vld [vmem:[#allocation7 + $0x1c68] sm:$0xff]  ;;  %v15386_v41 = vcombine.high %v4948_v36, %v4952_v25 }
 0x45e   :  { %10933 = vmatpush1.bf16.msra.mxu1 %v15553_v33  ;;  %v15521_v33 = vcombine.low %v5084_v54, %v5088_v28  ;;  %v15514_v40 = vcombine.high %v5076_v49, %v5080_v46  ;;  %v4940_v45 = vld [vmem:[#allocation7 + $0x1808] sm:$0xff]  ;;  %v15513_v60 = vcombine.low %v5076_v49, %v5080_v46  ;;  %v15506_v8 = vcombine.high %v5068_v7, %v5072_v37 }
 0x45f   :  { %v10641_v23 = vpop.f32.mrf.mxu1  ;;  %10934 = vmatprep.subr.bf16.mxu1 %v15546_v11  ;;  %v4944_v11 = vld [vmem:[#allocation7 + $0x1828] sm:$0xff] }
 0x460   :  { %10894 = vmatpush1.bf16.msra.mxu0 %v15417_v9  ;;  %v15378_v63 = vcombine.high %v4940_v45, %v4944_v11  ;;  %v5060_v9 = vld [vmem:[#allocation7 + $0x1bc8] sm:$0xff]  ;;  %v15377_v23 = vcombine.low %v4940_v45, %v4944_v11 }
 0x461   :  { %10895 = vmatprep.subr.bf16.mxu0 %v15410_v10  ;;  %v5064_v30 = vld [vmem:[#allocation7 + $0x1be8] sm:$0xff] }
 0x462   :  { %10935 = vmatpush1.bf16.msra.mxu1 %v15545_v29  ;;  %v5188_v29 = vld [vmem:[#allocation7 + $0x1fc8] sm:$0xff]  ;;  %v15498_v19 = vcombine.high %v5060_v9, %v5064_v30 }
 0x463   :  { %10936 = vmatprep.subr.bf16.mxu1 %v15538_v17  ;;  %v5192_v10 = vld [vmem:[#allocation7 + $0x1fe8] sm:$0xff]  ;;  %v15505_v17 = vcombine.low %v5068_v7, %v5072_v37 }
 0x464   :  { %10896 = vmatpush1.bf16.msra.mxu0 %v15409_v20  ;;  %v15626_v32 = vcombine.high %v5188_v29, %v5192_v10  ;;  %v5052_v13 = vld [vmem:[#allocation7 + $0x1b88] sm:$0xff] }
 0x465   :  { %10897 = vmatprep.subr.bf16.mxu0 %v15402_v22  ;;  %v5056_v48 = vld [vmem:[#allocation7 + $0x1ba8] sm:$0xff]  ;;  %v15497_v22 = vcombine.low %v5060_v9, %v5064_v30 }
 0x466   :  { %10937 = vmatpush1.bf16.msra.mxu1 %v15537_v12  ;;  %v5180_v20 = vld [vmem:[#allocation7 + $0x1f88] sm:$0xff]  ;;  %v15490_v18 = vcombine.high %v5052_v13, %v5056_v48 }
 0x467   :  { %10938 = vmatprep.subr.bf16.mxu1 %v15530_v26  ;;  %v5184_v12 = vld [vmem:[#allocation7 + $0x1fa8] sm:$0xff]  ;;  %v15625_v26 = vcombine.low %v5188_v29, %v5192_v10 }
 0x468   :  { %10898 = vmatpush1.bf16.msra.mxu0 %v15401_v44  ;;  %v15618_v27 = vcombine.high %v5180_v20, %v5184_v12  ;;  %v5044_v54 = vld [vmem:[#allocation7 + $0x1b48] sm:$0xff] }
 0x469   :  { %10899 = vmatprep.subr.bf16.mxu0 %v15394_v58  ;;  %v5048_v28 = vld [vmem:[#allocation7 + $0x1b68] sm:$0xff]  ;;  %v15489_v58 = vcombine.low %v5052_v13, %v5056_v48 }
 0x46a   :  { %10939 = vmatpush1.bf16.msra.mxu1 %v15529_v34  ;;  %v5172_v44 = vld [vmem:[#allocation7 + $0x1f48] sm:$0xff]  ;;  %v15482_v36 = vcombine.high %v5044_v54, %v5048_v28 }
 0x46b   :  { %10940 = vmatprep.subr.bf16.mxu1 %v15522_v0  ;;  %v5176_v34 = vld [vmem:[#allocation7 + $0x1f68] sm:$0xff]  ;;  %v15617_v0 = vcombine.low %v5180_v20, %v5184_v12 }
 0x46c   :  { %10900 = vmatpush1.bf16.msra.mxu0 %v15393_v42  ;;  %v15610_v25 = vcombine.high %v5172_v44, %v5176_v34  ;;  %v5036_v49 = vld [vmem:[#allocation7 + $0x1b08] sm:$0xff] }
 0x46d   :  { %10901 = vmatprep.subr.bf16.mxu0 %v15386_v41  ;;  %v5040_v46 = vld [vmem:[#allocation7 + $0x1b28] sm:$0xff]  ;;  %v15481_v41 = vcombine.low %v5044_v54, %v5048_v28 }
 0x46e   :  { %10941 = vmatpush1.bf16.msra.mxu1 %v15521_v33  ;;  %v5164_v42 = vld [vmem:[#allocation7 + $0x1f08] sm:$0xff]  ;;  %v15474_v45 = vcombine.high %v5036_v49, %v5040_v46 }
 0x46f   :  { %10942 = vmatprep.subr.bf16.mxu1 %v15514_v40  ;;  %v5168_v33 = vld [vmem:[#allocation7 + $0x1f28] sm:$0xff]  ;;  %v15609_v40 = vcombine.low %v5172_v44, %v5176_v34 }
 0x470   :  { %10902 = vmatpush1.bf16.msra.mxu0 %v15385_v56  ;;  %v15602_v11 = vcombine.high %v5164_v42, %v5168_v33  ;;  %v5028_v7 = vld [vmem:[#allocation7 + $0x1ac8] sm:$0xff] }
 0x471   :  { %10903 = vmatprep.subr.bf16.mxu0 %v15378_v63  ;;  %v5032_v37 = vld [vmem:[#allocation7 + $0x1ae8] sm:$0xff]  ;;  %v15473_v63 = vcombine.low %v5036_v49, %v5040_v46 }
 0x472   :  { %10943 = vmatpush1.bf16.msra.mxu1 %v15513_v60  ;;  %v5156_v56 = vld [vmem:[#allocation7 + $0x1ec8] sm:$0xff]  ;;  %v15466_v9 = vcombine.high %v5028_v7, %v5032_v37 }
 0x473   :  { %10944 = vmatprep.subr.bf16.mxu1 %v15506_v8  ;;  %v5160_v60 = vld [vmem:[#allocation7 + $0x1ee8] sm:$0xff]  ;;  %v15601_v8 = vcombine.low %v5164_v42, %v5168_v33  ;;  %v4229_v42 = vld [vmem:[#allocation7 + $0x1d0] sm:$0xff] }
 0x474   :  { %10904 = vmatpush1.bf16.msra.mxu0 %v15377_v23  ;;  %v15594_v30 = vcombine.high %v5156_v56, %v5160_v60  ;;  %v5020_v29 = vld [vmem:[#allocation7 + $0x1a88] sm:$0xff]  ;;  %v4233_v33 = vld [vmem:[#allocation7 + $0x1f0] sm:$0xff] }
 0x475   :  { %10905 = vmatprep.subr.bf16.mxu0 %v15498_v19  ;;  %v5024_v10 = vld [vmem:[#allocation7 + $0x1aa8] sm:$0xff]  ;;  %v15465_v19 = vcombine.low %v5028_v7, %v5032_v37  ;;  %v14668_v7 = vcombine.high %v4229_v42, %v4233_v33 }
 0x476   :  { %10945 = vmatpush1.bf16.msra.mxu1 %v15505_v17  ;;  %v5148_v23 = vld [vmem:[#allocation7 + $0x1e88] sm:$0xff]  ;;  %v15458_v13 = vcombine.high %v5020_v29, %v5024_v10 }
 0x477   :  { %10946 = vmatprep.subr.bf16.mxu1 %v15626_v32  ;;  %v5152_v17 = vld [vmem:[#allocation7 + $0x1ea8] sm:$0xff]  ;;  %v15593_v32 = vcombine.low %v5156_v56, %v5160_v60  ;;  %v4221_v56 = vld [vmem:[#allocation7 + $0x190] sm:$0xff] }
 0x478   :  { %10906 = vmatpush2.bf16.msra.mxu0 %v15497_v22  ;;  %v15586_v48 = vcombine.high %v5148_v23, %v5152_v17  ;;  %v5012_v20 = vld [vmem:[#allocation7 + $0x1a48] sm:$0xff]  ;;  %v4225_v60 = vld [vmem:[#allocation7 + $0x1b0] sm:$0xff] }
 0x479   :  { %10907 = vmatprep.subr.bf16.mxu0 %v15490_v18  ;;  %v5016_v12 = vld [vmem:[#allocation7 + $0x1a68] sm:$0xff]  ;;  %v15457_v18 = vcombine.low %v5020_v29, %v5024_v10  ;;  %v14660_v29 = vcombine.high %v4221_v56, %v4225_v60  ;;  %v4213_v10 = vld [vmem:[#allocation7 + $0x150] sm:$0xff] }
 0x47a   :  { %10947 = vmatpush2.bf16.msra.mxu1 %v15625_v26  ;;  %v5140_v22 = vld [vmem:[#allocation7 + $0x1e48] sm:$0xff]  ;;  %v15450_v54 = vcombine.high %v5012_v20, %v5016_v12 }
 0x47b   :  { %10948 = vmatprep.subr.bf16.mxu1 %v15618_v27  ;;  %v5144_v26 = vld [vmem:[#allocation7 + $0x1e68] sm:$0xff]  ;;  %v15585_v27 = vcombine.low %v5148_v23, %v5152_v17  ;;  %v4217_v23 = vld [vmem:[#allocation7 + $0x170] sm:$0xff] }
 0x47c   :  { %10908 = vmatpush2.bf16.msra.mxu0 %v15489_v58  ;;  %v15578_v28 = vcombine.high %v5140_v22, %v5144_v26  ;;  %v5004_v44 = vld [vmem:[#allocation7 + $0x1a08] sm:$0xff] }
 0x47d   :  { %10909 = vmatprep.subr.bf16.mxu0 %v15482_v36  ;;  %v5008_v34 = vld [vmem:[#allocation7 + $0x1a28] sm:$0xff]  ;;  %v15449_v36 = vcombine.low %v5012_v20, %v5016_v12  ;;  %v14659_v20 = vcombine.low %v4221_v56, %v4225_v60 }
 0x47e   :  { %10949 = vmatpush2.bf16.msra.mxu1 %v15617_v0  ;;  %v5132_v58 = vld [vmem:[#allocation7 + $0x1e08] sm:$0xff]  ;;  %v15442_v49 = vcombine.high %v5004_v44, %v5008_v34 }
 0x47f   :  { %10950 = vmatprep.subr.bf16.mxu1 %v15610_v25  ;;  %v5136_v0 = vld [vmem:[#allocation7 + $0x1e28] sm:$0xff]  ;;  %v15577_v25 = vcombine.low %v5140_v22, %v5144_v26 }
 0x480   :  { %10910 = vmatpush2.bf16.msra.mxu0 %v15481_v41  ;;  %v15570_v46 = vcombine.high %v5132_v58, %v5136_v0  ;;  %v4357_v41 = vld [vmem:[#allocation7 + $0x5d0] sm:$0xff] }
 0x481   :  { %10911 = vmatprep.subr.bf16.mxu0 %v15474_v45  ;;  %v15441_v45 = vcombine.low %v5004_v44, %v5008_v34  ;;  %v4209_v44 = vld [vmem:[#allocation7 + $0x130] sm:$0xff] }
 0x482   :  { %10951 = vmatpush2.bf16.msra.mxu1 %v15609_v40  ;;  %v4361_v40 = vld [vmem:[#allocation7 + $0x5f0] sm:$0xff] }
 0x483   :  { %10952 = vmatprep.subr.bf16.mxu1 %v15602_v11  ;;  %v15569_v11 = vcombine.low %v5132_v58, %v5136_v0  ;;  %v14796_v37 = vcombine.high %v4357_v41, %v4361_v40  ;;  %v4333_v0 = vld [vmem:[#allocation7 + $0x510] sm:$0xff] }
 0x484   :  { %10912 = vmatpush2.bf16.msra.mxu0 %v15473_v63  ;;  %v14667_v63 = vcombine.low %v4229_v42, %v4233_v33 }
 0x485   :  { %10913 = vmatprep.subr.bf16.mxu0 %v15466_v9  ;;  %v4353_v9 = vld [vmem:[#allocation7 + $0x5b0] sm:$0xff] }
 0x486   :  { %10953 = vmatpush2.bf16.msra.mxu1 %v15601_v8  ;;  %v4349_v8 = vld [vmem:[#allocation7 + $0x590] sm:$0xff] }
 0x487   :  { %10954 = vmatprep.subr.bf16.mxu1 %v15594_v30  ;;  %v14795_v30 = vcombine.low %v4357_v41, %v4361_v40  ;;  %v14787_v26 = vcombine.low %v4349_v8, %v4353_v9 }
 0x488   :  { %10914 = vmatpush2.bf16.msra.mxu0 %v15465_v19  ;;  %v14788_v19 = vcombine.high %v4349_v8, %v4353_v9  ;;  %v4189_v9 = vld [vmem:[#allocation7 + $0x90] sm:$0xff] }
 0x489   :  { %10915 = vmatprep.subr.bf16.mxu0 %v15458_v13  ;;  %v4345_v13 = vld [vmem:[#allocation7 + $0x570] sm:$0xff] }
 0x48a   :  { %10955 = vmatpush2.bf16.msra.mxu1 %v15593_v32  ;;  %v4341_v32 = vld [vmem:[#allocation7 + $0x550] sm:$0xff] }
 0x48b   :  { %10956 = vmatprep.subr.bf16.mxu1 %v15586_v48  ;;  %v14779_v42 = vcombine.low %v4341_v32, %v4345_v13 }
 0x48c   :  { %10916 = vmatpush2.bf16.msra.mxu0 %v15457_v18  ;;  %v14652_v18 = vcombine.high %v4213_v10, %v4217_v23 }
 0x48d   :  { %10917 = vmatprep.subr.bf16.mxu0 %v15450_v54  ;;  %v14780_v54 = vcombine.high %v4341_v32, %v4345_v13  ;;  %v4181_v13 = vld [vmem:[#allocation7 + $0x50] sm:$0xff] }
 0x48e   :  { %10957 = vmatpush2.bf16.msra.mxu1 %v15585_v27 }
 0x48f   :  { %10958 = vmatprep.subr.bf16.mxu1 %v15578_v28  ;;  %v4205_v28 = vld [vmem:[#allocation7 + $0x110] sm:$0xff] }
 0x490   :  { %10918 = vmatpush2.bf16.msra.mxu0 %v15449_v36  ;;  %v4337_v36 = vld [vmem:[#allocation7 + $0x530] sm:$0xff]  ;;  %v14644_v33 = vcombine.high %v4205_v28, %v4209_v44  ;;  %v14643_v56 = vcombine.low %v4205_v28, %v4209_v44 }
 0x491   :  { %10919 = vmatprep.subr.bf16.mxu0 %v15442_v49  ;;  %v14651_v49 = vcombine.low %v4213_v10, %v4217_v23  ;;  %v14772_v40 = vcombine.high %v4333_v0, %v4337_v36  ;;  %v14771_v60 = vcombine.low %v4333_v0, %v4337_v36  ;;  %v4321_v10 = vld [vmem:[#allocation7 + $0x4b0] sm:$0xff] }
 0x492   :  { %10959 = vmatpush2.bf16.msra.mxu1 %v15577_v25  ;;  %v4173_v28 = vld [vmem:[#allocation7 + $0x10] sm:$0xff] }
 0x493   :  { %10960 = vmatprep.subr.bf16.mxu1 %v15570_v46  ;;  %v4177_v44 = vld [vmem:[#allocation7 + $0x30] sm:$0xff] }
 0x494   :  { %10920 = vmatpush2.bf16.msra.mxu0 %v15441_v45  ;;  %v4197_v45 = vld [vmem:[#allocation7 + $0xd0] sm:$0xff] }
 0x495   :  { %10971 = vmatprep.subr.bf16.mxu0 %v14668_v7  ;;  %v4325_v7 = vld [vmem:[#allocation7 + $0x4d0] sm:$0xff] }
 0x496   :  { %10961 = vmatpush2.bf16.msra.mxu1 %v15569_v11  ;;  %v4201_v11 = vld [vmem:[#allocation7 + $0xf0] sm:$0xff] }
 0x497   :  { %11012 = vmatprep.subr.bf16.mxu1 %v14796_v37  ;;  %v10677_v17 = vpop.f32.mrf.mxu0  ;;  %10922 = vmatmul.mubr.bf16.vlgmr.msra.gmra.mxu0 %v17063_v55  ;;  %v4329_v37 = vld [vmem:[#allocation7 + $0x4f0] sm:$0xff]  ;;  %v14635_v23 = vcombine.low %v4197_v45, %v4201_v11 }
 0x498   :  { %10972 = vmatpush1.bf16.msra.mxu0 %v14667_v63  ;;  %11003 = vmatprep.mubr.bf16.mxu0 %v16905_v57  ;;  %v14636_v63 = vcombine.high %v4197_v45, %v4201_v11  ;;  %v14764_v8 = vcombine.high %v4325_v7, %v4329_v37  ;;  %v4305_v0 = vld [vmem:[#allocation7 + $0x430] sm:$0xff]  ;;  %v14611_v45 = vcombine.low %v4173_v28, %v4177_v44 }
 0x499   :  { %v10718_v48 = vpop.f32.mrf.mxu1  ;;  %10963 = vmatmul.mubr.bf16.vlgmr.msra.gmra.mxu1 %v17065_v35  ;;  %v10679_v22 = vpop.f32.mrf.mxu0  ;;  %10973 = vmatprep.subr.bf16.mxu0 %v14660_v29  ;;  %v4317_v29 = vld [vmem:[#allocation7 + $0x490] sm:$0xff] }
 0x49a   :  { %v17107_v12 = vadd.f32 %v10718_v48, %v10677_v17  ;;  %11013 = vmatpush1.bf16.msra.mxu1 %v14795_v30  ;;  %11044 = vmatprep.mubr.bf16.mxu1 %v16908_v4  ;;  %v4193_v30 = vld [vmem:[#allocation7 + $0xb0] sm:$0xff]  ;;  %v14763_v17 = vcombine.low %v4325_v7, %v4329_v37  ;;  %v14756_v32 = vcombine.high %v4317_v29, %v4321_v10 }
 0x49b   :  { %v10720_v27 = vpop.f32.mrf.mxu1  ;;  %v10681_v58 = vpop.f32.mrf.mxu0  ;;  %11014 = vmatprep.subr.bf16.mxu1 %v14788_v19  ;;  %v14628_v19 = vcombine.high %v4189_v9, %v4193_v30  ;;  %v4185_v48 = vld [vmem:[#allocation7 + $0x70] sm:$0xff] }
 0x49c   :  { %v17111_v34 = vadd.f32 %v10720_v27, %v10679_v22  ;;  %10974 = vmatpush1.bf16.msra.mxu0 %v14659_v20  ;;  %v4309_v20 = vld [vmem:[#allocation7 + $0x450] sm:$0xff]  ;;  %v14620_v27 = vcombine.high %v4181_v13, %v4185_v48  ;;  %v14619_v36 = vcombine.low %v4181_v13, %v4185_v48 }
 0x49d   :  { %v10722_v25 = vpop.f32.mrf.mxu1  ;;  %v10682_v46 = vpop.f32.mrf.mxu0  ;;  %10975 = vmatprep.subr.bf16.mxu0 %v14652_v18  ;;  %v4313_v22 = vld [vmem:[#allocation7 + $0x470] sm:$0xff]  ;;  %v14755_v18 = vcombine.low %v4317_v29, %v4321_v10 }
 0x49e   :  { %11015 = vmatpush1.bf16.msra.mxu1 %v14787_v26  ;;  %v14627_v26 = vcombine.low %v4189_v9, %v4193_v30  ;;  %v4301_v58 = vld [vmem:[#allocation7 + $0x410] sm:$0xff]  ;;  %v14747_v25 = vcombine.low %v4309_v20, %v4313_v22 }
 0x49f   :  { %v10723_v41 = vpop.f32.mrf.mxu1  ;;  %11016 = vmatprep.subr.bf16.mxu1 %v14780_v54  ;;  %v14748_v54 = vcombine.high %v4309_v20, %v4313_v22  ;;  %v14740_v46 = vcombine.high %v4301_v58, %v4305_v0  ;;  %v14739_v11 = vcombine.low %v4301_v58, %v4305_v0 }
 0x4a0   :  { %10976 = vmatpush1.bf16.msra.mxu0 %v14651_v49  ;;  %v14612_v49 = vcombine.high %v4173_v28, %v4177_v44  ;;  %v4421_v41 = vld [vmem:[#allocation7 + $0x7d0] sm:$0xff] }
 0x4a1   :  { %10977 = vmatprep.subr.bf16.mxu0 %v14644_v33  ;;  %v4297_v33 = vld [vmem:[#allocation7 + $0x3f0] sm:$0xff] }
 0x4a2   :  { %11017 = vmatpush1.bf16.msra.mxu1 %v14779_v42  ;;  %v4293_v42 = vld [vmem:[#allocation7 + $0x3d0] sm:$0xff] }
 0x4a3   :  { %11018 = vmatprep.subr.bf16.mxu1 %v14772_v40  ;;  %v4425_v40 = vld [vmem:[#allocation7 + $0x7f0] sm:$0xff]  ;;  %v14732_v7 = vcombine.high %v4293_v42, %v4297_v33  ;;  %v14731_v9 = vcombine.low %v4293_v42, %v4297_v33 }
 0x4a4   :  { %10978 = vmatpush1.bf16.msra.mxu0 %v14643_v56  ;;  %v14860_v37 = vcombine.high %v4421_v41, %v4425_v40  ;;  %v4285_v56 = vld [vmem:[#allocation7 + $0x390] sm:$0xff]  ;;  %v14859_v30 = vcombine.low %v4421_v41, %v4425_v40 }
 0x4a5   :  { %10979 = vmatprep.subr.bf16.mxu0 %v14636_v63  ;;  %v4413_v63 = vld [vmem:[#allocation7 + $0x790] sm:$0xff] }
 0x4a6   :  { %11019 = vmatpush1.bf16.msra.mxu1 %v14771_v60  ;;  %v4289_v60 = vld [vmem:[#allocation7 + $0x3b0] sm:$0xff] }
 0x4a7   :  { %11020 = vmatprep.subr.bf16.mxu1 %v14764_v8  ;;  %v4417_v8 = vld [vmem:[#allocation7 + $0x7b0] sm:$0xff]  ;;  %v14724_v29 = vcombine.high %v4285_v56, %v4289_v60  ;;  %v14723_v13 = vcombine.low %v4285_v56, %v4289_v60 }
 0x4a8   :  { %10980 = vmatpush1.bf16.msra.mxu0 %v14635_v23  ;;  %v14852_v10 = vcombine.high %v4413_v63, %v4417_v8  ;;  %v4277_v23 = vld [vmem:[#allocation7 + $0x350] sm:$0xff]  ;;  %v14851_v48 = vcombine.low %v4413_v63, %v4417_v8 }
 0x4a9   :  { %10981 = vmatprep.subr.bf16.mxu0 %v14628_v19  ;;  %v4405_v19 = vld [vmem:[#allocation7 + $0x750] sm:$0xff] }
 0x4aa   :  { %11021 = vmatpush1.bf16.msra.mxu1 %v14763_v17  ;;  %v4281_v17 = vld [vmem:[#allocation7 + $0x370] sm:$0xff] }
 0x4ab   :  { %11022 = vmatprep.subr.bf16.mxu1 %v14756_v32  ;;  %v4409_v32 = vld [vmem:[#allocation7 + $0x770] sm:$0xff]  ;;  %v14716_v20 = vcombine.high %v4277_v23, %v4281_v17  ;;  %v14715_v28 = vcombine.low %v4277_v23, %v4281_v17 }
 0x4ac   :  { %10982 = vmatpush1.bf16.msra.mxu0 %v14627_v26  ;;  %v14844_v22 = vcombine.high %v4405_v19, %v4409_v32  ;;  %v4269_v26 = vld [vmem:[#allocation7 + $0x310] sm:$0xff]  ;;  %v14843_v44 = vcombine.low %v4405_v19, %v4409_v32 }
 0x4ad   :  { %10983 = vmatprep.subr.bf16.mxu0 %v14620_v27  ;;  %v4397_v27 = vld [vmem:[#allocation7 + $0x710] sm:$0xff] }
 0x4ae   :  { %11023 = vmatpush1.bf16.msra.mxu1 %v14755_v18  ;;  %v4273_v18 = vld [vmem:[#allocation7 + $0x330] sm:$0xff] }
 0x4af   :  { %11024 = vmatprep.subr.bf16.mxu1 %v14748_v54  ;;  %v4401_v54 = vld [vmem:[#allocation7 + $0x730] sm:$0xff]  ;;  %v14708_v58 = vcombine.high %v4269_v26, %v4273_v18  ;;  %v14707_v42 = vcombine.low %v4269_v26, %v4273_v18 }
 0x4b0   :  { %10984 = vmatpush1.bf16.msra.mxu0 %v14619_v36  ;;  %v14836_v0 = vcombine.high %v4397_v27, %v4401_v54  ;;  %v4261_v36 = vld [vmem:[#allocation7 + $0x2d0] sm:$0xff]  ;;  %v14835_v33 = vcombine.low %v4397_v27, %v4401_v54 }
 0x4b1   :  { %10985 = vmatprep.subr.bf16.mxu0 %v14612_v49  ;;  %v4389_v49 = vld [vmem:[#allocation7 + $0x6d0] sm:$0xff] }
 0x4b2   :  { %11025 = vmatpush1.bf16.msra.mxu1 %v14747_v25  ;;  %v4265_v25 = vld [vmem:[#allocation7 + $0x2f0] sm:$0xff] }
 0x4b3   :  { %11026 = vmatprep.subr.bf16.mxu1 %v14740_v46  ;;  %v4393_v46 = vld [vmem:[#allocation7 + $0x6f0] sm:$0xff]  ;;  %v14700_v41 = vcombine.high %v4261_v36, %v4265_v25  ;;  %v14699_v56 = vcombine.low %v4261_v36, %v4265_v25 }
 0x4b4   :  { %10986 = vmatpush1.bf16.msra.mxu0 %v14611_v45  ;;  %v14828_v40 = vcombine.high %v4389_v49, %v4393_v46  ;;  %v4253_v45 = vld [vmem:[#allocation7 + $0x290] sm:$0xff]  ;;  %v14827_v60 = vcombine.low %v4389_v49, %v4393_v46 }
 0x4b5   :  { %10987 = vmatprep.subr.bf16.mxu0 %v14732_v7  ;;  %v4381_v7 = vld [vmem:[#allocation7 + $0x690] sm:$0xff] }
 0x4b6   :  { %11027 = vmatpush1.bf16.msra.mxu1 %v14739_v11  ;;  %v4257_v11 = vld [vmem:[#allocation7 + $0x2b0] sm:$0xff] }
 0x4b7   :  { %11028 = vmatprep.subr.bf16.mxu1 %v14860_v37  ;;  %v4385_v37 = vld [vmem:[#allocation7 + $0x6b0] sm:$0xff]  ;;  %v14692_v63 = vcombine.high %v4253_v45, %v4257_v11  ;;  %v14691_v23 = vcombine.low %v4253_v45, %v4257_v11 }
 0x4b8   :  { %10988 = vmatpush2.bf16.msra.mxu0 %v14731_v9  ;;  %v14820_v8 = vcombine.high %v4381_v7, %v4385_v37  ;;  %v4245_v9 = vld [vmem:[#allocation7 + $0x250] sm:$0xff]  ;;  %v14819_v17 = vcombine.low %v4381_v7, %v4385_v37 }
 0x4b9   :  { %10989 = vmatprep.subr.bf16.mxu0 %v14724_v29  ;;  %v4373_v29 = vld [vmem:[#allocation7 + $0x650] sm:$0xff] }
 0x4ba   :  { %11029 = vmatpush2.bf16.msra.mxu1 %v14859_v30  ;;  %v4249_v30 = vld [vmem:[#allocation7 + $0x270] sm:$0xff] }
 0x4bb   :  { %11030 = vmatprep.subr.bf16.mxu1 %v14852_v10  ;;  %v4377_v10 = vld [vmem:[#allocation7 + $0x670] sm:$0xff]  ;;  %v14684_v19 = vcombine.high %v4245_v9, %v4249_v30  ;;  %v14683_v26 = vcombine.low %v4245_v9, %v4249_v30 }
 0x4bc   :  { %10990 = vmatpush2.bf16.msra.mxu0 %v14723_v13  ;;  %v14812_v32 = vcombine.high %v4373_v29, %v4377_v10  ;;  %v4237_v13 = vld [vmem:[#allocation7 + $0x210] sm:$0xff]  ;;  %v14811_v18 = vcombine.low %v4373_v29, %v4377_v10 }
 0x4bd   :  { %10991 = vmatprep.subr.bf16.mxu0 %v14716_v20  ;;  %v4365_v20 = vld [vmem:[#allocation7 + $0x610] sm:$0xff] }
 0x4be   :  { %11031 = vmatpush2.bf16.msra.mxu1 %v14851_v48  ;;  %v4241_v48 = vld [vmem:[#allocation7 + $0x230] sm:$0xff] }
 0x4bf   :  { %11032 = vmatprep.subr.bf16.mxu1 %v14844_v22  ;;  %v4369_v22 = vld [vmem:[#allocation7 + $0x630] sm:$0xff]  ;;  %v14676_v27 = vcombine.high %v4237_v13, %v4241_v48  ;;  %v14675_v36 = vcombine.low %v4237_v13, %v4241_v48 }
 0x4c0   :  { %10992 = vmatpush2.bf16.msra.mxu0 %v14715_v28  ;;  %v14804_v54 = vcombine.high %v4365_v20, %v4369_v22  ;;  %v4485_v28 = vld [vmem:[#allocation7 + $0x9d0] sm:$0xff]  ;;  %v14803_v25 = vcombine.low %v4365_v20, %v4369_v22 }
 0x4c1   :  { %10993 = vmatprep.subr.bf16.mxu0 %v14708_v58  ;;  %v4613_v58 = vld [vmem:[#allocation7 + $0xdd0] sm:$0xff] }
 0x4c2   :  { %11033 = vmatpush2.bf16.msra.mxu1 %v14843_v44  ;;  %v4489_v44 = vld [vmem:[#allocation7 + $0x9f0] sm:$0xff] }
 0x4c3   :  { %11034 = vmatprep.subr.bf16.mxu1 %v14836_v0  ;;  %v4617_v0 = vld [vmem:[#allocation7 + $0xdf0] sm:$0xff]  ;;  %v14924_v49 = vcombine.high %v4485_v28, %v4489_v44 }
 0x4c4   :  { %10994 = vmatpush2.bf16.msra.mxu0 %v14707_v42  ;;  %v15052_v46 = vcombine.high %v4613_v58, %v4617_v0  ;;  %v4477_v42 = vld [vmem:[#allocation7 + $0x990] sm:$0xff]  ;;  %v15051_v11 = vcombine.low %v4613_v58, %v4617_v0 }
 0x4c5   :  { %10995 = vmatprep.subr.bf16.mxu0 %v14700_v41  ;;  %v14923_v41 = vcombine.low %v4485_v28, %v4489_v44  ;;  %v4609_v45 = vld [vmem:[#allocation7 + $0xdb0] sm:$0xff] }
 0x4c6   :  { %11035 = vmatpush2.bf16.msra.mxu1 %v14835_v33  ;;  %v4481_v33 = vld [vmem:[#allocation7 + $0x9b0] sm:$0xff] }
 0x4c7   :  { %11036 = vmatprep.subr.bf16.mxu1 %v14828_v40  ;;  %v4605_v40 = vld [vmem:[#allocation7 + $0xd90] sm:$0xff]  ;;  %v14916_v7 = vcombine.high %v4477_v42, %v4481_v33  ;;  %v14915_v10 = vcombine.low %v4477_v42, %v4481_v33 }
 0x4c8   :  { %10996 = vmatpush2.bf16.msra.mxu0 %v14699_v56  ;;  %v4469_v37 = vld [vmem:[#allocation7 + $0x950] sm:$0xff] }
 0x4c9   :  { %10997 = vmatprep.subr.bf16.mxu0 %v14692_v63  ;;  %v4473_v56 = vld [vmem:[#allocation7 + $0x970] sm:$0xff]  ;;  %v15044_v63 = vcombine.high %v4605_v40, %v4609_v45 }
 0x4ca   :  { %11037 = vmatpush2.bf16.msra.mxu1 %v14827_v60  ;;  %v4601_v9 = vld [vmem:[#allocation7 + $0xd70] sm:$0xff]  ;;  %v14907_v44 = vcombine.low %v4469_v37, %v4473_v56 }
 0x4cb   :  { %11038 = vmatprep.subr.bf16.mxu1 %v14820_v8  ;;  %v4597_v8 = vld [vmem:[#allocation7 + $0xd50] sm:$0xff] }
 0x4cc   :  { %10998 = vmatpush2.bf16.msra.mxu0 %v14691_v23  ;;  %v4461_v20 = vld [vmem:[#allocation7 + $0x910] sm:$0xff]  ;;  %v15035_v0 = vcombine.low %v4597_v8, %v4601_v9 }
 0x4cd   :  { %10999 = vmatprep.subr.bf16.mxu0 %v14684_v19  ;;  %v14908_v19 = vcombine.high %v4469_v37, %v4473_v56  ;;  %v4465_v22 = vld [vmem:[#allocation7 + $0x930] sm:$0xff] }
 0x4ce   :  { %11039 = vmatpush2.bf16.msra.mxu1 %v14819_v17  ;;  %v15043_v17 = vcombine.low %v4605_v40, %v4609_v45  ;;  %v4581_v42 = vld [vmem:[#allocation7 + $0xcd0] sm:$0xff] }
 0x4cf   :  { %11040 = vmatprep.subr.bf16.mxu1 %v14812_v32  ;;  %v4585_v33 = vld [vmem:[#allocation7 + $0xcf0] sm:$0xff] }
 0x4d0   :  { %11000 = vmatpush2.bf16.msra.mxu0 %v14683_v26  ;;  %v4449_v37 = vld [vmem:[#allocation7 + $0x8b0] sm:$0xff] }
 0x4d1   :  { %11001 = vmatprep.subr.bf16.mxu0 %v14676_v27  ;;  %v4593_v27 = vld [vmem:[#allocation7 + $0xd30] sm:$0xff] }
 0x4d2   :  { %11041 = vmatpush2.bf16.msra.mxu1 %v14811_v18  ;;  %v4589_v18 = vld [vmem:[#allocation7 + $0xd10] sm:$0xff] }
 0x4d3   :  { %11042 = vmatprep.subr.bf16.mxu1 %v14804_v54  ;;  %v15027_v40 = vcombine.low %v4589_v18, %v4593_v27  ;;  %v4573_v56 = vld [vmem:[#allocation7 + $0xc90] sm:$0xff] }
 0x4d4   :  { %11002 = vmatpush2.bf16.msra.mxu0 %v14675_v36  ;;  %v14900_v36 = vcombine.high %v4461_v20, %v4465_v22 }
 0x4d5   :  { %11053 = vmatprep.subr.bf16.mxu0 %v14924_v49  ;;  %v4453_v49 = vld [vmem:[#allocation7 + $0x8d0] sm:$0xff] }
 0x4d6   :  { %11043 = vmatpush2.bf16.msra.mxu1 %v14803_v25  ;;  %v15028_v25 = vcombine.high %v4589_v18, %v4593_v27  ;;  %v4561_v18 = vld [vmem:[#allocation7 + $0xc30] sm:$0xff] }
 0x4d7   :  { %11094 = vmatprep.subr.bf16.mxu1 %v15052_v46  ;;  %v10759_v60 = vpop.f32.mrf.mxu0  ;;  %11004 = vmatmul.mubr.bf16.vlgmr.msra.gmra.mxu0 %v16949_v16  ;;  %v4457_v46 = vld [vmem:[#allocation7 + $0x8f0] sm:$0xff] }
 0x4d8   :  { %v10760_v30 = vadd.f32 %v10759_v60, %v17107_v12  ;;  %11054 = vmatpush1.bf16.msra.mxu0 %v14923_v41  ;;  %11085 = vmatprep.mubr.bf16.mxu0 %v16953_v21  ;;  %v15036_v12 = vcombine.high %v4597_v8, %v4601_v9  ;;  %v14899_v41 = vcombine.low %v4461_v20, %v4465_v22  ;;  %v4577_v60 = vld [vmem:[#allocation7 + $0xcb0] sm:$0xff] }
 0x4d9   :  { %v10800_v29 = vpop.f32.mrf.mxu1  ;;  %11045 = vmatmul.mubr.bf16.vlgmr.msra.gmra.mxu1 %v16951_v14  ;;  %v10761_v23 = vpop.f32.mrf.mxu0  ;;  %11055 = vmatprep.subr.bf16.mxu0 %v14916_v7  ;;  %v14892_v45 = vcombine.high %v4453_v49, %v4457_v46  ;;  %v4445_v7 = vld [vmem:[#allocation7 + $0x890] sm:$0xff]  ;;  %v15019_v8 = vcombine.low %v4581_v42, %v4585_v33 }
 0x4da   :  { %11095 = vmatpush1.bf16.msra.mxu1 %v15051_v11  ;;  %v17117_v32 = vadd.f32 %v10800_v29, %v10760_v30  ;;  %11126 = vmatprep.mubr.bf16.mxu1 %v16956_v53  ;;  %v10762_v13 = vadd.f32 %v10761_v23, %v17111_v34  ;;  %v15020_v11 = vcombine.high %v4581_v42, %v4585_v33  ;;  %v4437_v29 = vld [vmem:[#allocation7 + $0x850] sm:$0xff] }
 0x4db   :  { %v10802_v48 = vpop.f32.mrf.mxu1  ;;  %v10763_v26 = vpop.f32.mrf.mxu0  ;;  %11096 = vmatprep.subr.bf16.mxu1 %v15044_v63  ;;  %v14891_v63 = vcombine.low %v4453_v49, %v4457_v46  ;;  %v14884_v9 = vcombine.high %v4445_v7, %v4449_v37  ;;  %v15012_v30 = vcombine.high %v4573_v56, %v4577_v60  ;;  %v4565_v23 = vld [vmem:[#allocation7 + $0xc50] sm:$0xff] }
 0x4dc   :  { %v17121_v54 = vadd.f32 %v10802_v48, %v10762_v13  ;;  %11056 = vmatpush1.bf16.msra.mxu0 %v14915_v10  ;;  %v4441_v10 = vld [vmem:[#allocation7 + $0x870] sm:$0xff]  ;;  %v15011_v13 = vcombine.low %v4573_v56, %v4577_v60 }
 0x4dd   :  { %v10804_v28 = vpop.f32.mrf.mxu1  ;;  %v10764_v58 = vpop.f32.mrf.mxu0  ;;  %11057 = vmatprep.subr.bf16.mxu0 %v14908_v19  ;;  %v14883_v19 = vcombine.low %v4445_v7, %v4449_v37  ;;  %v14876_v48 = vcombine.high %v4437_v29, %v4441_v10  ;;  %v4429_v20 = vld [vmem:[#allocation7 + $0x810] sm:$0xff]  ;;  %v14875_v27 = vcombine.low %v4437_v29, %v4441_v10 }
 0x4de   :  { %11097 = vmatpush1.bf16.msra.mxu1 %v15043_v17  ;;  %v4569_v17 = vld [vmem:[#allocation7 + $0xc70] sm:$0xff] }
 0x4df   :  { %v10805_v34 = vpop.f32.mrf.mxu1  ;;  %11098 = vmatprep.subr.bf16.mxu1 %v15036_v12  ;;  %v15004_v12 = vcombine.high %v4565_v23, %v4569_v17  ;;  %v4433_v22 = vld [vmem:[#allocation7 + $0x830] sm:$0xff]  ;;  %v15003_v28 = vcombine.low %v4565_v23, %v4569_v17 }
 0x4e0   :  { %11058 = vmatpush1.bf16.msra.mxu0 %v14907_v44  ;;  %v4557_v26 = vld [vmem:[#allocation7 + $0xc10] sm:$0xff]  ;;  %v14868_v44 = vcombine.high %v4429_v20, %v4433_v22  ;;  %v14867_v49 = vcombine.low %v4429_v20, %v4433_v22 }
 0x4e1   :  { %11059 = vmatprep.subr.bf16.mxu0 %v14900_v36  ;;  %v14996_v58 = vcombine.high %v4557_v26, %v4561_v18  ;;  %v4553_v36 = vld [vmem:[#allocation7 + $0xbf0] sm:$0xff]  ;;  %v14995_v46 = vcombine.low %v4557_v26, %v4561_v18 }
 0x4e2   :  { %11099 = vmatpush1.bf16.msra.mxu1 %v15035_v0  ;;  %v4549_v0 = vld [vmem:[#allocation7 + $0xbd0] sm:$0xff] }
 0x4e3   :  { %11100 = vmatprep.subr.bf16.mxu1 %v15028_v25  ;;  %v4677_v34 = vld [vmem:[#allocation7 + $0xfd0] sm:$0xff]  ;;  %v14988_v42 = vcombine.high %v4549_v0, %v4553_v36  ;;  %v14987_v7 = vcombine.low %v4549_v0, %v4553_v36 }
 0x4e4   :  { %11060 = vmatpush1.bf16.msra.mxu0 %v14899_v41  ;;  %v4681_v25 = vld [vmem:[#allocation7 + $0xff0] sm:$0xff] }
 0x4e5   :  { %11061 = vmatprep.subr.bf16.mxu0 %v14892_v45  ;;  %v15116_v33 = vcombine.high %v4677_v34, %v4681_v25  ;;  %v4541_v41 = vld [vmem:[#allocation7 + $0xb90] sm:$0xff]  ;;  %v15115_v37 = vcombine.low %v4677_v34, %v4681_v25 }
 0x4e6   :  { %11101 = vmatpush1.bf16.msra.mxu1 %v15027_v40  ;;  %v4545_v40 = vld [vmem:[#allocation7 + $0xbb0] sm:$0xff] }
 0x4e7   :  { %11102 = vmatprep.subr.bf16.mxu1 %v15020_v11  ;;  %v4669_v45 = vld [vmem:[#allocation7 + $0xf90] sm:$0xff]  ;;  %v14980_v56 = vcombine.high %v4541_v41, %v4545_v40  ;;  %v14979_v29 = vcombine.low %v4541_v41, %v4545_v40 }
 0x4e8   :  { %11062 = vmatpush1.bf16.msra.mxu0 %v14891_v63  ;;  %v4673_v11 = vld [vmem:[#allocation7 + $0xfb0] sm:$0xff] }
 0x4e9   :  { %11063 = vmatprep.subr.bf16.mxu0 %v14884_v9  ;;  %v15108_v60 = vcombine.high %v4669_v45, %v4673_v11  ;;  %v4533_v63 = vld [vmem:[#allocation7 + $0xb50] sm:$0xff]  ;;  %v15107_v10 = vcombine.low %v4669_v45, %v4673_v11 }
 0x4ea   :  { %11103 = vmatpush1.bf16.msra.mxu1 %v15019_v8  ;;  %v4537_v8 = vld [vmem:[#allocation7 + $0xb70] sm:$0xff] }
 0x4eb   :  { %11104 = vmatprep.subr.bf16.mxu1 %v15012_v30  ;;  %v4661_v9 = vld [vmem:[#allocation7 + $0xf50] sm:$0xff]  ;;  %v14972_v23 = vcombine.high %v4533_v63, %v4537_v8  ;;  %v14971_v20 = vcombine.low %v4533_v63, %v4537_v8 }
 0x4ec   :  { %11064 = vmatpush1.bf16.msra.mxu0 %v14883_v19  ;;  %v4665_v30 = vld [vmem:[#allocation7 + $0xf70] sm:$0xff] }
 0x4ed   :  { %11065 = vmatprep.subr.bf16.mxu0 %v14876_v48  ;;  %v15100_v17 = vcombine.high %v4661_v9, %v4665_v30  ;;  %v4525_v19 = vld [vmem:[#allocation7 + $0xb10] sm:$0xff]  ;;  %v15099_v22 = vcombine.low %v4661_v9, %v4665_v30 }
 0x4ee   :  { %11105 = vmatpush1.bf16.msra.mxu1 %v15011_v13  ;;  %v4529_v13 = vld [vmem:[#allocation7 + $0xb30] sm:$0xff] }
 0x4ef   :  { %11106 = vmatprep.subr.bf16.mxu1 %v15004_v12  ;;  %v4653_v48 = vld [vmem:[#allocation7 + $0xf10] sm:$0xff]  ;;  %v14964_v26 = vcombine.high %v4525_v19, %v4529_v13  ;;  %v14963_v0 = vcombine.low %v4525_v19, %v4529_v13 }
 0x4f0   :  { %11066 = vmatpush1.bf16.msra.mxu0 %v14875_v27  ;;  %v4657_v12 = vld [vmem:[#allocation7 + $0xf30] sm:$0xff] }
 0x4f1   :  { %11067 = vmatprep.subr.bf16.mxu0 %v14868_v44  ;;  %v15092_v18 = vcombine.high %v4653_v48, %v4657_v12  ;;  %v4517_v27 = vld [vmem:[#allocation7 + $0xad0] sm:$0xff]  ;;  %v15091_v36 = vcombine.low %v4653_v48, %v4657_v12 }
 0x4f2   :  { %11107 = vmatpush1.bf16.msra.mxu1 %v15003_v28  ;;  %v4521_v28 = vld [vmem:[#allocation7 + $0xaf0] sm:$0xff] }
 0x4f3   :  { %11108 = vmatprep.subr.bf16.mxu1 %v14996_v58  ;;  %v4645_v44 = vld [vmem:[#allocation7 + $0xed0] sm:$0xff]  ;;  %v14956_v34 = vcombine.high %v4517_v27, %v4521_v28  ;;  %v14955_v41 = vcombine.low %v4517_v27, %v4521_v28 }
 0x4f4   :  { %11068 = vmatpush1.bf16.msra.mxu0 %v14867_v49  ;;  %v4649_v58 = vld [vmem:[#allocation7 + $0xef0] sm:$0xff] }
 0x4f5   :  { %11069 = vmatprep.subr.bf16.mxu0 %v14988_v42  ;;  %v15084_v25 = vcombine.high %v4645_v44, %v4649_v58  ;;  %v4509_v49 = vld [vmem:[#allocation7 + $0xa90] sm:$0xff]  ;;  %v15083_v40 = vcombine.low %v4645_v44, %v4649_v58 }
 0x4f6   :  { %11109 = vmatpush1.bf16.msra.mxu1 %v14995_v46  ;;  %v4513_v46 = vld [vmem:[#allocation7 + $0xab0] sm:$0xff] }
 0x4f7   :  { %11110 = vmatprep.subr.bf16.mxu1 %v15116_v33  ;;  %v4637_v42 = vld [vmem:[#allocation7 + $0xe90] sm:$0xff]  ;;  %v14948_v45 = vcombine.high %v4509_v49, %v4513_v46  ;;  %v14947_v63 = vcombine.low %v4509_v49, %v4513_v46 }
 0x4f8   :  { %11070 = vmatpush2.bf16.msra.mxu0 %v14987_v7  ;;  %v4641_v33 = vld [vmem:[#allocation7 + $0xeb0] sm:$0xff] }
 0x4f9   :  { %11071 = vmatprep.subr.bf16.mxu0 %v14980_v56  ;;  %v15076_v11 = vcombine.high %v4637_v42, %v4641_v33  ;;  %v4501_v7 = vld [vmem:[#allocation7 + $0xa50] sm:$0xff]  ;;  %v15075_v8 = vcombine.low %v4637_v42, %v4641_v33 }
 0x4fa   :  { %11111 = vmatpush2.bf16.msra.mxu1 %v15115_v37  ;;  %v4505_v37 = vld [vmem:[#allocation7 + $0xa70] sm:$0xff] }
 0x4fb   :  { %11112 = vmatprep.subr.bf16.mxu1 %v15108_v60  ;;  %v4629_v56 = vld [vmem:[#allocation7 + $0xe50] sm:$0xff]  ;;  %v14940_v9 = vcombine.high %v4501_v7, %v4505_v37  ;;  %v14939_v19 = vcombine.low %v4501_v7, %v4505_v37 }
 0x4fc   :  { %11072 = vmatpush2.bf16.msra.mxu0 %v14979_v29  ;;  %v4633_v60 = vld [vmem:[#allocation7 + $0xe70] sm:$0xff] }
 0x4fd   :  { %11073 = vmatprep.subr.bf16.mxu0 %v14972_v23  ;;  %v15068_v30 = vcombine.high %v4629_v56, %v4633_v60  ;;  %v4493_v29 = vld [vmem:[#allocation7 + $0xa10] sm:$0xff]  ;;  %v15067_v13 = vcombine.low %v4629_v56, %v4633_v60 }
 0x4fe   :  { %11113 = vmatpush2.bf16.msra.mxu1 %v15107_v10  ;;  %v4497_v10 = vld [vmem:[#allocation7 + $0xa30] sm:$0xff] }
 0x4ff   :  { %11114 = vmatprep.subr.bf16.mxu1 %v15100_v17  ;;  %v4621_v23 = vld [vmem:[#allocation7 + $0xe10] sm:$0xff]  ;;  %v14932_v48 = vcombine.high %v4493_v29, %v4497_v10  ;;  %v14931_v27 = vcombine.low %v4493_v29, %v4497_v10 }
 0x500   :  { %11074 = vmatpush2.bf16.msra.mxu0 %v14971_v20  ;;  %v4625_v17 = vld [vmem:[#allocation7 + $0xe30] sm:$0xff] }
 0x501   :  { %11075 = vmatprep.subr.bf16.mxu0 %v14964_v26  ;;  %v15060_v12 = vcombine.high %v4621_v23, %v4625_v17  ;;  %v4741_v20 = vld [vmem:[#allocation7 + $0x11d0] sm:$0xff]  ;;  %v15059_v28 = vcombine.low %v4621_v23, %v4625_v17 }
 0x502   :  { %11115 = vmatpush2.bf16.msra.mxu1 %v15099_v22  ;;  %v4745_v22 = vld [vmem:[#allocation7 + $0x11f0] sm:$0xff] }
 0x503   :  { %11116 = vmatprep.subr.bf16.mxu1 %v15092_v18  ;;  %v4869_v26 = vld [vmem:[#allocation7 + $0x15d0] sm:$0xff]  ;;  %v15180_v44 = vcombine.high %v4741_v20, %v4745_v22 }
 0x504   :  { %11076 = vmatpush2.bf16.msra.mxu0 %v14963_v0  ;;  %v4873_v18 = vld [vmem:[#allocation7 + $0x15f0] sm:$0xff] }
 0x505   :  { %11077 = vmatprep.subr.bf16.mxu0 %v14956_v34  ;;  %v15308_v58 = vcombine.high %v4869_v26, %v4873_v18  ;;  %v4733_v0 = vld [vmem:[#allocation7 + $0x1190] sm:$0xff]  ;;  %v15179_v34 = vcombine.low %v4741_v20, %v4745_v22  ;;  %v15307_v46 = vcombine.low %v4869_v26, %v4873_v18 }
 0x506   :  { %11117 = vmatpush2.bf16.msra.mxu1 %v15091_v36  ;;  %v4737_v36 = vld [vmem:[#allocation7 + $0x11b0] sm:$0xff] }
 0x507   :  { %11118 = vmatprep.subr.bf16.mxu1 %v15084_v25  ;;  %v4861_v25 = vld [vmem:[#allocation7 + $0x1590] sm:$0xff]  ;;  %v15172_v42 = vcombine.high %v4733_v0, %v4737_v36  ;;  %v15171_v60 = vcombine.low %v4733_v0, %v4737_v36 }
 0x508   :  { %11078 = vmatpush2.bf16.msra.mxu0 %v14955_v41  ;;  %v4865_v49 = vld [vmem:[#allocation7 + $0x15b0] sm:$0xff] }
 0x509   :  { %11079 = vmatprep.subr.bf16.mxu0 %v14948_v45  ;;  %v4725_v33 = vld [vmem:[#allocation7 + $0x1150] sm:$0xff]  ;;  %v15300_v45 = vcombine.high %v4861_v25, %v4865_v49 }
 0x50a   :  { %11119 = vmatpush2.bf16.msra.mxu1 %v15083_v40  ;;  %v4729_v41 = vld [vmem:[#allocation7 + $0x1170] sm:$0xff] }
 0x50b   :  { %11120 = vmatprep.subr.bf16.mxu1 %v15076_v11  ;;  %v4853_v11 = vld [vmem:[#allocation7 + $0x1550] sm:$0xff]  ;;  %v15163_v22 = vcombine.low %v4725_v33, %v4729_v41 }
 0x50c   :  { %11080 = vmatpush2.bf16.msra.mxu0 %v14947_v63  ;;  %v4857_v7 = vld [vmem:[#allocation7 + $0x1570] sm:$0xff] }
 0x50d   :  { %11081 = vmatprep.subr.bf16.mxu0 %v14940_v9  ;;  %v15164_v9 = vcombine.high %v4725_v33, %v4729_v41  ;;  %v4717_v23 = vld [vmem:[#allocation7 + $0x1110] sm:$0xff]  ;;  %v15291_v18 = vcombine.low %v4853_v11, %v4857_v7 }
 0x50e   :  { %11121 = vmatpush2.bf16.msra.mxu1 %v15075_v8  ;;  %v15299_v8 = vcombine.low %v4861_v25, %v4865_v49  ;;  %v4721_v17 = vld [vmem:[#allocation7 + $0x1130] sm:$0xff] }
 0x50f   :  { %11122 = vmatprep.subr.bf16.mxu1 %v15068_v30  ;;  %v4837_v0 = vld [vmem:[#allocation7 + $0x14d0] sm:$0xff] }
 0x510   :  { %11082 = vmatpush2.bf16.msra.mxu0 %v14939_v19  ;;  %v4841_v36 = vld [vmem:[#allocation7 + $0x14f0] sm:$0xff] }
 0x511   :  { %11083 = vmatprep.subr.bf16.mxu0 %v14932_v48  ;;  %v4849_v48 = vld [vmem:[#allocation7 + $0x1530] sm:$0xff] }
 0x512   :  { %11123 = vmatpush2.bf16.msra.mxu1 %v15067_v13  ;;  %v4845_v13 = vld [vmem:[#allocation7 + $0x1510] sm:$0xff] }
 0x513   :  { %11124 = vmatprep.subr.bf16.mxu1 %v15060_v12  ;;  %v15283_v25 = vcombine.low %v4845_v13, %v4849_v48  ;;  %v4705_v33 = vld [vmem:[#allocation7 + $0x10b0] sm:$0xff] }
 0x514   :  { %11084 = vmatpush2.bf16.msra.mxu0 %v14931_v27  ;;  %v15156_v27 = vcombine.high %v4717_v23, %v4721_v17  ;;  %v4829_v41 = vld [vmem:[#allocation7 + $0x1490] sm:$0xff] }
 0x515   :  { %11135 = vmatprep.subr.bf16.mxu0 %v15180_v44  ;;  %v4709_v44 = vld [vmem:[#allocation7 + $0x10d0] sm:$0xff] }
 0x516   :  { %11125 = vmatpush2.bf16.msra.mxu1 %v15059_v28  ;;  %v15284_v28 = vcombine.high %v4845_v13, %v4849_v48  ;;  %v4817_v13 = vld [vmem:[#allocation7 + $0x1430] sm:$0xff] }
 0x517   :  { %11176 = vmatprep.subr.bf16.mxu1 %v15308_v58  ;;  %v10841_v40 = vpop.f32.mrf.mxu0  ;;  %11086 = vmatmul.mubr.bf16.vlgmr.msra.gmra.mxu0 %v16998_v43  ;;  %v4713_v58 = vld [vmem:[#allocation7 + $0x10f0] sm:$0xff] }
 0x518   :  { %v10842_v37 = vadd.f32 %v10841_v40, %v17117_v32  ;;  %11136 = vmatpush1.bf16.msra.mxu0 %v15179_v34  ;;  %11167 = vmatprep.mubr.bf16.mxu0 %v17002_v52  ;;  %v15292_v32 = vcombine.high %v4853_v11, %v4857_v7  ;;  %v15155_v34 = vcombine.low %v4717_v23, %v4721_v17  ;;  %v4833_v40 = vld [vmem:[#allocation7 + $0x14b0] sm:$0xff] }
 0x519   :  { %v10882_v56 = vpop.f32.mrf.mxu1  ;;  %11127 = vmatmul.mubr.bf16.vlgmr.msra.gmra.mxu1 %v17000_v24  ;;  %v10843_v63 = vpop.f32.mrf.mxu0  ;;  %11137 = vmatprep.subr.bf16.mxu0 %v15172_v42  ;;  %v15148_v49 = vcombine.high %v4709_v44, %v4713_v58  ;;  %v4701_v42 = vld [vmem:[#allocation7 + $0x1090] sm:$0xff]  ;;  %v15275_v11 = vcombine.low %v4837_v0, %v4841_v36 }
 0x51a   :  { %11177 = vmatpush1.bf16.msra.mxu1 %v15307_v46  ;;  %v17127_v30 = vadd.f32 %v10882_v56, %v10842_v37  ;;  %11208 = vmatprep.mubr.bf16.mxu1 %v17005_v6  ;;  %v10844_v29 = vadd.f32 %v10843_v63, %v17121_v54  ;;  %v15276_v46 = vcombine.high %v4837_v0, %v4841_v36  ;;  %v4693_v56 = vld [vmem:[#allocation7 + $0x1050] sm:$0xff] }
 0x51b   :  { %v10884_v10 = vpop.f32.mrf.mxu1  ;;  %v10845_v19 = vpop.f32.mrf.mxu0  ;;  %11178 = vmatprep.subr.bf16.mxu1 %v15300_v45  ;;  %v15147_v45 = vcombine.low %v4709_v44, %v4713_v58  ;;  %v15140_v7 = vcombine.high %v4701_v42, %v4705_v33  ;;  %v15268_v37 = vcombine.high %v4829_v41, %v4833_v40  ;;  %v4821_v63 = vld [vmem:[#allocation7 + $0x1450] sm:$0xff] }
 0x51c   :  { %v17131_v12 = vadd.f32 %v10884_v10, %v10844_v29  ;;  %11138 = vmatpush1.bf16.msra.mxu0 %v15171_v60  ;;  %v4697_v60 = vld [vmem:[#allocation7 + $0x1070] sm:$0xff]  ;;  %v15267_v29 = vcombine.low %v4829_v41, %v4833_v40 }
 0x51d   :  { %v10886_v20 = vpop.f32.mrf.mxu1  ;;  %v10846_v26 = vpop.f32.mrf.mxu0  ;;  %11139 = vmatprep.subr.bf16.mxu0 %v15164_v9  ;;  %v15139_v9 = vcombine.low %v4701_v42, %v4705_v33  ;;  %v15132_v10 = vcombine.high %v4693_v56, %v4697_v60  ;;  %v4685_v23 = vld [vmem:[#allocation7 + $0x1010] sm:$0xff]  ;;  %v15131_v48 = vcombine.low %v4693_v56, %v4697_v60 }
 0x51e   :  { %11179 = vmatpush1.bf16.msra.mxu1 %v15299_v8  ;;  %v4825_v8 = vld [vmem:[#allocation7 + $0x1470] sm:$0xff] }
 0x51f   :  { %v10887_v54 = vpop.f32.mrf.mxu1  ;;  %11180 = vmatprep.subr.bf16.mxu1 %v15292_v32  ;;  %v15260_v32 = vcombine.high %v4821_v63, %v4825_v8  ;;  %v4689_v17 = vld [vmem:[#allocation7 + $0x1030] sm:$0xff]  ;;  %v15259_v20 = vcombine.low %v4821_v63, %v4825_v8 }
 0x520   :  { %11140 = vmatpush1.bf16.msra.mxu0 %v15163_v22  ;;  %v4813_v19 = vld [vmem:[#allocation7 + $0x1410] sm:$0xff]  ;;  %v15124_v22 = vcombine.high %v4685_v23, %v4689_v17  ;;  %v15123_v44 = vcombine.low %v4685_v23, %v4689_v17 }
 0x521   :  { %11141 = vmatprep.subr.bf16.mxu0 %v15156_v27  ;;  %v15252_v26 = vcombine.high %v4813_v19, %v4817_v13  ;;  %v4809_v27 = vld [vmem:[#allocation7 + $0x13f0] sm:$0xff]  ;;  %v15251_v58 = vcombine.low %v4813_v19, %v4817_v13 }
 0x522   :  { %11181 = vmatpush1.bf16.msra.mxu1 %v15291_v18  ;;  %v4805_v18 = vld [vmem:[#allocation7 + $0x13d0] sm:$0xff] }
 0x523   :  { %11182 = vmatprep.subr.bf16.mxu1 %v15284_v28  ;;  %v4933_v54 = vld [vmem:[#allocation7 + $0x17d0] sm:$0xff]  ;;  %v15244_v0 = vcombine.high %v4805_v18, %v4809_v27  ;;  %v15243_v42 = vcombine.low %v4805_v18, %v4809_v27 }
 0x524   :  { %11142 = vmatpush1.bf16.msra.mxu0 %v15155_v34  ;;  %v4937_v28 = vld [vmem:[#allocation7 + $0x17f0] sm:$0xff] }
 0x525   :  { %11143 = vmatprep.subr.bf16.mxu0 %v15148_v49  ;;  %v15372_v36 = vcombine.high %v4933_v54, %v4937_v28  ;;  %v4797_v34 = vld [vmem:[#allocation7 + $0x1390] sm:$0xff]  ;;  %v15371_v33 = vcombine.low %v4933_v54, %v4937_v28 }
 0x526   :  { %11183 = vmatpush1.bf16.msra.mxu1 %v15283_v25  ;;  %v4801_v25 = vld [vmem:[#allocation7 + $0x13b0] sm:$0xff] }
 0x527   :  { %11184 = vmatprep.subr.bf16.mxu1 %v15276_v46  ;;  %v4925_v49 = vld [vmem:[#allocation7 + $0x1790] sm:$0xff]  ;;  %v15236_v41 = vcombine.high %v4797_v34, %v4801_v25  ;;  %v15235_v56 = vcombine.low %v4797_v34, %v4801_v25 }
 0x528   :  { %11144 = vmatpush1.bf16.msra.mxu0 %v15147_v45  ;;  %v4929_v46 = vld [vmem:[#allocation7 + $0x17b0] sm:$0xff] }
 0x529   :  { %11145 = vmatprep.subr.bf16.mxu0 %v15140_v7  ;;  %v15364_v40 = vcombine.high %v4925_v49, %v4929_v46  ;;  %v4789_v45 = vld [vmem:[#allocation7 + $0x1350] sm:$0xff]  ;;  %v15363_v60 = vcombine.low %v4925_v49, %v4929_v46 }
 0x52a   :  { %11185 = vmatpush1.bf16.msra.mxu1 %v15275_v11  ;;  %v4793_v11 = vld [vmem:[#allocation7 + $0x1370] sm:$0xff] }
 0x52b   :  { %11186 = vmatprep.subr.bf16.mxu1 %v15268_v37  ;;  %v4917_v7 = vld [vmem:[#allocation7 + $0x1750] sm:$0xff]  ;;  %v15228_v63 = vcombine.high %v4789_v45, %v4793_v11  ;;  %v15227_v23 = vcombine.low %v4789_v45, %v4793_v11 }
 0x52c   :  { %11146 = vmatpush1.bf16.msra.mxu0 %v15139_v9  ;;  %v4921_v37 = vld [vmem:[#allocation7 + $0x1770] sm:$0xff] }
 0x52d   :  { %11147 = vmatprep.subr.bf16.mxu0 %v15132_v10  ;;  %v15356_v8 = vcombine.high %v4917_v7, %v4921_v37  ;;  %v4781_v9 = vld [vmem:[#allocation7 + $0x1310] sm:$0xff]  ;;  %v15355_v17 = vcombine.low %v4917_v7, %v4921_v37 }
 0x52e   :  { %11187 = vmatpush1.bf16.msra.mxu1 %v15267_v29  ;;  %v4785_v29 = vld [vmem:[#allocation7 + $0x1330] sm:$0xff] }
 0x52f   :  { %11188 = vmatprep.subr.bf16.mxu1 %v15260_v32  ;;  %v4909_v10 = vld [vmem:[#allocation7 + $0x1710] sm:$0xff]  ;;  %v15220_v19 = vcombine.high %v4781_v9, %v4785_v29  ;;  %v15219_v18 = vcombine.low %v4781_v9, %v4785_v29 }
 0x530   :  { %11148 = vmatpush1.bf16.msra.mxu0 %v15131_v48  ;;  %v4913_v32 = vld [vmem:[#allocation7 + $0x1730] sm:$0xff] }
 0x531   :  { %11149 = vmatprep.subr.bf16.mxu0 %v15124_v22  ;;  %v15348_v13 = vcombine.high %v4909_v10, %v4913_v32  ;;  %v4773_v48 = vld [vmem:[#allocation7 + $0x12d0] sm:$0xff]  ;;  %v15347_v27 = vcombine.low %v4909_v10, %v4913_v32 }
 0x532   :  { %11189 = vmatpush1.bf16.msra.mxu1 %v15259_v20  ;;  %v4777_v20 = vld [vmem:[#allocation7 + $0x12f0] sm:$0xff] }
 0x533   :  { %11190 = vmatprep.subr.bf16.mxu1 %v15252_v26  ;;  %v4901_v22 = vld [vmem:[#allocation7 + $0x16d0] sm:$0xff]  ;;  %v15212_v54 = vcombine.high %v4773_v48, %v4777_v20  ;;  %v15211_v34 = vcombine.low %v4773_v48, %v4777_v20 }
 0x534   :  { %11150 = vmatpush1.bf16.msra.mxu0 %v15123_v44  ;;  %v4905_v26 = vld [vmem:[#allocation7 + $0x16f0] sm:$0xff] }
 0x535   :  { %11151 = vmatprep.subr.bf16.mxu0 %v15244_v0  ;;  %v15340_v28 = vcombine.high %v4901_v22, %v4905_v26  ;;  %v4765_v44 = vld [vmem:[#allocation7 + $0x1290] sm:$0xff]  ;;  %v15339_v25 = vcombine.low %v4901_v22, %v4905_v26 }
 0x536   :  { %11191 = vmatpush1.bf16.msra.mxu1 %v15251_v58  ;;  %v4769_v58 = vld [vmem:[#allocation7 + $0x12b0] sm:$0xff] }
 0x537   :  { %11192 = vmatprep.subr.bf16.mxu1 %v15372_v36  ;;  %v4893_v0 = vld [vmem:[#allocation7 + $0x1690] sm:$0xff]  ;;  %v15204_v49 = vcombine.high %v4765_v44, %v4769_v58  ;;  %v15203_v45 = vcombine.low %v4765_v44, %v4769_v58 }
 0x538   :  { %11152 = vmatpush2.bf16.msra.mxu0 %v15243_v42  ;;  %v4897_v36 = vld [vmem:[#allocation7 + $0x16b0] sm:$0xff] }
 0x539   :  { %11153 = vmatprep.subr.bf16.mxu0 %v15236_v41  ;;  %v15332_v46 = vcombine.high %v4893_v0, %v4897_v36  ;;  %v4757_v42 = vld [vmem:[#allocation7 + $0x1250] sm:$0xff]  ;;  %v15331_v11 = vcombine.low %v4893_v0, %v4897_v36 }
 0x53a   :  { %11193 = vmatpush2.bf16.msra.mxu1 %v15371_v33  ;;  %v4761_v33 = vld [vmem:[#allocation7 + $0x1270] sm:$0xff] }
 0x53b   :  { %11194 = vmatprep.subr.bf16.mxu1 %v15364_v40  ;;  %v4885_v41 = vld [vmem:[#allocation7 + $0x1650] sm:$0xff]  ;;  %v15196_v7 = vcombine.high %v4757_v42, %v4761_v33  ;;  %v15195_v9 = vcombine.low %v4757_v42, %v4761_v33 }
 0x53c   :  { %11154 = vmatpush2.bf16.msra.mxu0 %v15235_v56  ;;  %v4889_v40 = vld [vmem:[#allocation7 + $0x1670] sm:$0xff] }
 0x53d   :  { %11155 = vmatprep.subr.bf16.mxu0 %v15228_v63  ;;  %v15324_v37 = vcombine.high %v4885_v41, %v4889_v40  ;;  %v4749_v56 = vld [vmem:[#allocation7 + $0x1210] sm:$0xff]  ;;  %v15323_v29 = vcombine.low %v4885_v41, %v4889_v40 }
 0x53e   :  { %11195 = vmatpush2.bf16.msra.mxu1 %v15363_v60  ;;  %v4753_v60 = vld [vmem:[#allocation7 + $0x1230] sm:$0xff] }
 0x53f   :  { %11196 = vmatprep.subr.bf16.mxu1 %v15356_v8  ;;  %v4877_v63 = vld [vmem:[#allocation7 + $0x1610] sm:$0xff]  ;;  %v15188_v10 = vcombine.high %v4749_v56, %v4753_v60  ;;  %v15187_v48 = vcombine.low %v4749_v56, %v4753_v60 }
 0x540   :  { %11156 = vmatpush2.bf16.msra.mxu0 %v15227_v23  ;;  %v4881_v8 = vld [vmem:[#allocation7 + $0x1630] sm:$0xff] }
 0x541   :  { %11157 = vmatprep.subr.bf16.mxu0 %v15220_v19  ;;  %v15316_v32 = vcombine.high %v4877_v63, %v4881_v8  ;;  %v4997_v23 = vld [vmem:[#allocation7 + $0x19d0] sm:$0xff]  ;;  %v15315_v20 = vcombine.low %v4877_v63, %v4881_v8 }
 0x542   :  { %11197 = vmatpush2.bf16.msra.mxu1 %v15355_v17  ;;  %v5001_v17 = vld [vmem:[#allocation7 + $0x19f0] sm:$0xff] }
 0x543   :  { %11198 = vmatprep.subr.bf16.mxu1 %v15348_v13  ;;  %v5125_v19 = vld [vmem:[#allocation7 + $0x1dd0] sm:$0xff]  ;;  %v15436_v22 = vcombine.high %v4997_v23, %v5001_v17 }
 0x544   :  { %11158 = vmatpush2.bf16.msra.mxu0 %v15219_v18  ;;  %v5129_v13 = vld [vmem:[#allocation7 + $0x1df0] sm:$0xff] }
 0x545   :  { %11159 = vmatprep.subr.bf16.mxu0 %v15212_v54  ;;  %v15564_v26 = vcombine.high %v5125_v19, %v5129_v13  ;;  %v4989_v18 = vld [vmem:[#allocation7 + $0x1990] sm:$0xff]  ;;  %v15435_v54 = vcombine.low %v4997_v23, %v5001_v17  ;;  %v15563_v58 = vcombine.low %v5125_v19, %v5129_v13 }
 0x546   :  { %11199 = vmatpush2.bf16.msra.mxu1 %v15347_v27  ;;  %v4993_v27 = vld [vmem:[#allocation7 + $0x19b0] sm:$0xff] }
 0x547   :  { %11200 = vmatprep.subr.bf16.mxu1 %v15340_v28  ;;  %v5117_v28 = vld [vmem:[#allocation7 + $0x1d90] sm:$0xff]  ;;  %v15428_v0 = vcombine.high %v4989_v18, %v4993_v27  ;;  %v15427_v40 = vcombine.low %v4989_v18, %v4993_v27 }
 0x548   :  { %11160 = vmatpush2.bf16.msra.mxu0 %v15211_v34  ;;  %v5121_v44 = vld [vmem:[#allocation7 + $0x1db0] sm:$0xff] }
 0x549   :  { %11161 = vmatprep.subr.bf16.mxu0 %v15204_v49  ;;  %v4981_v36 = vld [vmem:[#allocation7 + $0x1950] sm:$0xff]  ;;  %v15556_v49 = vcombine.high %v5117_v28, %v5121_v44 }
 0x54a   :  { %11201 = vmatpush2.bf16.msra.mxu1 %v15339_v25  ;;  %v4985_v34 = vld [vmem:[#allocation7 + $0x1970] sm:$0xff] }
 0x54b   :  { %11202 = vmatprep.subr.bf16.mxu1 %v15332_v46  ;;  %v5109_v46 = vld [vmem:[#allocation7 + $0x1d50] sm:$0xff]  ;;  %v15419_v17 = vcombine.low %v4981_v36, %v4985_v34 }
 0x54c   :  { %11162 = vmatpush2.bf16.msra.mxu0 %v15203_v45  ;;  %v5113_v42 = vld [vmem:[#allocation7 + $0x1d70] sm:$0xff] }
 0x54d   :  { %11163 = vmatprep.subr.bf16.mxu0 %v15196_v7  ;;  %v15420_v7 = vcombine.high %v4981_v36, %v4985_v34  ;;  %v4973_v63 = vld [vmem:[#allocation7 + $0x1910] sm:$0xff]  ;;  %v15547_v13 = vcombine.low %v5109_v46, %v5113_v42 }
 0x54e   :  { %11203 = vmatpush2.bf16.msra.mxu1 %v15331_v11  ;;  %v15555_v11 = vcombine.low %v5117_v28, %v5121_v44  ;;  %v4977_v8 = vld [vmem:[#allocation7 + $0x1930] sm:$0xff] }
 0x54f   :  { %11204 = vmatprep.subr.bf16.mxu1 %v15324_v37  ;;  %v5093_v18 = vld [vmem:[#allocation7 + $0x1cd0] sm:$0xff] }
 0x550   :  { %11164 = vmatpush2.bf16.msra.mxu0 %v15195_v9  ;;  %v5097_v27 = vld [vmem:[#allocation7 + $0x1cf0] sm:$0xff] }
 0x551   :  { %11165 = vmatprep.subr.bf16.mxu0 %v15188_v10  ;;  %v5105_v10 = vld [vmem:[#allocation7 + $0x1d30] sm:$0xff] }
 0x552   :  { %11205 = vmatpush2.bf16.msra.mxu1 %v15323_v29  ;;  %v5101_v29 = vld [vmem:[#allocation7 + $0x1d10] sm:$0xff] }
 0x553   :  { %11206 = vmatprep.subr.bf16.mxu1 %v15316_v32  ;;  %v15539_v28 = vcombine.low %v5101_v29, %v5105_v10  ;;  %v4961_v36 = vld [vmem:[#allocation7 + $0x18b0] sm:$0xff] }
 0x554   :  { %11166 = vmatpush2.bf16.msra.mxu0 %v15187_v48  ;;  %v15412_v48 = vcombine.high %v4973_v63, %v4977_v8  ;;  %v5085_v34 = vld [vmem:[#allocation7 + $0x1c90] sm:$0xff] }
 0x555   :  { %11217 = vmatprep.subr.bf16.mxu0 %v15436_v22  ;;  %v4965_v22 = vld [vmem:[#allocation7 + $0x18d0] sm:$0xff] }
 0x556   :  { %11207 = vmatpush2.bf16.msra.mxu1 %v15315_v20  ;;  %v15540_v20 = vcombine.high %v5101_v29, %v5105_v10  ;;  %v5073_v29 = vld [vmem:[#allocation7 + $0x1c30] sm:$0xff] }
 0x557   :  { %11258 = vmatprep.subr.bf16.mxu1 %v15564_v26  ;;  %v10923_v25 = vpop.f32.mrf.mxu0  ;;  %11168 = vmatmul.mubr.bf16.vlgmr.msra.gmra.mxu0 %v17032_v15  ;;  %v4969_v26 = vld [vmem:[#allocation7 + $0x18f0] sm:$0xff] }
 0x558   :  { %v10924_v33 = vadd.f32 %v10923_v25, %v17127_v30  ;;  %11218 = vmatpush1.bf16.msra.mxu0 %v15435_v54  ;;  %11249 = vmatprep.mubr.bf16.mxu0 %v17036_v39  ;;  %v15548_v30 = vcombine.high %v5109_v46, %v5113_v42  ;;  %v15411_v54 = vcombine.low %v4973_v63, %v4977_v8  ;;  %v5089_v25 = vld [vmem:[#allocation7 + $0x1cb0] sm:$0xff] }
 0x559   :  { %v10964_v41 = vpop.f32.mrf.mxu1  ;;  %11209 = vmatmul.mubr.bf16.vlgmr.msra.gmra.mxu1 %v17034_v59  ;;  %v10925_v45 = vpop.f32.mrf.mxu0  ;;  %11219 = vmatprep.subr.bf16.mxu0 %v15428_v0  ;;  %v15404_v44 = vcombine.high %v4965_v22, %v4969_v26  ;;  %v4957_v0 = vld [vmem:[#allocation7 + $0x1890] sm:$0xff]  ;;  %v15531_v46 = vcombine.low %v5093_v18, %v5097_v27 }
 0x55a   :  { %11259 = vmatpush1.bf16.msra.mxu1 %v15563_v58  ;;  %v17137_v37 = vadd.f32 %v10964_v41, %v10924_v33  ;;  %11290 = vmatprep.mubr.bf16.mxu1 %v17049_v38  ;;  %v10926_v56 = vadd.f32 %v10925_v45, %v17131_v12  ;;  %v15532_v58 = vcombine.high %v5093_v18, %v5097_v27  ;;  %v4949_v41 = vld [vmem:[#allocation7 + $0x1850] sm:$0xff] }
 0x55b   :  { %v10966_v60 = vpop.f32.mrf.mxu1  ;;  %v10927_v9 = vpop.f32.mrf.mxu0  ;;  %11260 = vmatprep.subr.bf16.mxu1 %v15556_v49  ;;  %v15403_v49 = vcombine.low %v4965_v22, %v4969_v26  ;;  %v15396_v42 = vcombine.high %v4957_v0, %v4961_v36  ;;  %v15524_v33 = vcombine.high %v5085_v34, %v5089_v25  ;;  %v5077_v45 = vld [vmem:[#allocation7 + $0x1c50] sm:$0xff] }
 0x55c   :  { %v17141_v32 = vadd.f32 %v10966_v60, %v10926_v56  ;;  %11220 = vmatpush1.bf16.msra.mxu0 %v15427_v40  ;;  %v4953_v40 = vld [vmem:[#allocation7 + $0x1870] sm:$0xff]  ;;  %v15523_v56 = vcombine.low %v5085_v34, %v5089_v25 }
 0x55d   :  { %v10968_v23 = vpop.f32.mrf.mxu1  ;;  %v10928_v19 = vpop.f32.mrf.mxu0  ;;  %11221 = vmatprep.subr.bf16.mxu0 %v15420_v7  ;;  %v15395_v7 = vcombine.low %v4957_v0, %v4961_v36  ;;  %v15388_v60 = vcombine.high %v4949_v41, %v4953_v40  ;;  %v4941_v63 = vld [vmem:[#allocation7 + $0x1810] sm:$0xff]  ;;  %v15387_v10 = vcombine.low %v4949_v41, %v4953_v40 }
 0x55e   :  { %11261 = vmatpush1.bf16.msra.mxu1 %v15555_v11  ;;  %v5081_v11 = vld [vmem:[#allocation7 + $0x1c70] sm:$0xff] }
 0x55f   :  { %v10969_v12 = vpop.f32.mrf.mxu1  ;;  %11262 = vmatprep.subr.bf16.mxu1 %v15548_v30  ;;  %v15516_v30 = vcombine.high %v5077_v45, %v5081_v11  ;;  %v4945_v8 = vld [vmem:[#allocation7 + $0x1830] sm:$0xff]  ;;  %v15515_v23 = vcombine.low %v5077_v45, %v5081_v11 }
 0x560   :  { %11222 = vmatpush1.bf16.msra.mxu0 %v15419_v17  ;;  %v5069_v9 = vld [vmem:[#allocation7 + $0x1c10] sm:$0xff]  ;;  %v15380_v17 = vcombine.high %v4941_v63, %v4945_v8  ;;  %v15379_v22 = vcombine.low %v4941_v63, %v4945_v8 }
 0x561   :  { %11223 = vmatprep.subr.bf16.mxu0 %v15412_v48  ;;  %v15508_v19 = vcombine.high %v5069_v9, %v5073_v29  ;;  %v5065_v48 = vld [vmem:[#allocation7 + $0x1bf0] sm:$0xff]  ;;  %v15507_v26 = vcombine.low %v5069_v9, %v5073_v29 }
 0x562   :  { %11263 = vmatpush1.bf16.msra.mxu1 %v15547_v13  ;;  %v5061_v13 = vld [vmem:[#allocation7 + $0x1bd0] sm:$0xff] }
 0x563   :  { %11264 = vmatprep.subr.bf16.mxu1 %v15540_v20  ;;  %v5189_v12 = vld [vmem:[#allocation7 + $0x1fd0] sm:$0xff]  ;;  %v15500_v18 = vcombine.high %v5061_v13, %v5065_v48  ;;  %v15499_v0 = vcombine.low %v5061_v13, %v5065_v48 }
 0x564   :  { %11224 = vmatpush1.bf16.msra.mxu0 %v15411_v54  ;;  %v5193_v20 = vld [vmem:[#allocation7 + $0x1ff0] sm:$0xff] }
 0x565   :  { %11225 = vmatprep.subr.bf16.mxu0 %v15404_v44  ;;  %v15628_v27 = vcombine.high %v5189_v12, %v5193_v20  ;;  %v5053_v54 = vld [vmem:[#allocation7 + $0x1b90] sm:$0xff]  ;;  %v15627_v36 = vcombine.low %v5189_v12, %v5193_v20 }
 0x566   :  { %11265 = vmatpush1.bf16.msra.mxu1 %v15539_v28  ;;  %v5057_v28 = vld [vmem:[#allocation7 + $0x1bb0] sm:$0xff] }
 0x567   :  { %11266 = vmatprep.subr.bf16.mxu1 %v15532_v58  ;;  %v5181_v44 = vld [vmem:[#allocation7 + $0x1f90] sm:$0xff]  ;;  %v15492_v34 = vcombine.high %v5053_v54, %v5057_v28  ;;  %v15491_v41 = vcombine.low %v5053_v54, %v5057_v28 }
 0x568   :  { %11226 = vmatpush1.bf16.msra.mxu0 %v15403_v49  ;;  %v5185_v58 = vld [vmem:[#allocation7 + $0x1fb0] sm:$0xff] }
 0x569   :  { %11227 = vmatprep.subr.bf16.mxu0 %v15396_v42  ;;  %v15620_v25 = vcombine.high %v5181_v44, %v5185_v58  ;;  %v5045_v49 = vld [vmem:[#allocation7 + $0x1b50] sm:$0xff]  ;;  %v15619_v40 = vcombine.low %v5181_v44, %v5185_v58 }
 0x56a   :  { %11267 = vmatpush1.bf16.msra.mxu1 %v15531_v46  ;;  %v5049_v46 = vld [vmem:[#allocation7 + $0x1b70] sm:$0xff] }
 0x56b   :  { %11268 = vmatprep.subr.bf16.mxu1 %v15524_v33  ;;  %v5173_v42 = vld [vmem:[#allocation7 + $0x1f50] sm:$0xff]  ;;  %v15484_v45 = vcombine.high %v5045_v49, %v5049_v46  ;;  %v15483_v63 = vcombine.low %v5045_v49, %v5049_v46 }
 0x56c   :  { %11228 = vmatpush1.bf16.msra.mxu0 %v15395_v7  ;;  %v5177_v33 = vld [vmem:[#allocation7 + $0x1f70] sm:$0xff] }
 0x56d   :  { %11229 = vmatprep.subr.bf16.mxu0 %v15388_v60  ;;  %v15612_v11 = vcombine.high %v5173_v42, %v5177_v33  ;;  %v5037_v7 = vld [vmem:[#allocation7 + $0x1b10] sm:$0xff]  ;;  %v15611_v8 = vcombine.low %v5173_v42, %v5177_v33 }
 0x56e   :  { %11269 = vmatpush1.bf16.msra.mxu1 %v15523_v56  ;;  %v5041_v56 = vld [vmem:[#allocation7 + $0x1b30] sm:$0xff] }
 0x56f   :  { %11270 = vmatprep.subr.bf16.mxu1 %v15516_v30  ;;  %v5165_v60 = vld [vmem:[#allocation7 + $0x1f10] sm:$0xff]  ;;  %v15476_v9 = vcombine.high %v5037_v7, %v5041_v56  ;;  %v15475_v13 = vcombine.low %v5037_v7, %v5041_v56 }
 0x570   :  { %11230 = vmatpush1.bf16.msra.mxu0 %v15387_v10  ;;  %v5169_v30 = vld [vmem:[#allocation7 + $0x1f30] sm:$0xff] }
 0x571   :  { %11231 = vmatprep.subr.bf16.mxu0 %v15380_v17  ;;  %v15604_v29 = vcombine.high %v5165_v60, %v5169_v30  ;;  %v5029_v10 = vld [vmem:[#allocation7 + $0x1ad0] sm:$0xff]  ;;  %v15603_v48 = vcombine.low %v5165_v60, %v5169_v30 }
 0x572   :  { %11271 = vmatpush1.bf16.msra.mxu1 %v15515_v23  ;;  %v5033_v23 = vld [vmem:[#allocation7 + $0x1af0] sm:$0xff] }
 0x573   :  { %11272 = vmatprep.subr.bf16.mxu1 %v15508_v19  ;;  %v5157_v17 = vld [vmem:[#allocation7 + $0x1ed0] sm:$0xff]  ;;  %v15468_v12 = vcombine.high %v5029_v10, %v5033_v23  ;;  %v15467_v54 = vcombine.low %v5029_v10, %v5033_v23 }
 0x574   :  { %11232 = vmatpush1.bf16.msra.mxu0 %v15379_v22  ;;  %v5161_v19 = vld [vmem:[#allocation7 + $0x1ef0] sm:$0xff] }
 0x575   :  { %11233 = vmatprep.subr.bf16.mxu0 %v15500_v18  ;;  %v15596_v20 = vcombine.high %v5157_v17, %v5161_v19  ;;  %v5021_v22 = vld [vmem:[#allocation7 + $0x1a90] sm:$0xff]  ;;  %v15595_v28 = vcombine.low %v5157_v17, %v5161_v19 }
 0x576   :  { %11273 = vmatpush1.bf16.msra.mxu1 %v15507_v26  ;;  %v5025_v26 = vld [vmem:[#allocation7 + $0x1ab0] sm:$0xff] }
 0x577   :  { %11274 = vmatprep.subr.bf16.mxu1 %v15628_v27  ;;  %v5149_v18 = vld [vmem:[#allocation7 + $0x1e90] sm:$0xff]  ;;  %v15460_v44 = vcombine.high %v5021_v22, %v5025_v26  ;;  %v15459_v49 = vcombine.low %v5021_v22, %v5025_v26  ;;  %v4354_v22 = vld [vmem:[#allocation7 + $0x5b8] sm:$0xff] }
 0x578   :  { %11234 = vmatpush2.bf16.msra.mxu0 %v15499_v0  ;;  %v5153_v27 = vld [vmem:[#allocation7 + $0x1eb0] sm:$0xff] }
 0x579   :  { %11235 = vmatprep.subr.bf16.mxu0 %v15492_v34  ;;  %v15588_v58 = vcombine.high %v5149_v18, %v5153_v27  ;;  %v5013_v0 = vld [vmem:[#allocation7 + $0x1a50] sm:$0xff]  ;;  %v15587_v46 = vcombine.low %v5149_v18, %v5153_v27  ;;  %v4214_v27 = vld [vmem:[#allocation7 + $0x158] sm:$0xff] }
 0x57a   :  { %11275 = vmatpush2.bf16.msra.mxu1 %v15627_v36  ;;  %v5017_v36 = vld [vmem:[#allocation7 + $0x1a70] sm:$0xff] }
 0x57b   :  { %11276 = vmatprep.subr.bf16.mxu1 %v15620_v25  ;;  %v5141_v34 = vld [vmem:[#allocation7 + $0x1e50] sm:$0xff]  ;;  %v15452_v42 = vcombine.high %v5013_v0, %v5017_v36  ;;  %v15451_v7 = vcombine.low %v5013_v0, %v5017_v36  ;;  %v4346_v0 = vld [vmem:[#allocation7 + $0x578] sm:$0xff] }
 0x57c   :  { %11236 = vmatpush2.bf16.msra.mxu0 %v15491_v41  ;;  %v5145_v25 = vld [vmem:[#allocation7 + $0x1e70] sm:$0xff] }
 0x57d   :  { %11237 = vmatprep.subr.bf16.mxu0 %v15484_v45  ;;  %v15580_v33 = vcombine.high %v5141_v34, %v5145_v25  ;;  %v5005_v41 = vld [vmem:[#allocation7 + $0x1a10] sm:$0xff]  ;;  %v15579_v56 = vcombine.low %v5141_v34, %v5145_v25 }
 0x57e   :  { %11277 = vmatpush2.bf16.msra.mxu1 %v15619_v40  ;;  %v5009_v40 = vld [vmem:[#allocation7 + $0x1a30] sm:$0xff] }
 0x57f   :  { %11278 = vmatprep.subr.bf16.mxu1 %v15612_v11  ;;  %v5133_v45 = vld [vmem:[#allocation7 + $0x1e10] sm:$0xff]  ;;  %v15444_v60 = vcombine.high %v5005_v41, %v5009_v40  ;;  %v15443_v10 = vcombine.low %v5005_v41, %v5009_v40  ;;  %v4206_v40 = vld [vmem:[#allocation7 + $0x118] sm:$0xff] }
 0x580   :  { %11238 = vmatpush2.bf16.msra.mxu0 %v15483_v63  ;;  %v5137_v11 = vld [vmem:[#allocation7 + $0x1e30] sm:$0xff]  ;;  %v4230_v63 = vld [vmem:[#allocation7 + $0x1d8] sm:$0xff] }
 0x581   :  { %11239 = vmatprep.subr.bf16.mxu0 %v15476_v9  ;;  %v15572_v30 = vcombine.high %v5133_v45, %v5137_v11  ;;  %v4358_v9 = vld [vmem:[#allocation7 + $0x5d8] sm:$0xff]  ;;  %v15571_v23 = vcombine.low %v5133_v45, %v5137_v11 }
 0x582   :  { %11279 = vmatpush2.bf16.msra.mxu1 %v15611_v8  ;;  %v4234_v8 = vld [vmem:[#allocation7 + $0x1f8] sm:$0xff] }
 0x583   :  { %11280 = vmatprep.subr.bf16.mxu1 %v15604_v29  ;;  %v4362_v29 = vld [vmem:[#allocation7 + $0x5f8] sm:$0xff]  ;;  %v14670_v17 = vcombine.high %v4230_v63, %v4234_v8 }
 0x584   :  { %11240 = vmatpush2.bf16.msra.mxu0 %v15475_v13  ;;  %v14798_v19 = vcombine.high %v4358_v9, %v4362_v29  ;;  %v4222_v13 = vld [vmem:[#allocation7 + $0x198] sm:$0xff]  ;;  %v14797_v26 = vcombine.low %v4358_v9, %v4362_v29 }
 0x585   :  { %11241 = vmatprep.subr.bf16.mxu0 %v15468_v12  ;;  %v14669_v12 = vcombine.low %v4230_v63, %v4234_v8  ;;  %v4210_v45 = vld [vmem:[#allocation7 + $0x138] sm:$0xff] }
 0x586   :  { %11281 = vmatpush2.bf16.msra.mxu1 %v15603_v48  ;;  %v4226_v48 = vld [vmem:[#allocation7 + $0x1b8] sm:$0xff]  ;;  %v14646_v9 = vcombine.high %v4206_v40, %v4210_v45 }
 0x587   :  { %11282 = vmatprep.subr.bf16.mxu1 %v15596_v20  ;;  %v4350_v20 = vld [vmem:[#allocation7 + $0x598] sm:$0xff]  ;;  %v14662_v18 = vcombine.high %v4222_v13, %v4226_v48  ;;  %v14661_v34 = vcombine.low %v4222_v13, %v4226_v48  ;;  %v14645_v13 = vcombine.low %v4206_v40, %v4210_v45 }
 0x588   :  { %11242 = vmatpush2.bf16.msra.mxu0 %v15467_v54  ;;  %v4218_v54 = vld [vmem:[#allocation7 + $0x178] sm:$0xff] }
 0x589   :  { %11243 = vmatprep.subr.bf16.mxu0 %v15460_v44  ;;  %v14790_v44 = vcombine.high %v4350_v20, %v4354_v22  ;;  %v4174_v40 = vld [vmem:[#allocation7 + $0x18] sm:$0xff] }
 0x58a   :  { %11283 = vmatpush2.bf16.msra.mxu1 %v15595_v28  ;;  %v4178_v45 = vld [vmem:[#allocation7 + $0x38] sm:$0xff] }
 0x58b   :  { %11284 = vmatprep.subr.bf16.mxu1 %v15588_v58  ;;  %v4342_v58 = vld [vmem:[#allocation7 + $0x558] sm:$0xff] }
 0x58c   :  { %11244 = vmatpush2.bf16.msra.mxu0 %v15459_v49  ;;  %v14782_v41 = vcombine.high %v4342_v58, %v4346_v0  ;;  %v14781_v8 = vcombine.low %v4342_v58, %v4346_v0  ;;  %v4182_v0 = vld [vmem:[#allocation7 + $0x58] sm:$0xff] }
 0x58d   :  { %11245 = vmatprep.subr.bf16.mxu0 %v15452_v42  ;;  %v14654_v42 = vcombine.high %v4214_v27, %v4218_v54 }
 0x58e   :  { %11285 = vmatpush2.bf16.msra.mxu1 %v15587_v46  ;;  %v14789_v46 = vcombine.low %v4350_v20, %v4354_v22  ;;  %v4190_v22 = vld [vmem:[#allocation7 + $0x98] sm:$0xff] }
 0x58f   :  { %11286 = vmatprep.subr.bf16.mxu1 %v15580_v33 }
 0x590   :  { %11246 = vmatpush2.bf16.msra.mxu0 %v15451_v7 }
 0x591   :  { %11247 = vmatprep.subr.bf16.mxu0 %v15444_v60  ;;  %v4338_v60 = vld [vmem:[#allocation7 + $0x538] sm:$0xff] }
 0x592   :  { %11287 = vmatpush2.bf16.msra.mxu1 %v15579_v56  ;;  %v4334_v56 = vld [vmem:[#allocation7 + $0x518] sm:$0xff] }
 0x593   :  { %11288 = vmatprep.subr.bf16.mxu1 %v15572_v30  ;;  %v14774_v29 = vcombine.high %v4334_v56, %v4338_v60  ;;  %v14773_v48 = vcombine.low %v4334_v56, %v4338_v60  ;;  %v4306_v56 = vld [vmem:[#allocation7 + $0x438] sm:$0xff] }
 0x594   :  { %11248 = vmatpush2.bf16.msra.mxu0 %v15443_v10  ;;  %v4198_v10 = vld [vmem:[#allocation7 + $0xd8] sm:$0xff] }
 0x595   :  { %11299 = vmatprep.subr.bf16.mxu0 %v14670_v17  ;;  %v4326_v17 = vld [vmem:[#allocation7 + $0x4d8] sm:$0xff] }
 0x596   :  { %11289 = vmatpush2.bf16.msra.mxu1 %v15571_v23  ;;  %v4202_v23 = vld [vmem:[#allocation7 + $0xf8] sm:$0xff] }
 0x597   :  { %11340 = vmatprep.subr.bf16.mxu1 %v14798_v19  ;;  %v11005_v28 = vpop.f32.mrf.mxu0  ;;  %11250 = vmatmul.mubr.bf16.vlgmr.msra.gmra.mxu0 %v17063_v55  ;;  %v4330_v19 = vld [vmem:[#allocation7 + $0x4f8] sm:$0xff] }
 0x598   :  { %11300 = vmatpush1.bf16.msra.mxu0 %v14669_v12  ;;  %11331 = vmatprep.mubr.bf16.mxu0 %v16905_v57  ;;  %v14653_v57 = vcombine.low %v4214_v27, %v4218_v54  ;;  %v14638_v12 = vcombine.high %v4198_v10, %v4202_v23  ;;  %v14766_v20 = vcombine.high %v4326_v17, %v4330_v19  ;;  %v4322_v27 = vld [vmem:[#allocation7 + $0x4b8] sm:$0xff] }
 0x599   :  { %v11046_v36 = vpop.f32.mrf.mxu1  ;;  %11291 = vmatmul.mubr.bf16.vlgmr.msra.gmra.mxu1 %v17065_v35  ;;  %v11007_v49 = vpop.f32.mrf.mxu0  ;;  %11301 = vmatprep.subr.bf16.mxu0 %v14662_v18  ;;  %v4318_v18 = vld [vmem:[#allocation7 + $0x498] sm:$0xff]  ;;  %v14637_v54 = vcombine.low %v4198_v10, %v4202_v23  ;;  %v14613_v10 = vcombine.low %v4174_v40, %v4178_v45 }
 0x59a   :  { %v17145_v25 = vadd.f32 %v11046_v36, %v11005_v28  ;;  %11341 = vmatpush1.bf16.msra.mxu1 %v14797_v26  ;;  %11372 = vmatprep.mubr.bf16.mxu1 %v16908_v4  ;;  %v4194_v26 = vld [vmem:[#allocation7 + $0xb8] sm:$0xff]  ;;  %v14765_v28 = vcombine.low %v4326_v17, %v4330_v19  ;;  %v14758_v58 = vcombine.high %v4318_v18, %v4322_v27 }
 0x59b   :  { %v11048_v33 = vpop.f32.mrf.mxu1  ;;  %v11009_v7 = vpop.f32.mrf.mxu0  ;;  %11342 = vmatprep.subr.bf16.mxu1 %v14790_v44  ;;  %v14630_v44 = vcombine.high %v4190_v22, %v4194_v26  ;;  %v4186_v36 = vld [vmem:[#allocation7 + $0x78] sm:$0xff] }
 0x59c   :  { %v17149_v11 = vadd.f32 %v11048_v33, %v11007_v49  ;;  %11302 = vmatpush1.bf16.msra.mxu0 %v14661_v34  ;;  %v4310_v34 = vld [vmem:[#allocation7 + $0x458] sm:$0xff]  ;;  %v14622_v33 = vcombine.high %v4182_v0, %v4186_v36  ;;  %v14621_v60 = vcombine.low %v4182_v0, %v4186_v36 }
 0x59d   :  { %v11050_v30 = vpop.f32.mrf.mxu1  ;;  %v11010_v63 = vpop.f32.mrf.mxu0  ;;  %11303 = vmatprep.subr.bf16.mxu0 %v14654_v42  ;;  %v4314_v49 = vld [vmem:[#allocation7 + $0x478] sm:$0xff]  ;;  %v14757_v42 = vcombine.low %v4318_v18, %v4322_v27 }
 0x59e   :  { %11343 = vmatpush1.bf16.msra.mxu1 %v14789_v46  ;;  %v14629_v46 = vcombine.low %v4190_v22, %v4194_v26  ;;  %v4302_v7 = vld [vmem:[#allocation7 + $0x418] sm:$0xff]  ;;  %v14749_v30 = vcombine.low %v4310_v34, %v4314_v49 }
 0x59f   :  { %v11051_v4 = vpop.f32.mrf.mxu1  ;;  %11344 = vmatprep.subr.bf16.mxu1 %v14782_v41  ;;  %v14750_v41 = vcombine.high %v4310_v34, %v4314_v49  ;;  %v14742_v63 = vcombine.high %v4302_v7, %v4306_v56  ;;  %v14741_v23 = vcombine.low %v4302_v7, %v4306_v56 }
 0x5a0   :  { %11304 = vmatpush1.bf16.msra.mxu0 %v14653_v57  ;;  %v14614_v57 = vcombine.high %v4174_v40, %v4178_v45  ;;  %v4422_v4 = vld [vmem:[#allocation7 + $0x7d8] sm:$0xff] }
 0x5a1   :  { %11305 = vmatprep.subr.bf16.mxu0 %v14646_v9  ;;  %v4298_v9 = vld [vmem:[#allocation7 + $0x3f8] sm:$0xff] }
 0x5a2   :  { %11345 = vmatpush1.bf16.msra.mxu1 %v14781_v8  ;;  %v4294_v8 = vld [vmem:[#allocation7 + $0x3d8] sm:$0xff] }
 0x5a3   :  { %11346 = vmatprep.subr.bf16.mxu1 %v14774_v29  ;;  %v4426_v29 = vld [vmem:[#allocation7 + $0x7f8] sm:$0xff]  ;;  %v14734_v17 = vcombine.high %v4294_v8, %v4298_v9  ;;  %v14733_v22 = vcombine.low %v4294_v8, %v4298_v9 }
 0x5a4   :  { %11306 = vmatpush1.bf16.msra.mxu0 %v14645_v13  ;;  %v14862_v19 = vcombine.high %v4422_v4, %v4426_v29  ;;  %v4286_v13 = vld [vmem:[#allocation7 + $0x398] sm:$0xff]  ;;  %v14861_v26 = vcombine.low %v4422_v4, %v4426_v29 }
 0x5a5   :  { %11307 = vmatprep.subr.bf16.mxu0 %v14638_v12  ;;  %v4414_v12 = vld [vmem:[#allocation7 + $0x798] sm:$0xff] }
 0x5a6   :  { %11347 = vmatpush1.bf16.msra.mxu1 %v14773_v48  ;;  %v4290_v48 = vld [vmem:[#allocation7 + $0x3b8] sm:$0xff] }
 0x5a7   :  { %11348 = vmatprep.subr.bf16.mxu1 %v14766_v20  ;;  %v4418_v20 = vld [vmem:[#allocation7 + $0x7b8] sm:$0xff]  ;;  %v14726_v18 = vcombine.high %v4286_v13, %v4290_v48  ;;  %v14725_v0 = vcombine.low %v4286_v13, %v4290_v48 }
 0x5a8   :  { %11308 = vmatpush1.bf16.msra.mxu0 %v14637_v54  ;;  %v14854_v27 = vcombine.high %v4414_v12, %v4418_v20  ;;  %v4278_v54 = vld [vmem:[#allocation7 + $0x358] sm:$0xff]  ;;  %v14853_v36 = vcombine.low %v4414_v12, %v4418_v20 }
 0x5a9   :  { %11309 = vmatprep.subr.bf16.mxu0 %v14630_v44  ;;  %v4406_v44 = vld [vmem:[#allocation7 + $0x758] sm:$0xff] }
 0x5aa   :  { %11349 = vmatpush1.bf16.msra.mxu1 %v14765_v28  ;;  %v4282_v28 = vld [vmem:[#allocation7 + $0x378] sm:$0xff] }
 0x5ab   :  { %11350 = vmatprep.subr.bf16.mxu1 %v14758_v58  ;;  %v4410_v58 = vld [vmem:[#allocation7 + $0x778] sm:$0xff]  ;;  %v14718_v34 = vcombine.high %v4278_v54, %v4282_v28  ;;  %v14717_v40 = vcombine.low %v4278_v54, %v4282_v28 }
 0x5ac   :  { %11310 = vmatpush1.bf16.msra.mxu0 %v14629_v46  ;;  %v14846_v49 = vcombine.high %v4406_v44, %v4410_v58  ;;  %v4270_v46 = vld [vmem:[#allocation7 + $0x318] sm:$0xff]  ;;  %v14845_v45 = vcombine.low %v4406_v44, %v4410_v58 }
 0x5ad   :  { %11311 = vmatprep.subr.bf16.mxu0 %v14622_v33  ;;  %v4398_v33 = vld [vmem:[#allocation7 + $0x718] sm:$0xff] }
 0x5ae   :  { %11351 = vmatpush1.bf16.msra.mxu1 %v14757_v42  ;;  %v4274_v42 = vld [vmem:[#allocation7 + $0x338] sm:$0xff] }
 0x5af   :  { %11352 = vmatprep.subr.bf16.mxu1 %v14750_v41  ;;  %v4402_v41 = vld [vmem:[#allocation7 + $0x738] sm:$0xff]  ;;  %v14710_v7 = vcombine.high %v4270_v46, %v4274_v42  ;;  %v14709_v8 = vcombine.low %v4270_v46, %v4274_v42 }
 0x5b0   :  { %11312 = vmatpush1.bf16.msra.mxu0 %v14621_v60  ;;  %v14838_v56 = vcombine.high %v4398_v33, %v4402_v41  ;;  %v4262_v60 = vld [vmem:[#allocation7 + $0x2d8] sm:$0xff]  ;;  %v14837_v9 = vcombine.low %v4398_v33, %v4402_v41 }
 0x5b1   :  { %11313 = vmatprep.subr.bf16.mxu0 %v14614_v57  ;;  %v4390_v57 = vld [vmem:[#allocation7 + $0x6d8] sm:$0xff] }
 0x5b2   :  { %11353 = vmatpush1.bf16.msra.mxu1 %v14749_v30  ;;  %v4266_v30 = vld [vmem:[#allocation7 + $0x2f8] sm:$0xff] }
 0x5b3   :  { %11354 = vmatprep.subr.bf16.mxu1 %v14742_v63  ;;  %v4394_v63 = vld [vmem:[#allocation7 + $0x6f8] sm:$0xff]  ;;  %v14702_v4 = vcombine.high %v4262_v60, %v4266_v30  ;;  %v14701_v13 = vcombine.low %v4262_v60, %v4266_v30 }
 0x5b4   :  { %11314 = vmatpush1.bf16.msra.mxu0 %v14613_v10  ;;  %v14830_v29 = vcombine.high %v4390_v57, %v4394_v63  ;;  %v4254_v10 = vld [vmem:[#allocation7 + $0x298] sm:$0xff]  ;;  %v14829_v48 = vcombine.low %v4390_v57, %v4394_v63 }
 0x5b5   :  { %11315 = vmatprep.subr.bf16.mxu0 %v14734_v17  ;;  %v4382_v17 = vld [vmem:[#allocation7 + $0x698] sm:$0xff] }
 0x5b6   :  { %11355 = vmatpush1.bf16.msra.mxu1 %v14741_v23  ;;  %v4258_v23 = vld [vmem:[#allocation7 + $0x2b8] sm:$0xff] }
 0x5b7   :  { %11356 = vmatprep.subr.bf16.mxu1 %v14862_v19  ;;  %v4386_v19 = vld [vmem:[#allocation7 + $0x6b8] sm:$0xff]  ;;  %v14694_v12 = vcombine.high %v4254_v10, %v4258_v23  ;;  %v14693_v54 = vcombine.low %v4254_v10, %v4258_v23 }
 0x5b8   :  { %11316 = vmatpush2.bf16.msra.mxu0 %v14733_v22  ;;  %v14822_v20 = vcombine.high %v4382_v17, %v4386_v19  ;;  %v4246_v22 = vld [vmem:[#allocation7 + $0x258] sm:$0xff]  ;;  %v14821_v28 = vcombine.low %v4382_v17, %v4386_v19 }
 0x5b9   :  { %11317 = vmatprep.subr.bf16.mxu0 %v14726_v18  ;;  %v4374_v18 = vld [vmem:[#allocation7 + $0x658] sm:$0xff] }
 0x5ba   :  { %11357 = vmatpush2.bf16.msra.mxu1 %v14861_v26  ;;  %v4250_v26 = vld [vmem:[#allocation7 + $0x278] sm:$0xff] }
 0x5bb   :  { %11358 = vmatprep.subr.bf16.mxu1 %v14854_v27  ;;  %v4378_v27 = vld [vmem:[#allocation7 + $0x678] sm:$0xff]  ;;  %v14686_v44 = vcombine.high %v4246_v22, %v4250_v26  ;;  %v14685_v46 = vcombine.low %v4246_v22, %v4250_v26 }
 0x5bc   :  { %11318 = vmatpush2.bf16.msra.mxu0 %v14725_v0  ;;  %v14814_v58 = vcombine.high %v4374_v18, %v4378_v27  ;;  %v4238_v0 = vld [vmem:[#allocation7 + $0x218] sm:$0xff]  ;;  %v14813_v42 = vcombine.low %v4374_v18, %v4378_v27 }
 0x5bd   :  { %11319 = vmatprep.subr.bf16.mxu0 %v14718_v34  ;;  %v4366_v34 = vld [vmem:[#allocation7 + $0x618] sm:$0xff] }
 0x5be   :  { %11359 = vmatpush2.bf16.msra.mxu1 %v14853_v36  ;;  %v4242_v36 = vld [vmem:[#allocation7 + $0x238] sm:$0xff] }
 0x5bf   :  { %11360 = vmatprep.subr.bf16.mxu1 %v14846_v49  ;;  %v4370_v49 = vld [vmem:[#allocation7 + $0x638] sm:$0xff]  ;;  %v14678_v33 = vcombine.high %v4238_v0, %v4242_v36  ;;  %v14677_v60 = vcombine.low %v4238_v0, %v4242_v36 }
 0x5c0   :  { %11320 = vmatpush2.bf16.msra.mxu0 %v14717_v40  ;;  %v14806_v41 = vcombine.high %v4366_v34, %v4370_v49  ;;  %v4486_v40 = vld [vmem:[#allocation7 + $0x9d8] sm:$0xff]  ;;  %v14805_v30 = vcombine.low %v4366_v34, %v4370_v49 }
 0x5c1   :  { %11321 = vmatprep.subr.bf16.mxu0 %v14710_v7  ;;  %v4614_v7 = vld [vmem:[#allocation7 + $0xdd8] sm:$0xff] }
 0x5c2   :  { %11361 = vmatpush2.bf16.msra.mxu1 %v14845_v45  ;;  %v4490_v45 = vld [vmem:[#allocation7 + $0x9f8] sm:$0xff] }
 0x5c3   :  { %11362 = vmatprep.subr.bf16.mxu1 %v14838_v56  ;;  %v4618_v56 = vld [vmem:[#allocation7 + $0xdf8] sm:$0xff]  ;;  %v14926_v57 = vcombine.high %v4486_v40, %v4490_v45 }
 0x5c4   :  { %11322 = vmatpush2.bf16.msra.mxu0 %v14709_v8  ;;  %v15054_v63 = vcombine.high %v4614_v7, %v4618_v56  ;;  %v4478_v8 = vld [vmem:[#allocation7 + $0x998] sm:$0xff]  ;;  %v15053_v23 = vcombine.low %v4614_v7, %v4618_v56 }
 0x5c5   :  { %11323 = vmatprep.subr.bf16.mxu0 %v14702_v4  ;;  %v14925_v4 = vcombine.low %v4486_v40, %v4490_v45  ;;  %v4610_v10 = vld [vmem:[#allocation7 + $0xdb8] sm:$0xff] }
 0x5c6   :  { %11363 = vmatpush2.bf16.msra.mxu1 %v14837_v9  ;;  %v4482_v9 = vld [vmem:[#allocation7 + $0x9b8] sm:$0xff] }
 0x5c7   :  { %11364 = vmatprep.subr.bf16.mxu1 %v14830_v29  ;;  %v4606_v29 = vld [vmem:[#allocation7 + $0xd98] sm:$0xff]  ;;  %v14918_v17 = vcombine.high %v4478_v8, %v4482_v9  ;;  %v14917_v27 = vcombine.low %v4478_v8, %v4482_v9 }
 0x5c8   :  { %11324 = vmatpush2.bf16.msra.mxu0 %v14701_v13  ;;  %v4470_v19 = vld [vmem:[#allocation7 + $0x958] sm:$0xff] }
 0x5c9   :  { %11325 = vmatprep.subr.bf16.mxu0 %v14694_v12  ;;  %v4474_v13 = vld [vmem:[#allocation7 + $0x978] sm:$0xff]  ;;  %v15046_v12 = vcombine.high %v4606_v29, %v4610_v10 }
 0x5ca   :  { %11365 = vmatpush2.bf16.msra.mxu1 %v14829_v48  ;;  %v4602_v22 = vld [vmem:[#allocation7 + $0xd78] sm:$0xff] }
 0x5cb   :  { %11366 = vmatprep.subr.bf16.mxu1 %v14822_v20  ;;  %v4598_v20 = vld [vmem:[#allocation7 + $0xd58] sm:$0xff] }
 0x5cc   :  { %11326 = vmatpush2.bf16.msra.mxu0 %v14693_v54  ;;  %v4462_v36 = vld [vmem:[#allocation7 + $0x918] sm:$0xff] }
 0x5cd   :  { %11327 = vmatprep.subr.bf16.mxu0 %v14686_v44  ;;  %v14910_v44 = vcombine.high %v4470_v19, %v4474_v13  ;;  %v4466_v34 = vld [vmem:[#allocation7 + $0x938] sm:$0xff] }
 0x5ce   :  { %11367 = vmatpush2.bf16.msra.mxu1 %v14821_v28  ;;  %v15045_v28 = vcombine.low %v4606_v29, %v4610_v10  ;;  %v4590_v49 = vld [vmem:[#allocation7 + $0xd18] sm:$0xff]  ;;  %v14902_v40 = vcombine.high %v4462_v36, %v4466_v34 }
 0x5cf   :  { %11368 = vmatprep.subr.bf16.mxu1 %v14814_v58  ;;  %v4454_v7 = vld [vmem:[#allocation7 + $0x8d8] sm:$0xff] }
 0x5d0   :  { %11328 = vmatpush2.bf16.msra.mxu0 %v14685_v46  ;;  %v4594_v46 = vld [vmem:[#allocation7 + $0xd38] sm:$0xff] }
 0x5d1   :  { %11329 = vmatprep.subr.bf16.mxu0 %v14678_v33  ;;  %v14909_v33 = vcombine.low %v4470_v19, %v4474_v13  ;;  %v15030_v45 = vcombine.high %v4590_v49, %v4594_v46  ;;  %v4458_v56 = vld [vmem:[#allocation7 + $0x8f8] sm:$0xff] }
 0x5d2   :  { %11369 = vmatpush2.bf16.msra.mxu1 %v14813_v42  ;;  %v14894_v8 = vcombine.high %v4454_v7, %v4458_v56  ;;  %v4450_v29 = vld [vmem:[#allocation7 + $0x8b8] sm:$0xff] }
 0x5d3   :  { %11370 = vmatprep.subr.bf16.mxu1 %v14806_v41  ;;  %v4574_v10 = vld [vmem:[#allocation7 + $0xc98] sm:$0xff] }
 0x5d4   :  { %11330 = vmatpush2.bf16.msra.mxu0 %v14677_v60  ;;  %v4582_v60 = vld [vmem:[#allocation7 + $0xcd8] sm:$0xff] }
 0x5d5   :  { %11381 = vmatprep.subr.bf16.mxu0 %v14926_v57  ;;  %v14901_v57 = vcombine.low %v4462_v36, %v4466_v34 }
 0x5d6   :  { %11371 = vmatpush2.bf16.msra.mxu1 %v14805_v30  ;;  %v4586_v30 = vld [vmem:[#allocation7 + $0xcf8] sm:$0xff] }
 0x5d7   :  { %11422 = vmatprep.subr.bf16.mxu1 %v15054_v63  ;;  %v11087_v48 = vpop.f32.mrf.mxu0  ;;  %11332 = vmatmul.mubr.bf16.vlgmr.msra.gmra.mxu0 %v16949_v16  ;;  %v15029_v63 = vcombine.low %v4590_v49, %v4594_v46  ;;  %v15022_v9 = vcombine.high %v4582_v60, %v4586_v30  ;;  %v15021_v19 = vcombine.low %v4582_v60, %v4586_v30  ;;  %v4550_v46 = vld [vmem:[#allocation7 + $0xbd8] sm:$0xff] }
 0x5d8   :  { %v11088_v26 = vadd.f32 %v11087_v48, %v17145_v25  ;;  %11382 = vmatpush1.bf16.msra.mxu0 %v14925_v4  ;;  %11413 = vmatprep.mubr.bf16.mxu0 %v16953_v21  ;;  %v15038_v25 = vcombine.high %v4598_v20, %v4602_v22  ;;  %v4446_v4 = vld [vmem:[#allocation7 + $0x898] sm:$0xff] }
 0x5d9   :  { %v11128_v18 = vpop.f32.mrf.mxu1  ;;  %11373 = vmatmul.mubr.bf16.vlgmr.msra.gmra.mxu1 %v16951_v14  ;;  %v11089_v54 = vpop.f32.mrf.mxu0  ;;  %11383 = vmatprep.subr.bf16.mxu0 %v14918_v17  ;;  %v14893_v17 = vcombine.low %v4454_v7, %v4458_v56  ;;  %v14886_v13 = vcombine.high %v4446_v4, %v4450_v29  ;;  %v4542_v7 = vld [vmem:[#allocation7 + $0xb98] sm:$0xff] }
 0x5da   :  { %11423 = vmatpush1.bf16.msra.mxu1 %v15053_v23  ;;  %v17155_v58 = vadd.f32 %v11128_v18, %v11088_v26  ;;  %11454 = vmatprep.mubr.bf16.mxu1 %v16956_v53  ;;  %v11090_v16 = vadd.f32 %v11089_v54, %v17149_v11  ;;  %v15037_v53 = vcombine.low %v4598_v20, %v4602_v22  ;;  %v4578_v23 = vld [vmem:[#allocation7 + $0xcb8] sm:$0xff] }
 0x5db   :  { %v11130_v0 = vpop.f32.mrf.mxu1  ;;  %v11091_v14 = vpop.f32.mrf.mxu0  ;;  %11424 = vmatprep.subr.bf16.mxu1 %v15046_v12  ;;  %v15014_v48 = vcombine.high %v4574_v10, %v4578_v23  ;;  %v4438_v12 = vld [vmem:[#allocation7 + $0x858] sm:$0xff]  ;;  %v14885_v18 = vcombine.low %v4446_v4, %v4450_v29 }
 0x5dc   :  { %v17159_v21 = vadd.f32 %v11130_v0, %v11090_v16  ;;  %11384 = vmatpush1.bf16.msra.mxu0 %v14917_v27  ;;  %v4442_v20 = vld [vmem:[#allocation7 + $0x878] sm:$0xff]  ;;  %v15013_v27 = vcombine.low %v4574_v10, %v4578_v23 }
 0x5dd   :  { %v11132_v42 = vpop.f32.mrf.mxu1  ;;  %v11092_v41 = vpop.f32.mrf.mxu0  ;;  %11385 = vmatprep.subr.bf16.mxu0 %v14910_v44  ;;  %v4566_v22 = vld [vmem:[#allocation7 + $0xc58] sm:$0xff]  ;;  %v14878_v54 = vcombine.high %v4438_v12, %v4442_v20  ;;  %v14877_v36 = vcombine.low %v4438_v12, %v4442_v20 }
 0x5de   :  { %11425 = vmatpush1.bf16.msra.mxu1 %v15045_v28  ;;  %v4570_v26 = vld [vmem:[#allocation7 + $0xc78] sm:$0xff] }
 0x5df   :  { %v11133_v11 = vpop.f32.mrf.mxu1  ;;  %11426 = vmatprep.subr.bf16.mxu1 %v15038_v25  ;;  %v15006_v28 = vcombine.high %v4566_v22, %v4570_v26  ;;  %v4430_v44 = vld [vmem:[#allocation7 + $0x818] sm:$0xff]  ;;  %v15005_v34 = vcombine.low %v4566_v22, %v4570_v26 }
 0x5e0   :  { %11386 = vmatpush1.bf16.msra.mxu0 %v14909_v33  ;;  %v4434_v16 = vld [vmem:[#allocation7 + $0x838] sm:$0xff] }
 0x5e1   :  { %11387 = vmatprep.subr.bf16.mxu0 %v14902_v40  ;;  %v4558_v0 = vld [vmem:[#allocation7 + $0xc18] sm:$0xff]  ;;  %v14870_v14 = vcombine.high %v4430_v44, %v4434_v16 }
 0x5e2   :  { %11427 = vmatpush1.bf16.msra.mxu1 %v15037_v53  ;;  %v4562_v25 = vld [vmem:[#allocation7 + $0xc38] sm:$0xff]  ;;  %v14869_v53 = vcombine.low %v4430_v44, %v4434_v16 }
 0x5e3   :  { %11428 = vmatprep.subr.bf16.mxu1 %v15030_v45  ;;  %v14998_v49 = vcombine.high %v4558_v0, %v4562_v25  ;;  %v4554_v42 = vld [vmem:[#allocation7 + $0xbf8] sm:$0xff]  ;;  %v14997_v40 = vcombine.low %v4558_v0, %v4562_v25 }
 0x5e4   :  { %11388 = vmatpush1.bf16.msra.mxu0 %v14901_v57  ;;  %v4678_v33 = vld [vmem:[#allocation7 + $0xfd8] sm:$0xff]  ;;  %v14990_v11 = vcombine.high %v4550_v46, %v4554_v42  ;;  %v14989_v57 = vcombine.low %v4550_v46, %v4554_v42 }
 0x5e5   :  { %11389 = vmatprep.subr.bf16.mxu0 %v14894_v8  ;;  %v4682_v41 = vld [vmem:[#allocation7 + $0xff8] sm:$0xff] }
 0x5e6   :  { %11429 = vmatpush1.bf16.msra.mxu1 %v15029_v63  ;;  %v15118_v45 = vcombine.high %v4678_v33, %v4682_v41  ;;  %v4546_v56 = vld [vmem:[#allocation7 + $0xbb8] sm:$0xff]  ;;  %v15117_v63 = vcombine.low %v4678_v33, %v4682_v41 }
 0x5e7   :  { %11430 = vmatprep.subr.bf16.mxu1 %v15022_v9  ;;  %v4670_v60 = vld [vmem:[#allocation7 + $0xf98] sm:$0xff]  ;;  %v14982_v8 = vcombine.high %v4542_v7, %v4546_v56 }
 0x5e8   :  { %11390 = vmatpush1.bf16.msra.mxu0 %v14893_v17  ;;  %v4674_v30 = vld [vmem:[#allocation7 + $0xfb8] sm:$0xff]  ;;  %v14981_v17 = vcombine.low %v4542_v7, %v4546_v56 }
 0x5e9   :  { %11391 = vmatprep.subr.bf16.mxu0 %v14886_v13  ;;  %v15110_v9 = vcombine.high %v4670_v60, %v4674_v30  ;;  %v4534_v4 = vld [vmem:[#allocation7 + $0xb58] sm:$0xff] }
 0x5ea   :  { %11431 = vmatpush1.bf16.msra.mxu1 %v15021_v19  ;;  %v4538_v29 = vld [vmem:[#allocation7 + $0xb78] sm:$0xff]  ;;  %v15109_v19 = vcombine.low %v4670_v60, %v4674_v30 }
 0x5eb   :  { %11432 = vmatprep.subr.bf16.mxu1 %v15014_v48  ;;  %v4662_v10 = vld [vmem:[#allocation7 + $0xf58] sm:$0xff]  ;;  %v14974_v13 = vcombine.high %v4534_v4, %v4538_v29 }
 0x5ec   :  { %11392 = vmatpush1.bf16.msra.mxu0 %v14885_v18  ;;  %v4666_v23 = vld [vmem:[#allocation7 + $0xf78] sm:$0xff]  ;;  %v14973_v18 = vcombine.low %v4534_v4, %v4538_v29 }
 0x5ed   :  { %11393 = vmatprep.subr.bf16.mxu0 %v14878_v54  ;;  %v15102_v48 = vcombine.high %v4662_v10, %v4666_v23  ;;  %v4526_v12 = vld [vmem:[#allocation7 + $0xb18] sm:$0xff] }
 0x5ee   :  { %11433 = vmatpush1.bf16.msra.mxu1 %v15013_v27  ;;  %v4530_v20 = vld [vmem:[#allocation7 + $0xb38] sm:$0xff]  ;;  %v15101_v27 = vcombine.low %v4662_v10, %v4666_v23 }
 0x5ef   :  { %11434 = vmatprep.subr.bf16.mxu1 %v15006_v28  ;;  %v4654_v22 = vld [vmem:[#allocation7 + $0xf18] sm:$0xff]  ;;  %v14966_v54 = vcombine.high %v4526_v12, %v4530_v20 }
 0x5f0   :  { %11394 = vmatpush1.bf16.msra.mxu0 %v14877_v36  ;;  %v4658_v26 = vld [vmem:[#allocation7 + $0xf38] sm:$0xff]  ;;  %v14965_v36 = vcombine.low %v4526_v12, %v4530_v20 }
 0x5f1   :  { %11395 = vmatprep.subr.bf16.mxu0 %v14870_v14  ;;  %v15094_v28 = vcombine.high %v4654_v22, %v4658_v26  ;;  %v4518_v44 = vld [vmem:[#allocation7 + $0xad8] sm:$0xff] }
 0x5f2   :  { %11435 = vmatpush1.bf16.msra.mxu1 %v15005_v34  ;;  %v4522_v16 = vld [vmem:[#allocation7 + $0xaf8] sm:$0xff]  ;;  %v15093_v34 = vcombine.low %v4654_v22, %v4658_v26 }
 0x5f3   :  { %11436 = vmatprep.subr.bf16.mxu1 %v14998_v49  ;;  %v4646_v0 = vld [vmem:[#allocation7 + $0xed8] sm:$0xff]  ;;  %v14958_v14 = vcombine.high %v4518_v44, %v4522_v16 }
 0x5f4   :  { %11396 = vmatpush1.bf16.msra.mxu0 %v14869_v53  ;;  %v4650_v25 = vld [vmem:[#allocation7 + $0xef8] sm:$0xff]  ;;  %v14957_v53 = vcombine.low %v4518_v44, %v4522_v16 }
 0x5f5   :  { %11397 = vmatprep.subr.bf16.mxu0 %v14990_v11  ;;  %v15086_v49 = vcombine.high %v4646_v0, %v4650_v25  ;;  %v4510_v46 = vld [vmem:[#allocation7 + $0xa98] sm:$0xff] }
 0x5f6   :  { %11437 = vmatpush1.bf16.msra.mxu1 %v14997_v40  ;;  %v4514_v42 = vld [vmem:[#allocation7 + $0xab8] sm:$0xff]  ;;  %v15085_v40 = vcombine.low %v4646_v0, %v4650_v25 }
 0x5f7   :  { %11438 = vmatprep.subr.bf16.mxu1 %v15118_v45  ;;  %v4638_v33 = vld [vmem:[#allocation7 + $0xe98] sm:$0xff]  ;;  %v14950_v11 = vcombine.high %v4510_v46, %v4514_v42 }
 0x5f8   :  { %11398 = vmatpush2.bf16.msra.mxu0 %v14989_v57  ;;  %v4642_v41 = vld [vmem:[#allocation7 + $0xeb8] sm:$0xff]  ;;  %v14949_v57 = vcombine.low %v4510_v46, %v4514_v42 }
 0x5f9   :  { %11399 = vmatprep.subr.bf16.mxu0 %v14982_v8  ;;  %v15078_v45 = vcombine.high %v4638_v33, %v4642_v41  ;;  %v4502_v7 = vld [vmem:[#allocation7 + $0xa58] sm:$0xff] }
 0x5fa   :  { %11439 = vmatpush2.bf16.msra.mxu1 %v15117_v63  ;;  %v4506_v56 = vld [vmem:[#allocation7 + $0xa78] sm:$0xff]  ;;  %v15077_v63 = vcombine.low %v4638_v33, %v4642_v41 }
 0x5fb   :  { %11440 = vmatprep.subr.bf16.mxu1 %v15110_v9  ;;  %v4630_v60 = vld [vmem:[#allocation7 + $0xe58] sm:$0xff]  ;;  %v14942_v8 = vcombine.high %v4502_v7, %v4506_v56 }
 0x5fc   :  { %11400 = vmatpush2.bf16.msra.mxu0 %v14981_v17  ;;  %v4634_v30 = vld [vmem:[#allocation7 + $0xe78] sm:$0xff]  ;;  %v14941_v17 = vcombine.low %v4502_v7, %v4506_v56 }
 0x5fd   :  { %11401 = vmatprep.subr.bf16.mxu0 %v14974_v13  ;;  %v15070_v9 = vcombine.high %v4630_v60, %v4634_v30  ;;  %v4494_v4 = vld [vmem:[#allocation7 + $0xa18] sm:$0xff] }
 0x5fe   :  { %11441 = vmatpush2.bf16.msra.mxu1 %v15109_v19  ;;  %v4498_v29 = vld [vmem:[#allocation7 + $0xa38] sm:$0xff]  ;;  %v15069_v19 = vcombine.low %v4630_v60, %v4634_v30 }
 0x5ff   :  { %11442 = vmatprep.subr.bf16.mxu1 %v15102_v48  ;;  %v4622_v10 = vld [vmem:[#allocation7 + $0xe18] sm:$0xff]  ;;  %v14934_v13 = vcombine.high %v4494_v4, %v4498_v29 }
 0x600   :  { %11402 = vmatpush2.bf16.msra.mxu0 %v14973_v18  ;;  %v4626_v23 = vld [vmem:[#allocation7 + $0xe38] sm:$0xff]  ;;  %v14933_v18 = vcombine.low %v4494_v4, %v4498_v29 }
 0x601   :  { %11403 = vmatprep.subr.bf16.mxu0 %v14966_v54  ;;  %v15062_v48 = vcombine.high %v4622_v10, %v4626_v23  ;;  %v4742_v12 = vld [vmem:[#allocation7 + $0x11d8] sm:$0xff] }
 0x602   :  { %11443 = vmatpush2.bf16.msra.mxu1 %v15101_v27  ;;  %v4746_v20 = vld [vmem:[#allocation7 + $0x11f8] sm:$0xff]  ;;  %v15061_v27 = vcombine.low %v4622_v10, %v4626_v23 }
 0x603   :  { %11444 = vmatprep.subr.bf16.mxu1 %v15094_v28  ;;  %v4870_v22 = vld [vmem:[#allocation7 + $0x15d8] sm:$0xff]  ;;  %v15182_v54 = vcombine.high %v4742_v12, %v4746_v20  ;;  %v15181_v0 = vcombine.low %v4742_v12, %v4746_v20 }
 0x604   :  { %11404 = vmatpush2.bf16.msra.mxu0 %v14965_v36  ;;  %v4874_v26 = vld [vmem:[#allocation7 + $0x15f8] sm:$0xff] }
 0x605   :  { %11405 = vmatprep.subr.bf16.mxu0 %v14958_v14  ;;  %v15310_v28 = vcombine.high %v4870_v22, %v4874_v26  ;;  %v4734_v44 = vld [vmem:[#allocation7 + $0x1198] sm:$0xff] }
 0x606   :  { %11445 = vmatpush2.bf16.msra.mxu1 %v15093_v34  ;;  %v4738_v16 = vld [vmem:[#allocation7 + $0x11b8] sm:$0xff]  ;;  %v15309_v34 = vcombine.low %v4870_v22, %v4874_v26 }
 0x607   :  { %11446 = vmatprep.subr.bf16.mxu1 %v15086_v49  ;;  %v4862_v25 = vld [vmem:[#allocation7 + $0x1598] sm:$0xff]  ;;  %v15174_v14 = vcombine.high %v4734_v44, %v4738_v16 }
 0x608   :  { %11406 = vmatpush2.bf16.msra.mxu0 %v14957_v53  ;;  %v4866_v36 = vld [vmem:[#allocation7 + $0x15b8] sm:$0xff] }
 0x609   :  { %11407 = vmatprep.subr.bf16.mxu0 %v14950_v11  ;;  %v4726_v49 = vld [vmem:[#allocation7 + $0x1158] sm:$0xff]  ;;  %v15302_v33 = vcombine.high %v4862_v25, %v4866_v36  ;;  %v15301_v56 = vcombine.low %v4862_v25, %v4866_v36 }
 0x60a   :  { %11447 = vmatpush2.bf16.msra.mxu1 %v15085_v40  ;;  %v4730_v46 = vld [vmem:[#allocation7 + $0x1178] sm:$0xff] }
 0x60b   :  { %11448 = vmatprep.subr.bf16.mxu1 %v15078_v45  ;;  %v4854_v41 = vld [vmem:[#allocation7 + $0x1558] sm:$0xff]  ;;  %v15173_v45 = vcombine.low %v4734_v44, %v4738_v16  ;;  %v15166_v60 = vcombine.high %v4726_v49, %v4730_v46  ;;  %v15165_v10 = vcombine.low %v4726_v49, %v4730_v46 }
 0x60c   :  { %11408 = vmatpush2.bf16.msra.mxu0 %v14949_v57  ;;  %v4858_v53 = vld [vmem:[#allocation7 + $0x1578] sm:$0xff] }
 0x60d   :  { %11409 = vmatprep.subr.bf16.mxu0 %v14942_v8  ;;  %v4722_v8 = vld [vmem:[#allocation7 + $0x1138] sm:$0xff] }
 0x60e   :  { %11449 = vmatpush2.bf16.msra.mxu1 %v15077_v63  ;;  %v4718_v63 = vld [vmem:[#allocation7 + $0x1118] sm:$0xff] }
 0x60f   :  { %11450 = vmatprep.subr.bf16.mxu1 %v15070_v9  ;;  %v4846_v9 = vld [vmem:[#allocation7 + $0x1518] sm:$0xff]  ;;  %v15157_v22 = vcombine.low %v4718_v63, %v4722_v8 }
 0x610   :  { %11410 = vmatpush2.bf16.msra.mxu0 %v14941_v17  ;;  %v4850_v4 = vld [vmem:[#allocation7 + $0x1538] sm:$0xff]  ;;  %v15158_v17 = vcombine.high %v4718_v63, %v4722_v8 }
 0x611   :  { %11411 = vmatprep.subr.bf16.mxu0 %v14934_v13  ;;  %v4710_v13 = vld [vmem:[#allocation7 + $0x10d8] sm:$0xff]  ;;  %v15285_v26 = vcombine.low %v4846_v9, %v4850_v4 }
 0x612   :  { %11451 = vmatpush2.bf16.msra.mxu1 %v15069_v19  ;;  %v15286_v19 = vcombine.high %v4846_v9, %v4850_v4  ;;  %v4838_v12 = vld [vmem:[#allocation7 + $0x14d8] sm:$0xff] }
 0x613   :  { %11452 = vmatprep.subr.bf16.mxu1 %v15062_v48  ;;  %v4714_v48 = vld [vmem:[#allocation7 + $0x10f8] sm:$0xff] }
 0x614   :  { %11412 = vmatpush2.bf16.msra.mxu0 %v14933_v18  ;;  %v4842_v20 = vld [vmem:[#allocation7 + $0x14f8] sm:$0xff]  ;;  %v15150_v18 = vcombine.high %v4710_v13, %v4714_v48 }
 0x615   :  { %11463 = vmatprep.subr.bf16.mxu0 %v15182_v54  ;;  %v4702_v54 = vld [vmem:[#allocation7 + $0x1098] sm:$0xff]  ;;  %v15277_v25 = vcombine.low %v4838_v12, %v4842_v20 }
 0x616   :  { %11453 = vmatpush2.bf16.msra.mxu1 %v15061_v27  ;;  %v15278_v27 = vcombine.high %v4838_v12, %v4842_v20  ;;  %v4830_v44 = vld [vmem:[#allocation7 + $0x1498] sm:$0xff] }
 0x617   :  { %11504 = vmatprep.subr.bf16.mxu1 %v15310_v28  ;;  %v11169_v42 = vpop.f32.mrf.mxu0  ;;  %11414 = vmatmul.mubr.bf16.vlgmr.msra.gmra.mxu0 %v16998_v43  ;;  %v4706_v28 = vld [vmem:[#allocation7 + $0x10b8] sm:$0xff] }
 0x618   :  { %v11170_v40 = vadd.f32 %v11169_v42, %v17155_v58  ;;  %11464 = vmatpush1.bf16.msra.mxu0 %v15181_v0  ;;  %11495 = vmatprep.mubr.bf16.mxu0 %v17002_v52  ;;  %v15294_v58 = vcombine.high %v4854_v41, %v4858_v53  ;;  %v4834_v16 = vld [vmem:[#allocation7 + $0x14b8] sm:$0xff]  ;;  %v15149_v0 = vcombine.low %v4710_v13, %v4714_v48 }
 0x619   :  { %v11210_v11 = vpop.f32.mrf.mxu1  ;;  %11455 = vmatmul.mubr.bf16.vlgmr.msra.gmra.mxu1 %v17000_v24  ;;  %v11171_v7 = vpop.f32.mrf.mxu0  ;;  %11465 = vmatprep.subr.bf16.mxu0 %v15174_v14  ;;  %v15142_v36 = vcombine.high %v4702_v54, %v4706_v28  ;;  %v4694_v14 = vld [vmem:[#allocation7 + $0x1058] sm:$0xff] }
 0x61a   :  { %11505 = vmatpush1.bf16.msra.mxu1 %v15309_v34  ;;  %v17165_v30 = vadd.f32 %v11210_v11, %v11170_v40  ;;  %11536 = vmatprep.mubr.bf16.mxu1 %v17005_v6  ;;  %v11172_v43 = vadd.f32 %v11171_v7, %v17159_v21  ;;  %v15293_v6 = vcombine.low %v4854_v41, %v4858_v53  ;;  %v4698_v49 = vld [vmem:[#allocation7 + $0x1078] sm:$0xff] }
 0x61b   :  { %v11212_v57 = vpop.f32.mrf.mxu1  ;;  %v11173_v24 = vpop.f32.mrf.mxu0  ;;  %11506 = vmatprep.subr.bf16.mxu1 %v15302_v33  ;;  %v15270_v34 = vcombine.high %v4830_v44, %v4834_v16  ;;  %v4822_v46 = vld [vmem:[#allocation7 + $0x1458] sm:$0xff]  ;;  %v15141_v33 = vcombine.low %v4702_v54, %v4706_v28  ;;  %v15269_v41 = vcombine.low %v4830_v44, %v4834_v16  ;;  %v15134_v53 = vcombine.high %v4694_v14, %v4698_v49 }
 0x61c   :  { %v17169_v52 = vadd.f32 %v11212_v57, %v11172_v43  ;;  %11466 = vmatpush1.bf16.msra.mxu0 %v15173_v45  ;;  %v4826_v42 = vld [vmem:[#allocation7 + $0x1478] sm:$0xff] }
 0x61d   :  { %v11214_v29 = vpop.f32.mrf.mxu1  ;;  %v11174_v23 = vpop.f32.mrf.mxu0  ;;  %11467 = vmatprep.subr.bf16.mxu0 %v15166_v60  ;;  %v15262_v40 = vcombine.high %v4822_v46, %v4826_v42  ;;  %v4686_v11 = vld [vmem:[#allocation7 + $0x1018] sm:$0xff]  ;;  %v15133_v60 = vcombine.low %v4694_v14, %v4698_v49  ;;  %v15261_v43 = vcombine.low %v4822_v46, %v4826_v42 }
 0x61e   :  { %11507 = vmatpush1.bf16.msra.mxu1 %v15301_v56  ;;  %v4690_v45 = vld [vmem:[#allocation7 + $0x1038] sm:$0xff] }
 0x61f   :  { %v11215_v21 = vpop.f32.mrf.mxu1  ;;  %11508 = vmatprep.subr.bf16.mxu1 %v15294_v58  ;;  %v4814_v7 = vld [vmem:[#allocation7 + $0x1418] sm:$0xff]  ;;  %v15126_v57 = vcombine.high %v4686_v11, %v4690_v45  ;;  %v15125_v4 = vcombine.low %v4686_v11, %v4690_v45 }
 0x620   :  { %11468 = vmatpush1.bf16.msra.mxu0 %v15165_v10  ;;  %v4818_v56 = vld [vmem:[#allocation7 + $0x1438] sm:$0xff] }
 0x621   :  { %11469 = vmatprep.subr.bf16.mxu0 %v15158_v17  ;;  %v15254_v58 = vcombine.high %v4814_v7, %v4818_v56  ;;  %v4806_v63 = vld [vmem:[#allocation7 + $0x13d8] sm:$0xff]  ;;  %v15253_v29 = vcombine.low %v4814_v7, %v4818_v56 }
 0x622   :  { %11509 = vmatpush1.bf16.msra.mxu1 %v15293_v6  ;;  %v4810_v8 = vld [vmem:[#allocation7 + $0x13f8] sm:$0xff] }
 0x623   :  { %11510 = vmatprep.subr.bf16.mxu1 %v15286_v19  ;;  %v4934_v24 = vld [vmem:[#allocation7 + $0x17d8] sm:$0xff]  ;;  %v15246_v10 = vcombine.high %v4806_v63, %v4810_v8  ;;  %v15245_v13 = vcombine.low %v4806_v63, %v4810_v8 }
 0x624   :  { %11470 = vmatpush1.bf16.msra.mxu0 %v15157_v22  ;;  %v4938_v9 = vld [vmem:[#allocation7 + $0x17f8] sm:$0xff] }
 0x625   :  { %11471 = vmatprep.subr.bf16.mxu0 %v15150_v18  ;;  %v15374_v23 = vcombine.high %v4934_v24, %v4938_v9  ;;  %v4798_v6 = vld [vmem:[#allocation7 + $0x1398] sm:$0xff]  ;;  %v15373_v48 = vcombine.low %v4934_v24, %v4938_v9 }
 0x626   :  { %11511 = vmatpush1.bf16.msra.mxu1 %v15285_v26  ;;  %v4802_v17 = vld [vmem:[#allocation7 + $0x13b8] sm:$0xff] }
 0x627   :  { %11512 = vmatprep.subr.bf16.mxu1 %v15278_v27  ;;  %v4926_v21 = vld [vmem:[#allocation7 + $0x1798] sm:$0xff]  ;;  %v15238_v12 = vcombine.high %v4798_v6, %v4802_v17  ;;  %v15237_v54 = vcombine.low %v4798_v6, %v4802_v17 }
 0x628   :  { %11472 = vmatpush1.bf16.msra.mxu0 %v15149_v0  ;;  %v4930_v19 = vld [vmem:[#allocation7 + $0x17b8] sm:$0xff] }
 0x629   :  { %11473 = vmatprep.subr.bf16.mxu0 %v15142_v36  ;;  %v15366_v20 = vcombine.high %v4926_v21, %v4930_v19  ;;  %v4790_v22 = vld [vmem:[#allocation7 + $0x1358] sm:$0xff]  ;;  %v15365_v28 = vcombine.low %v4926_v21, %v4930_v19 }
 0x62a   :  { %11513 = vmatpush1.bf16.msra.mxu1 %v15277_v25  ;;  %v4794_v26 = vld [vmem:[#allocation7 + $0x1378] sm:$0xff] }
 0x62b   :  { %11514 = vmatprep.subr.bf16.mxu1 %v15270_v34  ;;  %v4918_v18 = vld [vmem:[#allocation7 + $0x1758] sm:$0xff]  ;;  %v15230_v44 = vcombine.high %v4790_v22, %v4794_v26  ;;  %v15229_v14 = vcombine.low %v4790_v22, %v4794_v26 }
 0x62c   :  { %11474 = vmatpush1.bf16.msra.mxu0 %v15141_v33  ;;  %v4922_v27 = vld [vmem:[#allocation7 + $0x1778] sm:$0xff] }
 0x62d   :  { %11475 = vmatprep.subr.bf16.mxu0 %v15134_v53  ;;  %v15358_v16 = vcombine.high %v4918_v18, %v4922_v27  ;;  %v4782_v0 = vld [vmem:[#allocation7 + $0x1318] sm:$0xff]  ;;  %v15357_v49 = vcombine.low %v4918_v18, %v4922_v27 }
 0x62e   :  { %11515 = vmatpush1.bf16.msra.mxu1 %v15269_v41  ;;  %v4786_v25 = vld [vmem:[#allocation7 + $0x1338] sm:$0xff] }
 0x62f   :  { %11516 = vmatprep.subr.bf16.mxu1 %v15262_v40  ;;  %v4910_v36 = vld [vmem:[#allocation7 + $0x1718] sm:$0xff]  ;;  %v15222_v46 = vcombine.high %v4782_v0, %v4786_v25  ;;  %v15221_v11 = vcombine.low %v4782_v0, %v4786_v25 }
 0x630   :  { %11476 = vmatpush1.bf16.msra.mxu0 %v15133_v60  ;;  %v4914_v34 = vld [vmem:[#allocation7 + $0x1738] sm:$0xff] }
 0x631   :  { %11477 = vmatprep.subr.bf16.mxu0 %v15126_v57  ;;  %v15350_v42 = vcombine.high %v4910_v36, %v4914_v34  ;;  %v4774_v33 = vld [vmem:[#allocation7 + $0x12d8] sm:$0xff]  ;;  %v15349_v45 = vcombine.low %v4910_v36, %v4914_v34 }
 0x632   :  { %11517 = vmatpush1.bf16.msra.mxu1 %v15261_v43  ;;  %v4778_v41 = vld [vmem:[#allocation7 + $0x12f8] sm:$0xff] }
 0x633   :  { %11518 = vmatprep.subr.bf16.mxu1 %v15254_v58  ;;  %v4902_v53 = vld [vmem:[#allocation7 + $0x16d8] sm:$0xff]  ;;  %v15214_v7 = vcombine.high %v4774_v33, %v4778_v41  ;;  %v15213_v63 = vcombine.low %v4774_v33, %v4778_v41 }
 0x634   :  { %11478 = vmatpush1.bf16.msra.mxu0 %v15125_v4  ;;  %v4906_v40 = vld [vmem:[#allocation7 + $0x16f8] sm:$0xff] }
 0x635   :  { %11479 = vmatprep.subr.bf16.mxu0 %v15246_v10  ;;  %v15342_v56 = vcombine.high %v4902_v53, %v4906_v40  ;;  %v4766_v60 = vld [vmem:[#allocation7 + $0x1298] sm:$0xff]  ;;  %v15341_v8 = vcombine.low %v4902_v53, %v4906_v40 }
 0x636   :  { %11519 = vmatpush1.bf16.msra.mxu1 %v15253_v29  ;;  %v4770_v43 = vld [vmem:[#allocation7 + $0x12b8] sm:$0xff] }
 0x637   :  { %11520 = vmatprep.subr.bf16.mxu1 %v15374_v23  ;;  %v4894_v57 = vld [vmem:[#allocation7 + $0x1698] sm:$0xff]  ;;  %v15206_v24 = vcombine.high %v4766_v60, %v4770_v43  ;;  %v15205_v6 = vcombine.low %v4766_v60, %v4770_v43 }
 0x638   :  { %11480 = vmatpush2.bf16.msra.mxu0 %v15245_v13  ;;  %v4898_v58 = vld [vmem:[#allocation7 + $0x16b8] sm:$0xff] }
 0x639   :  { %11481 = vmatprep.subr.bf16.mxu0 %v15238_v12  ;;  %v15334_v9 = vcombine.high %v4894_v57, %v4898_v58  ;;  %v4758_v4 = vld [vmem:[#allocation7 + $0x1258] sm:$0xff]  ;;  %v15333_v17 = vcombine.low %v4894_v57, %v4898_v58 }
 0x63a   :  { %11521 = vmatpush2.bf16.msra.mxu1 %v15373_v48  ;;  %v4762_v29 = vld [vmem:[#allocation7 + $0x1278] sm:$0xff] }
 0x63b   :  { %11522 = vmatprep.subr.bf16.mxu1 %v15366_v20  ;;  %v4886_v10 = vld [vmem:[#allocation7 + $0x1658] sm:$0xff]  ;;  %v15198_v21 = vcombine.high %v4758_v4, %v4762_v29  ;;  %v15197_v22 = vcombine.low %v4758_v4, %v4762_v29 }
 0x63c   :  { %11482 = vmatpush2.bf16.msra.mxu0 %v15237_v54  ;;  %v4890_v23 = vld [vmem:[#allocation7 + $0x1678] sm:$0xff] }
 0x63d   :  { %11483 = vmatprep.subr.bf16.mxu0 %v15230_v44  ;;  %v15326_v19 = vcombine.high %v4886_v10, %v4890_v23  ;;  %v4750_v13 = vld [vmem:[#allocation7 + $0x1218] sm:$0xff]  ;;  %v15325_v26 = vcombine.low %v4886_v10, %v4890_v23 }
 0x63e   :  { %11523 = vmatpush2.bf16.msra.mxu1 %v15365_v28  ;;  %v4754_v48 = vld [vmem:[#allocation7 + $0x1238] sm:$0xff] }
 0x63f   :  { %11524 = vmatprep.subr.bf16.mxu1 %v15358_v16  ;;  %v4878_v12 = vld [vmem:[#allocation7 + $0x1618] sm:$0xff]  ;;  %v15190_v18 = vcombine.high %v4750_v13, %v4754_v48  ;;  %v15189_v0 = vcombine.low %v4750_v13, %v4754_v48 }
 0x640   :  { %11484 = vmatpush2.bf16.msra.mxu0 %v15229_v14  ;;  %v4882_v20 = vld [vmem:[#allocation7 + $0x1638] sm:$0xff] }
 0x641   :  { %11485 = vmatprep.subr.bf16.mxu0 %v15222_v46  ;;  %v15318_v27 = vcombine.high %v4878_v12, %v4882_v20  ;;  %v4998_v54 = vld [vmem:[#allocation7 + $0x19d8] sm:$0xff]  ;;  %v15317_v25 = vcombine.low %v4878_v12, %v4882_v20 }
 0x642   :  { %11525 = vmatpush2.bf16.msra.mxu1 %v15357_v49  ;;  %v5002_v28 = vld [vmem:[#allocation7 + $0x19f8] sm:$0xff] }
 0x643   :  { %11526 = vmatprep.subr.bf16.mxu1 %v15350_v42  ;;  %v5126_v44 = vld [vmem:[#allocation7 + $0x1dd8] sm:$0xff]  ;;  %v15438_v36 = vcombine.high %v4998_v54, %v5002_v28  ;;  %v15437_v46 = vcombine.low %v4998_v54, %v5002_v28 }
 0x644   :  { %11486 = vmatpush2.bf16.msra.mxu0 %v15221_v11  ;;  %v5130_v16 = vld [vmem:[#allocation7 + $0x1df8] sm:$0xff] }
 0x645   :  { %11487 = vmatprep.subr.bf16.mxu0 %v15214_v7  ;;  %v15566_v34 = vcombine.high %v5126_v44, %v5130_v16  ;;  %v4990_v14 = vld [vmem:[#allocation7 + $0x1998] sm:$0xff]  ;;  %v15565_v41 = vcombine.low %v5126_v44, %v5130_v16 }
 0x646   :  { %11527 = vmatpush2.bf16.msra.mxu1 %v15349_v45  ;;  %v4994_v49 = vld [vmem:[#allocation7 + $0x19b8] sm:$0xff] }
 0x647   :  { %11528 = vmatprep.subr.bf16.mxu1 %v15342_v56  ;;  %v5118_v42 = vld [vmem:[#allocation7 + $0x1d98] sm:$0xff]  ;;  %v15430_v53 = vcombine.high %v4990_v14, %v4994_v49  ;;  %v15429_v58 = vcombine.low %v4990_v14, %v4994_v49 }
 0x648   :  { %11488 = vmatpush2.bf16.msra.mxu0 %v15213_v63  ;;  %v5122_v33 = vld [vmem:[#allocation7 + $0x1db8] sm:$0xff] }
 0x649   :  { %11489 = vmatprep.subr.bf16.mxu0 %v15206_v24  ;;  %v4982_v40 = vld [vmem:[#allocation7 + $0x1958] sm:$0xff]  ;;  %v15558_v7 = vcombine.high %v5118_v42, %v5122_v33 }
 0x64a   :  { %11529 = vmatpush2.bf16.msra.mxu1 %v15341_v8  ;;  %v4986_v11 = vld [vmem:[#allocation7 + $0x1978] sm:$0xff]  ;;  %v15557_v8 = vcombine.low %v5118_v42, %v5122_v33 }
 0x64b   :  { %11530 = vmatprep.subr.bf16.mxu1 %v15334_v9  ;;  %v5110_v56 = vld [vmem:[#allocation7 + $0x1d58] sm:$0xff]  ;;  %v15422_v24 = vcombine.high %v4982_v40, %v4986_v11 }
 0x64c   :  { %11490 = vmatpush2.bf16.msra.mxu0 %v15205_v6  ;;  %v5114_v60 = vld [vmem:[#allocation7 + $0x1d78] sm:$0xff] }
 0x64d   :  { %11491 = vmatprep.subr.bf16.mxu0 %v15198_v21  ;;  %v4974_v29 = vld [vmem:[#allocation7 + $0x1918] sm:$0xff]  ;;  %v15421_v21 = vcombine.low %v4982_v40, %v4986_v11 }
 0x64e   :  { %11531 = vmatpush2.bf16.msra.mxu1 %v15333_v17  ;;  %v4978_v10 = vld [vmem:[#allocation7 + $0x1938] sm:$0xff] }
 0x64f   :  { %11532 = vmatprep.subr.bf16.mxu1 %v15326_v19  ;;  %v5102_v23 = vld [vmem:[#allocation7 + $0x1d18] sm:$0xff]  ;;  %v15414_v13 = vcombine.high %v4974_v29, %v4978_v10 }
 0x650   :  { %11492 = vmatpush2.bf16.msra.mxu0 %v15197_v22  ;;  %v5106_v6 = vld [vmem:[#allocation7 + $0x1d38] sm:$0xff] }
 0x651   :  { %11493 = vmatprep.subr.bf16.mxu0 %v15190_v18  ;;  %v15542_v48 = vcombine.high %v5102_v23, %v5106_v6  ;;  %v4966_v12 = vld [vmem:[#allocation7 + $0x18d8] sm:$0xff]  ;;  %v15413_v18 = vcombine.low %v4974_v29, %v4978_v10 }
 0x652   :  { %11533 = vmatpush2.bf16.msra.mxu1 %v15325_v26  ;;  %v4970_v20 = vld [vmem:[#allocation7 + $0x18f8] sm:$0xff] }
 0x653   :  { %11534 = vmatprep.subr.bf16.mxu1 %v15318_v27  ;;  %v5094_v22 = vld [vmem:[#allocation7 + $0x1cd8] sm:$0xff]  ;;  %v15541_v27 = vcombine.low %v5102_v23, %v5106_v6  ;;  %v15406_v54 = vcombine.high %v4966_v12, %v4970_v20 }
 0x654   :  { %11494 = vmatpush2.bf16.msra.mxu0 %v15189_v0  ;;  %v5098_v26 = vld [vmem:[#allocation7 + $0x1cf8] sm:$0xff] }
 0x655   :  { %11545 = vmatprep.subr.bf16.mxu0 %v15438_v36  ;;  %v15534_v28 = vcombine.high %v5094_v22, %v5098_v26  ;;  %v4958_v44 = vld [vmem:[#allocation7 + $0x1898] sm:$0xff]  ;;  %v15405_v36 = vcombine.low %v4966_v12, %v4970_v20 }
 0x656   :  { %11535 = vmatpush2.bf16.msra.mxu1 %v15317_v25  ;;  %v4962_v16 = vld [vmem:[#allocation7 + $0x18b8] sm:$0xff] }
 0x657   :  { %11586 = vmatprep.subr.bf16.mxu1 %v15566_v34  ;;  %v11251_v45 = vpop.f32.mrf.mxu0  ;;  %11496 = vmatmul.mubr.bf16.vlgmr.msra.gmra.mxu0 %v17032_v15  ;;  %v5086_v0 = vld [vmem:[#allocation7 + $0x1c98] sm:$0xff]  ;;  %v15533_v34 = vcombine.low %v5094_v22, %v5098_v26  ;;  %v15398_v14 = vcombine.high %v4958_v44, %v4962_v16 }
 0x658   :  { %v11252_v43 = vadd.f32 %v11251_v45, %v17165_v30  ;;  %11546 = vmatpush1.bf16.msra.mxu0 %v15437_v46  ;;  %11577 = vmatprep.mubr.bf16.mxu0 %v17036_v39  ;;  %v15550_v30 = vcombine.high %v5110_v56, %v5114_v60  ;;  %v5090_v25 = vld [vmem:[#allocation7 + $0x1cb8] sm:$0xff] }
 0x659   :  { %v11292_v57 = vpop.f32.mrf.mxu1  ;;  %11537 = vmatmul.mubr.bf16.vlgmr.msra.gmra.mxu1 %v17034_v59  ;;  %v11253_v63 = vpop.f32.mrf.mxu0  ;;  %11547 = vmatprep.subr.bf16.mxu0 %v15430_v53  ;;  %v15526_v49 = vcombine.high %v5086_v0, %v5090_v25  ;;  %v4950_v46 = vld [vmem:[#allocation7 + $0x1858] sm:$0xff]  ;;  %v15397_v53 = vcombine.low %v4958_v44, %v4962_v16  ;;  %v15525_v40 = vcombine.low %v5086_v0, %v5090_v25 }
 0x65a   :  { %11587 = vmatpush1.bf16.msra.mxu1 %v15565_v41  ;;  %v17175_v9 = vadd.f32 %v11292_v57, %v11252_v43  ;;  %11618 = vmatprep.mubr.bf16.mxu1 %v17049_v38  ;;  %v11254_v15 = vadd.f32 %v11253_v63, %v17169_v52  ;;  %v15549_v38 = vcombine.low %v5110_v56, %v5114_v60  ;;  %v4954_v42 = vld [vmem:[#allocation7 + $0x1878] sm:$0xff] }
 0x65b   :  { %v11294_v4 = vpop.f32.mrf.mxu1  ;;  %v11255_v59 = vpop.f32.mrf.mxu0  ;;  %11588 = vmatprep.subr.bf16.mxu1 %v15558_v7  ;;  %v5078_v33 = vld [vmem:[#allocation7 + $0x1c58] sm:$0xff]  ;;  %v15390_v11 = vcombine.high %v4950_v46, %v4954_v42  ;;  %v15389_v57 = vcombine.low %v4950_v46, %v4954_v42 }
 0x65c   :  { %v17179_v39 = vadd.f32 %v11294_v4, %v11254_v15  ;;  %11548 = vmatpush1.bf16.msra.mxu0 %v15429_v58  ;;  %v5082_v41 = vld [vmem:[#allocation7 + $0x1c78] sm:$0xff] }
 0x65d   :  { %v11296_v17 = vpop.f32.mrf.mxu1  ;;  %v11256_v19 = vpop.f32.mrf.mxu0  ;;  %11549 = vmatprep.subr.bf16.mxu0 %v15422_v24  ;;  %v15518_v45 = vcombine.high %v5078_v33, %v5082_v41  ;;  %v4942_v7 = vld [vmem:[#allocation7 + $0x1818] sm:$0xff]  ;;  %v15517_v58 = vcombine.low %v5078_v33, %v5082_v41 }
 0x65e   :  { %11589 = vmatpush1.bf16.msra.mxu1 %v15557_v8  ;;  %v4946_v56 = vld [vmem:[#allocation7 + $0x1838] sm:$0xff] }
 0x65f   :  { %v11297_v52 = vpop.f32.mrf.mxu1  ;;  %11590 = vmatprep.subr.bf16.mxu1 %v15550_v30  ;;  %v5070_v60 = vld [vmem:[#allocation7 + $0x1c18] sm:$0xff]  ;;  %v15382_v63 = vcombine.high %v4942_v7, %v4946_v56  ;;  %v15381_v29 = vcombine.low %v4942_v7, %v4946_v56 }
 0x660   :  { %11550 = vmatpush1.bf16.msra.mxu0 %v15421_v21  ;;  %v5074_v43 = vld [vmem:[#allocation7 + $0x1c38] sm:$0xff] }
 0x661   :  { %11551 = vmatprep.subr.bf16.mxu0 %v15414_v13  ;;  %v15510_v8 = vcombine.high %v5070_v60, %v5074_v43  ;;  %v5062_v24 = vld [vmem:[#allocation7 + $0x1bd8] sm:$0xff]  ;;  %v15509_v10 = vcombine.low %v5070_v60, %v5074_v43 }
 0x662   :  { %11591 = vmatpush1.bf16.msra.mxu1 %v15549_v38  ;;  %v5066_v15 = vld [vmem:[#allocation7 + $0x1bf8] sm:$0xff] }
 0x663   :  { %11592 = vmatprep.subr.bf16.mxu1 %v15542_v48  ;;  %v5190_v4 = vld [vmem:[#allocation7 + $0x1fd8] sm:$0xff]  ;;  %v15502_v59 = vcombine.high %v5062_v24, %v5066_v15  ;;  %v15501_v38 = vcombine.low %v5062_v24, %v5066_v15 }
 0x664   :  { %11552 = vmatpush1.bf16.msra.mxu0 %v15413_v18  ;;  %v5194_v30 = vld [vmem:[#allocation7 + $0x1ff8] sm:$0xff] }
 0x665   :  { %11553 = vmatprep.subr.bf16.mxu0 %v15406_v54  ;;  %v15630_v23 = vcombine.high %v5190_v4, %v5194_v30  ;;  %v5054_v6 = vld [vmem:[#allocation7 + $0x1b98] sm:$0xff]  ;;  %v15629_v13 = vcombine.low %v5190_v4, %v5194_v30 }
 0x666   :  { %11593 = vmatpush1.bf16.msra.mxu1 %v15541_v27  ;;  %v5058_v17 = vld [vmem:[#allocation7 + $0x1bb8] sm:$0xff] }
 0x667   :  { %11594 = vmatprep.subr.bf16.mxu1 %v15534_v28  ;;  %v5182_v21 = vld [vmem:[#allocation7 + $0x1f98] sm:$0xff]  ;;  %v15494_v52 = vcombine.high %v5054_v6, %v5058_v17  ;;  %v15493_v18 = vcombine.low %v5054_v6, %v5058_v17 }
 0x668   :  { %11554 = vmatpush1.bf16.msra.mxu0 %v15405_v36  ;;  %v5186_v19 = vld [vmem:[#allocation7 + $0x1fb8] sm:$0xff] }
 0x669   :  { %11555 = vmatprep.subr.bf16.mxu0 %v15398_v14  ;;  %v15622_v48 = vcombine.high %v5182_v21, %v5186_v19  ;;  %v5046_v12 = vld [vmem:[#allocation7 + $0x1b58] sm:$0xff]  ;;  %v15621_v27 = vcombine.low %v5182_v21, %v5186_v19  ;;  %v17187_v21 = vld [vmem:[#allocation10] sm:$0xff] }
 0x66a   :  { %11595 = vmatpush1.bf16.msra.mxu1 %v15533_v34  ;;  %v5050_v20 = vld [vmem:[#allocation7 + $0x1b78] sm:$0xff] }
 0x66b   :  { %11596 = vmatprep.subr.bf16.mxu1 %v15526_v49  ;;  %v5174_v22 = vld [vmem:[#allocation7 + $0x1f58] sm:$0xff]  ;;  %v15486_v54 = vcombine.high %v5046_v12, %v5050_v20  ;;  %v15485_v36 = vcombine.low %v5046_v12, %v5050_v20 }
 0x66c   :  { %11556 = vmatpush1.bf16.msra.mxu0 %v15397_v53  ;;  %v5178_v26 = vld [vmem:[#allocation7 + $0x1f78] sm:$0xff] }
 0x66d   :  { %11557 = vmatprep.subr.bf16.mxu0 %v15390_v11  ;;  %v15614_v28 = vcombine.high %v5174_v22, %v5178_v26  ;;  %v5038_v44 = vld [vmem:[#allocation7 + $0x1b18] sm:$0xff]  ;;  %v15613_v34 = vcombine.low %v5174_v22, %v5178_v26  ;;  %v11694_v26 = vrot.slane %v17187_v21, %v16891_v2 }
 0x66e   :  { %11597 = vmatpush1.bf16.msra.mxu1 %v15525_v40  ;;  %v5042_v16 = vld [vmem:[#allocation7 + $0x1b38] sm:$0xff] }
 0x66f   :  { %11598 = vmatprep.subr.bf16.mxu1 %v15518_v45  ;;  %v5166_v0 = vld [vmem:[#allocation7 + $0x1f18] sm:$0xff]  ;;  %v15478_v14 = vcombine.high %v5038_v44, %v5042_v16  ;;  %v15477_v53 = vcombine.low %v5038_v44, %v5042_v16 }
 0x670   :  { %11558 = vmatpush1.bf16.msra.mxu0 %v15389_v57  ;;  %v5170_v25 = vld [vmem:[#allocation7 + $0x1f38] sm:$0xff] }
 0x671   :  { %11559 = vmatprep.subr.bf16.mxu0 %v15382_v63  ;;  %v15606_v49 = vcombine.high %v5166_v0, %v5170_v25  ;;  %v5030_v46 = vld [vmem:[#allocation7 + $0x1ad8] sm:$0xff]  ;;  %v15605_v40 = vcombine.low %v5166_v0, %v5170_v25  ;;  %v16006_v25 = vld [vmem:[#allocation12 + $0xe4] ss:$16 sps:$4 sm:$0xff]  }
 0x672   :  { %11599 = vmatpush1.bf16.msra.mxu1 %v15517_v58  ;;  %v5034_v42 = vld [vmem:[#allocation7 + $0x1af8] sm:$0xff] }
 0x673   :  { %11600 = vmatprep.subr.bf16.mxu1 %v15510_v8  ;;  %v5158_v33 = vld [vmem:[#allocation7 + $0x1ed8] sm:$0xff]  ;;  %v15470_v11 = vcombine.high %v5030_v46, %v5034_v42  ;;  %v15469_v57 = vcombine.low %v5030_v46, %v5034_v42  ;;  %v17181_v8 = vld [vmem:[#allocation9] sm:$0xff] }
 0x674   :  { %11560 = vmatpush1.bf16.msra.mxu0 %v15381_v29  ;;  %v5162_v41 = vld [vmem:[#allocation7 + $0x1ef8] sm:$0xff]  ;;  %v11636_v30 = vrot.slane %v17181_v8, %v16886_v61  ;;  %v16012_v46 = vld [vmem:[#allocation12 + $0xc4] ss:$16 sps:$4 sm:$0xff]  }
 0x675   :  { %11561 = vmatprep.subr.bf16.mxu0 %v15502_v59  ;;  %v15598_v45 = vcombine.high %v5158_v33, %v5162_v41  ;;  %v5022_v7 = vld [vmem:[#allocation7 + $0x1a98] sm:$0xff]  ;;  %v15597_v58 = vcombine.low %v5158_v33, %v5162_v41  ;;  %v11644_v59 = vrot.slane %v17181_v8, %v16891_v2  ;;  %v16015_v41 = vld [vmem:[#allocation12 + $0x2c4] ss:$16 sps:$4 sm:$0xff]  }
 0x676   :  { %11601 = vmatpush1.bf16.msra.mxu1 %v15509_v10  ;;  %v5026_v56 = vld [vmem:[#allocation7 + $0x1ab8] sm:$0xff] }
 0x677   :  { %11602 = vmatprep.subr.bf16.mxu1 %v15630_v23  ;;  %v5150_v60 = vld [vmem:[#allocation7 + $0x1e98] sm:$0xff]  ;;  %v15462_v63 = vcombine.high %v5022_v7, %v5026_v56  ;;  %v15461_v23 = vcombine.low %v5022_v7, %v5026_v56  ;;  %v11672_v22 = vmul.f32 %v11644_v59, %v17141_v32  ;;  %v16009_v32 = vld [vmem:[#allocation12 + $0x2e4] ss:$16 sps:$4 sm:$0xff]   ;;  %v16013_v56 = vld [vmem:[#allocation12 + $0x2c0] ss:$16 sps:$4 sm:$0xff]  }
 0x678   :  { %11562 = vmatpush2.bf16.msra.mxu0 %v15501_v38  ;;  %v5154_v43 = vld [vmem:[#allocation7 + $0x1eb8] sm:$0xff]  ;;  %v16025_v59 = vld [vmem:[#allocation12 + $0x280] ss:$16 sps:$4 sm:$0xff]  }
 0x679   :  { %11563 = vmatprep.subr.bf16.mxu0 %v15494_v52  ;;  %v15590_v24 = vcombine.high %v5150_v60, %v5154_v43  ;;  %v5014_v15 = vld [vmem:[#allocation7 + $0x1a58] sm:$0xff]  ;;  %v15589_v6 = vcombine.low %v5150_v60, %v5154_v43  ;;  %v11670_v52 = vmul.f32 %v11636_v30, %v17103_v3  ;;  %v11722_v3 = vadd.f32 %v11694_v26, %v11672_v22  ;;  %v16018_v60 = vld [vmem:[#allocation12 + $0xa4] ss:$16 sps:$4 sm:$0xff]   ;;  %v16040_v22 = vld [vmem:[#allocation12 + $0x20] ss:$16 sps:$4 sm:$0xff]  }
 0x67a   :  { %11603 = vmatpush2.bf16.msra.mxu1 %v15629_v13  ;;  %v5018_v4 = vld [vmem:[#allocation7 + $0x1a78] sm:$0xff]  ;;  %v16021_v43 = vld [vmem:[#allocation12 + $0x2a4] ss:$16 sps:$4 sm:$0xff]   ;;  %v16043_v26 = vld [vmem:[#allocation12 + $0x220] ss:$16 sps:$4 sm:$0xff]  }
 0x67b   :  { %11604 = vmatprep.subr.bf16.mxu1 %v15622_v48  ;;  %v5142_v29 = vld [vmem:[#allocation7 + $0x1e58] sm:$0xff]  ;;  %v15454_v17 = vcombine.high %v5014_v15, %v5018_v4  ;;  %v11686_v48 = vrot.slane %v17187_v21, %v16886_v61 }
 0x67c   :  { %11564 = vmatpush2.bf16.msra.mxu0 %v15493_v18  ;;  %v5146_v10 = vld [vmem:[#allocation7 + $0x1e78] sm:$0xff]  ;;  %v15453_v18 = vcombine.low %v5014_v15, %v5018_v4  ;;  %v16019_v15 = vld [vmem:[#allocation12 + $0x2a0] ss:$16 sps:$4 sm:$0xff]   ;;  %v16024_v4 = vld [vmem:[#allocation12 + $0x84] ss:$16 sps:$4 sm:$0xff]  }
 0x67d   :  { %11565 = vmatprep.subr.bf16.mxu0 %v15486_v54  ;;  %v15582_v19 = vcombine.high %v5142_v29, %v5146_v10  ;;  %v5006_v38 = vld [vmem:[#allocation7 + $0x1a18] sm:$0xff]  ;;  %v11720_v44 = vadd.f32 %v11686_v48, %v11670_v52  ;;  %v16034_v52 = vld [vmem:[#allocation12 + $0x40] ss:$16 sps:$4 sm:$0xff]  }
 0x67e   :  { %11605 = vmatpush2.bf16.msra.mxu1 %v15621_v27  ;;  %v5010_v13 = vld [vmem:[#allocation7 + $0x1a38] sm:$0xff]  ;;  %v15581_v27 = vcombine.low %v5142_v29, %v5146_v10  ;;  %v16027_v29 = vld [vmem:[#allocation12 + $0x284] ss:$16 sps:$4 sm:$0xff]   ;;  %v16022_v10 = vld [vmem:[#allocation12 + $0x80] ss:$16 sps:$4 sm:$0xff]  }
 0x67f   :  { %11606 = vmatprep.subr.bf16.mxu1 %v15614_v28  ;;  %v5134_v12 = vld [vmem:[#allocation7 + $0x1e18] sm:$0xff]  ;;  %v15446_v54 = vcombine.high %v5006_v38, %v5010_v13  ;;  %v15445_v16 = vcombine.low %v5006_v38, %v5010_v13  ;;  %v16036_v38 = vld [vmem:[#allocation12 + $0x44] ss:$16 sps:$4 sm:$0xff]   ;;  %v16037_v48 = vld [vmem:[#allocation12 + $0x240] ss:$16 sps:$4 sm:$0xff]  }
 0x680   :  { %11566 = vmatpush2.bf16.msra.mxu0 %v15485_v36  ;;  %v5138_v20 = vld [vmem:[#allocation7 + $0x1e38] sm:$0xff]  ;;  %v11728_v36 = vmax.f32 %v11720_v44, 0.0  ;;  %v16039_v13 = vld [vmem:[#allocation12 + $0x244] ss:$16 sps:$4 sm:$0xff]  }
 0x681   :  { %11567 = vmatprep.subr.bf16.mxu0 %v15478_v14  ;;  %v15574_v28 = vcombine.high %v5134_v12, %v5138_v20  ;;  %v15573_v0 = vcombine.low %v5134_v12, %v5138_v20  ;;  %v11730_v14 = vmax.f32 %v11722_v3, 0.0  ;;  %v16042_v12 = vld [vmem:[#allocation12 + $0x24] ss:$16 sps:$4 sm:$0xff]  }
 0x682   :  { %11607 = vmatpush2.bf16.msra.mxu1 %v15613_v34  ;;  %v16004_v34 = vld [vmem:[#allocation12 + $0xe0] ss:$16 sps:$4 sm:$0xff]   ;;  %v17196_v33 = vpack.c.bf16 %v11728_v36, %v11728_v36  ;;  %v16045_v20 = vld [vmem:[#allocation12 + $0x224] ss:$16 sps:$4 sm:$0xff]  }
 0x683   :  { %11608 = vmatprep.subr.bf16.mxu1 %v15606_v49  ;;  %v16007_v49 = vld [vmem:[#allocation12 + $0x2e0] ss:$16 sps:$4 sm:$0xff]   ;;  %v16054_v44 = vld [vmem:[#allocation12 + $0x1e4] ss:$16 sps:$4 sm:$0xff]  }
 0x684   :  { %11568 = vmatpush2.bf16.msra.mxu0 %v15477_v53  ;;  %v16057_v3 = vld [vmem:[#allocation12 + $0x3e4] ss:$16 sps:$4 sm:$0xff]   ;;  %v16058_v36 = vld [vmem:[#allocation12 + $0x1c0] ss:$16 sps:$4 sm:$0xff]  }
 0x685   :  { %11569 = vmatprep.subr.bf16.mxu0 %v15470_v11  ;;  %v16010_v11 = vld [vmem:[#allocation12 + $0xc0] ss:$16 sps:$4 sm:$0xff]  }
 0x686   :  { %11609 = vmatpush2.bf16.msra.mxu1 %v15605_v40  ;;  %v17199_v40 = vpack.c.bf16 %v11730_v14, %v11730_v14  ;;  %v16066_v14 = vld [vmem:[#allocation12 + $0x1a4] ss:$16 sps:$4 sm:$0xff]  }
 0x687   :  { %11610 = vmatprep.subr.bf16.mxu1 %v15598_v45 }
 0x688   :  { %11570 = vmatpush2.bf16.msra.mxu0 %v15469_v57 }
 0x689   :  { %11571 = vmatprep.subr.bf16.mxu0 %v15462_v63  ;;  %v16016_v63 = vld [vmem:[#allocation12 + $0xa0] ss:$16 sps:$4 sm:$0xff]  }
 0x68a   :  { %11611 = vmatpush2.bf16.msra.mxu1 %v15597_v58 }
 0x68b   :  { %11612 = vmatprep.subr.bf16.mxu1 %v15590_v24 }
 0x68c   :  { %11572 = vmatpush2.bf16.msra.mxu0 %v15461_v23  ;;  %v16030_v23 = vld [vmem:[#allocation12 + $0x64] ss:$16 sps:$4 sm:$0xff]  }
 0x68d   :  { %11573 = vmatprep.subr.bf16.mxu0 %v15454_v17  ;;  %v16028_v17 = vld [vmem:[#allocation12 + $0x60] ss:$16 sps:$4 sm:$0xff]  }
 0x68e   :  { %11613 = vmatpush2.bf16.msra.mxu1 %v15589_v6  ;;  %v16033_v6 = vld [vmem:[#allocation12 + $0x264] ss:$16 sps:$4 sm:$0xff]  }
 0x68f   :  { %11614 = vmatprep.subr.bf16.mxu1 %v15582_v19  ;;  %v16031_v19 = vld [vmem:[#allocation12 + $0x260] ss:$16 sps:$4 sm:$0xff]  }
 0x690   :  { %11574 = vmatpush2.bf16.msra.mxu0 %v15453_v18  ;;  %v16048_v18 = vld [vmem:[#allocation12 + $0x4] ss:$16 sps:$4 sm:$0xff]  }
 0x691   :  { %11575 = vmatprep.subr.bf16.mxu0 %v15446_v54  ;;  %v16046_v54 = vld [vmem:[#allocation12] ss:$16 sps:$4 sm:$0xff]  }
 0x692   :  { %11615 = vmatpush2.bf16.msra.mxu1 %v15581_v27  ;;  %v16051_v27 = vld [vmem:[#allocation12 + $0x204] ss:$16 sps:$4 sm:$0xff]  }
 0x693   :  { %11616 = vmatprep.subr.bf16.mxu1 %v15574_v28  ;;  %v16049_v28 = vld [vmem:[#allocation12 + $0x200] ss:$16 sps:$4 sm:$0xff]  }
 0x694   :  { %11576 = vmatpush2.bf16.msra.mxu0 %v15445_v16  ;;  %v16052_v16 = vld [vmem:[#allocation12 + $0x1e0] ss:$16 sps:$4 sm:$0xff]  }
 0x695   :  { %13279 = vmatprep.subr.bf16.mxu0 %v16006_v25  ;;  %v16060_v25 = vld [vmem:[#allocation12 + $0x1c4] ss:$16 sps:$4 sm:$0xff]  }
 0x696   :  { %11617 = vmatpush2.bf16.msra.mxu1 %v15573_v0  ;;  %v16055_v0 = vld [vmem:[#allocation12 + $0x3e0] ss:$16 sps:$4 sm:$0xff]  }
 0x697   :  { %13320 = vmatprep.subr.bf16.mxu1 %v16009_v32  ;;  %v11333_v42 = vpop.f32.mrf.mxu0  ;;  %11578 = vmatmul.mubr.bf16.vlgmr.msra.gmra.mxu0 %v17063_v55  ;;  %v16063_v32 = vld [vmem:[#allocation12 + $0x3c4] ss:$16 sps:$4 sm:$0xff]  }
 0x698   :  { %13280 = vmatpush1.bf16.msra.mxu0 %v16004_v34  ;;  %13311 = vmatprep.mubr.bf16.mxu0 %v17196_v33  ;;  %v16061_v34 = vld [vmem:[#allocation12 + $0x3c0] ss:$16 sps:$4 sm:$0xff]  }
 0x699   :  { %v11374_v53 = vpop.f32.mrf.mxu1  ;;  %11619 = vmatmul.mubr.bf16.vlgmr.msra.gmra.mxu1 %v17065_v35  ;;  %v11335_v7 = vpop.f32.mrf.mxu0  ;;  %13281 = vmatprep.subr.bf16.mxu0 %v16012_v46  ;;  %v16064_v46 = vld [vmem:[#allocation12 + $0x1a0] ss:$16 sps:$4 sm:$0xff]  }
 0x69a   :  { %v17201_v45 = vadd.f32 %v11374_v53, %v11333_v42  ;;  %13321 = vmatpush1.bf16.msra.mxu1 %v16007_v49  ;;  %13352 = vmatprep.mubr.bf16.mxu1 %v17199_v40  ;;  %v16069_v49 = vld [vmem:[#allocation12 + $0x3a4] ss:$16 sps:$4 sm:$0xff]   ;;  %v16067_v42 = vld [vmem:[#allocation12 + $0x3a0] ss:$16 sps:$4 sm:$0xff]  }
 0x69b   :  { %v11376_v55 = vpop.f32.mrf.mxu1  ;;  %v11337_v35 = vpop.f32.mrf.mxu0  ;;  %13322 = vmatprep.subr.bf16.mxu1 %v16015_v41  ;;  %v16072_v41 = vld [vmem:[#allocation12 + $0x184] ss:$16 sps:$4 sm:$0xff]  }
 0x69c   :  { %v17205_v57 = vadd.f32 %v11376_v55, %v11335_v7  ;;  %13282 = vmatpush1.bf16.msra.mxu0 %v16010_v11  ;;  %v16075_v53 = vld [vmem:[#allocation12 + $0x384] ss:$16 sps:$4 sm:$0xff]   ;;  %v16070_v11 = vld [vmem:[#allocation12 + $0x180] ss:$16 sps:$4 sm:$0xff]  }
 0x69d   :  { %v11378_v58 = vpop.f32.mrf.mxu1  ;;  %v11338_v24 = vpop.f32.mrf.mxu0  ;;  %13283 = vmatprep.subr.bf16.mxu0 %v16018_v60  ;;  %v16073_v7 = vld [vmem:[#allocation12 + $0x380] ss:$16 sps:$4 sm:$0xff]   ;;  %v16081_v60 = vld [vmem:[#allocation12 + $0x364] ss:$16 sps:$4 sm:$0xff]  }
 0x69e   :  { %13323 = vmatpush1.bf16.msra.mxu1 %v16013_v56  ;;  %v16078_v56 = vld [vmem:[#allocation12 + $0x164] ss:$16 sps:$4 sm:$0xff]   ;;  %v16076_v55 = vld [vmem:[#allocation12 + $0x160] ss:$16 sps:$4 sm:$0xff]  }
 0x69f   :  { %v11379_v30 = vpop.f32.mrf.mxu1  ;;  %13324 = vmatprep.subr.bf16.mxu1 %v16021_v43  ;;  %v11632_v43 = vrot.slane %v17181_v8, %v16918_v47  ;;  %v16079_v35 = vld [vmem:[#allocation12 + $0x360] ss:$16 sps:$4 sm:$0xff]   ;;  %v16084_v58 = vld [vmem:[#allocation12 + $0x144] ss:$16 sps:$4 sm:$0xff]  }
 0x6a0   :  { %13284 = vmatpush1.bf16.msra.mxu0 %v16016_v63  ;;  %v11640_v63 = vrot.slane %v17181_v8, %v16921_v51  ;;  %v16087_v24 = vld [vmem:[#allocation12 + $0x344] ss:$16 sps:$4 sm:$0xff]  }
 0x6a1   :  { %13285 = vmatprep.subr.bf16.mxu0 %v16024_v4  ;;  %v16082_v4 = vld [vmem:[#allocation12 + $0x140] ss:$16 sps:$4 sm:$0xff]   ;;  %v11669_v30 = vmul.f32 %v11632_v43, %v17099_v50 }
 0x6a2   :  { %13325 = vmatpush1.bf16.msra.mxu1 %v16019_v15  ;;  %v11652_v15 = vrot.slane %v17181_v8, %v16924_v62  ;;  %v16088_v50 = vld [vmem:[#allocation12 + $0x120] ss:$16 sps:$4 sm:$0xff]  }
 0x6a3   :  { %13326 = vmatprep.subr.bf16.mxu1 %v16027_v29  ;;  %v11682_v29 = vrot.slane %v17187_v21, %v16918_v47  ;;  %v16106_v43 = vld [vmem:[#allocation12 + $0x4a0] ss:$16 sps:$4 sm:$0xff]  }
 0x6a4   :  { %13286 = vmatpush1.bf16.msra.mxu0 %v16022_v10  ;;  %v16085_v10 = vld [vmem:[#allocation12 + $0x340] ss:$16 sps:$4 sm:$0xff]  }
 0x6a5   :  { %13287 = vmatprep.subr.bf16.mxu0 %v16030_v23  ;;  %v11671_v23 = vmul.f32 %v11640_v63, %v17137_v37  ;;  %v16099_v37 = vld [vmem:[#allocation12 + $0x304] ss:$16 sps:$4 sm:$0xff]  }
 0x6a6   :  { %13327 = vmatpush1.bf16.msra.mxu1 %v16025_v59  ;;  %v16090_v59 = vld [vmem:[#allocation12 + $0x124] ss:$16 sps:$4 sm:$0xff]  }
 0x6a7   :  { %13328 = vmatprep.subr.bf16.mxu1 %v16033_v6  ;;  %v11690_v6 = vrot.slane %v17187_v21, %v16921_v51 }
 0x6a8   :  { %13288 = vmatpush1.bf16.msra.mxu0 %v16028_v17  ;;  %v16093_v17 = vld [vmem:[#allocation12 + $0x324] ss:$16 sps:$4 sm:$0xff]  }
 0x6a9   :  { %13289 = vmatprep.subr.bf16.mxu0 %v16036_v38  ;;  %v11702_v38 = vrot.slane %v17187_v21, %v16924_v62  ;;  %v16162_v62 = vld [vmem:[#allocation12 + $0x6e4] ss:$16 sps:$4 sm:$0xff]  }
 0x6aa   :  { %13329 = vmatpush1.bf16.msra.mxu1 %v16031_v19  ;;  %v11674_v19 = vmul.f32 %v11652_v15, %v17179_v39  ;;  %v16097_v39 = vld [vmem:[#allocation12 + $0x300] ss:$16 sps:$4 sm:$0xff]   ;;  %v16180_v15 = vld [vmem:[#allocation12 + $0x684] ss:$16 sps:$4 sm:$0xff]  }
 0x6ab   :  { %13330 = vmatprep.subr.bf16.mxu1 %v16039_v13  ;;  %v11719_v13 = vadd.f32 %v11682_v29, %v11669_v30  ;;  %v16178_v30 = vld [vmem:[#allocation12 + $0x680] ss:$16 sps:$4 sm:$0xff]   ;;  %v16186_v29 = vld [vmem:[#allocation12 + $0x664] ss:$16 sps:$4 sm:$0xff]  }
 0x6ac   :  { %13290 = vmatpush1.bf16.msra.mxu0 %v16034_v52  ;;  %v16091_v52 = vld [vmem:[#allocation12 + $0x320] ss:$16 sps:$4 sm:$0xff]  }
 0x6ad   :  { %13291 = vmatprep.subr.bf16.mxu0 %v16042_v12  ;;  %v11721_v12 = vadd.f32 %v11690_v6, %v11671_v23  ;;  %v16184_v23 = vld [vmem:[#allocation12 + $0x660] ss:$16 sps:$4 sm:$0xff]   ;;  %v16192_v6 = vld [vmem:[#allocation12 + $0x644] ss:$16 sps:$4 sm:$0xff]  }
 0x6ae   :  { %13331 = vmatpush1.bf16.msra.mxu1 %v16037_v48  ;;  %v16096_v48 = vld [vmem:[#allocation12 + $0x104] ss:$16 sps:$4 sm:$0xff]  }
 0x6af   :  { %13332 = vmatprep.subr.bf16.mxu1 %v16045_v20  ;;  %v11724_v20 = vadd.f32 %v11702_v38, %v11674_v19  ;;  %v16120_v19 = vld [vmem:[#allocation12 + $0x424] ss:$16 sps:$4 sm:$0xff]   ;;  %v16190_v38 = vld [vmem:[#allocation12 + $0x640] ss:$16 sps:$4 sm:$0xff]  }
 0x6b0   :  { %13292 = vmatpush1.bf16.msra.mxu0 %v16040_v22  ;;  %v16094_v22 = vld [vmem:[#allocation12 + $0x100] ss:$16 sps:$4 sm:$0xff]  }
 0x6b1   :  { %13293 = vmatprep.subr.bf16.mxu0 %v16048_v18  ;;  %v16102_v18 = vld [vmem:[#allocation12 + $0x4e4] ss:$16 sps:$4 sm:$0xff]  }
 0x6b2   :  { %13333 = vmatpush1.bf16.msra.mxu1 %v16043_v26  ;;  %v11727_v26 = vmax.f32 %v11719_v13, 0.0  ;;  %v16118_v13 = vld [vmem:[#allocation12 + $0x420] ss:$16 sps:$4 sm:$0xff]  }
 0x6b3   :  { %13334 = vmatprep.subr.bf16.mxu1 %v16051_v27  ;;  %v11729_v27 = vmax.f32 %v11721_v12, 0.0  ;;  %v16204_v12 = vld [vmem:[#allocation12 + $0x604] ss:$16 sps:$4 sm:$0xff]  }
 0x6b4   :  { %13294 = vmatpush1.bf16.msra.mxu0 %v16046_v54  ;;  %v11732_v54 = vmax.f32 %v11724_v20, 0.0  ;;  %v16126_v20 = vld [vmem:[#allocation12 + $0x5e4] ss:$16 sps:$4 sm:$0xff]  }
 0x6b5   :  { %13295 = vmatprep.subr.bf16.mxu0 %v16054_v44  ;;  %v17222_v44 = vpack.c.bf16 %v11727_v26, %v11727_v26  ;;  %v16210_v26 = vld [vmem:[#allocation12 + $0x7e4] ss:$16 sps:$4 sm:$0xff]  }
 0x6b6   :  { %13335 = vmatpush1.bf16.msra.mxu1 %v16049_v28  ;;  %v16100_v28 = vld [vmem:[#allocation12 + $0x4e0] ss:$16 sps:$4 sm:$0xff]  }
 0x6b7   :  { %13336 = vmatprep.subr.bf16.mxu1 %v16057_v3  ;;  %v16105_v3 = vld [vmem:[#allocation12 + $0x4c4] ss:$16 sps:$4 sm:$0xff]  }
 0x6b8   :  { %13296 = vmatpush2.bf16.msra.mxu0 %v16052_v16  ;;  %v17224_v16 = vpack.c.bf16 %v11729_v27, %v11729_v27  ;;  %v16208_v27 = vld [vmem:[#allocation12 + $0x7e0] ss:$16 sps:$4 sm:$0xff]  }
 0x6b9   :  { %13297 = vmatprep.subr.bf16.mxu0 %v16060_v25 }
 0x6ba   :  { %13337 = vmatpush2.bf16.msra.mxu1 %v16055_v0  ;;  %v16160_v0 = vld [vmem:[#allocation12 + $0x6e0] ss:$16 sps:$4 sm:$0xff]  }
 0x6bb   :  { %13338 = vmatprep.subr.bf16.mxu1 %v16063_v32  ;;  %v17227_v32 = vpack.c.bf16 %v11732_v54, %v11732_v54  ;;  %v16127_v54 = vld [vmem:[#allocation12 + $0x5c0] ss:$16 sps:$4 sm:$0xff]  }
 0x6bc   :  { %13298 = vmatpush2.bf16.msra.mxu0 %v16058_v36  ;;  %v16168_v36 = vld [vmem:[#allocation12 + $0x6c4] ss:$16 sps:$4 sm:$0xff]  }
 0x6bd   :  { %13299 = vmatprep.subr.bf16.mxu0 %v16066_v14 }
 0x6be   :  { %13339 = vmatpush2.bf16.msra.mxu1 %v16061_v34 }
 0x6bf   :  { %13340 = vmatprep.subr.bf16.mxu1 %v16069_v49  ;;  %v16103_v49 = vld [vmem:[#allocation12 + $0x4c0] ss:$16 sps:$4 sm:$0xff]  }
 0x6c0   :  { %13300 = vmatpush2.bf16.msra.mxu0 %v16064_v46 }
 0x6c1   :  { %13301 = vmatprep.subr.bf16.mxu0 %v16072_v41 }
 0x6c2   :  { %13341 = vmatpush2.bf16.msra.mxu1 %v16067_v42  ;;  %v16108_v42 = vld [vmem:[#allocation12 + $0x4a4] ss:$16 sps:$4 sm:$0xff]  }
 0x6c3   :  { %13342 = vmatprep.subr.bf16.mxu1 %v16075_v53 }
 0x6c4   :  { %13302 = vmatpush2.bf16.msra.mxu0 %v16070_v11 }
 0x6c5   :  { %13303 = vmatprep.subr.bf16.mxu0 %v16078_v56 }
 0x6c6   :  { %13343 = vmatpush2.bf16.msra.mxu1 %v16073_v7  ;;  %v16166_v7 = vld [vmem:[#allocation12 + $0x6c0] ss:$16 sps:$4 sm:$0xff]  }
 0x6c7   :  { %13344 = vmatprep.subr.bf16.mxu1 %v16081_v60 }
 0x6c8   :  { %13304 = vmatpush2.bf16.msra.mxu0 %v16076_v55 }
 0x6c9   :  { %13305 = vmatprep.subr.bf16.mxu0 %v16084_v58  ;;  %v16111_v58 = vld [vmem:[#allocation12 + $0x484] ss:$16 sps:$4 sm:$0xff]  }
 0x6ca   :  { %13345 = vmatpush2.bf16.msra.mxu1 %v16079_v35 }
 0x6cb   :  { %13346 = vmatprep.subr.bf16.mxu1 %v16087_v24  ;;  %v16172_v24 = vld [vmem:[#allocation12 + $0x6a0] ss:$16 sps:$4 sm:$0xff]  }
 0x6cc   :  { %13306 = vmatpush2.bf16.msra.mxu0 %v16082_v4  ;;  %v16114_v4 = vld [vmem:[#allocation12 + $0x464] ss:$16 sps:$4 sm:$0xff]  }
 0x6cd   :  { %13307 = vmatprep.subr.bf16.mxu0 %v16090_v59  ;;  %v16117_v59 = vld [vmem:[#allocation12 + $0x444] ss:$16 sps:$4 sm:$0xff]  }
 0x6ce   :  { %13347 = vmatpush2.bf16.msra.mxu1 %v16085_v10  ;;  %v16112_v10 = vld [vmem:[#allocation12 + $0x460] ss:$16 sps:$4 sm:$0xff]  }
 0x6cf   :  { %13348 = vmatprep.subr.bf16.mxu1 %v16093_v17  ;;  %v16115_v17 = vld [vmem:[#allocation12 + $0x440] ss:$16 sps:$4 sm:$0xff]  }
 0x6d0   :  { %13308 = vmatpush2.bf16.msra.mxu0 %v16088_v50  ;;  %v16198_v50 = vld [vmem:[#allocation12 + $0x624] ss:$16 sps:$4 sm:$0xff]  }
 0x6d1   :  { %13309 = vmatprep.subr.bf16.mxu0 %v16096_v48  ;;  %v16196_v48 = vld [vmem:[#allocation12 + $0x620] ss:$16 sps:$4 sm:$0xff]  }
 0x6d2   :  { %13349 = vmatpush2.bf16.msra.mxu1 %v16091_v52  ;;  %v16123_v52 = vld [vmem:[#allocation12 + $0x404] ss:$16 sps:$4 sm:$0xff]  }
 0x6d3   :  { %13350 = vmatprep.subr.bf16.mxu1 %v16099_v37  ;;  %v16121_v37 = vld [vmem:[#allocation12 + $0x400] ss:$16 sps:$4 sm:$0xff]  }
 0x6d4   :  { %13310 = vmatpush2.bf16.msra.mxu0 %v16094_v22  ;;  %v16202_v22 = vld [vmem:[#allocation12 + $0x600] ss:$16 sps:$4 sm:$0xff]  }
 0x6d5   :  { %13361 = vmatprep.subr.bf16.mxu0 %v16102_v18  ;;  %v16129_v18 = vld [vmem:[#allocation12 + $0x5c4] ss:$16 sps:$4 sm:$0xff]  }
 0x6d6   :  { %13351 = vmatpush2.bf16.msra.mxu1 %v16097_v39  ;;  %v16124_v39 = vld [vmem:[#allocation12 + $0x5e0] ss:$16 sps:$4 sm:$0xff]  }
 0x6d7   :  { %13402 = vmatprep.subr.bf16.mxu1 %v16162_v62  ;;  %v11415_v25 = vpop.f32.mrf.mxu0  ;;  %13312 = vmatmul.mubr.bf16.vlgmr.msra.gmra.mxu0 %v17222_v44  ;;  %v16216_v62 = vld [vmem:[#allocation12 + $0x7c4] ss:$16 sps:$4 sm:$0xff]  }
 0x6d8   :  { %v11416_v34 = vadd.f32 %v11415_v25, %v17201_v45  ;;  %13362 = vmatpush1.bf16.msra.mxu0 %v16100_v28  ;;  %13393 = vmatprep.mubr.bf16.mxu0 %v17227_v32  ;;  %v16174_v45 = vld [vmem:[#allocation12 + $0x6a4] ss:$16 sps:$4 sm:$0xff]   ;;  %v16130_v25 = vld [vmem:[#allocation12 + $0x5a0] ss:$16 sps:$4 sm:$0xff]  }
 0x6d9   :  { %v11456_v14 = vpop.f32.mrf.mxu1  ;;  %13353 = vmatmul.mubr.bf16.vlgmr.msra.gmra.mxu1 %v17224_v16  ;;  %v11417_v46 = vpop.f32.mrf.mxu0  ;;  %13363 = vmatprep.subr.bf16.mxu0 %v16105_v3  ;;  %v16132_v28 = vld [vmem:[#allocation12 + $0x5a4] ss:$16 sps:$4 sm:$0xff]   ;;  %v16214_v3 = vld [vmem:[#allocation12 + $0x7c0] ss:$16 sps:$4 sm:$0xff]  }
 0x6da   :  { %v17232_v41 = vadd.f32 %v11456_v14, %v11416_v34  ;;  %v11418_v53 = vadd.f32 %v11417_v46, %v17205_v57  ;;  %13403 = vmatpush1.bf16.msra.mxu1 %v16160_v0  ;;  %v16109_v57 = vld [vmem:[#allocation12 + $0x480] ss:$16 sps:$4 sm:$0xff]   ;;  %v16222_v0 = vld [vmem:[#allocation12 + $0x7a4] ss:$16 sps:$4 sm:$0xff]  }
 0x6db   :  { %v11458_v11 = vpop.f32.mrf.mxu1  ;;  %v11419_v56 = vpop.f32.mrf.mxu0  ;;  %13404 = vmatprep.subr.bf16.mxu1 %v16168_v36  ;;  %v16135_v36 = vld [vmem:[#allocation12 + $0x584] ss:$16 sps:$4 sm:$0xff]   ;;  %v16220_v34 = vld [vmem:[#allocation12 + $0x7a0] ss:$16 sps:$4 sm:$0xff]  }
 0x6dc   :  { %v17235_v60 = vadd.f32 %v11458_v11, %v11418_v53  ;;  %13364 = vmatpush1.bf16.msra.mxu0 %v16103_v49  ;;  %v16228_v14 = vld [vmem:[#allocation12 + $0x784] ss:$16 sps:$4 sm:$0xff]   ;;  %v16133_v49 = vld [vmem:[#allocation12 + $0x580] ss:$16 sps:$4 sm:$0xff]  }
 0x6dd   :  { %v11460_v55 = vpop.f32.mrf.mxu1  ;;  %v11420_v35 = vpop.f32.mrf.mxu0  ;;  %13365 = vmatprep.subr.bf16.mxu0 %v16108_v42  ;;  %v16138_v46 = vld [vmem:[#allocation12 + $0x564] ss:$16 sps:$4 sm:$0xff]   ;;  %v16226_v42 = vld [vmem:[#allocation12 + $0x780] ss:$16 sps:$4 sm:$0xff]  }
 0x6de   :  { %13405 = vmatpush1.bf16.msra.mxu1 %v16166_v7  ;;  %v16234_v53 = vld [vmem:[#allocation12 + $0x764] ss:$16 sps:$4 sm:$0xff]   ;;  %v16136_v11 = vld [vmem:[#allocation12 + $0x560] ss:$16 sps:$4 sm:$0xff]   ;;  %v11648_v7 = vrot.slane %v17181_v8, %v16968_v31 }
 0x6df   :  { %v11461_v63 = vpop.f32.mrf.mxu1  ;;  %13406 = vmatprep.subr.bf16.mxu1 %v16174_v45  ;;  %v16141_v56 = vld [vmem:[#allocation12 + $0x544] ss:$16 sps:$4 sm:$0xff]   ;;  %v16232_v45 = vld [vmem:[#allocation12 + $0x760] ss:$16 sps:$4 sm:$0xff]  }
 0x6e0   :  { %13366 = vmatpush1.bf16.msra.mxu0 %v16106_v43  ;;  %v16240_v55 = vld [vmem:[#allocation12 + $0x744] ss:$16 sps:$4 sm:$0xff]   ;;  %v16139_v43 = vld [vmem:[#allocation12 + $0x540] ss:$16 sps:$4 sm:$0xff]   ;;  %v11673_v35 = vmul.f32 %v11648_v7, %v17175_v9  ;;  %v16199_v7 = vld [vmem:[#allocation12 + $0x1a8] ss:$16 sps:$4 sm:$0xff]  }
 0x6e1   :  { %13367 = vmatprep.subr.bf16.mxu0 %v16111_v58  ;;  %v11698_v58 = vrot.slane %v17187_v21, %v16968_v31  ;;  %v16144_v63 = vld [vmem:[#allocation12 + $0x524] ss:$16 sps:$4 sm:$0xff]   ;;  %v16145_v9 = vld [vmem:[#allocation12 + $0x500] ss:$16 sps:$4 sm:$0xff]   ;;  %v16150_v31 = vld [vmem:[#allocation12 + $0xec] ss:$16 sps:$4 sm:$0xff]  }
 0x6e2   :  { %13407 = vmatpush1.bf16.msra.mxu1 %v16172_v24  ;;  %v16238_v24 = vld [vmem:[#allocation12 + $0x740] ss:$16 sps:$4 sm:$0xff]  }
 0x6e3   :  { %13408 = vmatprep.subr.bf16.mxu1 %v16180_v15  ;;  %v16246_v15 = vld [vmem:[#allocation12 + $0x724] ss:$16 sps:$4 sm:$0xff]  }
 0x6e4   :  { %13368 = vmatpush1.bf16.msra.mxu0 %v16109_v57  ;;  %v16142_v57 = vld [vmem:[#allocation12 + $0x520] ss:$16 sps:$4 sm:$0xff]  }
 0x6e5   :  { %13369 = vmatprep.subr.bf16.mxu0 %v16114_v4  ;;  %v11723_v4 = vadd.f32 %v11698_v58, %v11673_v35  ;;  %v16219_v35 = vld [vmem:[#allocation12 + $0x14c] ss:$16 sps:$4 sm:$0xff]   ;;  %v16217_v58 = vld [vmem:[#allocation12 + $0x148] ss:$16 sps:$4 sm:$0xff]  }
 0x6e6   :  { %13409 = vmatpush1.bf16.msra.mxu1 %v16178_v30  ;;  %v16147_v30 = vld [vmem:[#allocation12 + $0x504] ss:$16 sps:$4 sm:$0xff]  }
 0x6e7   :  { %13410 = vmatprep.subr.bf16.mxu1 %v16186_v29  ;;  %v16244_v29 = vld [vmem:[#allocation12 + $0x720] ss:$16 sps:$4 sm:$0xff]  }
 0x6e8   :  { %13370 = vmatpush1.bf16.msra.mxu0 %v16112_v10  ;;  %v16252_v10 = vld [vmem:[#allocation12 + $0x704] ss:$16 sps:$4 sm:$0xff]  }
 0x6e9   :  { %13371 = vmatprep.subr.bf16.mxu0 %v16117_v59  ;;  %v11731_v59 = vmax.f32 %v11723_v4, 0.0  ;;  %v16237_v4 = vld [vmem:[#allocation12 + $0x4ec] ss:$16 sps:$4 sm:$0xff]  }
 0x6ea   :  { %13411 = vmatpush1.bf16.msra.mxu1 %v16184_v23  ;;  %v16250_v23 = vld [vmem:[#allocation12 + $0x700] ss:$16 sps:$4 sm:$0xff]  }
 0x6eb   :  { %13412 = vmatprep.subr.bf16.mxu1 %v16192_v6  ;;  %v16258_v6 = vld [vmem:[#allocation12 + $0x2ec] ss:$16 sps:$4 sm:$0xff]  }
 0x6ec   :  { %13372 = vmatpush1.bf16.msra.mxu0 %v16115_v17  ;;  %v16148_v17 = vld [vmem:[#allocation12 + $0xe8] ss:$16 sps:$4 sm:$0xff]  }
 0x6ed   :  { %13373 = vmatprep.subr.bf16.mxu0 %v16120_v19  ;;  %v17242_v19 = vpack.c.bf16 %v11731_v59, %v11731_v59 }
 0x6ee   :  { %13413 = vmatpush1.bf16.msra.mxu1 %v16190_v38  ;;  %v16153_v38 = vld [vmem:[#allocation12 + $0xcc] ss:$16 sps:$4 sm:$0xff]  }
 0x6ef   :  { %13414 = vmatprep.subr.bf16.mxu1 %v16198_v50 }
 0x6f0   :  { %13374 = vmatpush1.bf16.msra.mxu0 %v16118_v13 }
 0x6f1   :  { %13375 = vmatprep.subr.bf16.mxu0 %v16123_v52 }
 0x6f2   :  { %13415 = vmatpush1.bf16.msra.mxu1 %v16196_v48  ;;  %v16151_v48 = vld [vmem:[#allocation12 + $0xc8] ss:$16 sps:$4 sm:$0xff]  }
 0x6f3   :  { %13416 = vmatprep.subr.bf16.mxu1 %v16204_v12 }
 0x6f4   :  { %13376 = vmatpush1.bf16.msra.mxu0 %v16121_v37  ;;  %v16156_v37 = vld [vmem:[#allocation12 + $0xac] ss:$16 sps:$4 sm:$0xff]  }
 0x6f5   :  { %13377 = vmatprep.subr.bf16.mxu0 %v16126_v20 }
 0x6f6   :  { %13417 = vmatpush1.bf16.msra.mxu1 %v16202_v22 }
 0x6f7   :  { %13418 = vmatprep.subr.bf16.mxu1 %v16210_v26 }
 0x6f8   :  { %13378 = vmatpush2.bf16.msra.mxu0 %v16124_v39 }
 0x6f9   :  { %13379 = vmatprep.subr.bf16.mxu0 %v16129_v18  ;;  %v16154_v18 = vld [vmem:[#allocation12 + $0xa8] ss:$16 sps:$4 sm:$0xff]  }
 0x6fa   :  { %13419 = vmatpush2.bf16.msra.mxu1 %v16208_v27 }
 0x6fb   :  { %13420 = vmatprep.subr.bf16.mxu1 %v16216_v62 }
 0x6fc   :  { %13380 = vmatpush2.bf16.msra.mxu0 %v16127_v54  ;;  %v16157_v54 = vld [vmem:[#allocation12 + $0x88] ss:$16 sps:$4 sm:$0xff]  }
 0x6fd   :  { %13381 = vmatprep.subr.bf16.mxu0 %v16132_v28  ;;  %v16163_v28 = vld [vmem:[#allocation12 + $0x68] ss:$16 sps:$4 sm:$0xff]  }
 0x6fe   :  { %13421 = vmatpush2.bf16.msra.mxu1 %v16214_v3  ;;  %v16171_v3 = vld [vmem:[#allocation12 + $0x4c] ss:$16 sps:$4 sm:$0xff]  }
 0x6ff   :  { %13422 = vmatprep.subr.bf16.mxu1 %v16222_v0  ;;  %v16169_v0 = vld [vmem:[#allocation12 + $0x48] ss:$16 sps:$4 sm:$0xff]  }
 0x700   :  { %13382 = vmatpush2.bf16.msra.mxu0 %v16130_v25  ;;  %v16177_v25 = vld [vmem:[#allocation12 + $0x2c] ss:$16 sps:$4 sm:$0xff]  }
 0x701   :  { %13383 = vmatprep.subr.bf16.mxu0 %v16135_v36  ;;  %v16175_v36 = vld [vmem:[#allocation12 + $0x28] ss:$16 sps:$4 sm:$0xff]  }
 0x702   :  { %13423 = vmatpush2.bf16.msra.mxu1 %v16220_v34  ;;  %v16183_v34 = vld [vmem:[#allocation12 + $0xc] ss:$16 sps:$4 sm:$0xff]  }
 0x703   :  { %13424 = vmatprep.subr.bf16.mxu1 %v16228_v14  ;;  %v16181_v14 = vld [vmem:[#allocation12 + $0x8] ss:$16 sps:$4 sm:$0xff]  }
 0x704   :  { %13384 = vmatpush2.bf16.msra.mxu0 %v16133_v49  ;;  %v16189_v49 = vld [vmem:[#allocation12 + $0x1ec] ss:$16 sps:$4 sm:$0xff]  }
 0x705   :  { %13385 = vmatprep.subr.bf16.mxu0 %v16138_v46  ;;  %v16187_v46 = vld [vmem:[#allocation12 + $0x1e8] ss:$16 sps:$4 sm:$0xff]  }
 0x706   :  { %13425 = vmatpush2.bf16.msra.mxu1 %v16226_v42  ;;  %v16195_v42 = vld [vmem:[#allocation12 + $0x1cc] ss:$16 sps:$4 sm:$0xff]  }
 0x707   :  { %13426 = vmatprep.subr.bf16.mxu1 %v16234_v53  ;;  %v16193_v53 = vld [vmem:[#allocation12 + $0x1c8] ss:$16 sps:$4 sm:$0xff]  }
 0x708   :  { %13386 = vmatpush2.bf16.msra.mxu0 %v16136_v11  ;;  %v16201_v11 = vld [vmem:[#allocation12 + $0x1ac] ss:$16 sps:$4 sm:$0xff]  }
 0x709   :  { %13387 = vmatprep.subr.bf16.mxu0 %v16141_v56  ;;  %v16207_v56 = vld [vmem:[#allocation12 + $0x18c] ss:$16 sps:$4 sm:$0xff]  }
 0x70a   :  { %13427 = vmatpush2.bf16.msra.mxu1 %v16232_v45  ;;  %v16205_v45 = vld [vmem:[#allocation12 + $0x188] ss:$16 sps:$4 sm:$0xff]  }
 0x70b   :  { %13428 = vmatprep.subr.bf16.mxu1 %v16240_v55  ;;  %v16213_v55 = vld [vmem:[#allocation12 + $0x16c] ss:$16 sps:$4 sm:$0xff]  }
 0x70c   :  { %13388 = vmatpush2.bf16.msra.mxu0 %v16139_v43  ;;  %v16211_v43 = vld [vmem:[#allocation12 + $0x168] ss:$16 sps:$4 sm:$0xff]  }
 0x70d   :  { %13389 = vmatprep.subr.bf16.mxu0 %v16144_v63  ;;  %v16225_v63 = vld [vmem:[#allocation12 + $0x12c] ss:$16 sps:$4 sm:$0xff]  }
 0x70e   :  { %13429 = vmatpush2.bf16.msra.mxu1 %v16238_v24  ;;  %v16223_v24 = vld [vmem:[#allocation12 + $0x128] ss:$16 sps:$4 sm:$0xff]  }
 0x70f   :  { %13430 = vmatprep.subr.bf16.mxu1 %v16246_v15  ;;  %v16231_v15 = vld [vmem:[#allocation12 + $0x10c] ss:$16 sps:$4 sm:$0xff]  }
 0x710   :  { %13390 = vmatpush2.bf16.msra.mxu0 %v16142_v57  ;;  %v16229_v57 = vld [vmem:[#allocation12 + $0x108] ss:$16 sps:$4 sm:$0xff]  }
 0x711   :  { %13391 = vmatprep.subr.bf16.mxu0 %v16147_v30 }
 0x712   :  { %13431 = vmatpush2.bf16.msra.mxu1 %v16244_v29  ;;  %v16235_v29 = vld [vmem:[#allocation12 + $0x4e8] ss:$16 sps:$4 sm:$0xff]  }
 0x713   :  { %13432 = vmatprep.subr.bf16.mxu1 %v16252_v10  ;;  %v16243_v10 = vld [vmem:[#allocation12 + $0x4cc] ss:$16 sps:$4 sm:$0xff]  }
 0x714   :  { %13392 = vmatpush2.bf16.msra.mxu0 %v16145_v9 }
 0x715   :  { %13443 = vmatprep.subr.bf16.mxu0 %v16150_v31 }
 0x716   :  { %13433 = vmatpush2.bf16.msra.mxu1 %v16250_v23 }
 0x717   :  { %v11497_v50 = vpop.f32.mrf.mxu0  ;;  %13394 = vmatmul.mubr.bf16.vlgmr.msra.gmra.mxu0 %v17242_v19  ;;  %13484 = vmatprep.subr.bf16.mxu1 %v16258_v6  ;;  %v11656_v6 = vrot.slane %v17181_v8, %v16971_v1 }
 0x718   :  { %v11498_v13 = vadd.f32 %v11497_v50, %v17232_v41  ;;  %13444 = vmatpush1.bf16.msra.mxu0 %v16148_v17  ;;  %13475 = vmatprep.mubr.bf16.mxu0 %v17196_v33  ;;  %v16159_v41 = vld [vmem:[#allocation12 + $0x8c] ss:$16 sps:$4 sm:$0xff]   ;;  %v16241_v17 = vld [vmem:[#allocation12 + $0x4c8] ss:$16 sps:$4 sm:$0xff]  }
 0x719   :  { %v11538_v52 = vpop.f32.mrf.mxu1  ;;  %v17247_v12 = vpop.f32.mrf.mxu0  ;;  %13445 = vmatprep.subr.bf16.mxu0 %v16153_v38  ;;  %v16165_v33 = vld [vmem:[#allocation12 + $0x6c] ss:$16 sps:$4 sm:$0xff]  }
 0x71a   :  { %v17249_v20 = vadd.f32 %v11538_v52, %v11498_v13  ;;  %v11500_v30 = vadd.f32 %v17247_v12, %v17235_v60  ;;  %v16249_v38 = vld [vmem:[#allocation12 + $0x4ac] ss:$16 sps:$4 sm:$0xff]   ;;  %v11706_v13 = vrot.slane %v17187_v21, %v16971_v1 }
 0x71b   :  { %v17251_v22 = vpop.f32.mrf.mxu1  ;;  %v11501_v26 = vpop.f32.mrf.mxu0 }
 0x71c   :  { %13446 = vmatpush1.bf16.msra.mxu0 %v16151_v48  ;;  %v11541_v59 = vadd.f32 %v17251_v22, %v11500_v30  ;;  %v11660_v48 = vrot.slane %v17181_v8, %v16927_v5  ;;  %v11710_v22 = vrot.slane %v17187_v21, %v16927_v5  ;;  %v16247_v26 = vld [vmem:[#allocation12 + $0x4a8] ss:$16 sps:$4 sm:$0xff]   ;;  %v16261_v8 = vld [vmem:[#allocation12 + $0x46c] ss:$16 sps:$4 sm:$0xff]  }
 0x71d   :  { %v11542_v39 = vpop.f32.mrf.mxu1  ;;  %v11502_v27 = vpop.f32.mrf.mxu0  ;;  %13447 = vmatprep.subr.bf16.mxu0 %v16156_v37  ;;  %v16256_v5 = vld [vmem:[#allocation12 + $0x2e8] ss:$16 sps:$4 sm:$0xff]  }
 0x71e   :  { %v16292_v30 = vld [vmem:[#allocation12 + $0x228] ss:$16 sps:$4 sm:$0xff]  }
 0x71f   :  { %v11543_v62 = vpop.f32.mrf.mxu1 }
 0x720   :  { %13448 = vmatpush1.bf16.msra.mxu0 %v16154_v18  ;;  %v16255_v18 = vld [vmem:[#allocation12 + $0x48c] ss:$16 sps:$4 sm:$0xff]  }
 0x721   :  { %13449 = vmatprep.subr.bf16.mxu0 %v16159_v41 }
 0x724   :  { %13450 = vmatpush1.bf16.msra.mxu0 %v16157_v54  ;;  %v16253_v54 = vld [vmem:[#allocation12 + $0x488] ss:$16 sps:$4 sm:$0xff]  }
 0x725   :  { %13451 = vmatprep.subr.bf16.mxu0 %v16165_v33 }
 0x728   :  { %13452 = vmatpush1.bf16.msra.mxu0 %v16163_v28 }
 0x729   :  { %13453 = vmatprep.subr.bf16.mxu0 %v16171_v3 }
 0x72c   :  { %13454 = vmatpush1.bf16.msra.mxu0 %v16169_v0  ;;  %v16259_v0 = vld [vmem:[#allocation12 + $0x468] ss:$16 sps:$4 sm:$0xff]  }
 0x72d   :  { %13455 = vmatprep.subr.bf16.mxu0 %v16177_v25  ;;  %v16264_v25 = vld [vmem:[#allocation12 + $0x2cc] ss:$16 sps:$4 sm:$0xff]  }
 0x730   :  { %13456 = vmatpush1.bf16.msra.mxu0 %v16175_v36  ;;  %v16267_v36 = vld [vmem:[#allocation12 + $0x44c] ss:$16 sps:$4 sm:$0xff]  }
 0x731   :  { %13457 = vmatprep.subr.bf16.mxu0 %v16183_v34  ;;  %v16262_v34 = vld [vmem:[#allocation12 + $0x2c8] ss:$16 sps:$4 sm:$0xff]  }
 0x734   :  { %13458 = vmatpush1.bf16.msra.mxu0 %v16181_v14  ;;  %v16265_v14 = vld [vmem:[#allocation12 + $0x448] ss:$16 sps:$4 sm:$0xff]  }
 0x735   :  { %13459 = vmatprep.subr.bf16.mxu0 %v16189_v49  ;;  %v16270_v49 = vld [vmem:[#allocation12 + $0x2ac] ss:$16 sps:$4 sm:$0xff]  }
 0x738   :  { %13460 = vmatpush2.bf16.msra.mxu0 %v16187_v46  ;;  %v16273_v46 = vld [vmem:[#allocation12 + $0x42c] ss:$16 sps:$4 sm:$0xff]  }
 0x739   :  { %13461 = vmatprep.subr.bf16.mxu0 %v16195_v42  ;;  %v16268_v42 = vld [vmem:[#allocation12 + $0x2a8] ss:$16 sps:$4 sm:$0xff]  }
 0x73c   :  { %13462 = vmatpush2.bf16.msra.mxu0 %v16193_v53  ;;  %v16271_v53 = vld [vmem:[#allocation12 + $0x428] ss:$16 sps:$4 sm:$0xff]  }
 0x73d   :  { %13463 = vmatprep.subr.bf16.mxu0 %v16201_v11  ;;  %v16276_v11 = vld [vmem:[#allocation12 + $0x28c] ss:$16 sps:$4 sm:$0xff]  }
 0x740   :  { %13464 = vmatpush2.bf16.msra.mxu0 %v16199_v7  ;;  %v16279_v7 = vld [vmem:[#allocation12 + $0x40c] ss:$16 sps:$4 sm:$0xff]  }
 0x741   :  { %13465 = vmatprep.subr.bf16.mxu0 %v16207_v56  ;;  %v16274_v56 = vld [vmem:[#allocation12 + $0x288] ss:$16 sps:$4 sm:$0xff]  }
 0x744   :  { %13466 = vmatpush2.bf16.msra.mxu0 %v16205_v45  ;;  %v16282_v45 = vld [vmem:[#allocation12 + $0x26c] ss:$16 sps:$4 sm:$0xff]  }
 0x745   :  { %13467 = vmatprep.subr.bf16.mxu0 %v16213_v55  ;;  %v16285_v55 = vld [vmem:[#allocation12 + $0x5ec] ss:$16 sps:$4 sm:$0xff]  }
 0x748   :  { %13468 = vmatpush2.bf16.msra.mxu0 %v16211_v43  ;;  %v16280_v43 = vld [vmem:[#allocation12 + $0x268] ss:$16 sps:$4 sm:$0xff]  }
 0x749   :  { %13469 = vmatprep.subr.bf16.mxu0 %v16219_v35  ;;  %v16283_v35 = vld [vmem:[#allocation12 + $0x5e8] ss:$16 sps:$4 sm:$0xff]  }
 0x74c   :  { %13470 = vmatpush2.bf16.msra.mxu0 %v16217_v58  ;;  %v16288_v58 = vld [vmem:[#allocation12 + $0x24c] ss:$16 sps:$4 sm:$0xff]  }
 0x74d   :  { %13471 = vmatprep.subr.bf16.mxu0 %v16225_v63  ;;  %v16291_v63 = vld [vmem:[#allocation12 + $0x5cc] ss:$16 sps:$4 sm:$0xff]  }
 0x750   :  { %13472 = vmatpush2.bf16.msra.mxu0 %v16223_v24  ;;  %v16286_v24 = vld [vmem:[#allocation12 + $0x248] ss:$16 sps:$4 sm:$0xff]  }
 0x751   :  { %13473 = vmatprep.subr.bf16.mxu0 %v16231_v15  ;;  %v16289_v15 = vld [vmem:[#allocation12 + $0x5c8] ss:$16 sps:$4 sm:$0xff]  }
 0x754   :  { %13474 = vmatpush2.bf16.msra.mxu0 %v16229_v57  ;;  %v16294_v57 = vld [vmem:[#allocation12 + $0x22c] ss:$16 sps:$4 sm:$0xff]  }
 0x755   :  { %13525 = vmatprep.subr.bf16.mxu0 %v16237_v4  ;;  %v16297_v4 = vld [vmem:[#allocation12 + $0x5ac] ss:$16 sps:$4 sm:$0xff]  }
 0x757   :  { %v11579_v9 = vpop.f32.mrf.mxu0  ;;  %13476 = vmatmul.mubr.bf16.vlgmr.msra.gmra.mxu0 %v17222_v44 }
 0x758   :  { %v11580_v31 = vadd.f32 %v11579_v9, %v17249_v20  ;;  %13526 = vmatpush1.bf16.msra.mxu0 %v16235_v29  ;;  %13557 = vmatprep.mubr.bf16.mxu0 %v17227_v32  ;;  %v16295_v29 = vld [vmem:[#allocation12 + $0x5a8] ss:$16 sps:$4 sm:$0xff]   ;;  %v16303_v9 = vld [vmem:[#allocation12 + $0x58c] ss:$16 sps:$4 sm:$0xff]  }
 0x759   :  { %v11620_v23 = vpop.f32.mrf.mxu1  ;;  %v11581_v60 = vpop.f32.mrf.mxu0  ;;  %13527 = vmatprep.subr.bf16.mxu0 %v16243_v10  ;;  %v16300_v10 = vld [vmem:[#allocation12 + $0x20c] ss:$16 sps:$4 sm:$0xff]  }
 0x75a   :  { %v11621_v50 = vadd.f32 %v11620_v23, %v11580_v31  ;;  %v11582_v44 = vadd.f32 %v11581_v60, %v11541_v59  ;;  %v16298_v59 = vld [vmem:[#allocation12 + $0x208] ss:$16 sps:$4 sm:$0xff]   ;;  %v16306_v23 = vld [vmem:[#allocation12 + $0x3ec] ss:$16 sps:$4 sm:$0xff]  }
 0x75b   :  { %v11622_v52 = vpop.f32.mrf.mxu1  ;;  %v11583_v12 = vpop.f32.mrf.mxu0  ;;  %v16301_v31 = vld [vmem:[#allocation12 + $0x588] ss:$16 sps:$4 sm:$0xff]  }
 0x75c   :  { %v11675_v37 = vmul.f32 %v11656_v6, %v11621_v50  ;;  %v11623_v20 = vadd.f32 %v11622_v52, %v11582_v44  ;;  %13528 = vmatpush1.bf16.msra.mxu0 %v16241_v17  ;;  %v16309_v6 = vld [vmem:[#allocation12 + $0x56c] ss:$16 sps:$4 sm:$0xff]   ;;  %v16304_v17 = vld [vmem:[#allocation12 + $0x3e8] ss:$16 sps:$4 sm:$0xff]  }
 0x75d   :  { %v11624_v32 = vpop.f32.mrf.mxu1  ;;  %v11584_v39 = vpop.f32.mrf.mxu0  ;;  %13529 = vmatprep.subr.bf16.mxu0 %v16249_v38  ;;  %v16307_v60 = vld [vmem:[#allocation12 + $0x568] ss:$16 sps:$4 sm:$0xff]   ;;  %v16312_v38 = vld [vmem:[#allocation12 + $0x3cc] ss:$16 sps:$4 sm:$0xff]  }
 0x75e   :  { %v11725_v27 = vadd.f32 %v11706_v13, %v11675_v37  ;;  %v11676_v41 = vmul.f32 %v11660_v48, %v11623_v20  ;;  %v16315_v50 = vld [vmem:[#allocation12 + $0x54c] ss:$16 sps:$4 sm:$0xff]   ;;  %v16310_v13 = vld [vmem:[#allocation12 + $0x3c8] ss:$16 sps:$4 sm:$0xff]  }
 0x75f   :  { %v11625_v1 = vpop.f32.mrf.mxu1  ;;  %v16313_v44 = vld [vmem:[#allocation12 + $0x548] ss:$16 sps:$4 sm:$0xff]   ;;  %v16318_v52 = vld [vmem:[#allocation12 + $0x3ac] ss:$16 sps:$4 sm:$0xff]  }
 0x760   :  { %v11726_v62 = vadd.f32 %v11710_v22, %v11676_v41  ;;  %13530 = vmatpush1.bf16.msra.mxu0 %v16247_v26  ;;  %v11733_v33 = vmax.f32 %v11725_v27, 0.0  ;;  %v16321_v48 = vld [vmem:[#allocation12 + $0x52c] ss:$16 sps:$4 sm:$0xff]   ;;  %v16316_v12 = vld [vmem:[#allocation12 + $0x3a8] ss:$16 sps:$4 sm:$0xff]  }
 0x761   :  { %13531 = vmatprep.subr.bf16.mxu0 %v16255_v18  ;;  %v16319_v37 = vld [vmem:[#allocation12 + $0x528] ss:$16 sps:$4 sm:$0xff]   ;;  %v16324_v20 = vld [vmem:[#allocation12 + $0x38c] ss:$16 sps:$4 sm:$0xff]  }
 0x762   :  { %v11734_v28 = vmax.f32 %v11726_v62, 0.0  ;;  %v17269_v21 = vpack.c.bf16 %v11733_v33, %v11733_v33  ;;  %v16327_v22 = vld [vmem:[#allocation12 + $0x50c] ss:$16 sps:$4 sm:$0xff]   ;;  %v16322_v32 = vld [vmem:[#allocation12 + $0x388] ss:$16 sps:$4 sm:$0xff]  }
 0x763   :  { %v16325_v26 = vld [vmem:[#allocation12 + $0x508] ss:$16 sps:$4 sm:$0xff]   ;;  %v16330_v39 = vld [vmem:[#allocation12 + $0x36c] ss:$16 sps:$4 sm:$0xff]  }
 0x764   :  { %13532 = vmatpush1.bf16.msra.mxu0 %v16253_v54  ;;  %v17267_v3 = vpack.c.bf16 %v11734_v28, %v11734_v28  ;;  %v16388_v18 = vld [vmem:[%s17401_s10 + $0x78] sm:$0xff]  }
 0x765   :  { %13533 = vmatprep.subr.bf16.mxu0 %v16261_v8  ;;  %v16328_v27 = vld [vmem:[#allocation12 + $0x368] ss:$16 sps:$4 sm:$0xff]   ;;  %v16333_v41 = vld [vmem:[#allocation12 + $0x34c] ss:$16 sps:$4 sm:$0xff]  }
 0x766   :  { %13434 = vmatprep.mubr.bf16.mxu1 %v17267_v3  ;;  %v16389_v1 = vld [vmem:[%s17401_s10 + $0x38] sm:$0xff]  }
 0x767   :  { %13435 = vmatmul.mubr.bf16.vlgmr.msra.gmra.mxu1 %v17269_v21  ;;  %v16331_v33 = vld [vmem:[#allocation12 + $0x348] ss:$16 sps:$4 sm:$0xff]  }
 0x768   :  { %13485 = vmatpush1.bf16.msra.mxu1 %v16256_v5  ;;  %13516 = vmatprep.mubr.bf16.mxu1 %v17199_v40  ;;  %v16277_v40 = vld [vmem:[#allocation12 + $0x408] ss:$16 sps:$4 sm:$0xff]   ;;  %v16336_v5 = vld [vmem:[#allocation12 + $0x32c] ss:$16 sps:$4 sm:$0xff]  }
 0x769   :  { %13534 = vmatpush1.bf16.msra.mxu0 %v16259_v0  ;;  %13486 = vmatprep.subr.bf16.mxu1 %v16264_v25  ;;  %v16390_v0 = vld [vmem:[%s17401_s10 + $0x70] sm:$0xff]  }
 0x76a   :  { %13535 = vmatprep.subr.bf16.mxu0 %v16267_v36  ;;  %v16391_v25 = vld [vmem:[%s17401_s10 + $0x30] sm:$0xff]  }
 0x76c   :  { %13487 = vmatpush1.bf16.msra.mxu1 %v16262_v34 }
 0x76d   :  { %13536 = vmatpush1.bf16.msra.mxu0 %v16265_v14  ;;  %13488 = vmatprep.subr.bf16.mxu1 %v16270_v49  ;;  %v16334_v49 = vld [vmem:[#allocation12 + $0x328] ss:$16 sps:$4 sm:$0xff]  }
 0x76e   :  { %13537 = vmatprep.subr.bf16.mxu0 %v16273_v46 }
 0x770   :  { %13489 = vmatpush1.bf16.msra.mxu1 %v16268_v42  ;;  %v16339_v42 = vld [vmem:[#allocation12 + $0x30c] ss:$16 sps:$4 sm:$0xff]  }
 0x771   :  { %13538 = vmatpush1.bf16.msra.mxu0 %v16271_v53  ;;  %13490 = vmatprep.subr.bf16.mxu1 %v16276_v11  ;;  %v16392_v53 = vld [vmem:[%s17401_s10 + $0x68] sm:$0xff]  }
 0x772   :  { %13539 = vmatprep.subr.bf16.mxu0 %v16279_v7  ;;  %v16393_v11 = vld [vmem:[%s17401_s10 + $0x28] sm:$0xff]  }
 0x774   :  { %13491 = vmatpush1.bf16.msra.mxu1 %v16274_v56  ;;  %v16394_v56 = vld [vmem:[%s17401_s10 + $0x60] sm:$0xff]  }
 0x775   :  { %13540 = vmatpush1.bf16.msra.mxu0 %v16277_v40  ;;  %13492 = vmatprep.subr.bf16.mxu1 %v16282_v45  ;;  %v16337_v40 = vld [vmem:[#allocation12 + $0x308] ss:$16 sps:$4 sm:$0xff]   ;;  %v16342_v45 = vld [vmem:[#allocation12 + $0x6ec] ss:$16 sps:$4 sm:$0xff]  }
 0x776   :  { %13541 = vmatprep.subr.bf16.mxu0 %v16285_v55  ;;  %v16395_v55 = vld [vmem:[%s17401_s10 + $0x20] sm:$0xff]  }
 0x778   :  { %13493 = vmatpush1.bf16.msra.mxu1 %v16280_v43  ;;  %v16396_v43 = vld [vmem:[%s17401_s10 + $0x58] sm:$0xff]  }
 0x779   :  { %13542 = vmatpush2.bf16.msra.mxu0 %v16283_v35  ;;  %13494 = vmatprep.subr.bf16.mxu1 %v16288_v58  ;;  %v16340_v35 = vld [vmem:[#allocation12 + $0x6e8] ss:$16 sps:$4 sm:$0xff]   ;;  %v16345_v58 = vld [vmem:[#allocation12 + $0x6cc] ss:$16 sps:$4 sm:$0xff]  }
 0x77a   :  { %13543 = vmatprep.subr.bf16.mxu0 %v16291_v63  ;;  %v16397_v63 = vld [vmem:[%s17401_s10 + $0x18] sm:$0xff]  }
 0x77c   :  { %13495 = vmatpush1.bf16.msra.mxu1 %v16286_v24  ;;  %v16343_v24 = vld [vmem:[#allocation12 + $0x6c8] ss:$16 sps:$4 sm:$0xff]  }
 0x77d   :  { %13544 = vmatpush2.bf16.msra.mxu0 %v16289_v15  ;;  %13496 = vmatprep.subr.bf16.mxu1 %v16294_v57  ;;  %v16348_v15 = vld [vmem:[#allocation12 + $0x6ac] ss:$16 sps:$4 sm:$0xff]   ;;  %v16398_v57 = vld [vmem:[%s17401_s10 + $0x50] sm:$0xff]  }
 0x77e   :  { %13545 = vmatprep.subr.bf16.mxu0 %v16297_v4  ;;  %v16399_v4 = vld [vmem:[%s17401_s10 + $0x10] sm:$0xff]  }
 0x780   :  { %13497 = vmatpush1.bf16.msra.mxu1 %v16292_v30  ;;  %v16346_v30 = vld [vmem:[#allocation12 + $0x6a8] ss:$16 sps:$4 sm:$0xff]  }
 0x781   :  { %13546 = vmatpush2.bf16.msra.mxu0 %v16295_v29  ;;  %13498 = vmatprep.subr.bf16.mxu1 %v16300_v10  ;;  %v16401_v29 = vld [vmem:[%s17401_s10 + $0x8] sm:$0xff]  }
 0x782   :  { %13547 = vmatprep.subr.bf16.mxu0 %v16303_v9  ;;  %v16349_v10 = vld [vmem:[#allocation12 + $0x688] ss:$16 sps:$4 sm:$0xff]   ;;  %v16402_v9 = vld [vmem:[%s17401_s10 + $0x40] sm:$0xff]  }
 0x784   :  { %13499 = vmatpush1.bf16.msra.mxu1 %v16298_v59  ;;  %v16354_v59 = vld [vmem:[#allocation12 + $0x66c] ss:$16 sps:$4 sm:$0xff]  }
 0x785   :  { %13548 = vmatpush2.bf16.msra.mxu0 %v16301_v31  ;;  %13500 = vmatprep.subr.bf16.mxu1 %v16306_v23  ;;  %v16403_v31 = vld [vmem:[%s17401_s10] sm:$0xff]   ;;  %v16352_v23 = vld [vmem:[#allocation12 + $0x668] ss:$16 sps:$4 sm:$0xff]  }
 0x786   :  { %13549 = vmatprep.subr.bf16.mxu0 %v16309_v6  ;;  %v16357_v6 = vld [vmem:[#allocation12 + $0x64c] ss:$16 sps:$4 sm:$0xff]  }
 0x788   :  { %13501 = vmatpush2.bf16.msra.mxu1 %v16304_v17  ;;  %v16355_v17 = vld [vmem:[#allocation12 + $0x648] ss:$16 sps:$4 sm:$0xff]  }
 0x789   :  { %13550 = vmatpush2.bf16.msra.mxu0 %v16307_v60  ;;  %13502 = vmatprep.subr.bf16.mxu1 %v16312_v38  ;;  %v16360_v60 = vld [vmem:[#allocation12 + $0x62c] ss:$16 sps:$4 sm:$0xff]   ;;  %v16358_v38 = vld [vmem:[#allocation12 + $0x628] ss:$16 sps:$4 sm:$0xff]  }
 0x78a   :  { %13551 = vmatprep.subr.bf16.mxu0 %v16315_v50  ;;  %v16363_v50 = vld [vmem:[#allocation12 + $0x60c] ss:$16 sps:$4 sm:$0xff]  }
 0x78c   :  { %13503 = vmatpush2.bf16.msra.mxu1 %v16310_v13  ;;  %v16361_v13 = vld [vmem:[#allocation12 + $0x608] ss:$16 sps:$4 sm:$0xff]  }
 0x78d   :  { %13552 = vmatpush2.bf16.msra.mxu0 %v16313_v44  ;;  %13504 = vmatprep.subr.bf16.mxu1 %v16318_v52  ;;  %v16366_v44 = vld [vmem:[#allocation12 + $0x7ec] ss:$16 sps:$4 sm:$0xff]   ;;  %v16364_v52 = vld [vmem:[#allocation12 + $0x7e8] ss:$16 sps:$4 sm:$0xff]  }
 0x78e   :  { %13553 = vmatprep.subr.bf16.mxu0 %v16321_v48  ;;  %v16369_v48 = vld [vmem:[#allocation12 + $0x7cc] ss:$16 sps:$4 sm:$0xff]  }
 0x790   :  { %13505 = vmatpush2.bf16.msra.mxu1 %v16316_v12  ;;  %v16367_v12 = vld [vmem:[#allocation12 + $0x7c8] ss:$16 sps:$4 sm:$0xff]  }
 0x791   :  { %13554 = vmatpush2.bf16.msra.mxu0 %v16319_v37  ;;  %13506 = vmatprep.subr.bf16.mxu1 %v16324_v20  ;;  %v16372_v37 = vld [vmem:[#allocation12 + $0x7ac] ss:$16 sps:$4 sm:$0xff]   ;;  %v16370_v20 = vld [vmem:[#allocation12 + $0x7a8] ss:$16 sps:$4 sm:$0xff]  }
 0x792   :  { %13555 = vmatprep.subr.bf16.mxu0 %v16327_v22  ;;  %v16375_v22 = vld [vmem:[#allocation12 + $0x78c] ss:$16 sps:$4 sm:$0xff]  }
 0x794   :  { %13507 = vmatpush2.bf16.msra.mxu1 %v16322_v32  ;;  %v16373_v32 = vld [vmem:[#allocation12 + $0x788] ss:$16 sps:$4 sm:$0xff]  }
 0x795   :  { %13556 = vmatpush2.bf16.msra.mxu0 %v16325_v26  ;;  %13508 = vmatprep.subr.bf16.mxu1 %v16330_v39  ;;  %v16378_v26 = vld [vmem:[#allocation12 + $0x76c] ss:$16 sps:$4 sm:$0xff]   ;;  %v16376_v39 = vld [vmem:[#allocation12 + $0x768] ss:$16 sps:$4 sm:$0xff]  }
 0x796   :  { %15924 = vmatprep.subr.bf16.mxu0 %v16388_v18  ;;  %v16381_v18 = vld [vmem:[#allocation12 + $0x74c] ss:$16 sps:$4 sm:$0xff]  }
 0x797   :  { %v13313_v62 = vpop.f32.mrf.mxu0 }
 0x798   :  { %13509 = vmatpush2.bf16.msra.mxu1 %v16328_v27  ;;  %13558 = vmatmul.mubr.bf16.vlgmr.msra.gmra.mxu0 %v17242_v19 }
 0x799   :  { %v13354_v54 = vpop.f32.mrf.mxu1  ;;  %v13315_v28 = vpop.f32.mrf.mxu0  ;;  %13510 = vmatprep.subr.bf16.mxu1 %v16333_v41  ;;  %15925 = vmatpush3.bf16.msra.mxu0 %v16389_v1  ;;  %v16379_v1 = vld [vmem:[#allocation12 + $0x748] ss:$16 sps:$4 sm:$0xff]  }
 0x79a   :  { %v17281_v8 = vadd.f32 %v13354_v54, %v13313_v62  ;;  %15926 = vmatprep.subr.bf16.mxu0 %v16390_v0  ;;  %v16384_v54 = vld [vmem:[#allocation12 + $0x72c] ss:$16 sps:$4 sm:$0xff]  }
 0x79b   :  { %v13356_v36 = vpop.f32.mrf.mxu1  ;;  %v13317_v14 = vpop.f32.mrf.mxu0 }
 0x79c   :  { %v17289_v34 = vadd.f32 %v13356_v36, %v13315_v28  ;;  %13511 = vmatpush2.bf16.msra.mxu1 %v16331_v33  ;;  %v16385_v36 = vld [vmem:[#allocation12 + $0x708] ss:$16 sps:$4 sm:$0xff]   ;;  %v16406_v14 = vld [vmem:[%s17401_s10 + $0xf0] sm:$0xff]  }
 0x79d   :  { %v13358_v19 = vpop.f32.mrf.mxu1  ;;  %v13318_v46 = vpop.f32.mrf.mxu0  ;;  %13512 = vmatprep.subr.bf16.mxu1 %v16336_v5  ;;  %15927 = vmatpush3.bf16.msra.mxu0 %v16391_v25  ;;  %v16382_v5 = vld [vmem:[#allocation12 + $0x728] ss:$16 sps:$4 sm:$0xff]   ;;  %v16387_v25 = vld [vmem:[#allocation12 + $0x70c] ss:$16 sps:$4 sm:$0xff]  }
 0x79e   :  { %15928 = vmatprep.subr.bf16.mxu0 %v16392_v53  ;;  %v16407_v19 = vld [vmem:[%s17401_s10 + $0xb0] sm:$0xff]   ;;  %v16410_v46 = vld [vmem:[%s17401_s10 + $0xe0] sm:$0xff]   ;;  %v16412_v53 = vld [vmem:[%s17401_s10 + $0xd8] sm:$0xff]  }
 0x79f   :  { %v13359_v7 = vpop.f32.mrf.mxu1 }
 0x7a0   :  { %13513 = vmatpush2.bf16.msra.mxu1 %v16334_v49  ;;  %v16409_v49 = vld [vmem:[%s17401_s10 + $0xa8] sm:$0xff]  }
 0x7a1   :  { %13514 = vmatprep.subr.bf16.mxu1 %v16339_v42  ;;  %15929 = vmatpush3.bf16.msra.mxu0 %v16393_v11  ;;  %v16411_v42 = vld [vmem:[%s17401_s10 + $0xa0] sm:$0xff]   ;;  %v16413_v11 = vld [vmem:[%s17401_s10 + $0x98] sm:$0xff]  }
 0x7a2   :  { %15930 = vmatprep.subr.bf16.mxu0 %v16394_v56 }
 0x7a4   :  { %13515 = vmatpush2.bf16.msra.mxu1 %v16337_v40 }
 0x7a5   :  { %13566 = vmatprep.subr.bf16.mxu1 %v16342_v45  ;;  %15931 = vmatpush3.bf16.msra.mxu0 %v16395_v55  ;;  %v13607_v55 = vld [vmem:[#allocation13] sm:$0xf] }
 0x7a6   :  { %15932 = vmatprep.subr.bf16.mxu0 %v16396_v43  ;;  %v13633_v43 = vld [vmem:[#allocation15] sm:$0xf] }
 0x7a7   :  { %13517 = vmatmul.mubr.bf16.vlgmr.msra.gmra.mxu1 %v17224_v16  ;;  %v16351_v16 = vld [vmem:[#allocation12 + $0x68c] ss:$16 sps:$4 sm:$0xff]  }
 0x7a8   :  { %13567 = vmatpush1.bf16.msra.mxu1 %v16340_v35  ;;  %13598 = vmatprep.mubr.bf16.mxu1 %v17267_v3  ;;  %v16400_v3 = vld [vmem:[%s17401_s10 + $0x48] sm:$0xff]   ;;  %v13612_v35 = vrot.slane %v13607_v55, %v16918_v47 }
 0x7a9   :  { %13568 = vmatprep.subr.bf16.mxu1 %v16345_v58  ;;  %15933 = vmatpush3.bf16.msra.mxu0 %v16397_v63 }
 0x7aa   :  { %15934 = vmatprep.subr.bf16.mxu0 %v16398_v57  ;;  %v16414_v57 = vld [vmem:[%s17401_s10 + $0xd0] sm:$0xff]  }
 0x7ac   :  { %13569 = vmatpush1.bf16.msra.mxu1 %v16343_v24  ;;  %v13638_v24 = vrot.slane %v13633_v43, %v16918_v47 }
 0x7ad   :  { %13570 = vmatprep.subr.bf16.mxu1 %v16348_v15  ;;  %15935 = vmatpush3.bf16.msra.mxu0 %v16399_v4  ;;  %v13616_v15 = vrot.slane %v13607_v55, %v16886_v61 }
 0x7ae   :  { %15936 = vmatprep.subr.bf16.mxu0 %v16400_v3 }
 0x7b0   :  { %13571 = vmatpush1.bf16.msra.mxu1 %v16346_v30  ;;  %v16415_v30 = vld [vmem:[%s17401_s10 + $0x90] sm:$0xff]  }
 0x7b1   :  { %13572 = vmatprep.subr.bf16.mxu1 %v16351_v16  ;;  %15937 = vmatpush3.bf16.msra.mxu0 %v16401_v29  ;;  %v13642_v29 = vrot.slane %v13633_v43, %v16886_v61  ;;  %v16418_v61 = vld [vmem:[%s17401_s10 + $0xc0] sm:$0xff]  }
 0x7b2   :  { %15938 = vmatprep.subr.bf16.mxu0 %v16402_v9 }
 0x7b4   :  { %13573 = vmatpush1.bf16.msra.mxu1 %v16349_v10 }
 0x7b5   :  { %13574 = vmatprep.subr.bf16.mxu1 %v16354_v59  ;;  %15939 = vmatpush3.bf16.msra.mxu0 %v16403_v31  ;;  %v16416_v59 = vld [vmem:[%s17401_s10 + $0xc8] sm:$0xff]  }
 0x7b8   :  { %13575 = vmatpush1.bf16.msra.mxu1 %v16352_v23  ;;  %v16417_v23 = vld [vmem:[%s17401_s10 + $0x88] sm:$0xff]  }
 0x7b9   :  { %13576 = vmatprep.subr.bf16.mxu1 %v16357_v6 }
 0x7bc   :  { %13577 = vmatpush1.bf16.msra.mxu1 %v16355_v17 }
 0x7bd   :  { %13578 = vmatprep.subr.bf16.mxu1 %v16360_v60 }
 0x7c0   :  { %13579 = vmatpush1.bf16.msra.mxu1 %v16358_v38  ;;  %v16419_v38 = vld [vmem:[%s17401_s10 + $0x80] sm:$0xff]  }
 0x7c1   :  { %13580 = vmatprep.subr.bf16.mxu1 %v16363_v50 }
 0x7c4   :  { %13581 = vmatpush1.bf16.msra.mxu1 %v16361_v13 }
 0x7c5   :  { %13582 = vmatprep.subr.bf16.mxu1 %v16366_v44 }
 0x7c8   :  { %13583 = vmatpush2.bf16.msra.mxu1 %v16364_v52 }
 0x7c9   :  { %13584 = vmatprep.subr.bf16.mxu1 %v16369_v48 }
 0x7cc   :  { %13585 = vmatpush2.bf16.msra.mxu1 %v16367_v12 }
 0x7cd   :  { %13586 = vmatprep.subr.bf16.mxu1 %v16372_v37 }
 0x7d0   :  { %13587 = vmatpush2.bf16.msra.mxu1 %v16370_v20 }
 0x7d1   :  { %13588 = vmatprep.subr.bf16.mxu1 %v16375_v22 }
 0x7d4   :  { %13589 = vmatpush2.bf16.msra.mxu1 %v16373_v32 }
 0x7d5   :  { %13590 = vmatprep.subr.bf16.mxu1 %v16378_v26 }
 0x7d7   :  { %v13395_v27 = vpop.f32.mrf.mxu0 }
 0x7d8   :  { %v13396_v41 = vadd.f32 %v13395_v27, %v17281_v8  ;;  %13591 = vmatpush2.bf16.msra.mxu1 %v16376_v39  ;;  %v16404_v8 = vld [vmem:[%s17401_s10 + $0xf8] sm:$0xff]   ;;  %v13620_v27 = vrot.slane %v13607_v55, %v16921_v51 }
 0x7d9   :  { %v13397_v62 = vpop.f32.mrf.mxu0  ;;  %13592 = vmatprep.subr.bf16.mxu1 %v16381_v18 }
 0x7da   :  { %v13398_v33 = vadd.f32 %v13397_v62, %v17289_v34  ;;  %v16405_v34 = vld [vmem:[%s17401_s10 + $0xb8] sm:$0xff]   ;;  %v13646_v62 = vrot.slane %v13633_v43, %v16921_v51 }
 0x7db   :  { %v13399_v28 = vpop.f32.mrf.mxu0 }
 0x7dc   :  { %13593 = vmatpush2.bf16.msra.mxu1 %v16379_v1 }
 0x7dd   :  { %v13400_v0 = vpop.f32.mrf.mxu0  ;;  %13594 = vmatprep.subr.bf16.mxu1 %v16384_v54 }
 0x7e0   :  { %13595 = vmatpush2.bf16.msra.mxu1 %v16382_v5 }
 0x7e1   :  { %13596 = vmatprep.subr.bf16.mxu1 %v16387_v25  ;;  %v13650_v25 = vrot.slane %v13633_v43, %v16891_v2 }
 0x7e4   :  { %13597 = vmatpush2.bf16.msra.mxu1 %v16385_v36 }
 0x7e5   :  { %15946 = vmatprep.subr.bf16.mxu1 %v16404_v8 }
 0x7e7   :  { %13599 = vmatmul.mubr.bf16.vlgmr.msra.gmra.mxu1 %v17269_v21  ;;  %v16408_v21 = vld [vmem:[%s17401_s10 + $0xe8] sm:$0xff]  }
 0x7e8   :  { %15947 = vmatpush3.bf16.msra.mxu1 %v16405_v34 }
 0x7e9   :  { %15948 = vmatprep.subr.bf16.mxu1 %v16406_v14 }
 0x7ec   :  { %15949 = vmatpush3.bf16.msra.mxu1 %v16407_v19 }
 0x7ed   :  { %15950 = vmatprep.subr.bf16.mxu1 %v16408_v21 }
 0x7f0   :  { %15951 = vmatpush3.bf16.msra.mxu1 %v16409_v49 }
 0x7f1   :  { %15952 = vmatprep.subr.bf16.mxu1 %v16410_v46 }
 0x7f4   :  { %15953 = vmatpush3.bf16.msra.mxu1 %v16411_v42 }
 0x7f5   :  { %15954 = vmatprep.subr.bf16.mxu1 %v16412_v53 }
 0x7f8   :  { %15955 = vmatpush3.bf16.msra.mxu1 %v16413_v11 }
 0x7f9   :  { %15956 = vmatprep.subr.bf16.mxu1 %v16414_v57 }
 0x7fc   :  { %15957 = vmatpush3.bf16.msra.mxu1 %v16415_v30 }
 0x7fd   :  { %15958 = vmatprep.subr.bf16.mxu1 %v16416_v59 }
 0x800   :  { %15959 = vmatpush3.bf16.msra.mxu1 %v16417_v23 }
 0x801   :  { %15960 = vmatprep.subr.bf16.mxu1 %v16418_v61 }
 0x804   :  { %15961 = vmatpush3.bf16.msra.mxu1 %v16419_v38 }
 0x817   :  { %v13477_v7 = vpop.f32.mrf.mxu0 }
 0x819   :  { %v13479_v56 = vpop.f32.mrf.mxu0 }
 0x81b   :  { %v13481_v40 = vpop.f32.mrf.mxu0 }
 0x81c   :  { %v16695_v40 = vmov 0.0  }
 0x81d   :  { %v13482_v45 = vpop.f32.mrf.mxu0  ;;  %15971 = vmatprep.subr.bf16.mxu0 %v16695_v40 }
 0x81e   :  { %v16421_v45 = vld [vmem:[#allocation18] sm:$0xff]  }
 0x827   :  { %v13436_v58 = vpop.f32.mrf.mxu1 }
 0x828   :  { %v13437_v63 = vadd.f32 %v13436_v58, %v13396_v41 }
 0x829   :  { %v13438_v4 = vpop.f32.mrf.mxu1 }
 0x82a   :  { %v13629_v16 = vmul.f32 %v13612_v35, %v13437_v63  ;;  %v13439_v3 = vadd.f32 %v13438_v4, %v13398_v33  ;;  %v13624_v33 = vrot.slane %v13607_v55, %v16891_v2  ;;  %v15887_v55 = vld [vmem:[#allocation16] ss:$0 sm:$0xff] }
 0x82b   :  { %v13440_v10 = vpop.f32.mrf.mxu1 }
 0x82c   :  { %v13655_v9 = vadd.f32 %v13638_v24, %v13629_v16  ;;  %v13630_v47 = vmul.f32 %v13616_v15, %v13439_v3  ;;  %v15920_v16 = vld [vmem:[#allocation19] ss:$0 sm:$0xff] }
 0x82d   :  { %v13441_v31 = vpop.f32.mrf.mxu1 }
 0x82e   :  { %v13656_v6 = vadd.f32 %v13642_v29, %v13630_v47  ;;  %v13659_v17 = vmax.f32 %v13655_v9, 0.0 }
 0x830   :  { %v13660_v60 = vmax.f32 %v13656_v6, 0.0  ;;  %v13663_v13 = vpack.c.bf16 %v13659_v17, %v13659_v17 }
 0x832   :  { %v13664_v50 = vpack.c.bf16 %v13660_v60, %v13660_v60 }
 0x834   :  { %13962 = vmatprep.mubr.bf16.mxu0 %v13664_v50 }
 0x835   :  { %13963 = vmatmul.mubr.bf16.vlgmr.msra.gmra.mxu0 %v13663_v13 }
 0x836   :  { %15975 = vmatprep.mubr.msk.bf16.mxu0 %vm16696_vm0, %v16695_v40 }
 0x858   :  { %v13559_v44 = vpop.f32.mrf.mxu0 }
 0x85a   :  { %v13561_v52 = vpop.f32.mrf.mxu0 }
 0x85c   :  { %v13563_v48 = vpop.f32.mrf.mxu0 }
 0x85e   :  { %v13564_v12 = vpop.f32.mrf.mxu0 }
 0x867   :  { %v13518_v37 = vpop.f32.mrf.mxu1 }
 0x868   :  { %v13519_v26 = vadd.f32 %v13518_v37, %v13477_v7  ;;  %v16420_v7 = vld [vmem:[#allocation18 + $0x8] sm:$0xff]  }
 0x869   :  { %v13520_v20 = vpop.f32.mrf.mxu1  ;;  %15972 = vmatpush3.bf16.msra.mxu0 %v16420_v7 }
 0x86a   :  { %v13521_v39 = vadd.f32 %v13520_v20, %v13479_v56  ;;  %v13560_v18 = vadd.f32 %v13559_v44, %v13519_v26  ;;  %15973 = vmatprep.subr.bf16.mxu0 %v16695_v40 }
 0x86b   :  { %v13522_v22 = vpop.f32.mrf.mxu1 }
 0x86c   :  { %v13562_v54 = vadd.f32 %v13561_v52, %v13521_v39 }
 0x86d   :  { %v13523_v32 = vpop.f32.mrf.mxu1  ;;  %15974 = vmatpush3.bf16.msra.mxu0 %v16421_v45 }
 0x8a7   :  { %v13600_v41 = vpop.f32.mrf.mxu1 }
 0x8a8   :  { %v13601_v1 = vadd.f32 %v13600_v41, %v13560_v18 }
 0x8a9   :  { %v13602_v28 = vpop.f32.mrf.mxu1 }
 0x8aa   :  { %v13631_v5 = vmul.f32 %v13620_v27, %v13601_v1  ;;  %v13603_v0 = vadd.f32 %v13602_v28, %v13562_v54 }
 0x8ab   :  { %v13604_v36 = vpop.f32.mrf.mxu1 }
 0x8ac   :  { %v13657_v8 = vadd.f32 %v13646_v62, %v13631_v5  ;;  %v13632_v34 = vmul.f32 %v13624_v33, %v13603_v0 }
 0x8ad   :  { %v13605_v14 = vpop.f32.mrf.mxu1 }
 0x8ae   :  { %v13658_v19 = vadd.f32 %v13650_v25, %v13632_v34  ;;  %v13661_v21 = vmax.f32 %v13657_v8, 0.0 }
 0x8b0   :  { %v13662_v49 = vmax.f32 %v13658_v19, 0.0  ;;  %v13665_v42 = vpack.c.bf16 %v13661_v21, %v13661_v21 }
 0x8b2   :  { %v13666_v46 = vpack.c.bf16 %v13662_v49, %v13662_v49 }
 0x8b4   :  { %14002 = vmatprep.mubr.bf16.mxu1 %v13666_v46 }
 0x8b5   :  { %14003 = vmatmul.mubr.bf16.vlgmr.msra.gmra.mxu1 %v13665_v42 }
 0x8f5   :  { %v15940_v51 = vpop.f32.mrf.mxu0 }
 0x8f7   :  { %v15941_v53 = vpop.f32.mrf.mxu0 }
 0x8f8   :  { %v15942_v11 = vadd.f32 %v15941_v53, %v15940_v51 }
 0x8f9   :  { %v15943_v56 = vpop.f32.mrf.mxu0 }
 0x8fa   :  { %v13965_v58 = vadd.f32 %v15942_v11, %v15887_v55 }
 0x8fb   :  { %v15944_v2 = vpop.f32.mrf.mxu0 }
 0x975   :  { %v15962_v43 = vpop.f32.mrf.mxu1 }
 0x977   :  { %v15963_v35 = vpop.f32.mrf.mxu1 }
 0x978   :  { %v15964_v63 = vadd.f32 %v15963_v35, %v15962_v43 }
 0x979   :  { %v15965_v24 = vpop.f32.mrf.mxu1 }
 0x97a   :  { %v14005_v15 = vadd.f32 %v15964_v63, %v13965_v58 }
 0x97b   :  { %v15966_v57 = vpop.f32.mrf.mxu1 }
 0x97c   :  { %v14010_v4 = vmax.f32 %v14005_v15, 0.0 }
 0x97e   :  { %v14011_v30 = vpack.c.bf16 %v14010_v4, %v14010_v4 }
 0x980   :  { %15976 = vmatmul.mubr.msk.bf16.vlgmr.msra.gmra.mxu0 %vm14035_vm1, %v14011_v30 }
 0xa40   :  { %v14073_v3 = vpop.f32.mrf.mxu0 }
 0xa41   :  { %v14074_v29 = vadd.f32 %v15920_v16, %v14073_v3 }
 0xa42   :  { %v15977_v10 = vpop.f32.mrf.mxu0 }
 0xa43   :  { %14079 = vst [vmem:[%s17405_s14] sm:$0xff] %v14074_v29 }
 0xa44   :  { %v14076_v9 = vpop.f32.mrf.mxu0 }
 0xa46   :  { %v15978_v47 = vpop.f32.mrf.mxu0 }
 0xa47   :  { %14084 = vsyncpa [#allocation3], 1 }
 0xa48   :  { %14085 = vsyncpa [#allocation5], 1 }
 0xa49   :  { %14086 = vsyncpa [#allocation8], 1 }
 0xa4a   :  { %14087 = vsyncpa [#allocation11], 1 }
 0xa4b   :  { %14088 = vsyncpa [#allocation14], 1 }
 0xa4c   :  { %14089 = vsyncpa [#allocation17], 1 }
 0xa4d   :  { %14090 = vsyncpa [#allocation20], 1 }

</bundles_post_ra>
